<compile_context>
chip_gen: v7x
topology: tpu7x:2x2x1
jax: 0.10.0
libtpu: 0.0.40
codegen_flags: <defaults>
</compile_context>

<pallas_src>
import functools

import jax
import jax.numpy as jnp
from jax import lax
from jax.experimental import pallas as pl
from jax.experimental.pallas import tpu as pltpu

BN_EPS = 1e-5


def _fullspec(shape):
    nd = len(shape)
    return pl.BlockSpec(shape, lambda i: (0,) * nd)


def _sigmoid(v):
    # exact sigmoid via one tanh (single EUP push, no approx-recip drift)
    return 0.5 * (jnp.tanh(0.5 * v) + 1.0)


# ======================= kernel A: stem + 3 BiLSTM layers ====================

def _stem_lstm_kernel(x_ref, w0_ref, sb0_ref,
                      wih0_ref, whh0_ref, b0_ref,
                      wih1_ref, whh1_ref, b1_ref,
                      wih2_ref, whh2_ref, b2_ref,
                      o_ref, gxf_scr, gxb_scr, hf_scr, hb_scr):
    f32 = jnp.float32
    L, B, Cin = x_ref.shape
    K, _, H = w0_ref.shape
    T = o_ref.shape[0]
    Pd = K // 2

    # ---- stem: conv k=7 pad=3 as 7 shifted (L*B, Cin) matmuls + BN + ReLU ----
    zpad = jnp.zeros((Pd, B, Cin), f32)
    xpad = jnp.concatenate([zpad, x_ref[...], zpad], axis=0)        # (L+6, B, Cin)
    acc = jnp.zeros((L * B, H), f32)
    for k in range(K):
        acc = acc + jnp.dot(xpad[k:k + L].reshape(L * B, Cin), w0_ref[k],
                            preferred_element_type=f32)
    y = jnp.maximum(acc * sb0_ref[0:1, :] + sb0_ref[1:2, :], 0.0)
    y = y.reshape(L, B, H)

    # ---- maxpool k=3 s=2 p=1, vectorized (pair reshapes, no strided slices) --
    neg = jnp.full((1, B, H), -jnp.inf, f32)
    yp = jnp.concatenate([neg, y, neg], axis=0)                     # (L+2, B, H)
    a = yp[0:2 * T].reshape(T, 2, B, H)
    b = yp[1:2 * T + 1].reshape(T, 2, B, H)
    x = jnp.maximum(jnp.maximum(a[:, 0], a[:, 1]),
                    jnp.maximum(b[:, 0], b[:, 1]))                  # (T, B, H)

    # ---- 3 bidirectional LSTM layers, recurrence fully in VMEM --------------
    for wih_ref, whh_ref, bias_ref in ((wih0_ref, whh0_ref, b0_ref),
                                       (wih1_ref, whh1_ref, b1_ref),
                                       (wih2_ref, whh2_ref, b2_ref)):
        Cl = x.shape[2]
        # one stacked, 128-lane input projection for both directions (+ bias)
        xp = (jnp.dot(x.reshape(T * B, Cl), wih_ref[...],
                      preferred_element_type=f32) + bias_ref[...])
        xp = xp.reshape(T, B, 8 * H)
        gxf_scr[...] = xp[:, :, 0:4 * H]                            # fwd gates
        gxb_scr[...] = xp[:, :, 4 * H:8 * H]                        # bwd gates
        whh_f = whh_ref[0]
        whh_b = whh_ref[1]

        def step(t, carry):
            h_f, c_f, h_b, c_b = carry
            gf = gxf_scr[t] + jnp.dot(h_f, whh_f, preferred_element_type=f32)
            gb = gxb_scr[T - 1 - t] + jnp.dot(h_b, whh_b,
                                              preferred_element_type=f32)
            i_f = _sigmoid(gf[:, 0:H])
            f_f = _sigmoid(gf[:, H:2 * H])
            g_f = jnp.tanh(gf[:, 2 * H:3 * H])
            o_f = _sigmoid(gf[:, 3 * H:4 * H])
            i_b = _sigmoid(gb[:, 0:H])
            f_b = _sigmoid(gb[:, H:2 * H])
            g_b = jnp.tanh(gb[:, 2 * H:3 * H])
            o_b = _sigmoid(gb[:, 3 * H:4 * H])
            c_f = f_f * c_f + i_f * g_f
            c_b = f_b * c_b + i_b * g_b
            h_f = o_f * jnp.tanh(c_f)
            h_b = o_b * jnp.tanh(c_b)
            hf_scr[t] = h_f                                         # out time t
            hb_scr[T - 1 - t] = h_b                                 # out time T-1-t
            return h_f, c_f, h_b, c_b

        zero = jnp.zeros((B, H), f32)
        lax.fori_loop(0, T, step, (zero, zero, zero, zero))
        x = jnp.concatenate([hf_scr[...], hb_scr[...]], axis=-1)    # (T, B, 2H)

    o_ref[...] = x                                                  # bulk store


def stem_lstm_fused(x_lbc, conv0, sb0, lstm_params):
    L, B, _ = x_lbc.shape
    H = conv0.shape[2]
    T = (L + 2 - 3) // 2 + 1
    args = [x_lbc, conv0, sb0]
    for lp in lstm_params:
        args += [lp["wih"], lp["whh"], lp["bias"]]
    return pl.pallas_call(
        _stem_lstm_kernel,
        out_shape=jax.ShapeDtypeStruct((T, B, 2 * H), jnp.float32),
        grid=(1,),
        in_specs=[_fullspec(a.shape) for a in args],
        out_specs=_fullspec((T, B, 2 * H)),
        scratch_shapes=[
            pltpu.VMEM((T, B, 4 * H), jnp.float32),
            pltpu.VMEM((T, B, 4 * H), jnp.float32),
            pltpu.VMEM((T, B, H), jnp.float32),
            pltpu.VMEM((T, B, H), jnp.float32),
        ],
        compiler_params=pltpu.CompilerParams(
            dimension_semantics=("arbitrary",)),
    )(*args)


# ============== kernel B: dense blocks + transitions + tail ==================

def _dense_layer(x, sb1_ref, w1_ref, sb2_ref, w2_ref):
    f32 = jnp.float32
    L, B, Cin = x.shape
    Cmid = w1_ref.shape[1]
    G = w2_ref.shape[2]
    y = jnp.maximum(x * sb1_ref[0:1, :] + sb1_ref[1:2, :], 0.0)
    h = jnp.dot(y.reshape(L * B, Cin), w1_ref[...], preferred_element_type=f32)
    h = jnp.maximum(h * sb2_ref[0:1, :] + sb2_ref[1:2, :], 0.0)
    # conv k=3 pad=1: pad once, three shifted views -> three matmuls
    zrow = jnp.zeros((1, B, Cmid), f32)
    hp = jnp.concatenate([zrow, h.reshape(L, B, Cmid), zrow], axis=0)
    new = (jnp.dot(hp[0:L].reshape(L * B, Cmid), w2_ref[0],
                   preferred_element_type=f32)
           + jnp.dot(hp[1:L + 1].reshape(L * B, Cmid), w2_ref[1],
                     preferred_element_type=f32)
           + jnp.dot(hp[2:L + 2].reshape(L * B, Cmid), w2_ref[2],
                     preferred_element_type=f32))
    return jnp.concatenate([x, new.reshape(L, B, G)], axis=-1)      # cat channels


def _transition(x, sb_ref, w_ref):
    f32 = jnp.float32
    L, B, C = x.shape
    Cout = w_ref.shape[1]
    y = jnp.maximum(x * sb_ref[0:1, :] + sb_ref[1:2, :], 0.0)
    z = jnp.dot(y.reshape(L * B, C), w_ref[...], preferred_element_type=f32)
    z = z.reshape(L, B, Cout)
    Lo = (L - 2) // 2 + 1
    zp = z[0:2 * Lo].reshape(Lo, 2, B, Cout)
    return (zp[:, 0] + zp[:, 1]) * 0.5                              # avgpool 2/2


def _make_dense_tail_kernel(block_config):
    def kernel(*refs):
        it = iter(refs)
        x = next(it)[...]                                           # (L, B, C)
        for bi, num_layers in enumerate(block_config):
            for _ in range(num_layers):
                sb1, w1, sb2, w2 = next(it), next(it), next(it), next(it)
                x = _dense_layer(x, sb1, w1, sb2, w2)
            if bi != len(block_config) - 1:
                sb, w = next(it), next(it)
                x = _transition(x, sb, w)
        sb5_ref = next(it)
        weff_ref = next(it)                                         # (L, 1, C)
        rb_ref = next(it)                                           # (1, 1)
        o_ref = next(it)
        # BN5 + ReLU; avg_pool1d(7,1,3) + channel-major flatten + Linear are
        # pre-folded into weff -> one elementwise mul + full reduce.
        y = jnp.maximum(x * sb5_ref[0:1, :] + sb5_ref[1:2, :], 0.0)
        contrib = jnp.sum(y * weff_ref[...], axis=-1, keepdims=True)  # (L, B, 1)
        o_ref[...] = jnp.sum(contrib, axis=0) + rb_ref[...]           # (B, 1)
    return kernel


def dense_tail_fused(args, block_config):
    B = args[0].shape[1]
    return pl.pallas_call(
        _make_dense_tail_kernel(block_config),
        out_shape=jax.ShapeDtypeStruct((B, 1), jnp.float32),
        grid=(1,),
        in_specs=[_fullspec(a.shape) for a in args],
        out_specs=_fullspec((B, 1)),
        compiler_params=pltpu.CompilerParams(
            dimension_semantics=("arbitrary",)),
    )(*args)


# --------------------------- parameter construction -------------------------

class KeyGen:
    def __init__(self, seed=0):
        self._key = jax.random.PRNGKey(seed)

    def __call__(self):
        self._key, sub = jax.random.split(self._key)
        return sub


def _bn_sb(c):
    # eval-mode BN with gamma=1, beta=0, running_mean=0, running_var=1
    scale = jnp.full((1, c), 1.0 / (1.0 + BN_EPS) ** 0.5, jnp.float32)
    shift = jnp.zeros((1, c), jnp.float32)
    return jnp.concatenate([scale, shift], axis=0)                  # (2, c)


def _conv_w(kg, k, cin, cout):
    std = (2.0 / (k * cin)) ** 0.5                                  # kaiming fan-in
    return std * jax.random.normal(kg(), (k, cin, cout), jnp.float32)


def init_params(kg, input_nc, growth_rate, block_config, num_init_features,
                bn_size, input_length):
    H = num_init_features
    P = {}
    P["conv0"] = _conv_w(kg, 7, input_nc, H)
    P["sb0"] = _bn_sb(H)

    # 3-layer bidirectional LSTM, hidden = num_init_features.
    # wih stacked across directions -> (Cin, 8H); bias = b_ih + b_hh folded.
    bound = 1.0 / (H ** 0.5)
    lstm = []
    for layer in range(3):
        in_size = H if layer == 0 else 2 * H
        wih = jax.random.uniform(kg(), (in_size, 8 * H), jnp.float32,
                                 -bound, bound)
        whh = jax.random.uniform(kg(), (2, H, 4 * H), jnp.float32,
                                 -bound, bound)
        b_ih = jax.random.uniform(kg(), (1, 8 * H), jnp.float32, -bound, bound)
        b_hh = jax.random.uniform(kg(), (1, 8 * H), jnp.float32, -bound, bound)
        lstm.append(dict(wih=wih, whh=whh, bias=b_ih + b_hh))
    P["lstm"] = lstm

    num_features = 2 * H
    length = (input_length + 2 - 3) // 2 + 1                        # pool0 length
    blocks, trans = [], []
    for bi, num_layers in enumerate(block_config):
        layers = []
        for li in range(num_layers):
            cin = num_features + li * growth_rate
            cmid = bn_size * growth_rate
            layers.append(dict(
                sb1=_bn_sb(cin),
                w1=_conv_w(kg, 1, cin, cmid)[0],                    # (cin, cmid)
                sb2=_bn_sb(cmid),
                w2=_conv_w(kg, 3, cmid, growth_rate),               # (3, cmid, g)
            ))
        blocks.append(layers)
        num_features += num_layers * growth_rate
        if bi != len(block_config) - 1:
            trans.append(dict(
                sb=_bn_sb(num_features),
                w=_conv_w(kg, 1, num_features, num_features // 2)[0]))
            num_features //= 2
            length = (length - 2) // 2 + 1
    P["blocks"] = blocks
    P["trans"] = trans
    P["sb5"] = _bn_sb(num_features)

    # Final Linear.  Fold (a) the channel-major view(B, C*L) flatten and
    # (b) avg_pool1d(k=7, s=1, p=3, count_include_pad=True) — both linear —
    # into one (L, 1, C) weight at init time (per perf review).
    flat = length * num_features
    wb = 1.0 / (flat ** 0.5)
    ratio_w = jax.random.uniform(kg(), (flat, 1), jnp.float32, -wb, wb)
    w_lc = ratio_w.reshape(num_features, length).T                  # (L, C)
    rows = []
    for m in range(length):
        lo, hi = max(0, m - 3), min(length, m + 4)
        rows.append(jnp.sum(w_lc[lo:hi], axis=0, keepdims=True) / 7.0)
    P["w_eff"] = jnp.concatenate(rows, axis=0).reshape(length, 1, num_features)
    P["ratio_b"] = jnp.zeros((1, 1), jnp.float32)                   # Linear bias 0
    return P


# --------------------------------- forward ----------------------------------

def dense_lstm_forward(x_ncw, P, block_config):
    # x_ncw: (B, Cin, L) PyTorch NCW input -> time-major (L, B, Cin)
    x = jnp.transpose(x_ncw, (2, 0, 1)).astype(jnp.float32)

    # kernel A: conv0+BN+ReLU+maxpool + 3 bidirectional LSTM layers
    feat = stem_lstm_fused(x, P["conv0"], P["sb0"], P["lstm"])      # (T, B, 2H)

    # kernel B: all dense blocks + transitions + norm5/relu/pool/flatten/linear
    args = [feat]
    for bi, num_layers in enumerate(block_config):
        for li in range(num_layers):
            p = P["blocks"][bi][li]
            args += [p["sb1"], p["w1"], p["sb2"], p["w2"]]
        if bi != len(block_config) - 1:
            t = P["trans"][bi]
            args += [t["sb"], t["w"]]
    args += [P["sb5"], P["w_eff"], P["ratio_b"]]
    out = dense_tail_fused(args, block_config)                      # (B, 1)
    return out[:, 0]                                                # squeeze(-1)


# ---------------------------------- main -------------------------------------

if __name__ == "__main__":
    # small, consistent hyper-params (constructor args of DenseLSTM)
    input_nc = 4
    growth_rate = 8
    block_config = (2, 2, 4, 2)
    num_init_features = 16
    bn_size = 2
    input_length = 32
    batch = 2

    kg = KeyGen(0)
    params = init_params(kg, input_nc, growth_rate, block_config,
                         num_init_features, bn_size, input_length)

    x = jax.random.normal(jax.random.PRNGKey(0),
                          (batch, input_nc, input_length), jnp.float32)

    fwd = jax.jit(functools.partial(dense_lstm_forward,
                                    block_config=block_config))
    out = fwd(x, params)
    jax.block_until_ready(out)
    assert out.shape == (batch,), out.shape
    assert bool(jnp.all(jnp.isfinite(out)))
    print("KERNEL_OK")
</pallas_src>

<mosaic_0001>
module attributes {stable_mosaic.version = 11 : i64} {
  func.func @_stem_lstm_kernel(%arg0: i32, %arg1: memref<32x2x4xf32, #tpu.memory_space<vmem>>, %arg2: memref<7x4x16xf32, #tpu.memory_space<vmem>>, %arg3: memref<2x16xf32, #tpu.memory_space<vmem>>, %arg4: memref<16x128xf32, #tpu.memory_space<vmem>>, %arg5: memref<2x16x64xf32, #tpu.memory_space<vmem>>, %arg6: memref<1x128xf32, #tpu.memory_space<vmem>>, %arg7: memref<32x128xf32, #tpu.memory_space<vmem>>, %arg8: memref<2x16x64xf32, #tpu.memory_space<vmem>>, %arg9: memref<1x128xf32, #tpu.memory_space<vmem>>, %arg10: memref<32x128xf32, #tpu.memory_space<vmem>>, %arg11: memref<2x16x64xf32, #tpu.memory_space<vmem>>, %arg12: memref<1x128xf32, #tpu.memory_space<vmem>>, %arg13: memref<16x2x32xf32, #tpu.memory_space<vmem>>, %arg14: memref<16x2x64xf32, #tpu.memory_space<vmem>>, %arg15: memref<16x2x64xf32, #tpu.memory_space<vmem>>, %arg16: memref<16x2x16xf32, #tpu.memory_space<vmem>>, %arg17: memref<16x2x16xf32, #tpu.memory_space<vmem>>) attributes {dimension_semantics = [#tpu.dimension_semantics<arbitrary>], iteration_bounds = array<i64: 1>, scalar_prefetch = 0 : i64, scratch_operands = 4 : i64, tpu.core_type = #tpu.core_type<tc>, window_params = [{pipeline_mode = #tpu.pipeline_mode<synchronous>, transform_indices = @transform_0, window_bounds = array<i64: 32, 2, 4>}, {pipeline_mode = #tpu.pipeline_mode<synchronous>, transform_indices = @transform_1, window_bounds = array<i64: 7, 4, 16>}, {pipeline_mode = #tpu.pipeline_mode<synchronous>, transform_indices = @transform_2, window_bounds = array<i64: 2, 16>}, {pipeline_mode = #tpu.pipeline_mode<synchronous>, transform_indices = @transform_3, window_bounds = array<i64: 16, 128>}, {pipeline_mode = #tpu.pipeline_mode<synchronous>, transform_indices = @transform_4, window_bounds = array<i64: 2, 16, 64>}, {pipeline_mode = #tpu.pipeline_mode<synchronous>, transform_indices = @transform_5, window_bounds = array<i64: 1, 128>}, {pipeline_mode = #tpu.pipeline_mode<synchronous>, transform_indices = @transform_6, window_bounds = array<i64: 32, 128>}, {pipeline_mode = #tpu.pipeline_mode<synchronous>, transform_indices = @transform_7, window_bounds = array<i64: 2, 16, 64>}, {pipeline_mode = #tpu.pipeline_mode<synchronous>, transform_indices = @transform_8, window_bounds = array<i64: 1, 128>}, {pipeline_mode = #tpu.pipeline_mode<synchronous>, transform_indices = @transform_9, window_bounds = array<i64: 32, 128>}, {pipeline_mode = #tpu.pipeline_mode<synchronous>, transform_indices = @transform_10, window_bounds = array<i64: 2, 16, 64>}, {pipeline_mode = #tpu.pipeline_mode<synchronous>, transform_indices = @transform_11, window_bounds = array<i64: 1, 128>}, {pipeline_mode = #tpu.pipeline_mode<synchronous>, transform_indices = @transform_12, window_bounds = array<i64: 16, 2, 32>}]} {
    %cst = arith.constant 0.000000e+00 : f32
    %0 = vector.broadcast %cst : f32 to vector<3x2x4xf32>
    %c0 = arith.constant 0 : index
    %c0_0 = arith.constant 0 : index
    %c0_1 = arith.constant 0 : index
    %1 = vector.load %arg1[%c0, %c0_0, %c0_1] : memref<32x2x4xf32, #tpu.memory_space<vmem>>, vector<32x2x4xf32>
    %2 = tpu.concatenate %0, %1, %0 in 0 : vector<3x2x4xf32>, vector<32x2x4xf32>, vector<3x2x4xf32> -> vector<38x2x4xf32>
    %cst_2 = arith.constant 0.000000e+00 : f32
    %3 = vector.broadcast %cst_2 : f32 to vector<64x16xf32>
    %4 = vector.extract_strided_slice %2 {offsets = [0, 0, 0], sizes = [32, 2, 4], strides = [1, 1, 1]} : vector<38x2x4xf32> to vector<32x2x4xf32>
    %5 = vector.shape_cast %4 : vector<32x2x4xf32> to vector<64x4xf32>
    %c0_3 = arith.constant 0 : index
    %c0_4 = arith.constant 0 : index
    %c0_5 = arith.constant 0 : index
    %6 = vector.load %arg2[%c0_3, %c0_4, %c0_5] : memref<7x4x16xf32, #tpu.memory_space<vmem>>, vector<1x4x16xf32>
    %7 = vector.shape_cast %6 : vector<1x4x16xf32> to vector<4x16xf32>
    %cst_6 = arith.constant dense<0.000000e+00> : vector<64x16xf32>
    %8 = tpu.matmul %5, %7, %cst_6 {dimension_numbers = #tpu.dot_dimension_numbers<[1], [0], [0], [1], [0, 0, 1, 1], [], []>} : vector<64x4xf32>, vector<4x16xf32>, vector<64x16xf32> -> vector<64x16xf32>
    %9 = arith.addf %3, %8 : vector<64x16xf32>
    %10 = vector.extract_strided_slice %2 {offsets = [1, 0, 0], sizes = [32, 2, 4], strides = [1, 1, 1]} : vector<38x2x4xf32> to vector<32x2x4xf32>
    %11 = vector.shape_cast %10 : vector<32x2x4xf32> to vector<64x4xf32>
    %c1 = arith.constant 1 : index
    %c0_7 = arith.constant 0 : index
    %c0_8 = arith.constant 0 : index
    %12 = vector.load %arg2[%c1, %c0_7, %c0_8] : memref<7x4x16xf32, #tpu.memory_space<vmem>>, vector<1x4x16xf32>
    %13 = vector.shape_cast %12 : vector<1x4x16xf32> to vector<4x16xf32>
    %cst_9 = arith.constant dense<0.000000e+00> : vector<64x16xf32>
    %14 = tpu.matmul %11, %13, %cst_9 {dimension_numbers = #tpu.dot_dimension_numbers<[1], [0], [0], [1], [0, 0, 1, 1], [], []>} : vector<64x4xf32>, vector<4x16xf32>, vector<64x16xf32> -> vector<64x16xf32>
    %15 = arith.addf %9, %14 : vector<64x16xf32>
    %16 = vector.extract_strided_slice %2 {offsets = [2, 0, 0], sizes = [32, 2, 4], strides = [1, 1, 1]} : vector<38x2x4xf32> to vector<32x2x4xf32>
    %17 = vector.shape_cast %16 : vector<32x2x4xf32> to vector<64x4xf32>
    %c2 = arith.constant 2 : index
    %c0_10 = arith.constant 0 : index
    %c0_11 = arith.constant 0 : index
    %18 = vector.load %arg2[%c2, %c0_10, %c0_11] : memref<7x4x16xf32, #tpu.memory_space<vmem>>, vector<1x4x16xf32>
    %19 = vector.shape_cast %18 : vector<1x4x16xf32> to vector<4x16xf32>
    %cst_12 = arith.constant dense<0.000000e+00> : vector<64x16xf32>
    %20 = tpu.matmul %17, %19, %cst_12 {dimension_numbers = #tpu.dot_dimension_numbers<[1], [0], [0], [1], [0, 0, 1, 1], [], []>} : vector<64x4xf32>, vector<4x16xf32>, vector<64x16xf32> -> vector<64x16xf32>
    %21 = arith.addf %15, %20 : vector<64x16xf32>
    %22 = vector.extract_strided_slice %2 {offsets = [3, 0, 0], sizes = [32, 2, 4], strides = [1, 1, 1]} : vector<38x2x4xf32> to vector<32x2x4xf32>
    %23 = vector.shape_cast %22 : vector<32x2x4xf32> to vector<64x4xf32>
    %c3 = arith.constant 3 : index
    %c0_13 = arith.constant 0 : index
    %c0_14 = arith.constant 0 : index
    %24 = vector.load %arg2[%c3, %c0_13, %c0_14] : memref<7x4x16xf32, #tpu.memory_space<vmem>>, vector<1x4x16xf32>
    %25 = vector.shape_cast %24 : vector<1x4x16xf32> to vector<4x16xf32>
    %cst_15 = arith.constant dense<0.000000e+00> : vector<64x16xf32>
    %26 = tpu.matmul %23, %25, %cst_15 {dimension_numbers = #tpu.dot_dimension_numbers<[1], [0], [0], [1], [0, 0, 1, 1], [], []>} : vector<64x4xf32>, vector<4x16xf32>, vector<64x16xf32> -> vector<64x16xf32>
    %27 = arith.addf %21, %26 : vector<64x16xf32>
    %28 = vector.extract_strided_slice %2 {offsets = [4, 0, 0], sizes = [32, 2, 4], strides = [1, 1, 1]} : vector<38x2x4xf32> to vector<32x2x4xf32>
    %29 = vector.shape_cast %28 : vector<32x2x4xf32> to vector<64x4xf32>
    %c4 = arith.constant 4 : index
    %c0_16 = arith.constant 0 : index
    %c0_17 = arith.constant 0 : index
    %30 = vector.load %arg2[%c4, %c0_16, %c0_17] : memref<7x4x16xf32, #tpu.memory_space<vmem>>, vector<1x4x16xf32>
    %31 = vector.shape_cast %30 : vector<1x4x16xf32> to vector<4x16xf32>
    %cst_18 = arith.constant dense<0.000000e+00> : vector<64x16xf32>
    %32 = tpu.matmul %29, %31, %cst_18 {dimension_numbers = #tpu.dot_dimension_numbers<[1], [0], [0], [1], [0, 0, 1, 1], [], []>} : vector<64x4xf32>, vector<4x16xf32>, vector<64x16xf32> -> vector<64x16xf32>
    %33 = arith.addf %27, %32 : vector<64x16xf32>
    %34 = vector.extract_strided_slice %2 {offsets = [5, 0, 0], sizes = [32, 2, 4], strides = [1, 1, 1]} : vector<38x2x4xf32> to vector<32x2x4xf32>
    %35 = vector.shape_cast %34 : vector<32x2x4xf32> to vector<64x4xf32>
    %c5 = arith.constant 5 : index
    %c0_19 = arith.constant 0 : index
    %c0_20 = arith.constant 0 : index
    %36 = vector.load %arg2[%c5, %c0_19, %c0_20] : memref<7x4x16xf32, #tpu.memory_space<vmem>>, vector<1x4x16xf32>
    %37 = vector.shape_cast %36 : vector<1x4x16xf32> to vector<4x16xf32>
    %cst_21 = arith.constant dense<0.000000e+00> : vector<64x16xf32>
    %38 = tpu.matmul %35, %37, %cst_21 {dimension_numbers = #tpu.dot_dimension_numbers<[1], [0], [0], [1], [0, 0, 1, 1], [], []>} : vector<64x4xf32>, vector<4x16xf32>, vector<64x16xf32> -> vector<64x16xf32>
    %39 = arith.addf %33, %38 : vector<64x16xf32>
    %40 = vector.extract_strided_slice %2 {offsets = [6, 0, 0], sizes = [32, 2, 4], strides = [1, 1, 1]} : vector<38x2x4xf32> to vector<32x2x4xf32>
    %41 = vector.shape_cast %40 : vector<32x2x4xf32> to vector<64x4xf32>
    %c6 = arith.constant 6 : index
    %c0_22 = arith.constant 0 : index
    %c0_23 = arith.constant 0 : index
    %42 = vector.load %arg2[%c6, %c0_22, %c0_23] : memref<7x4x16xf32, #tpu.memory_space<vmem>>, vector<1x4x16xf32>
    %43 = vector.shape_cast %42 : vector<1x4x16xf32> to vector<4x16xf32>
    %cst_24 = arith.constant dense<0.000000e+00> : vector<64x16xf32>
    %44 = tpu.matmul %41, %43, %cst_24 {dimension_numbers = #tpu.dot_dimension_numbers<[1], [0], [0], [1], [0, 0, 1, 1], [], []>} : vector<64x4xf32>, vector<4x16xf32>, vector<64x16xf32> -> vector<64x16xf32>
    %45 = arith.addf %39, %44 : vector<64x16xf32>
    %c0_25 = arith.constant 0 : index
    %c0_26 = arith.constant 0 : index
    %46 = vector.load %arg3[%c0_25, %c0_26] : memref<2x16xf32, #tpu.memory_space<vmem>>, vector<1x16xf32>
    %47 = vector.broadcast %46 : vector<1x16xf32> to vector<64x16xf32>
    %48 = arith.mulf %45, %47 : vector<64x16xf32>
    %c1_27 = arith.constant 1 : index
    %c0_28 = arith.constant 0 : index
    %49 = vector.load %arg3[%c1_27, %c0_28] : memref<2x16xf32, #tpu.memory_space<vmem>>, vector<1x16xf32>
    %50 = vector.broadcast %49 : vector<1x16xf32> to vector<64x16xf32>
    %51 = arith.addf %48, %50 : vector<64x16xf32>
    %cst_29 = arith.constant 0.000000e+00 : f32
    %52 = vector.broadcast %cst_29 : f32 to vector<64x16xf32>
    %53 = arith.maximumf %51, %52 : vector<64x16xf32>
    %54 = vector.shape_cast %53 : vector<64x16xf32> to vector<32x2x16xf32>
    %cst_30 = arith.constant 0xFF800000 : f32
    %55 = vector.broadcast %cst_30 : f32 to vector<1x2x16xf32>
    %56 = tpu.concatenate %55, %54, %55 in 0 : vector<1x2x16xf32>, vector<32x2x16xf32>, vector<1x2x16xf32> -> vector<34x2x16xf32>
    %57 = vector.extract_strided_slice %56 {offsets = [0, 0, 0], sizes = [32, 2, 16], strides = [1, 1, 1]} : vector<34x2x16xf32> to vector<32x2x16xf32>
    %58 = vector.shape_cast %57 : vector<32x2x16xf32> to vector<16x2x2x16xf32>
    %59 = vector.extract_strided_slice %56 {offsets = [1, 0, 0], sizes = [32, 2, 16], strides = [1, 1, 1]} : vector<34x2x16xf32> to vector<32x2x16xf32>
    %60 = vector.shape_cast %59 : vector<32x2x16xf32> to vector<16x2x2x16xf32>
    %61 = vector.extract_strided_slice %58 {offsets = [0, 0, 0, 0], sizes = [16, 1, 2, 16], strides = [1, 1, 1, 1]} : vector<16x2x2x16xf32> to vector<16x1x2x16xf32>
    %62 = vector.shape_cast %61 : vector<16x1x2x16xf32> to vector<16x2x16xf32>
    %63 = vector.extract_strided_slice %58 {offsets = [0, 1, 0, 0], sizes = [16, 1, 2, 16], strides = [1, 1, 1, 1]} : vector<16x2x2x16xf32> to vector<16x1x2x16xf32>
    %64 = vector.shape_cast %63 : vector<16x1x2x16xf32> to vector<16x2x16xf32>
    %65 = arith.maximumf %62, %64 : vector<16x2x16xf32>
    %66 = vector.extract_strided_slice %60 {offsets = [0, 0, 0, 0], sizes = [16, 1, 2, 16], strides = [1, 1, 1, 1]} : vector<16x2x2x16xf32> to vector<16x1x2x16xf32>
    %67 = vector.shape_cast %66 : vector<16x1x2x16xf32> to vector<16x2x16xf32>
    %68 = vector.extract_strided_slice %60 {offsets = [0, 1, 0, 0], sizes = [16, 1, 2, 16], strides = [1, 1, 1, 1]} : vector<16x2x2x16xf32> to vector<16x1x2x16xf32>
    %69 = vector.shape_cast %68 : vector<16x1x2x16xf32> to vector<16x2x16xf32>
    %70 = arith.maximumf %67, %69 : vector<16x2x16xf32>
    %71 = arith.maximumf %65, %70 : vector<16x2x16xf32>
    %72 = vector.shape_cast %71 : vector<16x2x16xf32> to vector<32x16xf32>
    %c0_31 = arith.constant 0 : index
    %c0_32 = arith.constant 0 : index
    %73 = vector.load %arg4[%c0_31, %c0_32] : memref<16x128xf32, #tpu.memory_space<vmem>>, vector<16x128xf32>
    %cst_33 = arith.constant dense<0.000000e+00> : vector<32x128xf32>
    %74 = tpu.matmul %72, %73, %cst_33 {dimension_numbers = #tpu.dot_dimension_numbers<[1], [0], [0], [1], [0, 0, 1, 1], [], []>} : vector<32x16xf32>, vector<16x128xf32>, vector<32x128xf32> -> vector<32x128xf32>
    %c0_34 = arith.constant 0 : index
    %c0_35 = arith.constant 0 : index
    %75 = vector.load %arg6[%c0_34, %c0_35] : memref<1x128xf32, #tpu.memory_space<vmem>>, vector<1x128xf32>
    %76 = vector.broadcast %75 : vector<1x128xf32> to vector<32x128xf32>
    %77 = arith.addf %74, %76 : vector<32x128xf32>
    %78 = vector.shape_cast %77 : vector<32x128xf32> to vector<16x2x128xf32>
    %79 = vector.extract_strided_slice %78 {offsets = [0, 0, 0], sizes = [16, 2, 64], strides = [1, 1, 1]} : vector<16x2x128xf32> to vector<16x2x64xf32>
    %c0_36 = arith.constant 0 : index
    %c0_37 = arith.constant 0 : index
    %c0_38 = arith.constant 0 : index
    %80 = vector.load %arg14[%c0_36, %c0_37, %c0_38] : memref<16x2x64xf32, #tpu.memory_space<vmem>>, vector<16x2x64xf32>
    tpu.vector_store %arg14[%c0_36, %c0_37, %c0_38], %79 {strides = array<i32>} : memref<16x2x64xf32, #tpu.memory_space<vmem>>, vector<16x2x64xf32>,
    %81 = vector.extract_strided_slice %78 {offsets = [0, 0, 64], sizes = [16, 2, 64], strides = [1, 1, 1]} : vector<16x2x128xf32> to vector<16x2x64xf32>
    %c0_39 = arith.constant 0 : index
    %c0_40 = arith.constant 0 : index
    %c0_41 = arith.constant 0 : index
    %82 = vector.load %arg15[%c0_39, %c0_40, %c0_41] : memref<16x2x64xf32, #tpu.memory_space<vmem>>, vector<16x2x64xf32>
    tpu.vector_store %arg15[%c0_39, %c0_40, %c0_41], %81 {strides = array<i32>} : memref<16x2x64xf32, #tpu.memory_space<vmem>>, vector<16x2x64xf32>,
    %c0_42 = arith.constant 0 : index
    %c0_43 = arith.constant 0 : index
    %c0_44 = arith.constant 0 : index
    %83 = vector.load %arg5[%c0_42, %c0_43, %c0_44] : memref<2x16x64xf32, #tpu.memory_space<vmem>>, vector<1x16x64xf32>
    %84 = vector.shape_cast %83 : vector<1x16x64xf32> to vector<16x64xf32>
    %c1_45 = arith.constant 1 : index
    %c0_46 = arith.constant 0 : index
    %c0_47 = arith.constant 0 : index
    %85 = vector.load %arg5[%c1_45, %c0_46, %c0_47] : memref<2x16x64xf32, #tpu.memory_space<vmem>>, vector<1x16x64xf32>
    %86 = vector.shape_cast %85 : vector<1x16x64xf32> to vector<16x64xf32>
    %cst_48 = arith.constant 0.000000e+00 : f32
    %87 = vector.broadcast %cst_48 : f32 to vector<2x16xf32>
    %c0_i32 = arith.constant 0 : i32
    %c16_i32 = arith.constant 16 : i32
    %88 = arith.addi %c0_i32, %c16_i32 : i32
    %c1_i32 = arith.constant 1 : i32
    %89:4 = scf.for %arg18 = %c0_i32 to %88 step %c1_i32 iter_args(%arg19 = %87, %arg20 = %87, %arg21 = %87, %arg22 = %87) -> (vector<2x16xf32>, vector<2x16xf32>, vector<2x16xf32>, vector<2x16xf32>)  : i32 {
      %136 = arith.index_cast %arg18 : i32 to index
      %c0_115 = arith.constant 0 : index
      %c0_116 = arith.constant 0 : index
      %137 = vector.load %arg14[%136, %c0_115, %c0_116] : memref<16x2x64xf32, #tpu.memory_space<vmem>>, vector<1x2x64xf32>
      %138 = vector.shape_cast %137 : vector<1x2x64xf32> to vector<2x64xf32>
      %cst_117 = arith.constant dense<0.000000e+00> : vector<2x64xf32>
      %139 = tpu.matmul %arg19, %84, %cst_117 {dimension_numbers = #tpu.dot_dimension_numbers<[1], [0], [0], [1], [0, 0, 1, 1], [], []>} : vector<2x16xf32>, vector<16x64xf32>, vector<2x64xf32> -> vector<2x64xf32>
      %140 = arith.addf %138, %139 : vector<2x64xf32>
      %c15_i32 = arith.constant 15 : i32
      %141 = arith.subi %c15_i32, %arg18 : i32
      %142 = arith.index_cast %141 : i32 to index
      %c0_118 = arith.constant 0 : index
      %c0_119 = arith.constant 0 : index
      %143 = vector.load %arg15[%142, %c0_118, %c0_119] : memref<16x2x64xf32, #tpu.memory_space<vmem>>, vector<1x2x64xf32>
      %144 = vector.shape_cast %143 : vector<1x2x64xf32> to vector<2x64xf32>
      %cst_120 = arith.constant dense<0.000000e+00> : vector<2x64xf32>
      %145 = tpu.matmul %arg21, %86, %cst_120 {dimension_numbers = #tpu.dot_dimension_numbers<[1], [0], [0], [1], [0, 0, 1, 1], [], []>} : vector<2x16xf32>, vector<16x64xf32>, vector<2x64xf32> -> vector<2x64xf32>
      %146 = arith.addf %144, %145 : vector<2x64xf32>
      %147 = vector.extract_strided_slice %140 {offsets = [0, 0], sizes = [2, 16], strides = [1, 1]} : vector<2x64xf32> to vector<2x16xf32>
      %cst_121 = arith.constant 5.000000e-01 : f32
      %148 = vector.broadcast %cst_121 : f32 to vector<2x16xf32>
      %149 = arith.mulf %148, %147 : vector<2x16xf32>
      %150 = math.tanh %149 : vector<2x16xf32>
      %cst_122 = arith.constant 1.000000e+00 : f32
      %151 = vector.broadcast %cst_122 : f32 to vector<2x16xf32>
      %152 = arith.addf %150, %151 : vector<2x16xf32>
      %cst_123 = arith.constant 5.000000e-01 : f32
      %153 = vector.broadcast %cst_123 : f32 to vector<2x16xf32>
      %154 = arith.mulf %153, %152 : vector<2x16xf32>
      %155 = vector.extract_strided_slice %140 {offsets = [0, 16], sizes = [2, 16], strides = [1, 1]} : vector<2x64xf32> to vector<2x16xf32>
      %cst_124 = arith.constant 5.000000e-01 : f32
      %156 = vector.broadcast %cst_124 : f32 to vector<2x16xf32>
      %157 = arith.mulf %156, %155 : vector<2x16xf32>
      %158 = math.tanh %157 : vector<2x16xf32>
      %cst_125 = arith.constant 1.000000e+00 : f32
      %159 = vector.broadcast %cst_125 : f32 to vector<2x16xf32>
      %160 = arith.addf %158, %159 : vector<2x16xf32>
      %cst_126 = arith.constant 5.000000e-01 : f32
      %161 = vector.broadcast %cst_126 : f32 to vector<2x16xf32>
      %162 = arith.mulf %161, %160 : vector<2x16xf32>
      %163 = vector.extract_strided_slice %140 {offsets = [0, 32], sizes = [2, 16], strides = [1, 1]} : vector<2x64xf32> to vector<2x16xf32>
      %164 = math.tanh %163 : vector<2x16xf32>
      %165 = vector.extract_strided_slice %140 {offsets = [0, 48], sizes = [2, 16], strides = [1, 1]} : vector<2x64xf32> to vector<2x16xf32>
      %cst_127 = arith.constant 5.000000e-01 : f32
      %166 = vector.broadcast %cst_127 : f32 to vector<2x16xf32>
      %167 = arith.mulf %166, %165 : vector<2x16xf32>
      %168 = math.tanh %167 : vector<2x16xf32>
      %cst_128 = arith.constant 1.000000e+00 : f32
      %169 = vector.broadcast %cst_128 : f32 to vector<2x16xf32>
      %170 = arith.addf %168, %169 : vector<2x16xf32>
      %cst_129 = arith.constant 5.000000e-01 : f32
      %171 = vector.broadcast %cst_129 : f32 to vector<2x16xf32>
      %172 = arith.mulf %171, %170 : vector<2x16xf32>
      %173 = vector.extract_strided_slice %146 {offsets = [0, 0], sizes = [2, 16], strides = [1, 1]} : vector<2x64xf32> to vector<2x16xf32>
      %cst_130 = arith.constant 5.000000e-01 : f32
      %174 = vector.broadcast %cst_130 : f32 to vector<2x16xf32>
      %175 = arith.mulf %174, %173 : vector<2x16xf32>
      %176 = math.tanh %175 : vector<2x16xf32>
      %cst_131 = arith.constant 1.000000e+00 : f32
      %177 = vector.broadcast %cst_131 : f32 to vector<2x16xf32>
      %178 = arith.addf %176, %177 : vector<2x16xf32>
      %cst_132 = arith.constant 5.000000e-01 : f32
      %179 = vector.broadcast %cst_132 : f32 to vector<2x16xf32>
      %180 = arith.mulf %179, %178 : vector<2x16xf32>
      %181 = vector.extract_strided_slice %146 {offsets = [0, 16], sizes = [2, 16], strides = [1, 1]} : vector<2x64xf32> to vector<2x16xf32>
      %cst_133 = arith.constant 5.000000e-01 : f32
      %182 = vector.broadcast %cst_133 : f32 to vector<2x16xf32>
      %183 = arith.mulf %182, %181 : vector<2x16xf32>
      %184 = math.tanh %183 : vector<2x16xf32>
      %cst_134 = arith.constant 1.000000e+00 : f32
      %185 = vector.broadcast %cst_134 : f32 to vector<2x16xf32>
      %186 = arith.addf %184, %185 : vector<2x16xf32>
      %cst_135 = arith.constant 5.000000e-01 : f32
      %187 = vector.broadcast %cst_135 : f32 to vector<2x16xf32>
      %188 = arith.mulf %187, %186 : vector<2x16xf32>
      %189 = vector.extract_strided_slice %146 {offsets = [0, 32], sizes = [2, 16], strides = [1, 1]} : vector<2x64xf32> to vector<2x16xf32>
      %190 = math.tanh %189 : vector<2x16xf32>
      %191 = vector.extract_strided_slice %146 {offsets = [0, 48], sizes = [2, 16], strides = [1, 1]} : vector<2x64xf32> to vector<2x16xf32>
      %cst_136 = arith.constant 5.000000e-01 : f32
      %192 = vector.broadcast %cst_136 : f32 to vector<2x16xf32>
      %193 = arith.mulf %192, %191 : vector<2x16xf32>
      %194 = math.tanh %193 : vector<2x16xf32>
      %cst_137 = arith.constant 1.000000e+00 : f32
      %195 = vector.broadcast %cst_137 : f32 to vector<2x16xf32>
      %196 = arith.addf %194, %195 : vector<2x16xf32>
      %cst_138 = arith.constant 5.000000e-01 : f32
      %197 = vector.broadcast %cst_138 : f32 to vector<2x16xf32>
      %198 = arith.mulf %197, %196 : vector<2x16xf32>
      %199 = arith.mulf %162, %arg20 : vector<2x16xf32>
      %200 = arith.mulf %154, %164 : vector<2x16xf32>
      %201 = arith.addf %199, %200 : vector<2x16xf32>
      %202 = arith.mulf %188, %arg22 : vector<2x16xf32>
      %203 = arith.mulf %180, %190 : vector<2x16xf32>
      %204 = arith.addf %202, %203 : vector<2x16xf32>
      %205 = math.tanh %201 : vector<2x16xf32>
      %206 = arith.mulf %172, %205 : vector<2x16xf32>
      %207 = math.tanh %204 : vector<2x16xf32>
      %208 = arith.mulf %198, %207 : vector<2x16xf32>
      %209 = arith.index_cast %arg18 : i32 to index
      %c0_139 = arith.constant 0 : index
      %c0_140 = arith.constant 0 : index
      %210 = vector.load %arg16[%209, %c0_139, %c0_140] : memref<16x2x16xf32, #tpu.memory_space<vmem>>, vector<1x2x16xf32>
      %211 = vector.shape_cast %210 : vector<1x2x16xf32> to vector<2x16xf32>
      %212 = vector.shape_cast %206 : vector<2x16xf32> to vector<1x2x16xf32>
      tpu.vector_store %arg16[%209, %c0_139, %c0_140], %212 {strides = array<i32>} : memref<16x2x16xf32, #tpu.memory_space<vmem>>, vector<1x2x16xf32>,
      %c15_i32_141 = arith.constant 15 : i32
      %213 = arith.subi %c15_i32_141, %arg18 : i32
      %214 = arith.index_cast %213 : i32 to index
      %c0_142 = arith.constant 0 : index
      %c0_143 = arith.constant 0 : index
      %215 = vector.load %arg17[%214, %c0_142, %c0_143] : memref<16x2x16xf32, #tpu.memory_space<vmem>>, vector<1x2x16xf32>
      %216 = vector.shape_cast %215 : vector<1x2x16xf32> to vector<2x16xf32>
      %217 = vector.shape_cast %208 : vector<2x16xf32> to vector<1x2x16xf32>
      tpu.vector_store %arg17[%214, %c0_142, %c0_143], %217 {strides = array<i32>} : memref<16x2x16xf32, #tpu.memory_space<vmem>>, vector<1x2x16xf32>,
      scf.yield %206, %201, %208, %204 : vector<2x16xf32>, vector<2x16xf32>, vector<2x16xf32>, vector<2x16xf32>
    }
    %c16_i32_49 = arith.constant 16 : i32
    %c0_50 = arith.constant 0 : index
    %c0_51 = arith.constant 0 : index
    %c0_52 = arith.constant 0 : index
    %90 = vector.load %arg16[%c0_50, %c0_51, %c0_52] : memref<16x2x16xf32, #tpu.memory_space<vmem>>, vector<16x2x16xf32>
    %c0_53 = arith.constant 0 : index
    %c0_54 = arith.constant 0 : index
    %c0_55 = arith.constant 0 : index
    %91 = vector.load %arg17[%c0_53, %c0_54, %c0_55] : memref<16x2x16xf32, #tpu.memory_space<vmem>>, vector<16x2x16xf32>
    %92 = tpu.concatenate %90, %91 in 2 : vector<16x2x16xf32>, vector<16x2x16xf32> -> vector<16x2x32xf32>
    %93 = vector.shape_cast %92 : vector<16x2x32xf32> to vector<32x32xf32>
    %c0_56 = arith.constant 0 : index
    %c0_57 = arith.constant 0 : index
    %94 = vector.load %arg7[%c0_56, %c0_57] : memref<32x128xf32, #tpu.memory_space<vmem>>, vector<32x128xf32>
    %cst_58 = arith.constant dense<0.000000e+00> : vector<32x128xf32>
    %95 = tpu.matmul %93, %94, %cst_58 {dimension_numbers = #tpu.dot_dimension_numbers<[1], [0], [0], [1], [0, 0, 1, 1], [], []>} : vector<32x32xf32>, vector<32x128xf32>, vector<32x128xf32> -> vector<32x128xf32>
    %c0_59 = arith.constant 0 : index
    %c0_60 = arith.constant 0 : index
    %96 = vector.load %arg9[%c0_59, %c0_60] : memref<1x128xf32, #tpu.memory_space<vmem>>, vector<1x128xf32>
    %97 = vector.broadcast %96 : vector<1x128xf32> to vector<32x128xf32>
    %98 = arith.addf %95, %97 : vector<32x128xf32>
    %99 = vector.shape_cast %98 : vector<32x128xf32> to vector<16x2x128xf32>
    %100 = vector.extract_strided_slice %99 {offsets = [0, 0, 0], sizes = [16, 2, 64], strides = [1, 1, 1]} : vector<16x2x128xf32> to vector<16x2x64xf32>
    %c0_61 = arith.constant 0 : index
    %c0_62 = arith.constant 0 : index
    %c0_63 = arith.constant 0 : index
    %101 = vector.load %arg14[%c0_61, %c0_62, %c0_63] : memref<16x2x64xf32, #tpu.memory_space<vmem>>, vector<16x2x64xf32>
    tpu.vector_store %arg14[%c0_61, %c0_62, %c0_63], %100 {strides = array<i32>} : memref<16x2x64xf32, #tpu.memory_space<vmem>>, vector<16x2x64xf32>,
    %102 = vector.extract_strided_slice %99 {offsets = [0, 0, 64], sizes = [16, 2, 64], strides = [1, 1, 1]} : vector<16x2x128xf32> to vector<16x2x64xf32>
    %c0_64 = arith.constant 0 : index
    %c0_65 = arith.constant 0 : index
    %c0_66 = arith.constant 0 : index
    %103 = vector.load %arg15[%c0_64, %c0_65, %c0_66] : memref<16x2x64xf32, #tpu.memory_space<vmem>>, vector<16x2x64xf32>
    tpu.vector_store %arg15[%c0_64, %c0_65, %c0_66], %102 {strides = array<i32>} : memref<16x2x64xf32, #tpu.memory_space<vmem>>, vector<16x2x64xf32>,
    %c0_67 = arith.constant 0 : index
    %c0_68 = arith.constant 0 : index
    %c0_69 = arith.constant 0 : index
    %104 = vector.load %arg8[%c0_67, %c0_68, %c0_69] : memref<2x16x64xf32, #tpu.memory_space<vmem>>, vector<1x16x64xf32>
    %105 = vector.shape_cast %104 : vector<1x16x64xf32> to vector<16x64xf32>
    %c1_70 = arith.constant 1 : index
    %c0_71 = arith.constant 0 : index
    %c0_72 = arith.constant 0 : index
    %106 = vector.load %arg8[%c1_70, %c0_71, %c0_72] : memref<2x16x64xf32, #tpu.memory_space<vmem>>, vector<1x16x64xf32>
    %107 = vector.shape_cast %106 : vector<1x16x64xf32> to vector<16x64xf32>
    %cst_73 = arith.constant 0.000000e+00 : f32
    %108 = vector.broadcast %cst_73 : f32 to vector<2x16xf32>
    %c0_i32_74 = arith.constant 0 : i32
    %c16_i32_75 = arith.constant 16 : i32
    %109 = arith.addi %c0_i32_74, %c16_i32_75 : i32
    %c1_i32_76 = arith.constant 1 : i32
    %110:4 = scf.for %arg18 = %c0_i32_74 to %109 step %c1_i32_76 iter_args(%arg19 = %108, %arg20 = %108, %arg21 = %108, %arg22 = %108) -> (vector<2x16xf32>, vector<2x16xf32>, vector<2x16xf32>, vector<2x16xf32>)  : i32 {
      %136 = arith.index_cast %arg18 : i32 to index
      %c0_115 = arith.constant 0 : index
      %c0_116 = arith.constant 0 : index
      %137 = vector.load %arg14[%136, %c0_115, %c0_116] : memref<16x2x64xf32, #tpu.memory_space<vmem>>, vector<1x2x64xf32>
      %138 = vector.shape_cast %137 : vector<1x2x64xf32> to vector<2x64xf32>
      %cst_117 = arith.constant dense<0.000000e+00> : vector<2x64xf32>
      %139 = tpu.matmul %arg19, %105, %cst_117 {dimension_numbers = #tpu.dot_dimension_numbers<[1], [0], [0], [1], [0, 0, 1, 1], [], []>} : vector<2x16xf32>, vector<16x64xf32>, vector<2x64xf32> -> vector<2x64xf32>
      %140 = arith.addf %138, %139 : vector<2x64xf32>
      %c15_i32 = arith.constant 15 : i32
      %141 = arith.subi %c15_i32, %arg18 : i32
      %142 = arith.index_cast %141 : i32 to index
      %c0_118 = arith.constant 0 : index
      %c0_119 = arith.constant 0 : index
      %143 = vector.load %arg15[%142, %c0_118, %c0_119] : memref<16x2x64xf32, #tpu.memory_space<vmem>>, vector<1x2x64xf32>
      %144 = vector.shape_cast %143 : vector<1x2x64xf32> to vector<2x64xf32>
      %cst_120 = arith.constant dense<0.000000e+00> : vector<2x64xf32>
      %145 = tpu.matmul %arg21, %107, %cst_120 {dimension_numbers = #tpu.dot_dimension_numbers<[1], [0], [0], [1], [0, 0, 1, 1], [], []>} : vector<2x16xf32>, vector<16x64xf32>, vector<2x64xf32> -> vector<2x64xf32>
      %146 = arith.addf %144, %145 : vector<2x64xf32>
      %147 = vector.extract_strided_slice %140 {offsets = [0, 0], sizes = [2, 16], strides = [1, 1]} : vector<2x64xf32> to vector<2x16xf32>
      %cst_121 = arith.constant 5.000000e-01 : f32
      %148 = vector.broadcast %cst_121 : f32 to vector<2x16xf32>
      %149 = arith.mulf %148, %147 : vector<2x16xf32>
      %150 = math.tanh %149 : vector<2x16xf32>
      %cst_122 = arith.constant 1.000000e+00 : f32
      %151 = vector.broadcast %cst_122 : f32 to vector<2x16xf32>
      %152 = arith.addf %150, %151 : vector<2x16xf32>
      %cst_123 = arith.constant 5.000000e-01 : f32
      %153 = vector.broadcast %cst_123 : f32 to vector<2x16xf32>
      %154 = arith.mulf %153, %152 : vector<2x16xf32>
      %155 = vector.extract_strided_slice %140 {offsets = [0, 16], sizes = [2, 16], strides = [1, 1]} : vector<2x64xf32> to vector<2x16xf32>
      %cst_124 = arith.constant 5.000000e-01 : f32
      %156 = vector.broadcast %cst_124 : f32 to vector<2x16xf32>
      %157 = arith.mulf %156, %155 : vector<2x16xf32>
      %158 = math.tanh %157 : vector<2x16xf32>
      %cst_125 = arith.constant 1.000000e+00 : f32
      %159 = vector.broadcast %cst_125 : f32 to vector<2x16xf32>
      %160 = arith.addf %158, %159 : vector<2x16xf32>
      %cst_126 = arith.constant 5.000000e-01 : f32
      %161 = vector.broadcast %cst_126 : f32 to vector<2x16xf32>
      %162 = arith.mulf %161, %160 : vector<2x16xf32>
      %163 = vector.extract_strided_slice %140 {offsets = [0, 32], sizes = [2, 16], strides = [1, 1]} : vector<2x64xf32> to vector<2x16xf32>
      %164 = math.tanh %163 : vector<2x16xf32>
      %165 = vector.extract_strided_slice %140 {offsets = [0, 48], sizes = [2, 16], strides = [1, 1]} : vector<2x64xf32> to vector<2x16xf32>
      %cst_127 = arith.constant 5.000000e-01 : f32
      %166 = vector.broadcast %cst_127 : f32 to vector<2x16xf32>
      %167 = arith.mulf %166, %165 : vector<2x16xf32>
      %168 = math.tanh %167 : vector<2x16xf32>
      %cst_128 = arith.constant 1.000000e+00 : f32
      %169 = vector.broadcast %cst_128 : f32 to vector<2x16xf32>
      %170 = arith.addf %168, %169 : vector<2x16xf32>
      %cst_129 = arith.constant 5.000000e-01 : f32
      %171 = vector.broadcast %cst_129 : f32 to vector<2x16xf32>
      %172 = arith.mulf %171, %170 : vector<2x16xf32>
      %173 = vector.extract_strided_slice %146 {offsets = [0, 0], sizes = [2, 16], strides = [1, 1]} : vector<2x64xf32> to vector<2x16xf32>
      %cst_130 = arith.constant 5.000000e-01 : f32
      %174 = vector.broadcast %cst_130 : f32 to vector<2x16xf32>
      %175 = arith.mulf %174, %173 : vector<2x16xf32>
      %176 = math.tanh %175 : vector<2x16xf32>
      %cst_131 = arith.constant 1.000000e+00 : f32
      %177 = vector.broadcast %cst_131 : f32 to vector<2x16xf32>
      %178 = arith.addf %176, %177 : vector<2x16xf32>
      %cst_132 = arith.constant 5.000000e-01 : f32
      %179 = vector.broadcast %cst_132 : f32 to vector<2x16xf32>
      %180 = arith.mulf %179, %178 : vector<2x16xf32>
      %181 = vector.extract_strided_slice %146 {offsets = [0, 16], sizes = [2, 16], strides = [1, 1]} : vector<2x64xf32> to vector<2x16xf32>
      %cst_133 = arith.constant 5.000000e-01 : f32
      %182 = vector.broadcast %cst_133 : f32 to vector<2x16xf32>
      %183 = arith.mulf %182, %181 : vector<2x16xf32>
      %184 = math.tanh %183 : vector<2x16xf32>
      %cst_134 = arith.constant 1.000000e+00 : f32
      %185 = vector.broadcast %cst_134 : f32 to vector<2x16xf32>
      %186 = arith.addf %184, %185 : vector<2x16xf32>
      %cst_135 = arith.constant 5.000000e-01 : f32
      %187 = vector.broadcast %cst_135 : f32 to vector<2x16xf32>
      %188 = arith.mulf %187, %186 : vector<2x16xf32>
      %189 = vector.extract_strided_slice %146 {offsets = [0, 32], sizes = [2, 16], strides = [1, 1]} : vector<2x64xf32> to vector<2x16xf32>
      %190 = math.tanh %189 : vector<2x16xf32>
      %191 = vector.extract_strided_slice %146 {offsets = [0, 48], sizes = [2, 16], strides = [1, 1]} : vector<2x64xf32> to vector<2x16xf32>
      %cst_136 = arith.constant 5.000000e-01 : f32
      %192 = vector.broadcast %cst_136 : f32 to vector<2x16xf32>
      %193 = arith.mulf %192, %191 : vector<2x16xf32>
      %194 = math.tanh %193 : vector<2x16xf32>
      %cst_137 = arith.constant 1.000000e+00 : f32
      %195 = vector.broadcast %cst_137 : f32 to vector<2x16xf32>
      %196 = arith.addf %194, %195 : vector<2x16xf32>
      %cst_138 = arith.constant 5.000000e-01 : f32
      %197 = vector.broadcast %cst_138 : f32 to vector<2x16xf32>
      %198 = arith.mulf %197, %196 : vector<2x16xf32>
      %199 = arith.mulf %162, %arg20 : vector<2x16xf32>
      %200 = arith.mulf %154, %164 : vector<2x16xf32>
      %201 = arith.addf %199, %200 : vector<2x16xf32>
      %202 = arith.mulf %188, %arg22 : vector<2x16xf32>
      %203 = arith.mulf %180, %190 : vector<2x16xf32>
      %204 = arith.addf %202, %203 : vector<2x16xf32>
      %205 = math.tanh %201 : vector<2x16xf32>
      %206 = arith.mulf %172, %205 : vector<2x16xf32>
      %207 = math.tanh %204 : vector<2x16xf32>
      %208 = arith.mulf %198, %207 : vector<2x16xf32>
      %209 = arith.index_cast %arg18 : i32 to index
      %c0_139 = arith.constant 0 : index
      %c0_140 = arith.constant 0 : index
      %210 = vector.load %arg16[%209, %c0_139, %c0_140] : memref<16x2x16xf32, #tpu.memory_space<vmem>>, vector<1x2x16xf32>
      %211 = vector.shape_cast %210 : vector<1x2x16xf32> to vector<2x16xf32>
      %212 = vector.shape_cast %206 : vector<2x16xf32> to vector<1x2x16xf32>
      tpu.vector_store %arg16[%209, %c0_139, %c0_140], %212 {strides = array<i32>} : memref<16x2x16xf32, #tpu.memory_space<vmem>>, vector<1x2x16xf32>,
      %c15_i32_141 = arith.constant 15 : i32
      %213 = arith.subi %c15_i32_141, %arg18 : i32
      %214 = arith.index_cast %213 : i32 to index
      %c0_142 = arith.constant 0 : index
      %c0_143 = arith.constant 0 : index
      %215 = vector.load %arg17[%214, %c0_142, %c0_143] : memref<16x2x16xf32, #tpu.memory_space<vmem>>, vector<1x2x16xf32>
      %216 = vector.shape_cast %215 : vector<1x2x16xf32> to vector<2x16xf32>
      %217 = vector.shape_cast %208 : vector<2x16xf32> to vector<1x2x16xf32>
      tpu.vector_store %arg17[%214, %c0_142, %c0_143], %217 {strides = array<i32>} : memref<16x2x16xf32, #tpu.memory_space<vmem>>, vector<1x2x16xf32>,
      scf.yield %206, %201, %208, %204 : vector<2x16xf32>, vector<2x16xf32>, vector<2x16xf32>, vector<2x16xf32>
    }
    %c16_i32_77 = arith.constant 16 : i32
    %c0_78 = arith.constant 0 : index
    %c0_79 = arith.constant 0 : index
    %c0_80 = arith.constant 0 : index
    %111 = vector.load %arg16[%c0_78, %c0_79, %c0_80] : memref<16x2x16xf32, #tpu.memory_space<vmem>>, vector<16x2x16xf32>
    %c0_81 = arith.constant 0 : index
    %c0_82 = arith.constant 0 : index
    %c0_83 = arith.constant 0 : index
    %112 = vector.load %arg17[%c0_81, %c0_82, %c0_83] : memref<16x2x16xf32, #tpu.memory_space<vmem>>, vector<16x2x16xf32>
    %113 = tpu.concatenate %111, %112 in 2 : vector<16x2x16xf32>, vector<16x2x16xf32> -> vector<16x2x32xf32>
    %114 = vector.shape_cast %113 : vector<16x2x32xf32> to vector<32x32xf32>
    %c0_84 = arith.constant 0 : index
    %c0_85 = arith.constant 0 : index
    %115 = vector.load %arg10[%c0_84, %c0_85] : memref<32x128xf32, #tpu.memory_space<vmem>>, vector<32x128xf32>
    %cst_86 = arith.constant dense<0.000000e+00> : vector<32x128xf32>
    %116 = tpu.matmul %114, %115, %cst_86 {dimension_numbers = #tpu.dot_dimension_numbers<[1], [0], [0], [1], [0, 0, 1, 1], [], []>} : vector<32x32xf32>, vector<32x128xf32>, vector<32x128xf32> -> vector<32x128xf32>
    %c0_87 = arith.constant 0 : index
    %c0_88 = arith.constant 0 : index
    %117 = vector.load %arg12[%c0_87, %c0_88] : memref<1x128xf32, #tpu.memory_space<vmem>>, vector<1x128xf32>
    %118 = vector.broadcast %117 : vector<1x128xf32> to vector<32x128xf32>
    %119 = arith.addf %116, %118 : vector<32x128xf32>
    %120 = vector.shape_cast %119 : vector<32x128xf32> to vector<16x2x128xf32>
    %121 = vector.extract_strided_slice %120 {offsets = [0, 0, 0], sizes = [16, 2, 64], strides = [1, 1, 1]} : vector<16x2x128xf32> to vector<16x2x64xf32>
    %c0_89 = arith.constant 0 : index
    %c0_90 = arith.constant 0 : index
    %c0_91 = arith.constant 0 : index
    %122 = vector.load %arg14[%c0_89, %c0_90, %c0_91] : memref<16x2x64xf32, #tpu.memory_space<vmem>>, vector<16x2x64xf32>
    tpu.vector_store %arg14[%c0_89, %c0_90, %c0_91], %121 {strides = array<i32>} : memref<16x2x64xf32, #tpu.memory_space<vmem>>, vector<16x2x64xf32>,
    %123 = vector.extract_strided_slice %120 {offsets = [0, 0, 64], sizes = [16, 2, 64], strides = [1, 1, 1]} : vector<16x2x128xf32> to vector<16x2x64xf32>
    %c0_92 = arith.constant 0 : index
    %c0_93 = arith.constant 0 : index
    %c0_94 = arith.constant 0 : index
    %124 = vector.load %arg15[%c0_92, %c0_93, %c0_94] : memref<16x2x64xf32, #tpu.memory_space<vmem>>, vector<16x2x64xf32>
    tpu.vector_store %arg15[%c0_92, %c0_93, %c0_94], %123 {strides = array<i32>} : memref<16x2x64xf32, #tpu.memory_space<vmem>>, vector<16x2x64xf32>,
    %c0_95 = arith.constant 0 : index
    %c0_96 = arith.constant 0 : index
    %c0_97 = arith.constant 0 : index
    %125 = vector.load %arg11[%c0_95, %c0_96, %c0_97] : memref<2x16x64xf32, #tpu.memory_space<vmem>>, vector<1x16x64xf32>
    %126 = vector.shape_cast %125 : vector<1x16x64xf32> to vector<16x64xf32>
    %c1_98 = arith.constant 1 : index
    %c0_99 = arith.constant 0 : index
    %c0_100 = arith.constant 0 : index
    %127 = vector.load %arg11[%c1_98, %c0_99, %c0_100] : memref<2x16x64xf32, #tpu.memory_space<vmem>>, vector<1x16x64xf32>
    %128 = vector.shape_cast %127 : vector<1x16x64xf32> to vector<16x64xf32>
    %cst_101 = arith.constant 0.000000e+00 : f32
    %129 = vector.broadcast %cst_101 : f32 to vector<2x16xf32>
    %c0_i32_102 = arith.constant 0 : i32
    %c16_i32_103 = arith.constant 16 : i32
    %130 = arith.addi %c0_i32_102, %c16_i32_103 : i32
    %c1_i32_104 = arith.constant 1 : i32
    %131:4 = scf.for %arg18 = %c0_i32_102 to %130 step %c1_i32_104 iter_args(%arg19 = %129, %arg20 = %129, %arg21 = %129, %arg22 = %129) -> (vector<2x16xf32>, vector<2x16xf32>, vector<2x16xf32>, vector<2x16xf32>)  : i32 {
      %136 = arith.index_cast %arg18 : i32 to index
      %c0_115 = arith.constant 0 : index
      %c0_116 = arith.constant 0 : index
      %137 = vector.load %arg14[%136, %c0_115, %c0_116] : memref<16x2x64xf32, #tpu.memory_space<vmem>>, vector<1x2x64xf32>
      %138 = vector.shape_cast %137 : vector<1x2x64xf32> to vector<2x64xf32>
      %cst_117 = arith.constant dense<0.000000e+00> : vector<2x64xf32>
      %139 = tpu.matmul %arg19, %126, %cst_117 {dimension_numbers = #tpu.dot_dimension_numbers<[1], [0], [0], [1], [0, 0, 1, 1], [], []>} : vector<2x16xf32>, vector<16x64xf32>, vector<2x64xf32> -> vector<2x64xf32>
      %140 = arith.addf %138, %139 : vector<2x64xf32>
      %c15_i32 = arith.constant 15 : i32
      %141 = arith.subi %c15_i32, %arg18 : i32
      %142 = arith.index_cast %141 : i32 to index
      %c0_118 = arith.constant 0 : index
      %c0_119 = arith.constant 0 : index
      %143 = vector.load %arg15[%142, %c0_118, %c0_119] : memref<16x2x64xf32, #tpu.memory_space<vmem>>, vector<1x2x64xf32>
      %144 = vector.shape_cast %143 : vector<1x2x64xf32> to vector<2x64xf32>
      %cst_120 = arith.constant dense<0.000000e+00> : vector<2x64xf32>
      %145 = tpu.matmul %arg21, %128, %cst_120 {dimension_numbers = #tpu.dot_dimension_numbers<[1], [0], [0], [1], [0, 0, 1, 1], [], []>} : vector<2x16xf32>, vector<16x64xf32>, vector<2x64xf32> -> vector<2x64xf32>
      %146 = arith.addf %144, %145 : vector<2x64xf32>
      %147 = vector.extract_strided_slice %140 {offsets = [0, 0], sizes = [2, 16], strides = [1, 1]} : vector<2x64xf32> to vector<2x16xf32>
      %cst_121 = arith.constant 5.000000e-01 : f32
      %148 = vector.broadcast %cst_121 : f32 to vector<2x16xf32>
      %149 = arith.mulf %148, %147 : vector<2x16xf32>
      %150 = math.tanh %149 : vector<2x16xf32>
      %cst_122 = arith.constant 1.000000e+00 : f32
      %151 = vector.broadcast %cst_122 : f32 to vector<2x16xf32>
      %152 = arith.addf %150, %151 : vector<2x16xf32>
      %cst_123 = arith.constant 5.000000e-01 : f32
      %153 = vector.broadcast %cst_123 : f32 to vector<2x16xf32>
      %154 = arith.mulf %153, %152 : vector<2x16xf32>
      %155 = vector.extract_strided_slice %140 {offsets = [0, 16], sizes = [2, 16], strides = [1, 1]} : vector<2x64xf32> to vector<2x16xf32>
      %cst_124 = arith.constant 5.000000e-01 : f32
      %156 = vector.broadcast %cst_124 : f32 to vector<2x16xf32>
      %157 = arith.mulf %156, %155 : vector<2x16xf32>
      %158 = math.tanh %157 : vector<2x16xf32>
      %cst_125 = arith.constant 1.000000e+00 : f32
      %159 = vector.broadcast %cst_125 : f32 to vector<2x16xf32>
      %160 = arith.addf %158, %159 : vector<2x16xf32>
      %cst_126 = arith.constant 5.000000e-01 : f32
      %161 = vector.broadcast %cst_126 : f32 to vector<2x16xf32>
      %162 = arith.mulf %161, %160 : vector<2x16xf32>
      %163 = vector.extract_strided_slice %140 {offsets = [0, 32], sizes = [2, 16], strides = [1, 1]} : vector<2x64xf32> to vector<2x16xf32>
      %164 = math.tanh %163 : vector<2x16xf32>
      %165 = vector.extract_strided_slice %140 {offsets = [0, 48], sizes = [2, 16], strides = [1, 1]} : vector<2x64xf32> to vector<2x16xf32>
      %cst_127 = arith.constant 5.000000e-01 : f32
      %166 = vector.broadcast %cst_127 : f32 to vector<2x16xf32>
      %167 = arith.mulf %166, %165 : vector<2x16xf32>
      %168 = math.tanh %167 : vector<2x16xf32>
      %cst_128 = arith.constant 1.000000e+00 : f32
      %169 = vector.broadcast %cst_128 : f32 to vector<2x16xf32>
      %170 = arith.addf %168, %169 : vector<2x16xf32>
      %cst_129 = arith.constant 5.000000e-01 : f32
      %171 = vector.broadcast %cst_129 : f32 to vector<2x16xf32>
      %172 = arith.mulf %171, %170 : vector<2x16xf32>
      %173 = vector.extract_strided_slice %146 {offsets = [0, 0], sizes = [2, 16], strides = [1, 1]} : vector<2x64xf32> to vector<2x16xf32>
      %cst_130 = arith.constant 5.000000e-01 : f32
      %174 = vector.broadcast %cst_130 : f32 to vector<2x16xf32>
      %175 = arith.mulf %174, %173 : vector<2x16xf32>
      %176 = math.tanh %175 : vector<2x16xf32>
      %cst_131 = arith.constant 1.000000e+00 : f32
      %177 = vector.broadcast %cst_131 : f32 to vector<2x16xf32>
      %178 = arith.addf %176, %177 : vector<2x16xf32>
      %cst_132 = arith.constant 5.000000e-01 : f32
      %179 = vector.broadcast %cst_132 : f32 to vector<2x16xf32>
      %180 = arith.mulf %179, %178 : vector<2x16xf32>
      %181 = vector.extract_strided_slice %146 {offsets = [0, 16], sizes = [2, 16], strides = [1, 1]} : vector<2x64xf32> to vector<2x16xf32>
      %cst_133 = arith.constant 5.000000e-01 : f32
      %182 = vector.broadcast %cst_133 : f32 to vector<2x16xf32>
      %183 = arith.mulf %182, %181 : vector<2x16xf32>
      %184 = math.tanh %183 : vector<2x16xf32>
      %cst_134 = arith.constant 1.000000e+00 : f32
      %185 = vector.broadcast %cst_134 : f32 to vector<2x16xf32>
      %186 = arith.addf %184, %185 : vector<2x16xf32>
      %cst_135 = arith.constant 5.000000e-01 : f32
      %187 = vector.broadcast %cst_135 : f32 to vector<2x16xf32>
      %188 = arith.mulf %187, %186 : vector<2x16xf32>
      %189 = vector.extract_strided_slice %146 {offsets = [0, 32], sizes = [2, 16], strides = [1, 1]} : vector<2x64xf32> to vector<2x16xf32>
      %190 = math.tanh %189 : vector<2x16xf32>
      %191 = vector.extract_strided_slice %146 {offsets = [0, 48], sizes = [2, 16], strides = [1, 1]} : vector<2x64xf32> to vector<2x16xf32>
      %cst_136 = arith.constant 5.000000e-01 : f32
      %192 = vector.broadcast %cst_136 : f32 to vector<2x16xf32>
      %193 = arith.mulf %192, %191 : vector<2x16xf32>
      %194 = math.tanh %193 : vector<2x16xf32>
      %cst_137 = arith.constant 1.000000e+00 : f32
      %195 = vector.broadcast %cst_137 : f32 to vector<2x16xf32>
      %196 = arith.addf %194, %195 : vector<2x16xf32>
      %cst_138 = arith.constant 5.000000e-01 : f32
      %197 = vector.broadcast %cst_138 : f32 to vector<2x16xf32>
      %198 = arith.mulf %197, %196 : vector<2x16xf32>
      %199 = arith.mulf %162, %arg20 : vector<2x16xf32>
      %200 = arith.mulf %154, %164 : vector<2x16xf32>
      %201 = arith.addf %199, %200 : vector<2x16xf32>
      %202 = arith.mulf %188, %arg22 : vector<2x16xf32>
      %203 = arith.mulf %180, %190 : vector<2x16xf32>
      %204 = arith.addf %202, %203 : vector<2x16xf32>
      %205 = math.tanh %201 : vector<2x16xf32>
      %206 = arith.mulf %172, %205 : vector<2x16xf32>
      %207 = math.tanh %204 : vector<2x16xf32>
      %208 = arith.mulf %198, %207 : vector<2x16xf32>
      %209 = arith.index_cast %arg18 : i32 to index
      %c0_139 = arith.constant 0 : index
      %c0_140 = arith.constant 0 : index
      %210 = vector.load %arg16[%209, %c0_139, %c0_140] : memref<16x2x16xf32, #tpu.memory_space<vmem>>, vector<1x2x16xf32>
      %211 = vector.shape_cast %210 : vector<1x2x16xf32> to vector<2x16xf32>
      %212 = vector.shape_cast %206 : vector<2x16xf32> to vector<1x2x16xf32>
      tpu.vector_store %arg16[%209, %c0_139, %c0_140], %212 {strides = array<i32>} : memref<16x2x16xf32, #tpu.memory_space<vmem>>, vector<1x2x16xf32>,
      %c15_i32_141 = arith.constant 15 : i32
      %213 = arith.subi %c15_i32_141, %arg18 : i32
      %214 = arith.index_cast %213 : i32 to index
      %c0_142 = arith.constant 0 : index
      %c0_143 = arith.constant 0 : index
      %215 = vector.load %arg17[%214, %c0_142, %c0_143] : memref<16x2x16xf32, #tpu.memory_space<vmem>>, vector<1x2x16xf32>
      %216 = vector.shape_cast %215 : vector<1x2x16xf32> to vector<2x16xf32>
      %217 = vector.shape_cast %208 : vector<2x16xf32> to vector<1x2x16xf32>
      tpu.vector_store %arg17[%214, %c0_142, %c0_143], %217 {strides = array<i32>} : memref<16x2x16xf32, #tpu.memory_space<vmem>>, vector<1x2x16xf32>,
      scf.yield %206, %201, %208, %204 : vector<2x16xf32>, vector<2x16xf32>, vector<2x16xf32>, vector<2x16xf32>
    }
    %c16_i32_105 = arith.constant 16 : i32
    %c0_106 = arith.constant 0 : index
    %c0_107 = arith.constant 0 : index
    %c0_108 = arith.constant 0 : index
    %132 = vector.load %arg16[%c0_106, %c0_107, %c0_108] : memref<16x2x16xf32, #tpu.memory_space<vmem>>, vector<16x2x16xf32>
    %c0_109 = arith.constant 0 : index
    %c0_110 = arith.constant 0 : index
    %c0_111 = arith.constant 0 : index
    %133 = vector.load %arg17[%c0_109, %c0_110, %c0_111] : memref<16x2x16xf32, #tpu.memory_space<vmem>>, vector<16x2x16xf32>
    %134 = tpu.concatenate %132, %133 in 2 : vector<16x2x16xf32>, vector<16x2x16xf32> -> vector<16x2x32xf32>
    %c0_112 = arith.constant 0 : index
    %c0_113 = arith.constant 0 : index
    %c0_114 = arith.constant 0 : index
    %135 = vector.load %arg13[%c0_112, %c0_113, %c0_114] : memref<16x2x32xf32, #tpu.memory_space<vmem>>, vector<16x2x32xf32>
    tpu.vector_store %arg13[%c0_112, %c0_113, %c0_114], %134 {strides = array<i32>} : memref<16x2x32xf32, #tpu.memory_space<vmem>>, vector<16x2x32xf32>,
    return
  }
  func.func @transform_0(%arg0: i32) -> (i32, i32, i32) {
    %c0_i32 = arith.constant 0 : i32
    %c0_i32_0 = arith.constant 0 : i32
    %c0_i32_1 = arith.constant 0 : i32
    %c0_i32_2 = arith.constant 0 : i32
    return %c0_i32, %c0_i32_0, %c0_i32_1 : i32, i32, i32
  }
  func.func @transform_1(%arg0: i32) -> (i32, i32, i32) {
    %c0_i32 = arith.constant 0 : i32
    %c0_i32_0 = arith.constant 0 : i32
    %c0_i32_1 = arith.constant 0 : i32
    %c0_i32_2 = arith.constant 0 : i32
    return %c0_i32, %c0_i32_0, %c0_i32_1 : i32, i32, i32
  }
  func.func @transform_2(%arg0: i32) -> (i32, i32) {
    %c0_i32 = arith.constant 0 : i32
    %c0_i32_0 = arith.constant 0 : i32
    %c0_i32_1 = arith.constant 0 : i32
    return %c0_i32, %c0_i32_0 : i32, i32
  }
  func.func @transform_3(%arg0: i32) -> (i32, i32) {
    %c0_i32 = arith.constant 0 : i32
    %c0_i32_0 = arith.constant 0 : i32
    %c0_i32_1 = arith.constant 0 : i32
    return %c0_i32, %c0_i32_0 : i32, i32
  }
  func.func @transform_4(%arg0: i32) -> (i32, i32, i32) {
    %c0_i32 = arith.constant 0 : i32
    %c0_i32_0 = arith.constant 0 : i32
    %c0_i32_1 = arith.constant 0 : i32
    %c0_i32_2 = arith.constant 0 : i32
    return %c0_i32, %c0_i32_0, %c0_i32_1 : i32, i32, i32
  }
  func.func @transform_5(%arg0: i32) -> (i32, i32) {
    %c0_i32 = arith.constant 0 : i32
    %c0_i32_0 = arith.constant 0 : i32
    %c0_i32_1 = arith.constant 0 : i32
    return %c0_i32, %c0_i32_0 : i32, i32
  }
  func.func @transform_6(%arg0: i32) -> (i32, i32) {
    %c0_i32 = arith.constant 0 : i32
    %c0_i32_0 = arith.constant 0 : i32
    %c0_i32_1 = arith.constant 0 : i32
    return %c0_i32, %c0_i32_0 : i32, i32
  }
  func.func @transform_7(%arg0: i32) -> (i32, i32, i32) {
    %c0_i32 = arith.constant 0 : i32
    %c0_i32_0 = arith.constant 0 : i32
    %c0_i32_1 = arith.constant 0 : i32
    %c0_i32_2 = arith.constant 0 : i32
    return %c0_i32, %c0_i32_0, %c0_i32_1 : i32, i32, i32
  }
  func.func @transform_8(%arg0: i32) -> (i32, i32) {
    %c0_i32 = arith.constant 0 : i32
    %c0_i32_0 = arith.constant 0 : i32
    %c0_i32_1 = arith.constant 0 : i32
    return %c0_i32, %c0_i32_0 : i32, i32
  }
  func.func @transform_9(%arg0: i32) -> (i32, i32) {
    %c0_i32 = arith.constant 0 : i32
    %c0_i32_0 = arith.constant 0 : i32
    %c0_i32_1 = arith.constant 0 : i32
    return %c0_i32, %c0_i32_0 : i32, i32
  }
  func.func @transform_10(%arg0: i32) -> (i32, i32, i32) {
    %c0_i32 = arith.constant 0 : i32
    %c0_i32_0 = arith.constant 0 : i32
    %c0_i32_1 = arith.constant 0 : i32
    %c0_i32_2 = arith.constant 0 : i32
    return %c0_i32, %c0_i32_0, %c0_i32_1 : i32, i32, i32
  }
  func.func @transform_11(%arg0: i32) -> (i32, i32) {
    %c0_i32 = arith.constant 0 : i32
    %c0_i32_0 = arith.constant 0 : i32
    %c0_i32_1 = arith.constant 0 : i32
    return %c0_i32, %c0_i32_0 : i32, i32
  }
  func.func @transform_12(%arg0: i32) -> (i32, i32, i32) {
    %c0_i32 = arith.constant 0 : i32
    %c0_i32_0 = arith.constant 0 : i32
    %c0_i32_1 = arith.constant 0 : i32
    %c0_i32_2 = arith.constant 0 : i32
    return %c0_i32, %c0_i32_0, %c0_i32_1 : i32, i32, i32
  }
}

module attributes {stable_mosaic.version = 11 : i64} {
  func.func @kernel(%arg0: i32, %arg1: memref<16x2x32xf32, #tpu.memory_space<vmem>>, %arg2: memref<2x32xf32, #tpu.memory_space<vmem>>, %arg3: memref<32x16xf32, #tpu.memory_space<vmem>>, %arg4: memref<2x16xf32, #tpu.memory_space<vmem>>, %arg5: memref<3x16x8xf32, #tpu.memory_space<vmem>>, %arg6: memref<2x40xf32, #tpu.memory_space<vmem>>, %arg7: memref<40x16xf32, #tpu.memory_space<vmem>>, %arg8: memref<2x16xf32, #tpu.memory_space<vmem>>, %arg9: memref<3x16x8xf32, #tpu.memory_space<vmem>>, %arg10: memref<2x48xf32, #tpu.memory_space<vmem>>, %arg11: memref<48x24xf32, #tpu.memory_space<vmem>>, %arg12: memref<2x24xf32, #tpu.memory_space<vmem>>, %arg13: memref<24x16xf32, #tpu.memory_space<vmem>>, %arg14: memref<2x16xf32, #tpu.memory_space<vmem>>, %arg15: memref<3x16x8xf32, #tpu.memory_space<vmem>>, %arg16: memref<2x32xf32, #tpu.memory_space<vmem>>, %arg17: memref<32x16xf32, #tpu.memory_space<vmem>>, %arg18: memref<2x16xf32, #tpu.memory_space<vmem>>, %arg19: memref<3x16x8xf32, #tpu.memory_space<vmem>>, %arg20: memref<2x40xf32, #tpu.memory_space<vmem>>, %arg21: memref<40x20xf32, #tpu.memory_space<vmem>>, %arg22: memref<2x20xf32, #tpu.memory_space<vmem>>, %arg23: memref<20x16xf32, #tpu.memory_space<vmem>>, %arg24: memref<2x16xf32, #tpu.memory_space<vmem>>, %arg25: memref<3x16x8xf32, #tpu.memory_space<vmem>>, %arg26: memref<2x28xf32, #tpu.memory_space<vmem>>, %arg27: memref<28x16xf32, #tpu.memory_space<vmem>>, %arg28: memref<2x16xf32, #tpu.memory_space<vmem>>, %arg29: memref<3x16x8xf32, #tpu.memory_space<vmem>>, %arg30: memref<2x36xf32, #tpu.memory_space<vmem>>, %arg31: memref<36x16xf32, #tpu.memory_space<vmem>>, %arg32: memref<2x16xf32, #tpu.memory_space<vmem>>, %arg33: memref<3x16x8xf32, #tpu.memory_space<vmem>>, %arg34: memref<2x44xf32, #tpu.memory_space<vmem>>, %arg35: memref<44x16xf32, #tpu.memory_space<vmem>>, %arg36: memref<2x16xf32, #tpu.memory_space<vmem>>, %arg37: memref<3x16x8xf32, #tpu.memory_space<vmem>>, %arg38: memref<2x52xf32, #tpu.memory_space<vmem>>, %arg39: memref<52x26xf32, #tpu.memory_space<vmem>>, %arg40: memref<2x26xf32, #tpu.memory_space<vmem>>, %arg41: memref<26x16xf32, #tpu.memory_space<vmem>>, %arg42: memref<2x16xf32, #tpu.memory_space<vmem>>, %arg43: memref<3x16x8xf32, #tpu.memory_space<vmem>>, %arg44: memref<2x34xf32, #tpu.memory_space<vmem>>, %arg45: memref<34x16xf32, #tpu.memory_space<vmem>>, %arg46: memref<2x16xf32, #tpu.memory_space<vmem>>, %arg47: memref<3x16x8xf32, #tpu.memory_space<vmem>>, %arg48: memref<2x42xf32, #tpu.memory_space<vmem>>, %arg49: memref<2x1x42xf32, #tpu.memory_space<vmem>>, %arg50: memref<1x1xf32, #tpu.memory_space<vmem>>, %arg51: memref<2x1xf32, #tpu.memory_space<vmem>>) attributes {dimension_semantics = [#tpu.dimension_semantics<arbitrary>], iteration_bounds = array<i64: 1>, scalar_prefetch = 0 : i64, scratch_operands = 0 : i64, tpu.core_type = #tpu.core_type<tc>, window_params = [{pipeline_mode = #tpu.pipeline_mode<synchronous>, transform_indices = @transform_0, window_bounds = array<i64: 16, 2, 32>}, {pipeline_mode = #tpu.pipeline_mode<synchronous>, transform_indices = @transform_1, window_bounds = array<i64: 2, 32>}, {pipeline_mode = #tpu.pipeline_mode<synchronous>, transform_indices = @transform_2, window_bounds = array<i64: 32, 16>}, {pipeline_mode = #tpu.pipeline_mode<synchronous>, transform_indices = @transform_3, window_bounds = array<i64: 2, 16>}, {pipeline_mode = #tpu.pipeline_mode<synchronous>, transform_indices = @transform_4, window_bounds = array<i64: 3, 16, 8>}, {pipeline_mode = #tpu.pipeline_mode<synchronous>, transform_indices = @transform_5, window_bounds = array<i64: 2, 40>}, {pipeline_mode = #tpu.pipeline_mode<synchronous>, transform_indices = @transform_6, window_bounds = array<i64: 40, 16>}, {pipeline_mode = #tpu.pipeline_mode<synchronous>, transform_indices = @transform_7, window_bounds = array<i64: 2, 16>}, {pipeline_mode = #tpu.pipeline_mode<synchronous>, transform_indices = @transform_8, window_bounds = array<i64: 3, 16, 8>}, {pipeline_mode = #tpu.pipeline_mode<synchronous>, transform_indices = @transform_9, window_bounds = array<i64: 2, 48>}, {pipeline_mode = #tpu.pipeline_mode<synchronous>, transform_indices = @transform_10, window_bounds = array<i64: 48, 24>}, {pipeline_mode = #tpu.pipeline_mode<synchronous>, transform_indices = @transform_11, window_bounds = array<i64: 2, 24>}, {pipeline_mode = #tpu.pipeline_mode<synchronous>, transform_indices = @transform_12, window_bounds = array<i64: 24, 16>}, {pipeline_mode = #tpu.pipeline_mode<synchronous>, transform_indices = @transform_13, window_bounds = array<i64: 2, 16>}, {pipeline_mode = #tpu.pipeline_mode<synchronous>, transform_indices = @transform_14, window_bounds = array<i64: 3, 16, 8>}, {pipeline_mode = #tpu.pipeline_mode<synchronous>, transform_indices = @transform_15, window_bounds = array<i64: 2, 32>}, {pipeline_mode = #tpu.pipeline_mode<synchronous>, transform_indices = @transform_16, window_bounds = array<i64: 32, 16>}, {pipeline_mode = #tpu.pipeline_mode<synchronous>, transform_indices = @transform_17, window_bounds = array<i64: 2, 16>}, {pipeline_mode = #tpu.pipeline_mode<synchronous>, transform_indices = @transform_18, window_bounds = array<i64: 3, 16, 8>}, {pipeline_mode = #tpu.pipeline_mode<synchronous>, transform_indices = @transform_19, window_bounds = array<i64: 2, 40>}, {pipeline_mode = #tpu.pipeline_mode<synchronous>, transform_indices = @transform_20, window_bounds = array<i64: 40, 20>}, {pipeline_mode = #tpu.pipeline_mode<synchronous>, transform_indices = @transform_21, window_bounds = array<i64: 2, 20>}, {pipeline_mode = #tpu.pipeline_mode<synchronous>, transform_indices = @transform_22, window_bounds = array<i64: 20, 16>}, {pipeline_mode = #tpu.pipeline_mode<synchronous>, transform_indices = @transform_23, window_bounds = array<i64: 2, 16>}, {pipeline_mode = #tpu.pipeline_mode<synchronous>, transform_indices = @transform_24, window_bounds = array<i64: 3, 16, 8>}, {pipeline_mode = #tpu.pipeline_mode<synchronous>, transform_indices = @transform_25, window_bounds = array<i64: 2, 28>}, {pipeline_mode = #tpu.pipeline_mode<synchronous>, transform_indices = @transform_26, window_bounds = array<i64: 28, 16>}, {pipeline_mode = #tpu.pipeline_mode<synchronous>, transform_indices = @transform_27, window_bounds = array<i64: 2, 16>}, {pipeline_mode = #tpu.pipeline_mode<synchronous>, transform_indices = @transform_28, window_bounds = array<i64: 3, 16, 8>}, {pipeline_mode = #tpu.pipeline_mode<synchronous>, transform_indices = @transform_29, window_bounds = array<i64: 2, 36>}, {pipeline_mode = #tpu.pipeline_mode<synchronous>, transform_indices = @transform_30, window_bounds = array<i64: 36, 16>}, {pipeline_mode = #tpu.pipeline_mode<synchronous>, transform_indices = @transform_31, window_bounds = array<i64: 2, 16>}, {pipeline_mode = #tpu.pipeline_mode<synchronous>, transform_indices = @transform_32, window_bounds = array<i64: 3, 16, 8>}, {pipeline_mode = #tpu.pipeline_mode<synchronous>, transform_indices = @transform_33, window_bounds = array<i64: 2, 44>}, {pipeline_mode = #tpu.pipeline_mode<synchronous>, transform_indices = @transform_34, window_bounds = array<i64: 44, 16>}, {pipeline_mode = #tpu.pipeline_mode<synchronous>, transform_indices = @transform_35, window_bounds = array<i64: 2, 16>}, {pipeline_mode = #tpu.pipeline_mode<synchronous>, transform_indices = @transform_36, window_bounds = array<i64: 3, 16, 8>}, {pipeline_mode = #tpu.pipeline_mode<synchronous>, transform_indices = @transform_37, window_bounds = array<i64: 2, 52>}, {pipeline_mode = #tpu.pipeline_mode<synchronous>, transform_indices = @transform_38, window_bounds = array<i64: 52, 26>}, {pipeline_mode = #tpu.pipeline_mode<synchronous>, transform_indices = @transform_39, window_bounds = array<i64: 2, 26>}, {pipeline_mode = #tpu.pipeline_mode<synchronous>, transform_indices = @transform_40, window_bounds = array<i64: 26, 16>}, {pipeline_mode = #tpu.pipeline_mode<synchronous>, transform_indices = @transform_41, window_bounds = array<i64: 2, 16>}, {pipeline_mode = #tpu.pipeline_mode<synchronous>, transform_indices = @transform_42, window_bounds = array<i64: 3, 16, 8>}, {pipeline_mode = #tpu.pipeline_mode<synchronous>, transform_indices = @transform_43, window_bounds = array<i64: 2, 34>}, {pipeline_mode = #tpu.pipeline_mode<synchronous>, transform_indices = @transform_44, window_bounds = array<i64: 34, 16>}, {pipeline_mode = #tpu.pipeline_mode<synchronous>, transform_indices = @transform_45, window_bounds = array<i64: 2, 16>}, {pipeline_mode = #tpu.pipeline_mode<synchronous>, transform_indices = @transform_46, window_bounds = array<i64: 3, 16, 8>}, {pipeline_mode = #tpu.pipeline_mode<synchronous>, transform_indices = @transform_47, window_bounds = array<i64: 2, 42>}, {pipeline_mode = #tpu.pipeline_mode<synchronous>, transform_indices = @transform_48, window_bounds = array<i64: 2, 1, 42>}, {pipeline_mode = #tpu.pipeline_mode<synchronous>, transform_indices = @transform_49, window_bounds = array<i64: 1, 1>}, {pipeline_mode = #tpu.pipeline_mode<synchronous>, transform_indices = @transform_50, window_bounds = array<i64: 2, 1>}]} {
    %c0 = arith.constant 0 : index
    %c0_0 = arith.constant 0 : index
    %c0_1 = arith.constant 0 : index
    %0 = vector.load %arg1[%c0, %c0_0, %c0_1] : memref<16x2x32xf32, #tpu.memory_space<vmem>>, vector<16x2x32xf32>
    %c0_2 = arith.constant 0 : index
    %c0_3 = arith.constant 0 : index
    %1 = vector.load %arg2[%c0_2, %c0_3] : memref<2x32xf32, #tpu.memory_space<vmem>>, vector<1x32xf32>
    %2 = vector.shape_cast %1 : vector<1x32xf32> to vector<1x1x32xf32>
    %3 = vector.broadcast %2 : vector<1x1x32xf32> to vector<16x2x32xf32>
    %4 = arith.mulf %0, %3 : vector<16x2x32xf32>
    %c1 = arith.constant 1 : index
    %c0_4 = arith.constant 0 : index
    %5 = vector.load %arg2[%c1, %c0_4] : memref<2x32xf32, #tpu.memory_space<vmem>>, vector<1x32xf32>
    %6 = vector.shape_cast %5 : vector<1x32xf32> to vector<1x1x32xf32>
    %7 = vector.broadcast %6 : vector<1x1x32xf32> to vector<16x2x32xf32>
    %8 = arith.addf %4, %7 : vector<16x2x32xf32>
    %cst = arith.constant 0.000000e+00 : f32
    %9 = vector.broadcast %cst : f32 to vector<16x2x32xf32>
    %10 = arith.maximumf %8, %9 : vector<16x2x32xf32>
    %11 = vector.shape_cast %10 : vector<16x2x32xf32> to vector<32x32xf32>
    %c0_5 = arith.constant 0 : index
    %c0_6 = arith.constant 0 : index
    %12 = vector.load %arg3[%c0_5, %c0_6] : memref<32x16xf32, #tpu.memory_space<vmem>>, vector<32x16xf32>
    %cst_7 = arith.constant dense<0.000000e+00> : vector<32x16xf32>
    %13 = tpu.matmul %11, %12, %cst_7 {dimension_numbers = #tpu.dot_dimension_numbers<[1], [0], [0], [1], [0, 0, 1, 1], [], []>} : vector<32x32xf32>, vector<32x16xf32>, vector<32x16xf32> -> vector<32x16xf32>
    %c0_8 = arith.constant 0 : index
    %c0_9 = arith.constant 0 : index
    %14 = vector.load %arg4[%c0_8, %c0_9] : memref<2x16xf32, #tpu.memory_space<vmem>>, vector<1x16xf32>
    %15 = vector.broadcast %14 : vector<1x16xf32> to vector<32x16xf32>
    %16 = arith.mulf %13, %15 : vector<32x16xf32>
    %c1_10 = arith.constant 1 : index
    %c0_11 = arith.constant 0 : index
    %17 = vector.load %arg4[%c1_10, %c0_11] : memref<2x16xf32, #tpu.memory_space<vmem>>, vector<1x16xf32>
    %18 = vector.broadcast %17 : vector<1x16xf32> to vector<32x16xf32>
    %19 = arith.addf %16, %18 : vector<32x16xf32>
    %cst_12 = arith.constant 0.000000e+00 : f32
    %20 = vector.broadcast %cst_12 : f32 to vector<32x16xf32>
    %21 = arith.maximumf %19, %20 : vector<32x16xf32>
    %cst_13 = arith.constant 0.000000e+00 : f32
    %22 = vector.broadcast %cst_13 : f32 to vector<1x2x16xf32>
    %23 = vector.shape_cast %21 : vector<32x16xf32> to vector<16x2x16xf32>
    %24 = tpu.concatenate %22, %23, %22 in 0 : vector<1x2x16xf32>, vector<16x2x16xf32>, vector<1x2x16xf32> -> vector<18x2x16xf32>
    %25 = vector.extract_strided_slice %24 {offsets = [0, 0, 0], sizes = [16, 2, 16], strides = [1, 1, 1]} : vector<18x2x16xf32> to vector<16x2x16xf32>
    %26 = vector.shape_cast %25 : vector<16x2x16xf32> to vector<32x16xf32>
    %c0_14 = arith.constant 0 : index
    %c0_15 = arith.constant 0 : index
    %c0_16 = arith.constant 0 : index
    %27 = vector.load %arg5[%c0_14, %c0_15, %c0_16] : memref<3x16x8xf32, #tpu.memory_space<vmem>>, vector<1x16x8xf32>
    %28 = vector.shape_cast %27 : vector<1x16x8xf32> to vector<16x8xf32>
    %cst_17 = arith.constant dense<0.000000e+00> : vector<32x8xf32>
    %29 = tpu.matmul %26, %28, %cst_17 {dimension_numbers = #tpu.dot_dimension_numbers<[1], [0], [0], [1], [0, 0, 1, 1], [], []>} : vector<32x16xf32>, vector<16x8xf32>, vector<32x8xf32> -> vector<32x8xf32>
    %30 = vector.extract_strided_slice %24 {offsets = [1, 0, 0], sizes = [16, 2, 16], strides = [1, 1, 1]} : vector<18x2x16xf32> to vector<16x2x16xf32>
    %31 = vector.shape_cast %30 : vector<16x2x16xf32> to vector<32x16xf32>
    %c1_18 = arith.constant 1 : index
    %c0_19 = arith.constant 0 : index
    %c0_20 = arith.constant 0 : index
    %32 = vector.load %arg5[%c1_18, %c0_19, %c0_20] : memref<3x16x8xf32, #tpu.memory_space<vmem>>, vector<1x16x8xf32>
    %33 = vector.shape_cast %32 : vector<1x16x8xf32> to vector<16x8xf32>
    %cst_21 = arith.constant dense<0.000000e+00> : vector<32x8xf32>
    %34 = tpu.matmul %31, %33, %cst_21 {dimension_numbers = #tpu.dot_dimension_numbers<[1], [0], [0], [1], [0, 0, 1, 1], [], []>} : vector<32x16xf32>, vector<16x8xf32>, vector<32x8xf32> -> vector<32x8xf32>
    %35 = arith.addf %29, %34 : vector<32x8xf32>
    %36 = vector.extract_strided_slice %24 {offsets = [2, 0, 0], sizes = [16, 2, 16], strides = [1, 1, 1]} : vector<18x2x16xf32> to vector<16x2x16xf32>
    %37 = vector.shape_cast %36 : vector<16x2x16xf32> to vector<32x16xf32>
    %c2 = arith.constant 2 : index
    %c0_22 = arith.constant 0 : index
    %c0_23 = arith.constant 0 : index
    %38 = vector.load %arg5[%c2, %c0_22, %c0_23] : memref<3x16x8xf32, #tpu.memory_space<vmem>>, vector<1x16x8xf32>
    %39 = vector.shape_cast %38 : vector<1x16x8xf32> to vector<16x8xf32>
    %cst_24 = arith.constant dense<0.000000e+00> : vector<32x8xf32>
    %40 = tpu.matmul %37, %39, %cst_24 {dimension_numbers = #tpu.dot_dimension_numbers<[1], [0], [0], [1], [0, 0, 1, 1], [], []>} : vector<32x16xf32>, vector<16x8xf32>, vector<32x8xf32> -> vector<32x8xf32>
    %41 = arith.addf %35, %40 : vector<32x8xf32>
    %42 = vector.shape_cast %41 : vector<32x8xf32> to vector<16x2x8xf32>
    %43 = tpu.concatenate %0, %42 in 2 : vector<16x2x32xf32>, vector<16x2x8xf32> -> vector<16x2x40xf32>
    %c0_25 = arith.constant 0 : index
    %c0_26 = arith.constant 0 : index
    %44 = vector.load %arg6[%c0_25, %c0_26] : memref<2x40xf32, #tpu.memory_space<vmem>>, vector<1x40xf32>
    %45 = vector.shape_cast %44 : vector<1x40xf32> to vector<1x1x40xf32>
    %46 = vector.broadcast %45 : vector<1x1x40xf32> to vector<16x2x40xf32>
    %47 = arith.mulf %43, %46 : vector<16x2x40xf32>
    %c1_27 = arith.constant 1 : index
    %c0_28 = arith.constant 0 : index
    %48 = vector.load %arg6[%c1_27, %c0_28] : memref<2x40xf32, #tpu.memory_space<vmem>>, vector<1x40xf32>
    %49 = vector.shape_cast %48 : vector<1x40xf32> to vector<1x1x40xf32>
    %50 = vector.broadcast %49 : vector<1x1x40xf32> to vector<16x2x40xf32>
    %51 = arith.addf %47, %50 : vector<16x2x40xf32>
    %cst_29 = arith.constant 0.000000e+00 : f32
    %52 = vector.broadcast %cst_29 : f32 to vector<16x2x40xf32>
    %53 = arith.maximumf %51, %52 : vector<16x2x40xf32>
    %54 = vector.shape_cast %53 : vector<16x2x40xf32> to vector<32x40xf32>
    %c0_30 = arith.constant 0 : index
    %c0_31 = arith.constant 0 : index
    %55 = vector.load %arg7[%c0_30, %c0_31] : memref<40x16xf32, #tpu.memory_space<vmem>>, vector<40x16xf32>
    %cst_32 = arith.constant dense<0.000000e+00> : vector<32x16xf32>
    %56 = tpu.matmul %54, %55, %cst_32 {dimension_numbers = #tpu.dot_dimension_numbers<[1], [0], [0], [1], [0, 0, 1, 1], [], []>} : vector<32x40xf32>, vector<40x16xf32>, vector<32x16xf32> -> vector<32x16xf32>
    %c0_33 = arith.constant 0 : index
    %c0_34 = arith.constant 0 : index
    %57 = vector.load %arg8[%c0_33, %c0_34] : memref<2x16xf32, #tpu.memory_space<vmem>>, vector<1x16xf32>
    %58 = vector.broadcast %57 : vector<1x16xf32> to vector<32x16xf32>
    %59 = arith.mulf %56, %58 : vector<32x16xf32>
    %c1_35 = arith.constant 1 : index
    %c0_36 = arith.constant 0 : index
    %60 = vector.load %arg8[%c1_35, %c0_36] : memref<2x16xf32, #tpu.memory_space<vmem>>, vector<1x16xf32>
    %61 = vector.broadcast %60 : vector<1x16xf32> to vector<32x16xf32>
    %62 = arith.addf %59, %61 : vector<32x16xf32>
    %cst_37 = arith.constant 0.000000e+00 : f32
    %63 = vector.broadcast %cst_37 : f32 to vector<32x16xf32>
    %64 = arith.maximumf %62, %63 : vector<32x16xf32>
    %cst_38 = arith.constant 0.000000e+00 : f32
    %65 = vector.broadcast %cst_38 : f32 to vector<1x2x16xf32>
    %66 = vector.shape_cast %64 : vector<32x16xf32> to vector<16x2x16xf32>
    %67 = tpu.concatenate %65, %66, %65 in 0 : vector<1x2x16xf32>, vector<16x2x16xf32>, vector<1x2x16xf32> -> vector<18x2x16xf32>
    %68 = vector.extract_strided_slice %67 {offsets = [0, 0, 0], sizes = [16, 2, 16], strides = [1, 1, 1]} : vector<18x2x16xf32> to vector<16x2x16xf32>
    %69 = vector.shape_cast %68 : vector<16x2x16xf32> to vector<32x16xf32>
    %c0_39 = arith.constant 0 : index
    %c0_40 = arith.constant 0 : index
    %c0_41 = arith.constant 0 : index
    %70 = vector.load %arg9[%c0_39, %c0_40, %c0_41] : memref<3x16x8xf32, #tpu.memory_space<vmem>>, vector<1x16x8xf32>
    %71 = vector.shape_cast %70 : vector<1x16x8xf32> to vector<16x8xf32>
    %cst_42 = arith.constant dense<0.000000e+00> : vector<32x8xf32>
    %72 = tpu.matmul %69, %71, %cst_42 {dimension_numbers = #tpu.dot_dimension_numbers<[1], [0], [0], [1], [0, 0, 1, 1], [], []>} : vector<32x16xf32>, vector<16x8xf32>, vector<32x8xf32> -> vector<32x8xf32>
    %73 = vector.extract_strided_slice %67 {offsets = [1, 0, 0], sizes = [16, 2, 16], strides = [1, 1, 1]} : vector<18x2x16xf32> to vector<16x2x16xf32>
    %74 = vector.shape_cast %73 : vector<16x2x16xf32> to vector<32x16xf32>
    %c1_43 = arith.constant 1 : index
    %c0_44 = arith.constant 0 : index
    %c0_45 = arith.constant 0 : index
    %75 = vector.load %arg9[%c1_43, %c0_44, %c0_45] : memref<3x16x8xf32, #tpu.memory_space<vmem>>, vector<1x16x8xf32>
    %76 = vector.shape_cast %75 : vector<1x16x8xf32> to vector<16x8xf32>
    %cst_46 = arith.constant dense<0.000000e+00> : vector<32x8xf32>
    %77 = tpu.matmul %74, %76, %cst_46 {dimension_numbers = #tpu.dot_dimension_numbers<[1], [0], [0], [1], [0, 0, 1, 1], [], []>} : vector<32x16xf32>, vector<16x8xf32>, vector<32x8xf32> -> vector<32x8xf32>
    %78 = arith.addf %72, %77 : vector<32x8xf32>
    %79 = vector.extract_strided_slice %67 {offsets = [2, 0, 0], sizes = [16, 2, 16], strides = [1, 1, 1]} : vector<18x2x16xf32> to vector<16x2x16xf32>
    %80 = vector.shape_cast %79 : vector<16x2x16xf32> to vector<32x16xf32>
    %c2_47 = arith.constant 2 : index
    %c0_48 = arith.constant 0 : index
    %c0_49 = arith.constant 0 : index
    %81 = vector.load %arg9[%c2_47, %c0_48, %c0_49] : memref<3x16x8xf32, #tpu.memory_space<vmem>>, vector<1x16x8xf32>
    %82 = vector.shape_cast %81 : vector<1x16x8xf32> to vector<16x8xf32>
    %cst_50 = arith.constant dense<0.000000e+00> : vector<32x8xf32>
    %83 = tpu.matmul %80, %82, %cst_50 {dimension_numbers = #tpu.dot_dimension_numbers<[1], [0], [0], [1], [0, 0, 1, 1], [], []>} : vector<32x16xf32>, vector<16x8xf32>, vector<32x8xf32> -> vector<32x8xf32>
    %84 = arith.addf %78, %83 : vector<32x8xf32>
    %85 = vector.shape_cast %84 : vector<32x8xf32> to vector<16x2x8xf32>
    %86 = tpu.concatenate %43, %85 in 2 : vector<16x2x40xf32>, vector<16x2x8xf32> -> vector<16x2x48xf32>
    %c0_51 = arith.constant 0 : index
    %c0_52 = arith.constant 0 : index
    %87 = vector.load %arg10[%c0_51, %c0_52] : memref<2x48xf32, #tpu.memory_space<vmem>>, vector<1x48xf32>
    %88 = vector.shape_cast %87 : vector<1x48xf32> to vector<1x1x48xf32>
    %89 = vector.broadcast %88 : vector<1x1x48xf32> to vector<16x2x48xf32>
    %90 = arith.mulf %86, %89 : vector<16x2x48xf32>
    %c1_53 = arith.constant 1 : index
    %c0_54 = arith.constant 0 : index
    %91 = vector.load %arg10[%c1_53, %c0_54] : memref<2x48xf32, #tpu.memory_space<vmem>>, vector<1x48xf32>
    %92 = vector.shape_cast %91 : vector<1x48xf32> to vector<1x1x48xf32>
    %93 = vector.broadcast %92 : vector<1x1x48xf32> to vector<16x2x48xf32>
    %94 = arith.addf %90, %93 : vector<16x2x48xf32>
    %cst_55 = arith.constant 0.000000e+00 : f32
    %95 = vector.broadcast %cst_55 : f32 to vector<16x2x48xf32>
    %96 = arith.maximumf %94, %95 : vector<16x2x48xf32>
    %97 = vector.shape_cast %96 : vector<16x2x48xf32> to vector<32x48xf32>
    %c0_56 = arith.constant 0 : index
    %c0_57 = arith.constant 0 : index
    %98 = vector.load %arg11[%c0_56, %c0_57] : memref<48x24xf32, #tpu.memory_space<vmem>>, vector<48x24xf32>
    %cst_58 = arith.constant dense<0.000000e+00> : vector<32x24xf32>
    %99 = tpu.matmul %97, %98, %cst_58 {dimension_numbers = #tpu.dot_dimension_numbers<[1], [0], [0], [1], [0, 0, 1, 1], [], []>} : vector<32x48xf32>, vector<48x24xf32>, vector<32x24xf32> -> vector<32x24xf32>
    %100 = vector.shape_cast %99 : vector<32x24xf32> to vector<16x2x24xf32>
    %101 = vector.shape_cast %100 : vector<16x2x24xf32> to vector<8x2x2x24xf32>
    %102 = vector.extract_strided_slice %101 {offsets = [0, 0, 0, 0], sizes = [8, 1, 2, 24], strides = [1, 1, 1, 1]} : vector<8x2x2x24xf32> to vector<8x1x2x24xf32>
    %103 = vector.shape_cast %102 : vector<8x1x2x24xf32> to vector<8x2x24xf32>
    %104 = vector.extract_strided_slice %101 {offsets = [0, 1, 0, 0], sizes = [8, 1, 2, 24], strides = [1, 1, 1, 1]} : vector<8x2x2x24xf32> to vector<8x1x2x24xf32>
    %105 = vector.shape_cast %104 : vector<8x1x2x24xf32> to vector<8x2x24xf32>
    %106 = arith.addf %103, %105 : vector<8x2x24xf32>
    %cst_59 = arith.constant 5.000000e-01 : f32
    %107 = vector.broadcast %cst_59 : f32 to vector<8x2x24xf32>
    %108 = arith.mulf %106, %107 : vector<8x2x24xf32>
    %c0_60 = arith.constant 0 : index
    %c0_61 = arith.constant 0 : index
    %109 = vector.load %arg12[%c0_60, %c0_61] : memref<2x24xf32, #tpu.memory_space<vmem>>, vector<1x24xf32>
    %110 = vector.shape_cast %109 : vector<1x24xf32> to vector<1x1x24xf32>
    %111 = vector.broadcast %110 : vector<1x1x24xf32> to vector<8x2x24xf32>
    %112 = arith.mulf %108, %111 : vector<8x2x24xf32>
    %c1_62 = arith.constant 1 : index
    %c0_63 = arith.constant 0 : index
    %113 = vector.load %arg12[%c1_62, %c0_63] : memref<2x24xf32, #tpu.memory_space<vmem>>, vector<1x24xf32>
    %114 = vector.shape_cast %113 : vector<1x24xf32> to vector<1x1x24xf32>
    %115 = vector.broadcast %114 : vector<1x1x24xf32> to vector<8x2x24xf32>
    %116 = arith.addf %112, %115 : vector<8x2x24xf32>
    %cst_64 = arith.constant 0.000000e+00 : f32
    %117 = vector.broadcast %cst_64 : f32 to vector<8x2x24xf32>
    %118 = arith.maximumf %116, %117 : vector<8x2x24xf32>
    %119 = vector.shape_cast %118 : vector<8x2x24xf32> to vector<16x24xf32>
    %c0_65 = arith.constant 0 : index
    %c0_66 = arith.constant 0 : index
    %120 = vector.load %arg13[%c0_65, %c0_66] : memref<24x16xf32, #tpu.memory_space<vmem>>, vector<24x16xf32>
    %cst_67 = arith.constant dense<0.000000e+00> : vector<16x16xf32>
    %121 = tpu.matmul %119, %120, %cst_67 {dimension_numbers = #tpu.dot_dimension_numbers<[1], [0], [0], [1], [0, 0, 1, 1], [], []>} : vector<16x24xf32>, vector<24x16xf32>, vector<16x16xf32> -> vector<16x16xf32>
    %c0_68 = arith.constant 0 : index
    %c0_69 = arith.constant 0 : index
    %122 = vector.load %arg14[%c0_68, %c0_69] : memref<2x16xf32, #tpu.memory_space<vmem>>, vector<1x16xf32>
    %123 = vector.broadcast %122 : vector<1x16xf32> to vector<16x16xf32>
    %124 = arith.mulf %121, %123 : vector<16x16xf32>
    %c1_70 = arith.constant 1 : index
    %c0_71 = arith.constant 0 : index
    %125 = vector.load %arg14[%c1_70, %c0_71] : memref<2x16xf32, #tpu.memory_space<vmem>>, vector<1x16xf32>
    %126 = vector.broadcast %125 : vector<1x16xf32> to vector<16x16xf32>
    %127 = arith.addf %124, %126 : vector<16x16xf32>
    %cst_72 = arith.constant 0.000000e+00 : f32
    %128 = vector.broadcast %cst_72 : f32 to vector<16x16xf32>
    %129 = arith.maximumf %127, %128 : vector<16x16xf32>
    %cst_73 = arith.constant 0.000000e+00 : f32
    %130 = vector.broadcast %cst_73 : f32 to vector<1x2x16xf32>
    %131 = vector.shape_cast %129 : vector<16x16xf32> to vector<8x2x16xf32>
    %132 = tpu.concatenate %130, %131, %130 in 0 : vector<1x2x16xf32>, vector<8x2x16xf32>, vector<1x2x16xf32> -> vector<10x2x16xf32>
    %133 = vector.extract_strided_slice %132 {offsets = [0, 0, 0], sizes = [8, 2, 16], strides = [1, 1, 1]} : vector<10x2x16xf32> to vector<8x2x16xf32>
    %134 = vector.shape_cast %133 : vector<8x2x16xf32> to vector<16x16xf32>
    %c0_74 = arith.constant 0 : index
    %c0_75 = arith.constant 0 : index
    %c0_76 = arith.constant 0 : index
    %135 = vector.load %arg15[%c0_74, %c0_75, %c0_76] : memref<3x16x8xf32, #tpu.memory_space<vmem>>, vector<1x16x8xf32>
    %136 = vector.shape_cast %135 : vector<1x16x8xf32> to vector<16x8xf32>
    %cst_77 = arith.constant dense<0.000000e+00> : vector<16x8xf32>
    %137 = tpu.matmul %134, %136, %cst_77 {dimension_numbers = #tpu.dot_dimension_numbers<[1], [0], [0], [1], [0, 0, 1, 1], [], []>} : vector<16x16xf32>, vector<16x8xf32>, vector<16x8xf32> -> vector<16x8xf32>
    %138 = vector.extract_strided_slice %132 {offsets = [1, 0, 0], sizes = [8, 2, 16], strides = [1, 1, 1]} : vector<10x2x16xf32> to vector<8x2x16xf32>
    %139 = vector.shape_cast %138 : vector<8x2x16xf32> to vector<16x16xf32>
    %c1_78 = arith.constant 1 : index
    %c0_79 = arith.constant 0 : index
    %c0_80 = arith.constant 0 : index
    %140 = vector.load %arg15[%c1_78, %c0_79, %c0_80] : memref<3x16x8xf32, #tpu.memory_space<vmem>>, vector<1x16x8xf32>
    %141 = vector.shape_cast %140 : vector<1x16x8xf32> to vector<16x8xf32>
    %cst_81 = arith.constant dense<0.000000e+00> : vector<16x8xf32>
    %142 = tpu.matmul %139, %141, %cst_81 {dimension_numbers = #tpu.dot_dimension_numbers<[1], [0], [0], [1], [0, 0, 1, 1], [], []>} : vector<16x16xf32>, vector<16x8xf32>, vector<16x8xf32> -> vector<16x8xf32>
    %143 = arith.addf %137, %142 : vector<16x8xf32>
    %144 = vector.extract_strided_slice %132 {offsets = [2, 0, 0], sizes = [8, 2, 16], strides = [1, 1, 1]} : vector<10x2x16xf32> to vector<8x2x16xf32>
    %145 = vector.shape_cast %144 : vector<8x2x16xf32> to vector<16x16xf32>
    %c2_82 = arith.constant 2 : index
    %c0_83 = arith.constant 0 : index
    %c0_84 = arith.constant 0 : index
    %146 = vector.load %arg15[%c2_82, %c0_83, %c0_84] : memref<3x16x8xf32, #tpu.memory_space<vmem>>, vector<1x16x8xf32>
    %147 = vector.shape_cast %146 : vector<1x16x8xf32> to vector<16x8xf32>
    %cst_85 = arith.constant dense<0.000000e+00> : vector<16x8xf32>
    %148 = tpu.matmul %145, %147, %cst_85 {dimension_numbers = #tpu.dot_dimension_numbers<[1], [0], [0], [1], [0, 0, 1, 1], [], []>} : vector<16x16xf32>, vector<16x8xf32>, vector<16x8xf32> -> vector<16x8xf32>
    %149 = arith.addf %143, %148 : vector<16x8xf32>
    %150 = vector.shape_cast %149 : vector<16x8xf32> to vector<8x2x8xf32>
    %151 = tpu.concatenate %108, %150 in 2 : vector<8x2x24xf32>, vector<8x2x8xf32> -> vector<8x2x32xf32>
    %c0_86 = arith.constant 0 : index
    %c0_87 = arith.constant 0 : index
    %152 = vector.load %arg16[%c0_86, %c0_87] : memref<2x32xf32, #tpu.memory_space<vmem>>, vector<1x32xf32>
    %153 = vector.shape_cast %152 : vector<1x32xf32> to vector<1x1x32xf32>
    %154 = vector.broadcast %153 : vector<1x1x32xf32> to vector<8x2x32xf32>
    %155 = arith.mulf %151, %154 : vector<8x2x32xf32>
    %c1_88 = arith.constant 1 : index
    %c0_89 = arith.constant 0 : index
    %156 = vector.load %arg16[%c1_88, %c0_89] : memref<2x32xf32, #tpu.memory_space<vmem>>, vector<1x32xf32>
    %157 = vector.shape_cast %156 : vector<1x32xf32> to vector<1x1x32xf32>
    %158 = vector.broadcast %157 : vector<1x1x32xf32> to vector<8x2x32xf32>
    %159 = arith.addf %155, %158 : vector<8x2x32xf32>
    %cst_90 = arith.constant 0.000000e+00 : f32
    %160 = vector.broadcast %cst_90 : f32 to vector<8x2x32xf32>
    %161 = arith.maximumf %159, %160 : vector<8x2x32xf32>
    %162 = vector.shape_cast %161 : vector<8x2x32xf32> to vector<16x32xf32>
    %c0_91 = arith.constant 0 : index
    %c0_92 = arith.constant 0 : index
    %163 = vector.load %arg17[%c0_91, %c0_92] : memref<32x16xf32, #tpu.memory_space<vmem>>, vector<32x16xf32>
    %cst_93 = arith.constant dense<0.000000e+00> : vector<16x16xf32>
    %164 = tpu.matmul %162, %163, %cst_93 {dimension_numbers = #tpu.dot_dimension_numbers<[1], [0], [0], [1], [0, 0, 1, 1], [], []>} : vector<16x32xf32>, vector<32x16xf32>, vector<16x16xf32> -> vector<16x16xf32>
    %c0_94 = arith.constant 0 : index
    %c0_95 = arith.constant 0 : index
    %165 = vector.load %arg18[%c0_94, %c0_95] : memref<2x16xf32, #tpu.memory_space<vmem>>, vector<1x16xf32>
    %166 = vector.broadcast %165 : vector<1x16xf32> to vector<16x16xf32>
    %167 = arith.mulf %164, %166 : vector<16x16xf32>
    %c1_96 = arith.constant 1 : index
    %c0_97 = arith.constant 0 : index
    %168 = vector.load %arg18[%c1_96, %c0_97] : memref<2x16xf32, #tpu.memory_space<vmem>>, vector<1x16xf32>
    %169 = vector.broadcast %168 : vector<1x16xf32> to vector<16x16xf32>
    %170 = arith.addf %167, %169 : vector<16x16xf32>
    %cst_98 = arith.constant 0.000000e+00 : f32
    %171 = vector.broadcast %cst_98 : f32 to vector<16x16xf32>
    %172 = arith.maximumf %170, %171 : vector<16x16xf32>
    %cst_99 = arith.constant 0.000000e+00 : f32
    %173 = vector.broadcast %cst_99 : f32 to vector<1x2x16xf32>
    %174 = vector.shape_cast %172 : vector<16x16xf32> to vector<8x2x16xf32>
    %175 = tpu.concatenate %173, %174, %173 in 0 : vector<1x2x16xf32>, vector<8x2x16xf32>, vector<1x2x16xf32> -> vector<10x2x16xf32>
    %176 = vector.extract_strided_slice %175 {offsets = [0, 0, 0], sizes = [8, 2, 16], strides = [1, 1, 1]} : vector<10x2x16xf32> to vector<8x2x16xf32>
    %177 = vector.shape_cast %176 : vector<8x2x16xf32> to vector<16x16xf32>
    %c0_100 = arith.constant 0 : index
    %c0_101 = arith.constant 0 : index
    %c0_102 = arith.constant 0 : index
    %178 = vector.load %arg19[%c0_100, %c0_101, %c0_102] : memref<3x16x8xf32, #tpu.memory_space<vmem>>, vector<1x16x8xf32>
    %179 = vector.shape_cast %178 : vector<1x16x8xf32> to vector<16x8xf32>
    %cst_103 = arith.constant dense<0.000000e+00> : vector<16x8xf32>
    %180 = tpu.matmul %177, %179, %cst_103 {dimension_numbers = #tpu.dot_dimension_numbers<[1], [0], [0], [1], [0, 0, 1, 1], [], []>} : vector<16x16xf32>, vector<16x8xf32>, vector<16x8xf32> -> vector<16x8xf32>
    %181 = vector.extract_strided_slice %175 {offsets = [1, 0, 0], sizes = [8, 2, 16], strides = [1, 1, 1]} : vector<10x2x16xf32> to vector<8x2x16xf32>
    %182 = vector.shape_cast %181 : vector<8x2x16xf32> to vector<16x16xf32>
    %c1_104 = arith.constant 1 : index
    %c0_105 = arith.constant 0 : index
    %c0_106 = arith.constant 0 : index
    %183 = vector.load %arg19[%c1_104, %c0_105, %c0_106] : memref<3x16x8xf32, #tpu.memory_space<vmem>>, vector<1x16x8xf32>
    %184 = vector.shape_cast %183 : vector<1x16x8xf32> to vector<16x8xf32>
    %cst_107 = arith.constant dense<0.000000e+00> : vector<16x8xf32>
    %185 = tpu.matmul %182, %184, %cst_107 {dimension_numbers = #tpu.dot_dimension_numbers<[1], [0], [0], [1], [0, 0, 1, 1], [], []>} : vector<16x16xf32>, vector<16x8xf32>, vector<16x8xf32> -> vector<16x8xf32>
    %186 = arith.addf %180, %185 : vector<16x8xf32>
    %187 = vector.extract_strided_slice %175 {offsets = [2, 0, 0], sizes = [8, 2, 16], strides = [1, 1, 1]} : vector<10x2x16xf32> to vector<8x2x16xf32>
    %188 = vector.shape_cast %187 : vector<8x2x16xf32> to vector<16x16xf32>
    %c2_108 = arith.constant 2 : index
    %c0_109 = arith.constant 0 : index
    %c0_110 = arith.constant 0 : index
    %189 = vector.load %arg19[%c2_108, %c0_109, %c0_110] : memref<3x16x8xf32, #tpu.memory_space<vmem>>, vector<1x16x8xf32>
    %190 = vector.shape_cast %189 : vector<1x16x8xf32> to vector<16x8xf32>
    %cst_111 = arith.constant dense<0.000000e+00> : vector<16x8xf32>
    %191 = tpu.matmul %188, %190, %cst_111 {dimension_numbers = #tpu.dot_dimension_numbers<[1], [0], [0], [1], [0, 0, 1, 1], [], []>} : vector<16x16xf32>, vector<16x8xf32>, vector<16x8xf32> -> vector<16x8xf32>
    %192 = arith.addf %186, %191 : vector<16x8xf32>
    %193 = vector.shape_cast %192 : vector<16x8xf32> to vector<8x2x8xf32>
    %194 = tpu.concatenate %151, %193 in 2 : vector<8x2x32xf32>, vector<8x2x8xf32> -> vector<8x2x40xf32>
    %c0_112 = arith.constant 0 : index
    %c0_113 = arith.constant 0 : index
    %195 = vector.load %arg20[%c0_112, %c0_113] : memref<2x40xf32, #tpu.memory_space<vmem>>, vector<1x40xf32>
    %196 = vector.shape_cast %195 : vector<1x40xf32> to vector<1x1x40xf32>
    %197 = vector.broadcast %196 : vector<1x1x40xf32> to vector<8x2x40xf32>
    %198 = arith.mulf %194, %197 : vector<8x2x40xf32>
    %c1_114 = arith.constant 1 : index
    %c0_115 = arith.constant 0 : index
    %199 = vector.load %arg20[%c1_114, %c0_115] : memref<2x40xf32, #tpu.memory_space<vmem>>, vector<1x40xf32>
    %200 = vector.shape_cast %199 : vector<1x40xf32> to vector<1x1x40xf32>
    %201 = vector.broadcast %200 : vector<1x1x40xf32> to vector<8x2x40xf32>
    %202 = arith.addf %198, %201 : vector<8x2x40xf32>
    %cst_116 = arith.constant 0.000000e+00 : f32
    %203 = vector.broadcast %cst_116 : f32 to vector<8x2x40xf32>
    %204 = arith.maximumf %202, %203 : vector<8x2x40xf32>
    %205 = vector.shape_cast %204 : vector<8x2x40xf32> to vector<16x40xf32>
    %c0_117 = arith.constant 0 : index
    %c0_118 = arith.constant 0 : index
    %206 = vector.load %arg21[%c0_117, %c0_118] : memref<40x20xf32, #tpu.memory_space<vmem>>, vector<40x20xf32>
    %cst_119 = arith.constant dense<0.000000e+00> : vector<16x20xf32>
    %207 = tpu.matmul %205, %206, %cst_119 {dimension_numbers = #tpu.dot_dimension_numbers<[1], [0], [0], [1], [0, 0, 1, 1], [], []>} : vector<16x40xf32>, vector<40x20xf32>, vector<16x20xf32> -> vector<16x20xf32>
    %208 = vector.shape_cast %207 : vector<16x20xf32> to vector<8x2x20xf32>
    %209 = vector.shape_cast %208 : vector<8x2x20xf32> to vector<4x2x2x20xf32>
    %210 = vector.extract_strided_slice %209 {offsets = [0, 0, 0, 0], sizes = [4, 1, 2, 20], strides = [1, 1, 1, 1]} : vector<4x2x2x20xf32> to vector<4x1x2x20xf32>
    %211 = vector.shape_cast %210 : vector<4x1x2x20xf32> to vector<4x2x20xf32>
    %212 = vector.extract_strided_slice %209 {offsets = [0, 1, 0, 0], sizes = [4, 1, 2, 20], strides = [1, 1, 1, 1]} : vector<4x2x2x20xf32> to vector<4x1x2x20xf32>
    %213 = vector.shape_cast %212 : vector<4x1x2x20xf32> to vector<4x2x20xf32>
    %214 = arith.addf %211, %213 : vector<4x2x20xf32>
    %cst_120 = arith.constant 5.000000e-01 : f32
    %215 = vector.broadcast %cst_120 : f32 to vector<4x2x20xf32>
    %216 = arith.mulf %214, %215 : vector<4x2x20xf32>
    %c0_121 = arith.constant 0 : index
    %c0_122 = arith.constant 0 : index
    %217 = vector.load %arg22[%c0_121, %c0_122] : memref<2x20xf32, #tpu.memory_space<vmem>>, vector<1x20xf32>
    %218 = vector.shape_cast %217 : vector<1x20xf32> to vector<1x1x20xf32>
    %219 = vector.broadcast %218 : vector<1x1x20xf32> to vector<4x2x20xf32>
    %220 = arith.mulf %216, %219 : vector<4x2x20xf32>
    %c1_123 = arith.constant 1 : index
    %c0_124 = arith.constant 0 : index
    %221 = vector.load %arg22[%c1_123, %c0_124] : memref<2x20xf32, #tpu.memory_space<vmem>>, vector<1x20xf32>
    %222 = vector.shape_cast %221 : vector<1x20xf32> to vector<1x1x20xf32>
    %223 = vector.broadcast %222 : vector<1x1x20xf32> to vector<4x2x20xf32>
    %224 = arith.addf %220, %223 : vector<4x2x20xf32>
    %cst_125 = arith.constant 0.000000e+00 : f32
    %225 = vector.broadcast %cst_125 : f32 to vector<4x2x20xf32>
    %226 = arith.maximumf %224, %225 : vector<4x2x20xf32>
    %227 = vector.shape_cast %226 : vector<4x2x20xf32> to vector<8x20xf32>
    %c0_126 = arith.constant 0 : index
    %c0_127 = arith.constant 0 : index
    %228 = vector.load %arg23[%c0_126, %c0_127] : memref<20x16xf32, #tpu.memory_space<vmem>>, vector<20x16xf32>
    %cst_128 = arith.constant dense<0.000000e+00> : vector<8x16xf32>
    %229 = tpu.matmul %227, %228, %cst_128 {dimension_numbers = #tpu.dot_dimension_numbers<[1], [0], [0], [1], [0, 0, 1, 1], [], []>} : vector<8x20xf32>, vector<20x16xf32>, vector<8x16xf32> -> vector<8x16xf32>
    %c0_129 = arith.constant 0 : index
    %c0_130 = arith.constant 0 : index
    %230 = vector.load %arg24[%c0_129, %c0_130] : memref<2x16xf32, #tpu.memory_space<vmem>>, vector<1x16xf32>
    %231 = vector.broadcast %230 : vector<1x16xf32> to vector<8x16xf32>
    %232 = arith.mulf %229, %231 : vector<8x16xf32>
    %c1_131 = arith.constant 1 : index
    %c0_132 = arith.constant 0 : index
    %233 = vector.load %arg24[%c1_131, %c0_132] : memref<2x16xf32, #tpu.memory_space<vmem>>, vector<1x16xf32>
    %234 = vector.broadcast %233 : vector<1x16xf32> to vector<8x16xf32>
    %235 = arith.addf %232, %234 : vector<8x16xf32>
    %cst_133 = arith.constant 0.000000e+00 : f32
    %236 = vector.broadcast %cst_133 : f32 to vector<8x16xf32>
    %237 = arith.maximumf %235, %236 : vector<8x16xf32>
    %cst_134 = arith.constant 0.000000e+00 : f32
    %238 = vector.broadcast %cst_134 : f32 to vector<1x2x16xf32>
    %239 = vector.shape_cast %237 : vector<8x16xf32> to vector<4x2x16xf32>
    %240 = tpu.concatenate %238, %239, %238 in 0 : vector<1x2x16xf32>, vector<4x2x16xf32>, vector<1x2x16xf32> -> vector<6x2x16xf32>
    %241 = vector.extract_strided_slice %240 {offsets = [0, 0, 0], sizes = [4, 2, 16], strides = [1, 1, 1]} : vector<6x2x16xf32> to vector<4x2x16xf32>
    %242 = vector.shape_cast %241 : vector<4x2x16xf32> to vector<8x16xf32>
    %c0_135 = arith.constant 0 : index
    %c0_136 = arith.constant 0 : index
    %c0_137 = arith.constant 0 : index
    %243 = vector.load %arg25[%c0_135, %c0_136, %c0_137] : memref<3x16x8xf32, #tpu.memory_space<vmem>>, vector<1x16x8xf32>
    %244 = vector.shape_cast %243 : vector<1x16x8xf32> to vector<16x8xf32>
    %cst_138 = arith.constant dense<0.000000e+00> : vector<8x8xf32>
    %245 = tpu.matmul %242, %244, %cst_138 {dimension_numbers = #tpu.dot_dimension_numbers<[1], [0], [0], [1], [0, 0, 1, 1], [], []>} : vector<8x16xf32>, vector<16x8xf32>, vector<8x8xf32> -> vector<8x8xf32>
    %246 = vector.extract_strided_slice %240 {offsets = [1, 0, 0], sizes = [4, 2, 16], strides = [1, 1, 1]} : vector<6x2x16xf32> to vector<4x2x16xf32>
    %247 = vector.shape_cast %246 : vector<4x2x16xf32> to vector<8x16xf32>
    %c1_139 = arith.constant 1 : index
    %c0_140 = arith.constant 0 : index
    %c0_141 = arith.constant 0 : index
    %248 = vector.load %arg25[%c1_139, %c0_140, %c0_141] : memref<3x16x8xf32, #tpu.memory_space<vmem>>, vector<1x16x8xf32>
    %249 = vector.shape_cast %248 : vector<1x16x8xf32> to vector<16x8xf32>
    %cst_142 = arith.constant dense<0.000000e+00> : vector<8x8xf32>
    %250 = tpu.matmul %247, %249, %cst_142 {dimension_numbers = #tpu.dot_dimension_numbers<[1], [0], [0], [1], [0, 0, 1, 1], [], []>} : vector<8x16xf32>, vector<16x8xf32>, vector<8x8xf32> -> vector<8x8xf32>
    %251 = arith.addf %245, %250 : vector<8x8xf32>
    %252 = vector.extract_strided_slice %240 {offsets = [2, 0, 0], sizes = [4, 2, 16], strides = [1, 1, 1]} : vector<6x2x16xf32> to vector<4x2x16xf32>
    %253 = vector.shape_cast %252 : vector<4x2x16xf32> to vector<8x16xf32>
    %c2_143 = arith.constant 2 : index
    %c0_144 = arith.constant 0 : index
    %c0_145 = arith.constant 0 : index
    %254 = vector.load %arg25[%c2_143, %c0_144, %c0_145] : memref<3x16x8xf32, #tpu.memory_space<vmem>>, vector<1x16x8xf32>
    %255 = vector.shape_cast %254 : vector<1x16x8xf32> to vector<16x8xf32>
    %cst_146 = arith.constant dense<0.000000e+00> : vector<8x8xf32>
    %256 = tpu.matmul %253, %255, %cst_146 {dimension_numbers = #tpu.dot_dimension_numbers<[1], [0], [0], [1], [0, 0, 1, 1], [], []>} : vector<8x16xf32>, vector<16x8xf32>, vector<8x8xf32> -> vector<8x8xf32>
    %257 = arith.addf %251, %256 : vector<8x8xf32>
    %258 = vector.shape_cast %257 : vector<8x8xf32> to vector<4x2x8xf32>
    %259 = tpu.concatenate %216, %258 in 2 : vector<4x2x20xf32>, vector<4x2x8xf32> -> vector<4x2x28xf32>
    %c0_147 = arith.constant 0 : index
    %c0_148 = arith.constant 0 : index
    %260 = vector.load %arg26[%c0_147, %c0_148] : memref<2x28xf32, #tpu.memory_space<vmem>>, vector<1x28xf32>
    %261 = vector.shape_cast %260 : vector<1x28xf32> to vector<1x1x28xf32>
    %262 = vector.broadcast %261 : vector<1x1x28xf32> to vector<4x2x28xf32>
    %263 = arith.mulf %259, %262 : vector<4x2x28xf32>
    %c1_149 = arith.constant 1 : index
    %c0_150 = arith.constant 0 : index
    %264 = vector.load %arg26[%c1_149, %c0_150] : memref<2x28xf32, #tpu.memory_space<vmem>>, vector<1x28xf32>
    %265 = vector.shape_cast %264 : vector<1x28xf32> to vector<1x1x28xf32>
    %266 = vector.broadcast %265 : vector<1x1x28xf32> to vector<4x2x28xf32>
    %267 = arith.addf %263, %266 : vector<4x2x28xf32>
    %cst_151 = arith.constant 0.000000e+00 : f32
    %268 = vector.broadcast %cst_151 : f32 to vector<4x2x28xf32>
    %269 = arith.maximumf %267, %268 : vector<4x2x28xf32>
    %270 = vector.shape_cast %269 : vector<4x2x28xf32> to vector<8x28xf32>
    %c0_152 = arith.constant 0 : index
    %c0_153 = arith.constant 0 : index
    %271 = vector.load %arg27[%c0_152, %c0_153] : memref<28x16xf32, #tpu.memory_space<vmem>>, vector<28x16xf32>
    %cst_154 = arith.constant dense<0.000000e+00> : vector<8x16xf32>
    %272 = tpu.matmul %270, %271, %cst_154 {dimension_numbers = #tpu.dot_dimension_numbers<[1], [0], [0], [1], [0, 0, 1, 1], [], []>} : vector<8x28xf32>, vector<28x16xf32>, vector<8x16xf32> -> vector<8x16xf32>
    %c0_155 = arith.constant 0 : index
    %c0_156 = arith.constant 0 : index
    %273 = vector.load %arg28[%c0_155, %c0_156] : memref<2x16xf32, #tpu.memory_space<vmem>>, vector<1x16xf32>
    %274 = vector.broadcast %273 : vector<1x16xf32> to vector<8x16xf32>
    %275 = arith.mulf %272, %274 : vector<8x16xf32>
    %c1_157 = arith.constant 1 : index
    %c0_158 = arith.constant 0 : index
    %276 = vector.load %arg28[%c1_157, %c0_158] : memref<2x16xf32, #tpu.memory_space<vmem>>, vector<1x16xf32>
    %277 = vector.broadcast %276 : vector<1x16xf32> to vector<8x16xf32>
    %278 = arith.addf %275, %277 : vector<8x16xf32>
    %cst_159 = arith.constant 0.000000e+00 : f32
    %279 = vector.broadcast %cst_159 : f32 to vector<8x16xf32>
    %280 = arith.maximumf %278, %279 : vector<8x16xf32>
    %cst_160 = arith.constant 0.000000e+00 : f32
    %281 = vector.broadcast %cst_160 : f32 to vector<1x2x16xf32>
    %282 = vector.shape_cast %280 : vector<8x16xf32> to vector<4x2x16xf32>
    %283 = tpu.concatenate %281, %282, %281 in 0 : vector<1x2x16xf32>, vector<4x2x16xf32>, vector<1x2x16xf32> -> vector<6x2x16xf32>
    %284 = vector.extract_strided_slice %283 {offsets = [0, 0, 0], sizes = [4, 2, 16], strides = [1, 1, 1]} : vector<6x2x16xf32> to vector<4x2x16xf32>
    %285 = vector.shape_cast %284 : vector<4x2x16xf32> to vector<8x16xf32>
    %c0_161 = arith.constant 0 : index
    %c0_162 = arith.constant 0 : index
    %c0_163 = arith.constant 0 : index
    %286 = vector.load %arg29[%c0_161, %c0_162, %c0_163] : memref<3x16x8xf32, #tpu.memory_space<vmem>>, vector<1x16x8xf32>
    %287 = vector.shape_cast %286 : vector<1x16x8xf32> to vector<16x8xf32>
    %cst_164 = arith.constant dense<0.000000e+00> : vector<8x8xf32>
    %288 = tpu.matmul %285, %287, %cst_164 {dimension_numbers = #tpu.dot_dimension_numbers<[1], [0], [0], [1], [0, 0, 1, 1], [], []>} : vector<8x16xf32>, vector<16x8xf32>, vector<8x8xf32> -> vector<8x8xf32>
    %289 = vector.extract_strided_slice %283 {offsets = [1, 0, 0], sizes = [4, 2, 16], strides = [1, 1, 1]} : vector<6x2x16xf32> to vector<4x2x16xf32>
    %290 = vector.shape_cast %289 : vector<4x2x16xf32> to vector<8x16xf32>
    %c1_165 = arith.constant 1 : index
    %c0_166 = arith.constant 0 : index
    %c0_167 = arith.constant 0 : index
    %291 = vector.load %arg29[%c1_165, %c0_166, %c0_167] : memref<3x16x8xf32, #tpu.memory_space<vmem>>, vector<1x16x8xf32>
    %292 = vector.shape_cast %291 : vector<1x16x8xf32> to vector<16x8xf32>
    %cst_168 = arith.constant dense<0.000000e+00> : vector<8x8xf32>
    %293 = tpu.matmul %290, %292, %cst_168 {dimension_numbers = #tpu.dot_dimension_numbers<[1], [0], [0], [1], [0, 0, 1, 1], [], []>} : vector<8x16xf32>, vector<16x8xf32>, vector<8x8xf32> -> vector<8x8xf32>
    %294 = arith.addf %288, %293 : vector<8x8xf32>
    %295 = vector.extract_strided_slice %283 {offsets = [2, 0, 0], sizes = [4, 2, 16], strides = [1, 1, 1]} : vector<6x2x16xf32> to vector<4x2x16xf32>
    %296 = vector.shape_cast %295 : vector<4x2x16xf32> to vector<8x16xf32>
    %c2_169 = arith.constant 2 : index
    %c0_170 = arith.constant 0 : index
    %c0_171 = arith.constant 0 : index
    %297 = vector.load %arg29[%c2_169, %c0_170, %c0_171] : memref<3x16x8xf32, #tpu.memory_space<vmem>>, vector<1x16x8xf32>
    %298 = vector.shape_cast %297 : vector<1x16x8xf32> to vector<16x8xf32>
    %cst_172 = arith.constant dense<0.000000e+00> : vector<8x8xf32>
    %299 = tpu.matmul %296, %298, %cst_172 {dimension_numbers = #tpu.dot_dimension_numbers<[1], [0], [0], [1], [0, 0, 1, 1], [], []>} : vector<8x16xf32>, vector<16x8xf32>, vector<8x8xf32> -> vector<8x8xf32>
    %300 = arith.addf %294, %299 : vector<8x8xf32>
    %301 = vector.shape_cast %300 : vector<8x8xf32> to vector<4x2x8xf32>
    %302 = tpu.concatenate %259, %301 in 2 : vector<4x2x28xf32>, vector<4x2x8xf32> -> vector<4x2x36xf32>
    %c0_173 = arith.constant 0 : index
    %c0_174 = arith.constant 0 : index
    %303 = vector.load %arg30[%c0_173, %c0_174] : memref<2x36xf32, #tpu.memory_space<vmem>>, vector<1x36xf32>
    %304 = vector.shape_cast %303 : vector<1x36xf32> to vector<1x1x36xf32>
    %305 = vector.broadcast %304 : vector<1x1x36xf32> to vector<4x2x36xf32>
    %306 = arith.mulf %302, %305 : vector<4x2x36xf32>
    %c1_175 = arith.constant 1 : index
    %c0_176 = arith.constant 0 : index
    %307 = vector.load %arg30[%c1_175, %c0_176] : memref<2x36xf32, #tpu.memory_space<vmem>>, vector<1x36xf32>
    %308 = vector.shape_cast %307 : vector<1x36xf32> to vector<1x1x36xf32>
    %309 = vector.broadcast %308 : vector<1x1x36xf32> to vector<4x2x36xf32>
    %310 = arith.addf %306, %309 : vector<4x2x36xf32>
    %cst_177 = arith.constant 0.000000e+00 : f32
    %311 = vector.broadcast %cst_177 : f32 to vector<4x2x36xf32>
    %312 = arith.maximumf %310, %311 : vector<4x2x36xf32>
    %313 = vector.shape_cast %312 : vector<4x2x36xf32> to vector<8x36xf32>
    %c0_178 = arith.constant 0 : index
    %c0_179 = arith.constant 0 : index
    %314 = vector.load %arg31[%c0_178, %c0_179] : memref<36x16xf32, #tpu.memory_space<vmem>>, vector<36x16xf32>
    %cst_180 = arith.constant dense<0.000000e+00> : vector<8x16xf32>
    %315 = tpu.matmul %313, %314, %cst_180 {dimension_numbers = #tpu.dot_dimension_numbers<[1], [0], [0], [1], [0, 0, 1, 1], [], []>} : vector<8x36xf32>, vector<36x16xf32>, vector<8x16xf32> -> vector<8x16xf32>
    %c0_181 = arith.constant 0 : index
    %c0_182 = arith.constant 0 : index
    %316 = vector.load %arg32[%c0_181, %c0_182] : memref<2x16xf32, #tpu.memory_space<vmem>>, vector<1x16xf32>
    %317 = vector.broadcast %316 : vector<1x16xf32> to vector<8x16xf32>
    %318 = arith.mulf %315, %317 : vector<8x16xf32>
    %c1_183 = arith.constant 1 : index
    %c0_184 = arith.constant 0 : index
    %319 = vector.load %arg32[%c1_183, %c0_184] : memref<2x16xf32, #tpu.memory_space<vmem>>, vector<1x16xf32>
    %320 = vector.broadcast %319 : vector<1x16xf32> to vector<8x16xf32>
    %321 = arith.addf %318, %320 : vector<8x16xf32>
    %cst_185 = arith.constant 0.000000e+00 : f32
    %322 = vector.broadcast %cst_185 : f32 to vector<8x16xf32>
    %323 = arith.maximumf %321, %322 : vector<8x16xf32>
    %cst_186 = arith.constant 0.000000e+00 : f32
    %324 = vector.broadcast %cst_186 : f32 to vector<1x2x16xf32>
    %325 = vector.shape_cast %323 : vector<8x16xf32> to vector<4x2x16xf32>
    %326 = tpu.concatenate %324, %325, %324 in 0 : vector<1x2x16xf32>, vector<4x2x16xf32>, vector<1x2x16xf32> -> vector<6x2x16xf32>
    %327 = vector.extract_strided_slice %326 {offsets = [0, 0, 0], sizes = [4, 2, 16], strides = [1, 1, 1]} : vector<6x2x16xf32> to vector<4x2x16xf32>
    %328 = vector.shape_cast %327 : vector<4x2x16xf32> to vector<8x16xf32>
    %c0_187 = arith.constant 0 : index
    %c0_188 = arith.constant 0 : index
    %c0_189 = arith.constant 0 : index
    %329 = vector.load %arg33[%c0_187, %c0_188, %c0_189] : memref<3x16x8xf32, #tpu.memory_space<vmem>>, vector<1x16x8xf32>
    %330 = vector.shape_cast %329 : vector<1x16x8xf32> to vector<16x8xf32>
    %cst_190 = arith.constant dense<0.000000e+00> : vector<8x8xf32>
    %331 = tpu.matmul %328, %330, %cst_190 {dimension_numbers = #tpu.dot_dimension_numbers<[1], [0], [0], [1], [0, 0, 1, 1], [], []>} : vector<8x16xf32>, vector<16x8xf32>, vector<8x8xf32> -> vector<8x8xf32>
    %332 = vector.extract_strided_slice %326 {offsets = [1, 0, 0], sizes = [4, 2, 16], strides = [1, 1, 1]} : vector<6x2x16xf32> to vector<4x2x16xf32>
    %333 = vector.shape_cast %332 : vector<4x2x16xf32> to vector<8x16xf32>
    %c1_191 = arith.constant 1 : index
    %c0_192 = arith.constant 0 : index
    %c0_193 = arith.constant 0 : index
    %334 = vector.load %arg33[%c1_191, %c0_192, %c0_193] : memref<3x16x8xf32, #tpu.memory_space<vmem>>, vector<1x16x8xf32>
    %335 = vector.shape_cast %334 : vector<1x16x8xf32> to vector<16x8xf32>
    %cst_194 = arith.constant dense<0.000000e+00> : vector<8x8xf32>
    %336 = tpu.matmul %333, %335, %cst_194 {dimension_numbers = #tpu.dot_dimension_numbers<[1], [0], [0], [1], [0, 0, 1, 1], [], []>} : vector<8x16xf32>, vector<16x8xf32>, vector<8x8xf32> -> vector<8x8xf32>
    %337 = arith.addf %331, %336 : vector<8x8xf32>
    %338 = vector.extract_strided_slice %326 {offsets = [2, 0, 0], sizes = [4, 2, 16], strides = [1, 1, 1]} : vector<6x2x16xf32> to vector<4x2x16xf32>
    %339 = vector.shape_cast %338 : vector<4x2x16xf32> to vector<8x16xf32>
    %c2_195 = arith.constant 2 : index
    %c0_196 = arith.constant 0 : index
    %c0_197 = arith.constant 0 : index
    %340 = vector.load %arg33[%c2_195, %c0_196, %c0_197] : memref<3x16x8xf32, #tpu.memory_space<vmem>>, vector<1x16x8xf32>
    %341 = vector.shape_cast %340 : vector<1x16x8xf32> to vector<16x8xf32>
    %cst_198 = arith.constant dense<0.000000e+00> : vector<8x8xf32>
    %342 = tpu.matmul %339, %341, %cst_198 {dimension_numbers = #tpu.dot_dimension_numbers<[1], [0], [0], [1], [0, 0, 1, 1], [], []>} : vector<8x16xf32>, vector<16x8xf32>, vector<8x8xf32> -> vector<8x8xf32>
    %343 = arith.addf %337, %342 : vector<8x8xf32>
    %344 = vector.shape_cast %343 : vector<8x8xf32> to vector<4x2x8xf32>
    %345 = tpu.concatenate %302, %344 in 2 : vector<4x2x36xf32>, vector<4x2x8xf32> -> vector<4x2x44xf32>
    %c0_199 = arith.constant 0 : index
    %c0_200 = arith.constant 0 : index
    %346 = vector.load %arg34[%c0_199, %c0_200] : memref<2x44xf32, #tpu.memory_space<vmem>>, vector<1x44xf32>
    %347 = vector.shape_cast %346 : vector<1x44xf32> to vector<1x1x44xf32>
    %348 = vector.broadcast %347 : vector<1x1x44xf32> to vector<4x2x44xf32>
    %349 = arith.mulf %345, %348 : vector<4x2x44xf32>
    %c1_201 = arith.constant 1 : index
    %c0_202 = arith.constant 0 : index
    %350 = vector.load %arg34[%c1_201, %c0_202] : memref<2x44xf32, #tpu.memory_space<vmem>>, vector<1x44xf32>
    %351 = vector.shape_cast %350 : vector<1x44xf32> to vector<1x1x44xf32>
    %352 = vector.broadcast %351 : vector<1x1x44xf32> to vector<4x2x44xf32>
    %353 = arith.addf %349, %352 : vector<4x2x44xf32>
    %cst_203 = arith.constant 0.000000e+00 : f32
    %354 = vector.broadcast %cst_203 : f32 to vector<4x2x44xf32>
    %355 = arith.maximumf %353, %354 : vector<4x2x44xf32>
    %356 = vector.shape_cast %355 : vector<4x2x44xf32> to vector<8x44xf32>
    %c0_204 = arith.constant 0 : index
    %c0_205 = arith.constant 0 : index
    %357 = vector.load %arg35[%c0_204, %c0_205] : memref<44x16xf32, #tpu.memory_space<vmem>>, vector<44x16xf32>
    %cst_206 = arith.constant dense<0.000000e+00> : vector<8x16xf32>
    %358 = tpu.matmul %356, %357, %cst_206 {dimension_numbers = #tpu.dot_dimension_numbers<[1], [0], [0], [1], [0, 0, 1, 1], [], []>} : vector<8x44xf32>, vector<44x16xf32>, vector<8x16xf32> -> vector<8x16xf32>
    %c0_207 = arith.constant 0 : index
    %c0_208 = arith.constant 0 : index
    %359 = vector.load %arg36[%c0_207, %c0_208] : memref<2x16xf32, #tpu.memory_space<vmem>>, vector<1x16xf32>
    %360 = vector.broadcast %359 : vector<1x16xf32> to vector<8x16xf32>
    %361 = arith.mulf %358, %360 : vector<8x16xf32>
    %c1_209 = arith.constant 1 : index
    %c0_210 = arith.constant 0 : index
    %362 = vector.load %arg36[%c1_209, %c0_210] : memref<2x16xf32, #tpu.memory_space<vmem>>, vector<1x16xf32>
    %363 = vector.broadcast %362 : vector<1x16xf32> to vector<8x16xf32>
    %364 = arith.addf %361, %363 : vector<8x16xf32>
    %cst_211 = arith.constant 0.000000e+00 : f32
    %365 = vector.broadcast %cst_211 : f32 to vector<8x16xf32>
    %366 = arith.maximumf %364, %365 : vector<8x16xf32>
    %cst_212 = arith.constant 0.000000e+00 : f32
    %367 = vector.broadcast %cst_212 : f32 to vector<1x2x16xf32>
    %368 = vector.shape_cast %366 : vector<8x16xf32> to vector<4x2x16xf32>
    %369 = tpu.concatenate %367, %368, %367 in 0 : vector<1x2x16xf32>, vector<4x2x16xf32>, vector<1x2x16xf32> -> vector<6x2x16xf32>
    %370 = vector.extract_strided_slice %369 {offsets = [0, 0, 0], sizes = [4, 2, 16], strides = [1, 1, 1]} : vector<6x2x16xf32> to vector<4x2x16xf32>
    %371 = vector.shape_cast %370 : vector<4x2x16xf32> to vector<8x16xf32>
    %c0_213 = arith.constant 0 : index
    %c0_214 = arith.constant 0 : index
    %c0_215 = arith.constant 0 : index
    %372 = vector.load %arg37[%c0_213, %c0_214, %c0_215] : memref<3x16x8xf32, #tpu.memory_space<vmem>>, vector<1x16x8xf32>
    %373 = vector.shape_cast %372 : vector<1x16x8xf32> to vector<16x8xf32>
    %cst_216 = arith.constant dense<0.000000e+00> : vector<8x8xf32>
    %374 = tpu.matmul %371, %373, %cst_216 {dimension_numbers = #tpu.dot_dimension_numbers<[1], [0], [0], [1], [0, 0, 1, 1], [], []>} : vector<8x16xf32>, vector<16x8xf32>, vector<8x8xf32> -> vector<8x8xf32>
    %375 = vector.extract_strided_slice %369 {offsets = [1, 0, 0], sizes = [4, 2, 16], strides = [1, 1, 1]} : vector<6x2x16xf32> to vector<4x2x16xf32>
    %376 = vector.shape_cast %375 : vector<4x2x16xf32> to vector<8x16xf32>
    %c1_217 = arith.constant 1 : index
    %c0_218 = arith.constant 0 : index
    %c0_219 = arith.constant 0 : index
    %377 = vector.load %arg37[%c1_217, %c0_218, %c0_219] : memref<3x16x8xf32, #tpu.memory_space<vmem>>, vector<1x16x8xf32>
    %378 = vector.shape_cast %377 : vector<1x16x8xf32> to vector<16x8xf32>
    %cst_220 = arith.constant dense<0.000000e+00> : vector<8x8xf32>
    %379 = tpu.matmul %376, %378, %cst_220 {dimension_numbers = #tpu.dot_dimension_numbers<[1], [0], [0], [1], [0, 0, 1, 1], [], []>} : vector<8x16xf32>, vector<16x8xf32>, vector<8x8xf32> -> vector<8x8xf32>
    %380 = arith.addf %374, %379 : vector<8x8xf32>
    %381 = vector.extract_strided_slice %369 {offsets = [2, 0, 0], sizes = [4, 2, 16], strides = [1, 1, 1]} : vector<6x2x16xf32> to vector<4x2x16xf32>
    %382 = vector.shape_cast %381 : vector<4x2x16xf32> to vector<8x16xf32>
    %c2_221 = arith.constant 2 : index
    %c0_222 = arith.constant 0 : index
    %c0_223 = arith.constant 0 : index
    %383 = vector.load %arg37[%c2_221, %c0_222, %c0_223] : memref<3x16x8xf32, #tpu.memory_space<vmem>>, vector<1x16x8xf32>
    %384 = vector.shape_cast %383 : vector<1x16x8xf32> to vector<16x8xf32>
    %cst_224 = arith.constant dense<0.000000e+00> : vector<8x8xf32>
    %385 = tpu.matmul %382, %384, %cst_224 {dimension_numbers = #tpu.dot_dimension_numbers<[1], [0], [0], [1], [0, 0, 1, 1], [], []>} : vector<8x16xf32>, vector<16x8xf32>, vector<8x8xf32> -> vector<8x8xf32>
    %386 = arith.addf %380, %385 : vector<8x8xf32>
    %387 = vector.shape_cast %386 : vector<8x8xf32> to vector<4x2x8xf32>
    %388 = tpu.concatenate %345, %387 in 2 : vector<4x2x44xf32>, vector<4x2x8xf32> -> vector<4x2x52xf32>
    %c0_225 = arith.constant 0 : index
    %c0_226 = arith.constant 0 : index
    %389 = vector.load %arg38[%c0_225, %c0_226] : memref<2x52xf32, #tpu.memory_space<vmem>>, vector<1x52xf32>
    %390 = vector.shape_cast %389 : vector<1x52xf32> to vector<1x1x52xf32>
    %391 = vector.broadcast %390 : vector<1x1x52xf32> to vector<4x2x52xf32>
    %392 = arith.mulf %388, %391 : vector<4x2x52xf32>
    %c1_227 = arith.constant 1 : index
    %c0_228 = arith.constant 0 : index
    %393 = vector.load %arg38[%c1_227, %c0_228] : memref<2x52xf32, #tpu.memory_space<vmem>>, vector<1x52xf32>
    %394 = vector.shape_cast %393 : vector<1x52xf32> to vector<1x1x52xf32>
    %395 = vector.broadcast %394 : vector<1x1x52xf32> to vector<4x2x52xf32>
    %396 = arith.addf %392, %395 : vector<4x2x52xf32>
    %cst_229 = arith.constant 0.000000e+00 : f32
    %397 = vector.broadcast %cst_229 : f32 to vector<4x2x52xf32>
    %398 = arith.maximumf %396, %397 : vector<4x2x52xf32>
    %399 = vector.shape_cast %398 : vector<4x2x52xf32> to vector<8x52xf32>
    %c0_230 = arith.constant 0 : index
    %c0_231 = arith.constant 0 : index
    %400 = vector.load %arg39[%c0_230, %c0_231] : memref<52x26xf32, #tpu.memory_space<vmem>>, vector<52x26xf32>
    %cst_232 = arith.constant dense<0.000000e+00> : vector<8x26xf32>
    %401 = tpu.matmul %399, %400, %cst_232 {dimension_numbers = #tpu.dot_dimension_numbers<[1], [0], [0], [1], [0, 0, 1, 1], [], []>} : vector<8x52xf32>, vector<52x26xf32>, vector<8x26xf32> -> vector<8x26xf32>
    %402 = vector.shape_cast %401 : vector<8x26xf32> to vector<4x2x26xf32>
    %403 = vector.shape_cast %402 : vector<4x2x26xf32> to vector<2x2x2x26xf32>
    %404 = vector.extract_strided_slice %403 {offsets = [0, 0, 0, 0], sizes = [2, 1, 2, 26], strides = [1, 1, 1, 1]} : vector<2x2x2x26xf32> to vector<2x1x2x26xf32>
    %405 = vector.shape_cast %404 : vector<2x1x2x26xf32> to vector<2x2x26xf32>
    %406 = vector.extract_strided_slice %403 {offsets = [0, 1, 0, 0], sizes = [2, 1, 2, 26], strides = [1, 1, 1, 1]} : vector<2x2x2x26xf32> to vector<2x1x2x26xf32>
    %407 = vector.shape_cast %406 : vector<2x1x2x26xf32> to vector<2x2x26xf32>
    %408 = arith.addf %405, %407 : vector<2x2x26xf32>
    %cst_233 = arith.constant 5.000000e-01 : f32
    %409 = vector.broadcast %cst_233 : f32 to vector<2x2x26xf32>
    %410 = arith.mulf %408, %409 : vector<2x2x26xf32>
    %c0_234 = arith.constant 0 : index
    %c0_235 = arith.constant 0 : index
    %411 = vector.load %arg40[%c0_234, %c0_235] : memref<2x26xf32, #tpu.memory_space<vmem>>, vector<1x26xf32>
    %412 = vector.shape_cast %411 : vector<1x26xf32> to vector<1x1x26xf32>
    %413 = vector.broadcast %412 : vector<1x1x26xf32> to vector<2x2x26xf32>
    %414 = arith.mulf %410, %413 : vector<2x2x26xf32>
    %c1_236 = arith.constant 1 : index
    %c0_237 = arith.constant 0 : index
    %415 = vector.load %arg40[%c1_236, %c0_237] : memref<2x26xf32, #tpu.memory_space<vmem>>, vector<1x26xf32>
    %416 = vector.shape_cast %415 : vector<1x26xf32> to vector<1x1x26xf32>
    %417 = vector.broadcast %416 : vector<1x1x26xf32> to vector<2x2x26xf32>
    %418 = arith.addf %414, %417 : vector<2x2x26xf32>
    %cst_238 = arith.constant 0.000000e+00 : f32
    %419 = vector.broadcast %cst_238 : f32 to vector<2x2x26xf32>
    %420 = arith.maximumf %418, %419 : vector<2x2x26xf32>
    %421 = vector.shape_cast %420 : vector<2x2x26xf32> to vector<4x26xf32>
    %c0_239 = arith.constant 0 : index
    %c0_240 = arith.constant 0 : index
    %422 = vector.load %arg41[%c0_239, %c0_240] : memref<26x16xf32, #tpu.memory_space<vmem>>, vector<26x16xf32>
    %cst_241 = arith.constant dense<0.000000e+00> : vector<4x16xf32>
    %423 = tpu.matmul %421, %422, %cst_241 {dimension_numbers = #tpu.dot_dimension_numbers<[1], [0], [0], [1], [0, 0, 1, 1], [], []>} : vector<4x26xf32>, vector<26x16xf32>, vector<4x16xf32> -> vector<4x16xf32>
    %c0_242 = arith.constant 0 : index
    %c0_243 = arith.constant 0 : index
    %424 = vector.load %arg42[%c0_242, %c0_243] : memref<2x16xf32, #tpu.memory_space<vmem>>, vector<1x16xf32>
    %425 = vector.broadcast %424 : vector<1x16xf32> to vector<4x16xf32>
    %426 = arith.mulf %423, %425 : vector<4x16xf32>
    %c1_244 = arith.constant 1 : index
    %c0_245 = arith.constant 0 : index
    %427 = vector.load %arg42[%c1_244, %c0_245] : memref<2x16xf32, #tpu.memory_space<vmem>>, vector<1x16xf32>
    %428 = vector.broadcast %427 : vector<1x16xf32> to vector<4x16xf32>
    %429 = arith.addf %426, %428 : vector<4x16xf32>
    %cst_246 = arith.constant 0.000000e+00 : f32
    %430 = vector.broadcast %cst_246 : f32 to vector<4x16xf32>
    %431 = arith.maximumf %429, %430 : vector<4x16xf32>
    %cst_247 = arith.constant 0.000000e+00 : f32
    %432 = vector.broadcast %cst_247 : f32 to vector<1x2x16xf32>
    %433 = vector.shape_cast %431 : vector<4x16xf32> to vector<2x2x16xf32>
    %434 = tpu.concatenate %432, %433, %432 in 0 : vector<1x2x16xf32>, vector<2x2x16xf32>, vector<1x2x16xf32> -> vector<4x2x16xf32>
    %435 = vector.extract_strided_slice %434 {offsets = [0, 0, 0], sizes = [2, 2, 16], strides = [1, 1, 1]} : vector<4x2x16xf32> to vector<2x2x16xf32>
    %436 = vector.shape_cast %435 : vector<2x2x16xf32> to vector<4x16xf32>
    %c0_248 = arith.constant 0 : index
    %c0_249 = arith.constant 0 : index
    %c0_250 = arith.constant 0 : index
    %437 = vector.load %arg43[%c0_248, %c0_249, %c0_250] : memref<3x16x8xf32, #tpu.memory_space<vmem>>, vector<1x16x8xf32>
    %438 = vector.shape_cast %437 : vector<1x16x8xf32> to vector<16x8xf32>
    %cst_251 = arith.constant dense<0.000000e+00> : vector<4x8xf32>
    %439 = tpu.matmul %436, %438, %cst_251 {dimension_numbers = #tpu.dot_dimension_numbers<[1], [0], [0], [1], [0, 0, 1, 1], [], []>} : vector<4x16xf32>, vector<16x8xf32>, vector<4x8xf32> -> vector<4x8xf32>
    %440 = vector.extract_strided_slice %434 {offsets = [1, 0, 0], sizes = [2, 2, 16], strides = [1, 1, 1]} : vector<4x2x16xf32> to vector<2x2x16xf32>
    %441 = vector.shape_cast %440 : vector<2x2x16xf32> to vector<4x16xf32>
    %c1_252 = arith.constant 1 : index
    %c0_253 = arith.constant 0 : index
    %c0_254 = arith.constant 0 : index
    %442 = vector.load %arg43[%c1_252, %c0_253, %c0_254] : memref<3x16x8xf32, #tpu.memory_space<vmem>>, vector<1x16x8xf32>
    %443 = vector.shape_cast %442 : vector<1x16x8xf32> to vector<16x8xf32>
    %cst_255 = arith.constant dense<0.000000e+00> : vector<4x8xf32>
    %444 = tpu.matmul %441, %443, %cst_255 {dimension_numbers = #tpu.dot_dimension_numbers<[1], [0], [0], [1], [0, 0, 1, 1], [], []>} : vector<4x16xf32>, vector<16x8xf32>, vector<4x8xf32> -> vector<4x8xf32>
    %445 = arith.addf %439, %444 : vector<4x8xf32>
    %446 = vector.extract_strided_slice %434 {offsets = [2, 0, 0], sizes = [2, 2, 16], strides = [1, 1, 1]} : vector<4x2x16xf32> to vector<2x2x16xf32>
    %447 = vector.shape_cast %446 : vector<2x2x16xf32> to vector<4x16xf32>
    %c2_256 = arith.constant 2 : index
    %c0_257 = arith.constant 0 : index
    %c0_258 = arith.constant 0 : index
    %448 = vector.load %arg43[%c2_256, %c0_257, %c0_258] : memref<3x16x8xf32, #tpu.memory_space<vmem>>, vector<1x16x8xf32>
    %449 = vector.shape_cast %448 : vector<1x16x8xf32> to vector<16x8xf32>
    %cst_259 = arith.constant dense<0.000000e+00> : vector<4x8xf32>
    %450 = tpu.matmul %447, %449, %cst_259 {dimension_numbers = #tpu.dot_dimension_numbers<[1], [0], [0], [1], [0, 0, 1, 1], [], []>} : vector<4x16xf32>, vector<16x8xf32>, vector<4x8xf32> -> vector<4x8xf32>
    %451 = arith.addf %445, %450 : vector<4x8xf32>
    %452 = vector.shape_cast %451 : vector<4x8xf32> to vector<2x2x8xf32>
    %453 = tpu.concatenate %410, %452 in 2 : vector<2x2x26xf32>, vector<2x2x8xf32> -> vector<2x2x34xf32>
    %c0_260 = arith.constant 0 : index
    %c0_261 = arith.constant 0 : index
    %454 = vector.load %arg44[%c0_260, %c0_261] : memref<2x34xf32, #tpu.memory_space<vmem>>, vector<1x34xf32>
    %455 = vector.shape_cast %454 : vector<1x34xf32> to vector<1x1x34xf32>
    %456 = vector.broadcast %455 : vector<1x1x34xf32> to vector<2x2x34xf32>
    %457 = arith.mulf %453, %456 : vector<2x2x34xf32>
    %c1_262 = arith.constant 1 : index
    %c0_263 = arith.constant 0 : index
    %458 = vector.load %arg44[%c1_262, %c0_263] : memref<2x34xf32, #tpu.memory_space<vmem>>, vector<1x34xf32>
    %459 = vector.shape_cast %458 : vector<1x34xf32> to vector<1x1x34xf32>
    %460 = vector.broadcast %459 : vector<1x1x34xf32> to vector<2x2x34xf32>
    %461 = arith.addf %457, %460 : vector<2x2x34xf32>
    %cst_264 = arith.constant 0.000000e+00 : f32
    %462 = vector.broadcast %cst_264 : f32 to vector<2x2x34xf32>
    %463 = arith.maximumf %461, %462 : vector<2x2x34xf32>
    %464 = vector.shape_cast %463 : vector<2x2x34xf32> to vector<4x34xf32>
    %c0_265 = arith.constant 0 : index
    %c0_266 = arith.constant 0 : index
    %465 = vector.load %arg45[%c0_265, %c0_266] : memref<34x16xf32, #tpu.memory_space<vmem>>, vector<34x16xf32>
    %cst_267 = arith.constant dense<0.000000e+00> : vector<4x16xf32>
    %466 = tpu.matmul %464, %465, %cst_267 {dimension_numbers = #tpu.dot_dimension_numbers<[1], [0], [0], [1], [0, 0, 1, 1], [], []>} : vector<4x34xf32>, vector<34x16xf32>, vector<4x16xf32> -> vector<4x16xf32>
    %c0_268 = arith.constant 0 : index
    %c0_269 = arith.constant 0 : index
    %467 = vector.load %arg46[%c0_268, %c0_269] : memref<2x16xf32, #tpu.memory_space<vmem>>, vector<1x16xf32>
    %468 = vector.broadcast %467 : vector<1x16xf32> to vector<4x16xf32>
    %469 = arith.mulf %466, %468 : vector<4x16xf32>
    %c1_270 = arith.constant 1 : index
    %c0_271 = arith.constant 0 : index
    %470 = vector.load %arg46[%c1_270, %c0_271] : memref<2x16xf32, #tpu.memory_space<vmem>>, vector<1x16xf32>
    %471 = vector.broadcast %470 : vector<1x16xf32> to vector<4x16xf32>
    %472 = arith.addf %469, %471 : vector<4x16xf32>
    %cst_272 = arith.constant 0.000000e+00 : f32
    %473 = vector.broadcast %cst_272 : f32 to vector<4x16xf32>
    %474 = arith.maximumf %472, %473 : vector<4x16xf32>
    %cst_273 = arith.constant 0.000000e+00 : f32
    %475 = vector.broadcast %cst_273 : f32 to vector<1x2x16xf32>
    %476 = vector.shape_cast %474 : vector<4x16xf32> to vector<2x2x16xf32>
    %477 = tpu.concatenate %475, %476, %475 in 0 : vector<1x2x16xf32>, vector<2x2x16xf32>, vector<1x2x16xf32> -> vector<4x2x16xf32>
    %478 = vector.extract_strided_slice %477 {offsets = [0, 0, 0], sizes = [2, 2, 16], strides = [1, 1, 1]} : vector<4x2x16xf32> to vector<2x2x16xf32>
    %479 = vector.shape_cast %478 : vector<2x2x16xf32> to vector<4x16xf32>
    %c0_274 = arith.constant 0 : index
    %c0_275 = arith.constant 0 : index
    %c0_276 = arith.constant 0 : index
    %480 = vector.load %arg47[%c0_274, %c0_275, %c0_276] : memref<3x16x8xf32, #tpu.memory_space<vmem>>, vector<1x16x8xf32>
    %481 = vector.shape_cast %480 : vector<1x16x8xf32> to vector<16x8xf32>
    %cst_277 = arith.constant dense<0.000000e+00> : vector<4x8xf32>
    %482 = tpu.matmul %479, %481, %cst_277 {dimension_numbers = #tpu.dot_dimension_numbers<[1], [0], [0], [1], [0, 0, 1, 1], [], []>} : vector<4x16xf32>, vector<16x8xf32>, vector<4x8xf32> -> vector<4x8xf32>
    %483 = vector.extract_strided_slice %477 {offsets = [1, 0, 0], sizes = [2, 2, 16], strides = [1, 1, 1]} : vector<4x2x16xf32> to vector<2x2x16xf32>
    %484 = vector.shape_cast %483 : vector<2x2x16xf32> to vector<4x16xf32>
    %c1_278 = arith.constant 1 : index
    %c0_279 = arith.constant 0 : index
    %c0_280 = arith.constant 0 : index
    %485 = vector.load %arg47[%c1_278, %c0_279, %c0_280] : memref<3x16x8xf32, #tpu.memory_space<vmem>>, vector<1x16x8xf32>
    %486 = vector.shape_cast %485 : vector<1x16x8xf32> to vector<16x8xf32>
    %cst_281 = arith.constant dense<0.000000e+00> : vector<4x8xf32>
    %487 = tpu.matmul %484, %486, %cst_281 {dimension_numbers = #tpu.dot_dimension_numbers<[1], [0], [0], [1], [0, 0, 1, 1], [], []>} : vector<4x16xf32>, vector<16x8xf32>, vector<4x8xf32> -> vector<4x8xf32>
    %488 = arith.addf %482, %487 : vector<4x8xf32>
    %489 = vector.extract_strided_slice %477 {offsets = [2, 0, 0], sizes = [2, 2, 16], strides = [1, 1, 1]} : vector<4x2x16xf32> to vector<2x2x16xf32>
    %490 = vector.shape_cast %489 : vector<2x2x16xf32> to vector<4x16xf32>
    %c2_282 = arith.constant 2 : index
    %c0_283 = arith.constant 0 : index
    %c0_284 = arith.constant 0 : index
    %491 = vector.load %arg47[%c2_282, %c0_283, %c0_284] : memref<3x16x8xf32, #tpu.memory_space<vmem>>, vector<1x16x8xf32>
    %492 = vector.shape_cast %491 : vector<1x16x8xf32> to vector<16x8xf32>
    %cst_285 = arith.constant dense<0.000000e+00> : vector<4x8xf32>
    %493 = tpu.matmul %490, %492, %cst_285 {dimension_numbers = #tpu.dot_dimension_numbers<[1], [0], [0], [1], [0, 0, 1, 1], [], []>} : vector<4x16xf32>, vector<16x8xf32>, vector<4x8xf32> -> vector<4x8xf32>
    %494 = arith.addf %488, %493 : vector<4x8xf32>
    %495 = vector.shape_cast %494 : vector<4x8xf32> to vector<2x2x8xf32>
    %496 = tpu.concatenate %453, %495 in 2 : vector<2x2x34xf32>, vector<2x2x8xf32> -> vector<2x2x42xf32>
    %c0_286 = arith.constant 0 : index
    %c0_287 = arith.constant 0 : index
    %497 = vector.load %arg48[%c0_286, %c0_287] : memref<2x42xf32, #tpu.memory_space<vmem>>, vector<1x42xf32>
    %498 = vector.shape_cast %497 : vector<1x42xf32> to vector<1x1x42xf32>
    %499 = vector.broadcast %498 : vector<1x1x42xf32> to vector<2x2x42xf32>
    %500 = arith.mulf %496, %499 : vector<2x2x42xf32>
    %c1_288 = arith.constant 1 : index
    %c0_289 = arith.constant 0 : index
    %501 = vector.load %arg48[%c1_288, %c0_289] : memref<2x42xf32, #tpu.memory_space<vmem>>, vector<1x42xf32>
    %502 = vector.shape_cast %501 : vector<1x42xf32> to vector<1x1x42xf32>
    %503 = vector.broadcast %502 : vector<1x1x42xf32> to vector<2x2x42xf32>
    %504 = arith.addf %500, %503 : vector<2x2x42xf32>
    %cst_290 = arith.constant 0.000000e+00 : f32
    %505 = vector.broadcast %cst_290 : f32 to vector<2x2x42xf32>
    %506 = arith.maximumf %504, %505 : vector<2x2x42xf32>
    %c0_291 = arith.constant 0 : index
    %c0_292 = arith.constant 0 : index
    %c0_293 = arith.constant 0 : index
    %507 = vector.load %arg49[%c0_291, %c0_292, %c0_293] : memref<2x1x42xf32, #tpu.memory_space<vmem>>, vector<2x1x42xf32>
    %508 = vector.broadcast %507 : vector<2x1x42xf32> to vector<2x2x42xf32>
    %509 = arith.mulf %506, %508 : vector<2x2x42xf32>
    %cst_294 = arith.constant dense<0.000000e+00> : vector<2x2xf32>
    %510 = vector.multi_reduction <add>, %509, %cst_294 [2] : vector<2x2x42xf32> to vector<2x2xf32>
    %511 = vector.shape_cast %510 : vector<2x2xf32> to vector<2x2x1xf32>
    %cst_295 = arith.constant dense<0.000000e+00> : vector<2x1xf32>
    %512 = vector.multi_reduction <add>, %511, %cst_295 [0] : vector<2x2x1xf32> to vector<2x1xf32>
    %c0_296 = arith.constant 0 : index
    %c0_297 = arith.constant 0 : index
    %513 = vector.load %arg50[%c0_296, %c0_297] : memref<1x1xf32, #tpu.memory_space<vmem>>, vector<1x1xf32>
    %514 = vector.broadcast %513 : vector<1x1xf32> to vector<2x1xf32>
    %515 = arith.addf %512, %514 : vector<2x1xf32>
    %c0_298 = arith.constant 0 : index
    %c0_299 = arith.constant 0 : index
    %516 = vector.load %arg51[%c0_298, %c0_299] : memref<2x1xf32, #tpu.memory_space<vmem>>, vector<2x1xf32>
    tpu.vector_store %arg51[%c0_298, %c0_299], %515 {strides = array<i32>} : memref<2x1xf32, #tpu.memory_space<vmem>>, vector<2x1xf32>,
    return
  }
  func.func @transform_0(%arg0: i32) -> (i32, i32, i32) {
    %c0_i32 = arith.constant 0 : i32
    %c0_i32_0 = arith.constant 0 : i32
    %c0_i32_1 = arith.constant 0 : i32
    %c0_i32_2 = arith.constant 0 : i32
    return %c0_i32, %c0_i32_0, %c0_i32_1 : i32, i32, i32
  }
  func.func @transform_1(%arg0: i32) -> (i32, i32) {
    %c0_i32 = arith.constant 0 : i32
    %c0_i32_0 = arith.constant 0 : i32
    %c0_i32_1 = arith.constant 0 : i32
    return %c0_i32, %c0_i32_0 : i32, i32
  }
  func.func @transform_2(%arg0: i32) -> (i32, i32) {
    %c0_i32 = arith.constant 0 : i32
    %c0_i32_0 = arith.constant 0 : i32
    %c0_i32_1 = arith.constant 0 : i32
    return %c0_i32, %c0_i32_0 : i32, i32
  }
  func.func @transform_3(%arg0: i32) -> (i32, i32) {
    %c0_i32 = arith.constant 0 : i32
    %c0_i32_0 = arith.constant 0 : i32
    %c0_i32_1 = arith.constant 0 : i32
    return %c0_i32, %c0_i32_0 : i32, i32
  }
  func.func @transform_4(%arg0: i32) -> (i32, i32, i32) {
    %c0_i32 = arith.constant 0 : i32
    %c0_i32_0 = arith.constant 0 : i32
    %c0_i32_1 = arith.constant 0 : i32
    %c0_i32_2 = arith.constant 0 : i32
    return %c0_i32, %c0_i32_0, %c0_i32_1 : i32, i32, i32
  }
  func.func @transform_5(%arg0: i32) -> (i32, i32) {
    %c0_i32 = arith.constant 0 : i32
    %c0_i32_0 = arith.constant 0 : i32
    %c0_i32_1 = arith.constant 0 : i32
    return %c0_i32, %c0_i32_0 : i32, i32
  }
  func.func @transform_6(%arg0: i32) -> (i32, i32) {
    %c0_i32 = arith.constant 0 : i32
    %c0_i32_0 = arith.constant 0 : i32
    %c0_i32_1 = arith.constant 0 : i32
    return %c0_i32, %c0_i32_0 : i32, i32
  }
  func.func @transform_7(%arg0: i32) -> (i32, i32) {
    %c0_i32 = arith.constant 0 : i32
    %c0_i32_0 = arith.constant 0 : i32
    %c0_i32_1 = arith.constant 0 : i32
    return %c0_i32, %c0_i32_0 : i32, i32
  }
  func.func @transform_8(%arg0: i32) -> (i32, i32, i32) {
    %c0_i32 = arith.constant 0 : i32
    %c0_i32_0 = arith.constant 0 : i32
    %c0_i32_1 = arith.constant 0 : i32
    %c0_i32_2 = arith.constant 0 : i32
    return %c0_i32, %c0_i32_0, %c0_i32_1 : i32, i32, i32
  }
  func.func @transform_9(%arg0: i32) -> (i32, i32) {
    %c0_i32 = arith.constant 0 : i32
    %c0_i32_0 = arith.constant 0 : i32
    %c0_i32_1 = arith.constant 0 : i32
    return %c0_i32, %c0_i32_0 : i32, i32
  }
  func.func @transform_10(%arg0: i32) -> (i32, i32) {
    %c0_i32 = arith.constant 0 : i32
    %c0_i32_0 = arith.constant 0 : i32
    %c0_i32_1 = arith.constant 0 : i32
    return %c0_i32, %c0_i32_0 : i32, i32
  }
  func.func @transform_11(%arg0: i32) -> (i32, i32) {
    %c0_i32 = arith.constant 0 : i32
    %c0_i32_0 = arith.constant 0 : i32
    %c0_i32_1 = arith.constant 0 : i32
    return %c0_i32, %c0_i32_0 : i32, i32
  }
  func.func @transform_12(%arg0: i32) -> (i32, i32) {
    %c0_i32 = arith.constant 0 : i32
    %c0_i32_0 = arith.constant 0 : i32
    %c0_i32_1 = arith.constant 0 : i32
    return %c0_i32, %c0_i32_0 : i32, i32
  }
  func.func @transform_13(%arg0: i32) -> (i32, i32) {
    %c0_i32 = arith.constant 0 : i32
    %c0_i32_0 = arith.constant 0 : i32
    %c0_i32_1 = arith.constant 0 : i32
    return %c0_i32, %c0_i32_0 : i32, i32
  }
  func.func @transform_14(%arg0: i32) -> (i32, i32, i32) {
    %c0_i32 = arith.constant 0 : i32
    %c0_i32_0 = arith.constant 0 : i32
    %c0_i32_1 = arith.constant 0 : i32
    %c0_i32_2 = arith.constant 0 : i32
    return %c0_i32, %c0_i32_0, %c0_i32_1 : i32, i32, i32
  }
  func.func @transform_15(%arg0: i32) -> (i32, i32) {
    %c0_i32 = arith.constant 0 : i32
    %c0_i32_0 = arith.constant 0 : i32
    %c0_i32_1 = arith.constant 0 : i32
    return %c0_i32, %c0_i32_0 : i32, i32
  }
  func.func @transform_16(%arg0: i32) -> (i32, i32) {
    %c0_i32 = arith.constant 0 : i32
    %c0_i32_0 = arith.constant 0 : i32
    %c0_i32_1 = arith.constant 0 : i32
    return %c0_i32, %c0_i32_0 : i32, i32
  }
  func.func @transform_17(%arg0: i32) -> (i32, i32) {
    %c0_i32 = arith.constant 0 : i32
    %c0_i32_0 = arith.constant 0 : i32
    %c0_i32_1 = arith.constant 0 : i32
    return %c0_i32, %c0_i32_0 : i32, i32
  }
  func.func @transform_18(%arg0: i32) -> (i32, i32, i32) {
    %c0_i32 = arith.constant 0 : i32
    %c0_i32_0 = arith.constant 0 : i32
    %c0_i32_1 = arith.constant 0 : i32
    %c0_i32_2 = arith.constant 0 : i32
    return %c0_i32, %c0_i32_0, %c0_i32_1 : i32, i32, i32
  }
  func.func @transform_19(%arg0: i32) -> (i32, i32) {
    %c0_i32 = arith.constant 0 : i32
    %c0_i32_0 = arith.constant 0 : i32
    %c0_i32_1 = arith.constant 0 : i32
    return %c0_i32, %c0_i32_0 : i32, i32
  }
  func.func @transform_20(%arg0: i32) -> (i32, i32) {
    %c0_i32 = arith.constant 0 : i32
    %c0_i32_0 = arith.constant 0 : i32
    %c0_i32_1 = arith.constant 0 : i32
    return %c0_i32, %c0_i32_0 : i32, i32
  }
  func.func @transform_21(%arg0: i32) -> (i32, i32) {
    %c0_i32 = arith.constant 0 : i32
    %c0_i32_0 = arith.constant 0 : i32
    %c0_i32_1 = arith.constant 0 : i32
    return %c0_i32, %c0_i32_0 : i32, i32
  }
  func.func @transform_22(%arg0: i32) -> (i32, i32) {
    %c0_i32 = arith.constant 0 : i32
    %c0_i32_0 = arith.constant 0 : i32
    %c0_i32_1 = arith.constant 0 : i32
    return %c0_i32, %c0_i32_0 : i32, i32
  }
  func.func @transform_23(%arg0: i32) -> (i32, i32) {
    %c0_i32 = arith.constant 0 : i32
    %c0_i32_0 = arith.constant 0 : i32
    %c0_i32_1 = arith.constant 0 : i32
    return %c0_i32, %c0_i32_0 : i32, i32
  }
  func.func @transform_24(%arg0: i32) -> (i32, i32, i32) {
    %c0_i32 = arith.constant 0 : i32
    %c0_i32_0 = arith.constant 0 : i32
    %c0_i32_1 = arith.constant 0 : i32
    %c0_i32_2 = arith.constant 0 : i32
    return %c0_i32, %c0_i32_0, %c0_i32_1 : i32, i32, i32
  }
  func.func @transform_25(%arg0: i32) -> (i32, i32) {
    %c0_i32 = arith.constant 0 : i32
    %c0_i32_0 = arith.constant 0 : i32
    %c0_i32_1 = arith.constant 0 : i32
    return %c0_i32, %c0_i32_0 : i32, i32
  }
  func.func @transform_26(%arg0: i32) -> (i32, i32) {
    %c0_i32 = arith.constant 0 : i32
    %c0_i32_0 = arith.constant 0 : i32
    %c0_i32_1 = arith.constant 0 : i32
    return %c0_i32, %c0_i32_0 : i32, i32
  }
  func.func @transform_27(%arg0: i32) -> (i32, i32) {
    %c0_i32 = arith.constant 0 : i32
    %c0_i32_0 = arith.constant 0 : i32
    %c0_i32_1 = arith.constant 0 : i32
    return %c0_i32, %c0_i32_0 : i32, i32
  }
  func.func @transform_28(%arg0: i32) -> (i32, i32, i32) {
    %c0_i32 = arith.constant 0 : i32
    %c0_i32_0 = arith.constant 0 : i32
    %c0_i32_1 = arith.constant 0 : i32
    %c0_i32_2 = arith.constant 0 : i32
    return %c0_i32, %c0_i32_0, %c0_i32_1 : i32, i32, i32
  }
  func.func @transform_29(%arg0: i32) -> (i32, i32) {
    %c0_i32 = arith.constant 0 : i32
    %c0_i32_0 = arith.constant 0 : i32
    %c0_i32_1 = arith.constant 0 : i32
    return %c0_i32, %c0_i32_0 : i32, i32
  }
  func.func @transform_30(%arg0: i32) -> (i32, i32) {
    %c0_i32 = arith.constant 0 : i32
    %c0_i32_0 = arith.constant 0 : i32
    %c0_i32_1 = arith.constant 0 : i32
    return %c0_i32, %c0_i32_0 : i32, i32
  }
  func.func @transform_31(%arg0: i32) -> (i32, i32) {
    %c0_i32 = arith.constant 0 : i32
    %c0_i32_0 = arith.constant 0 : i32
    %c0_i32_1 = arith.constant 0 : i32
    return %c0_i32, %c0_i32_0 : i32, i32
  }
  func.func @transform_32(%arg0: i32) -> (i32, i32, i32) {
    %c0_i32 = arith.constant 0 : i32
    %c0_i32_0 = arith.constant 0 : i32
    %c0_i32_1 = arith.constant 0 : i32
    %c0_i32_2 = arith.constant 0 : i32
    return %c0_i32, %c0_i32_0, %c0_i32_1 : i32, i32, i32
  }
  func.func @transform_33(%arg0: i32) -> (i32, i32) {
    %c0_i32 = arith.constant 0 : i32
    %c0_i32_0 = arith.constant 0 : i32
    %c0_i32_1 = arith.constant 0 : i32
    return %c0_i32, %c0_i32_0 : i32, i32
  }
  func.func @transform_34(%arg0: i32) -> (i32, i32) {
    %c0_i32 = arith.constant 0 : i32
    %c0_i32_0 = arith.constant 0 : i32
    %c0_i32_1 = arith.constant 0 : i32
    return %c0_i32, %c0_i32_0 : i32, i32
  }
  func.func @transform_35(%arg0: i32) -> (i32, i32) {
    %c0_i32 = arith.constant 0 : i32
    %c0_i32_0 = arith.constant 0 : i32
    %c0_i32_1 = arith.constant 0 : i32
    return %c0_i32, %c0_i32_0 : i32, i32
  }
  func.func @transform_36(%arg0: i32) -> (i32, i32, i32) {
    %c0_i32 = arith.constant 0 : i32
    %c0_i32_0 = arith.constant 0 : i32
    %c0_i32_1 = arith.constant 0 : i32
    %c0_i32_2 = arith.constant 0 : i32
    return %c0_i32, %c0_i32_0, %c0_i32_1 : i32, i32, i32
  }
  func.func @transform_37(%arg0: i32) -> (i32, i32) {
    %c0_i32 = arith.constant 0 : i32
    %c0_i32_0 = arith.constant 0 : i32
    %c0_i32_1 = arith.constant 0 : i32
    return %c0_i32, %c0_i32_0 : i32, i32
  }
  func.func @transform_38(%arg0: i32) -> (i32, i32) {
    %c0_i32 = arith.constant 0 : i32
    %c0_i32_0 = arith.constant 0 : i32
    %c0_i32_1 = arith.constant 0 : i32
    return %c0_i32, %c0_i32_0 : i32, i32
  }
  func.func @transform_39(%arg0: i32) -> (i32, i32) {
    %c0_i32 = arith.constant 0 : i32
    %c0_i32_0 = arith.constant 0 : i32
    %c0_i32_1 = arith.constant 0 : i32
    return %c0_i32, %c0_i32_0 : i32, i32
  }
  func.func @transform_40(%arg0: i32) -> (i32, i32) {
    %c0_i32 = arith.constant 0 : i32
    %c0_i32_0 = arith.constant 0 : i32
    %c0_i32_1 = arith.constant 0 : i32
    return %c0_i32, %c0_i32_0 : i32, i32
  }
  func.func @transform_41(%arg0: i32) -> (i32, i32) {
    %c0_i32 = arith.constant 0 : i32
    %c0_i32_0 = arith.constant 0 : i32
    %c0_i32_1 = arith.constant 0 : i32
    return %c0_i32, %c0_i32_0 : i32, i32
  }
  func.func @transform_42(%arg0: i32) -> (i32, i32, i32) {
    %c0_i32 = arith.constant 0 : i32
    %c0_i32_0 = arith.constant 0 : i32
    %c0_i32_1 = arith.constant 0 : i32
    %c0_i32_2 = arith.constant 0 : i32
    return %c0_i32, %c0_i32_0, %c0_i32_1 : i32, i32, i32
  }
  func.func @transform_43(%arg0: i32) -> (i32, i32) {
    %c0_i32 = arith.constant 0 : i32
    %c0_i32_0 = arith.constant 0 : i32
    %c0_i32_1 = arith.constant 0 : i32
    return %c0_i32, %c0_i32_0 : i32, i32
  }
  func.func @transform_44(%arg0: i32) -> (i32, i32) {
    %c0_i32 = arith.constant 0 : i32
    %c0_i32_0 = arith.constant 0 : i32
    %c0_i32_1 = arith.constant 0 : i32
    return %c0_i32, %c0_i32_0 : i32, i32
  }
  func.func @transform_45(%arg0: i32) -> (i32, i32) {
    %c0_i32 = arith.constant 0 : i32
    %c0_i32_0 = arith.constant 0 : i32
    %c0_i32_1 = arith.constant 0 : i32
    return %c0_i32, %c0_i32_0 : i32, i32
  }
  func.func @transform_46(%arg0: i32) -> (i32, i32, i32) {
    %c0_i32 = arith.constant 0 : i32
    %c0_i32_0 = arith.constant 0 : i32
    %c0_i32_1 = arith.constant 0 : i32
    %c0_i32_2 = arith.constant 0 : i32
    return %c0_i32, %c0_i32_0, %c0_i32_1 : i32, i32, i32
  }
  func.func @transform_47(%arg0: i32) -> (i32, i32) {
    %c0_i32 = arith.constant 0 : i32
    %c0_i32_0 = arith.constant 0 : i32
    %c0_i32_1 = arith.constant 0 : i32
    return %c0_i32, %c0_i32_0 : i32, i32
  }
  func.func @transform_48(%arg0: i32) -> (i32, i32, i32) {
    %c0_i32 = arith.constant 0 : i32
    %c0_i32_0 = arith.constant 0 : i32
    %c0_i32_1 = arith.constant 0 : i32
    %c0_i32_2 = arith.constant 0 : i32
    return %c0_i32, %c0_i32_0, %c0_i32_1 : i32, i32, i32
  }
  func.func @transform_49(%arg0: i32) -> (i32, i32) {
    %c0_i32 = arith.constant 0 : i32
    %c0_i32_0 = arith.constant 0 : i32
    %c0_i32_1 = arith.constant 0 : i32
    return %c0_i32, %c0_i32_0 : i32, i32
  }
  func.func @transform_50(%arg0: i32) -> (i32, i32) {
    %c0_i32 = arith.constant 0 : i32
    %c0_i32_0 = arith.constant 0 : i32
    %c0_i32_1 = arith.constant 0 : i32
    return %c0_i32, %c0_i32_0 : i32, i32
  }
}

</mosaic_0001>

<bundles_post_ra>
// kernel: dense_lstm_forward.2
= control target key start
LH: loop header
LB: loop body
LE: loop exit
PB: predicated region body
PF: predicated region fallthrough
CT: control target
= control target key end

     0   :  { %vm260_vm0 = vcmask 1043456   ;;  %v112_v0 = vlaneseq  ;;  %v4863_v4 = vmov 1983009808   ;;  %vm243_vm1 = vcmask 31744   ;;  %s6133_s1 = inlined_call_operand.vmem [shape: f32[7,4,16], index: 1, kind: input, shape index: {}]   ;;  %s6134_s6 = inlined_call_operand.vmem [shape: f32[32,128], index: 6, kind: input, shape index: {}]   ;;  %s6135_s7 = inlined_call_operand.vmem [shape: f32[2,16,64], index: 7, kind: input, shape index: {}]   ;;  %s6136_s8 = inlined_call_operand.vmem [shape: f32[1,128], index: 8, kind: input, shape index: {}]   ;;  %s6137_s9 = inlined_call_operand.vmem [shape: f32[32,128], index: 9, kind: input, shape index: {}]   ;;  %s6138_s10 = inlined_call_operand.vmem [shape: f32[2,16,64], index: 10, kind: input, shape index: {}]   ;;  %s6139_s11 = inlined_call_operand.vmem [shape: f32[1,128], index: 11, kind: input, shape index: {}]   ;;  %s6140_s12 = inlined_call_operand.vmem [shape: f32[16,2,32], index: 12, kind: output, shape index: {}]   ;;  %s6141_s0 = inlined_call_operand.vmem [shape: f32[32,2,4], index: 0, kind: input, shape index: {}]   ;;  %s6142_s3 = inlined_call_operand.vmem [shape: f32[16,128], index: 3, kind: input, shape index: {}]   ;;  %s6143_s2 = inlined_call_operand.vmem [shape: f32[2,16], index: 2, kind: input, shape index: {}]   ;;  %s6144_s5 = inlined_call_operand.vmem [shape: f32[1,128], index: 5, kind: input, shape index: {}]   ;;  %s6145_s4 = inlined_call_operand.vmem [shape: f32[2,16,64], index: 4, kind: input, shape index: {}]  }
   0x1   :  { %v4956_v1 = vld [vmem:[%s6133_s1 + $0xc] sm:$0xf]  ;;  %v4081_v2 = vld [vmem:[%s6133_s1 + $0x4] sm:$0xf]  ;;  %v41_v3 = vld [vmem:[%s6141_s0] sm:$0x3]  ;;  %v110_v5 = vunpack.c.l.s4 %v4863_v4 }
   0x2   :  { %4330 = vmatprep.subr.msk.mxu0 %vm260_vm0, %v4956_v1  ;;  %4288 = vmatprep.subr.msk.mxu1 %vm260_vm0, %v4081_v2  ;;  %v4970_v6 = vld [vmem:[%s6141_s0 + $0x2] sm:$0x3]  ;;  %v113_v7 = vshrl.u32 %v112_v0, 7  ;;  %v4975_v8 = vld [vmem:[%s6141_s0 + $0x4] sm:$0x3]  ;;  %v4864_v9 = vmov 0.0  }
   0x3   :  { %4331 = vmatpush3.msk.msra.mxu0 %vm260_vm0, %v4956_v1  ;;  %4289 = vmatpush3.msk.msra.mxu1 %vm260_vm0, %v4081_v2  ;;  %v107_v10 = vcombine.low %v4864_v9, %v4864_v9  ;;  %v108_v11 = vcombine.low %v41_v3, %v4970_v6  ;;  %v111_v12 = vunpack.c.0.s8 %v110_v5  ;;  %v4986_v13 = vld [vmem:[%s6141_s0 + $0x6] sm:$0x3]  ;;  %v4991_v14 = vld [vmem:[%s6141_s0 + $0x8] sm:$0x3]  ;;  %v4996_v15 = vld [vmem:[%s6141_s0 + $0xa] sm:$0x3]  ;;  %v4999_v16 = vcombine.low %v4864_v9, %v41_v3 }
   0x4   :  { %v5004_v17 = vld [vmem:[%s6141_s0 + $0xc] sm:$0x3]  ;;  %v124_v18 = vcombine.low %v4975_v8, %v4986_v13  ;;  %v125_v19 = vcombine.low %v4991_v14, %v4996_v15  ;;  %v4120_v20 = vld [vmem:[%s6133_s1 + $0x10] sm:$0xf]  ;;  %v48_v21 = vld [vmem:[%s6141_s0 + $0xe] sm:$0x3]  ;;  %v378_v23 = vcombine.low %v4970_v6, %v4975_v8  ;;  %v379_v24 = vcombine.low %v4986_v13, %v4991_v14 }
   0x5   :  { %v5016_v22 = vsub.s32 %v111_v12, %v113_v7  ;;  %4344 = vmatprep.subr.msk.mxu0 %vm260_vm0, %v4120_v20  ;;  %v141_v25 = vcombine.low %v5004_v17, %v48_v21  ;;  %v49_v26 = vld [vmem:[%s6141_s0 + $0x10] sm:$0x3]  ;;  %v5030_v27 = vld [vmem:[%s6141_s0 + $0x12] sm:$0x3]  ;;  %v5035_v28 = vld [vmem:[%s6141_s0 + $0x14] sm:$0x3]  ;;  %v395_v29 = vcombine.low %v4996_v15, %v5004_v17 }
   0x6   :  { %v142_v30 = vcombine.low %v49_v26, %v5030_v27  ;;  %v396_v31 = vcombine.low %v48_v21, %v49_v26  ;;  %v5043_v32 = vld [vmem:[%s6141_s0 + $0x16] sm:$0x3]  ;;  %v5048_v33 = vld [vmem:[%s6141_s0 + $0x18] sm:$0x3]  ;;  %v5053_v34 = vld [vmem:[%s6141_s0 + $0x1a] sm:$0x3]  ;;  %v412_v35 = vcombine.low %v5030_v27, %v5035_v28 }
   0x7   :  { %v5058_v36 = vrot.slane %v107_v10, %v5016_v22  ;;  %v122_v37 = vrot.slane %v108_v11, %v5016_v22  ;;  %v132_v38 = vrot.slane %v124_v18, %v5016_v22  ;;  %v139_v39 = vrot.slane %v125_v19, %v5016_v22  ;;  %v5066_v40 = vld [vmem:[%s6141_s0 + $0x1c] sm:$0x3]  ;;  %v5071_v41 = vld [vmem:[%s6141_s0 + $0x1e] sm:$0x3]  ;;  %v5076_v42 = vld [vmem:[%s6141_s0 + $0x20] sm:$0x3] }
   0x8   :  { %v149_v43 = vrot.slane %v141_v25, %v5016_v22  ;;  %v156_v44 = vrot.slane %v142_v30, %v5016_v22  ;;  %v5081_v45 = vrot.slane %v396_v31, %v5016_v22  ;;  %v158_v46 = vcombine.low %v5035_v28, %v5043_v32  ;;  %v5088_v47 = vld [vmem:[%s6141_s0 + $0x22] sm:$0x3]  ;;  %v5093_v48 = vld [vmem:[%s6141_s0 + $0x24] sm:$0x3]  ;;  %v5098_v49 = vld [vmem:[%s6141_s0 + $0x26] sm:$0x3] }
   0x9   :  { %v123_v50 = vcombine.low %v5058_v36, %v122_v37  ;;  %v5101_v51 = vcombine.low %v132_v38, %v139_v39  ;;  %v775_v52 = vcombine.low %v122_v37, %v132_v38  ;;  %v159_v53 = vcombine.low %v5048_v33, %v5053_v34  ;;  %v5108_v54 = vld [vmem:[%s6141_s0 + $0x28] sm:$0x3]  ;;  %v5113_v55 = vld [vmem:[%s6141_s0 + $0x2a] sm:$0x3]  ;;  %v5123_v60 = vld [vmem:[%s6141_s0 + $0x2c] sm:$0x3] }
   0xa   :  { %v776_v56 = vcombine.low %v139_v39, %v149_v43  ;;  %v5115_v57 = vcombine.low %v149_v43, %v156_v44  ;;  %v166_v58 = vrot.slane %v158_v46, %v5016_v22  ;;  %v175_v59 = vcombine.low %v5066_v40, %v5071_v41  ;;  %v5135_v0 = vld [vmem:[%s6141_s0 + $0x2e] sm:$0x3]  ;;  %v5140_v2 = vld [vmem:[%s6141_s0 + $0x30] sm:$0x3]  ;;  %v5145_v3 = vld [vmem:[%s6141_s0 + $0x32] sm:$0x3] }
   0xb   :  { %4290 = vmatprep.mubr.msk.f32.mxu1 %vm243_vm1, %v123_v50  ;;  %4332 = vmatprep.mubr.msk.f32.mxu0 %vm243_vm1, %v775_v52  ;;  %v173_v61 = vrot.slane %v159_v53, %v5016_v22  ;;  %v176_v62 = vcombine.low %v5076_v42, %v5088_v47  ;;  %v192_v63 = vcombine.low %v5093_v48, %v5098_v49  ;;  %v73_v10 = vld [vmem:[%s6133_s1] sm:$0xf]  ;;  %v5172_v26 = vld [vmem:[%s6141_s0 + $0x34] sm:$0x3]  ;;  %v5177_v30 = vld [vmem:[%s6141_s0 + $0x36] sm:$0x3] }
   0xc   :  { %4291 = vmatmul.mubr.msk.f32.vlgmr.msra.gmra.mrb[0].mxu1 %vm243_vm1, %v5101_v51  ;;  %4333 = vmatmul.mubr.msk.f32.vlgmr.msra.gmra.mrb[0].mxu0 %vm243_vm1, %v776_v56  ;;  %v777_v4 = vcombine.low %v156_v44, %v166_v58  ;;  %v183_v5 = vrot.slane %v175_v59, %v5016_v22  ;;  %v193_v7 = vcombine.low %v5108_v54, %v5113_v55  ;;  %v4130_v43 = vld [vmem:[%s6133_s1 + $0x14] sm:$0xf]  ;;  %v5200_v44 = vld [vmem:[%s6141_s0 + $0x38] sm:$0x3]  ;;  %v5205_v6 = vld [vmem:[%s6141_s0 + $0x3a] sm:$0x3] }
   0xd   :  { %4345 = vmatpush3.msk.msra.mxu0 %vm260_vm0, %v4120_v20  ;;  %4293 = vmatprep.mubr.msk.f32.mxu1 %vm243_vm1, %v5115_v57  ;;  %v5159_v11 = vcombine.low %v166_v58, %v173_v61  ;;  %v190_v12 = vrot.slane %v176_v62, %v5016_v22  ;;  %v200_v18 = vrot.slane %v192_v63, %v5016_v22  ;;  %vm1644_vm2 = vcmask 130048  }
   0xe   :  { %4335 = vmatprep.mubr.msk.f32.mxu0 %vm243_vm1, %v777_v4  ;;  %v778_v19 = vcombine.low %v173_v61, %v183_v5  ;;  %v207_v21 = vrot.slane %v193_v7, %v5016_v22  ;;  %v209_v25 = vcombine.low %v5123_v60, %v5135_v0  ;;  %v210_v20 = vcombine.low %v5140_v2, %v5145_v3 }
   0xf   :  { %v5179_v31 = vcombine.low %v183_v5, %v190_v12  ;;  %v779_v37 = vcombine.low %v190_v12, %v200_v18  ;;  %4302 = vmatprep.subr.msk.mxu1 %vm260_vm0, %v73_v10  ;;  %v5186_v38 = vrot.slane %v378_v23, %v5016_v22  ;;  %v5192_v39 = vrot.slane %v379_v24, %v5016_v22  ;;  %v5219_v23 = vld [vmem:[%s6133_s1 + $0x8] sm:$0xf] }
  0x10   :  { %4294 = vmatmul.mubr.msk.f32.gmra.mrb[2].mxu1 %vm243_vm1, %v5159_v11  ;;  %4336 = vmatmul.mubr.msk.f32.gmra.mrb[2].mxu0 %vm243_vm1, %v778_v19  ;;  %v5210_v8 = vcombine.low %v200_v18, %v207_v21  ;;  %v217_v13 = vrot.slane %v209_v25, %v5016_v22  ;;  %v5214_v14 = vrot.slane %v210_v20, %v5016_v22  ;;  %vm1826_vm3 = vcmask 517120  }
  0x11   :  { %4296 = vmatprep.mubr.msk.f32.mxu1 %vm243_vm1, %v5179_v31  ;;  %4338 = vmatprep.mubr.msk.f32.mxu0 %vm243_vm1, %v779_v37  ;;  %v394_v24 = vcombine.low %v5186_v38, %v5192_v39  ;;  %v5230_v46 = vrot.slane %v395_v29, %v5016_v22  ;;  %v226_v50 = vcombine.low %v5172_v26, %v5177_v30 }
  0x12   :  { %v780_v52 = vcombine.low %v207_v21, %v217_v13  ;;  %v5235_v53 = vcombine.low %v217_v13, %v5214_v14  ;;  %4358 = vmatprep.subr.msk.mxu0 %vm260_vm0, %v4130_v43  ;;  %v227_v56 = vcombine.low %v5200_v44, %v5205_v6  ;;  %4303 = vmatpush3.msk.msra.mxu1 %vm260_vm0, %v73_v10  ;;  %v1552_v13 = vld [vmem:[%s6142_s3 + $0x8] sm:$0xff] }
  0x13   :  { %v411_v58 = vcombine.low %v5230_v46, %v5081_v45  ;;  %v5244_v15 = vrot.slane %v226_v50, %v5016_v22  ;;  %v5248_v17 = vrot.slane %v4999_v16, %v5016_v22  ;;  %4316 = vmatprep.subr.msk.mxu1 %vm260_vm0, %v5219_v23  ;;  %v413_v59 = vcombine.low %v5043_v32, %v5048_v33 }
  0x14   :  { %4297 = vmatmul.mubr.msk.f32.gmra.mrb[4].mxu1 %vm243_vm1, %v5210_v8  ;;  %4339 = vmatmul.mubr.msk.f32.gmra.mrb[4].mxu0 %vm243_vm1, %v780_v52  ;;  %v5256_v29 = vrot.slane %v227_v56, %v5016_v22  ;;  %v420_v16 = vrot.slane %v412_v35, %v5016_v22  ;;  %v429_v62 = vcombine.low %v5053_v34, %v5066_v40  ;;  %v5390_v56 = vld [vmem:[%s6143_s2] ss:$0 sm:$0xff] }
  0x15   :  { %4299 = vmatprep.mubr.msk.f32.mxu1 %vm243_vm1, %v5235_v53  ;;  %4346 = vmatprep.mubr.msk.f32.mxu0 %vm243_vm1, %v394_v24  ;;  %v377_v61 = vcombine.low %v5058_v36, %v5248_v17  ;;  %v430_v63 = vcombine.low %v5071_v41, %v5076_v42  ;;  %v427_v27 = vrot.slane %v413_v59, %v5016_v22  ;;  %v71_v41 = vld [vmem:[%s6141_s0 + $0x3c] sm:$0x3] }
  0x16   :  { %v5275_v32 = vcombine.low %v5244_v15, %v5256_v29  ;;  %v446_v28 = vcombine.low %v5088_v47, %v5093_v48  ;;  %v447_v33 = vcombine.low %v5098_v49, %v5108_v54  ;;  %v437_v35 = vrot.slane %v429_v62, %v5016_v22  ;;  %v72_v49 = vld [vmem:[%s6141_s0 + $0x3e] sm:$0x3]  ;;  %v4140_v54 = vld [vmem:[%s6133_s1 + $0x18] sm:$0xf] }
  0x17   :  { %v444_v4 = vrot.slane %v430_v63, %v5016_v22  ;;  %v463_v34 = vcombine.low %v5113_v55, %v5123_v60  ;;  %v464_v40 = vcombine.low %v5135_v0, %v5140_v2  ;;  %v428_v42 = vcombine.low %v420_v16, %v427_v27 }
  0x18   :  { %4300 = vmatmul.mubr.msk.f32.gmra.mrb[6].mxu1 %vm243_vm1, %v5275_v32  ;;  %4347 = vmatmul.mubr.msk.f32.vlgmr.msra.gmra.mrb[0].mxu0 %vm243_vm1, %v411_v58  ;;  %v454_v47 = vrot.slane %v446_v28, %v5016_v22  ;;  %v461_v48 = vrot.slane %v447_v33, %v5016_v22  ;;  %v480_v5 = vcombine.low %v5145_v3, %v5172_v26 }
  0x19   :  { %4359 = vmatpush3.msk.msra.mxu0 %vm260_vm0, %v4130_v43  ;;  %4304 = vmatprep.mubr.msk.f32.mxu1 %vm243_vm1, %v377_v61  ;;  %v445_v55 = vcombine.low %v437_v35, %v444_v4  ;;  %v471_v60 = vrot.slane %v463_v34, %v5016_v22  ;;  %v478_v0 = vrot.slane %v464_v40, %v5016_v22 }
  0x1a   :  { %4349 = vmatprep.mubr.msk.f32.mxu0 %vm243_vm1, %v428_v42  ;;  %v462_v2 = vcombine.low %v454_v47, %v461_v48  ;;  %v481_v7 = vcombine.low %v5177_v30, %v5200_v44  ;;  %v631_v10 = vcombine.low %v5205_v6, %v71_v41  ;;  %v925_v18 = vcombine.low %v72_v49, %v4864_v9 }
  0x1b   :  { %v479_v12 = vcombine.low %v471_v60, %v478_v0  ;;  %4372 = vmatprep.subr.msk.mxu0 %vm260_vm0, %v4140_v54  ;;  %v488_v19 = vrot.slane %v480_v5, %v5016_v22  ;;  %v624_v26 = vcombine.low %v5248_v17, %v5186_v38  ;;  %v625_v30 = vcombine.low %v5192_v39, %v5230_v46  ;;  %v5395_v17 = vld [vmem:[%s6143_s2 + $0x1] ss:$0 sm:$0xff] }
  0x1c   :  { %4305 = vmatmul.mubr.msk.f32.vlgmr.msra.gmra.mrb[0].mxu1 %vm243_vm1, %v394_v24  ;;  %4350 = vmatmul.mubr.msk.f32.gmra.mrb[2].mxu0 %vm243_vm1, %v445_v55  ;;  %v495_v21 = vrot.slane %v481_v7, %v5016_v22  ;;  %v638_v3 = vrot.slane %v631_v10, %v5016_v22  ;;  %v932_v25 = vrot.slane %v925_v18, %v5016_v22 }
  0x1d   :  { %4307 = vmatprep.mubr.msk.f32.mxu1 %vm243_vm1, %v411_v58  ;;  %4352 = vmatprep.mubr.msk.f32.mxu0 %vm243_vm1, %v462_v2  ;;  %v782_v37 = vcombine.low %v71_v41, %v72_v49  ;;  %v626_v43 = vcombine.low %v5081_v45, %v420_v16  ;;  %v629_v45 = vcombine.low %v461_v48, %v471_v60 }
  0x1e   :  { %v496_v20 = vcombine.low %v488_v19, %v495_v21  ;;  %4317 = vmatpush3.msk.msra.mxu1 %vm260_vm0, %v5219_v23  ;;  %v933_v9 = vcombine.low %v638_v3, %v932_v25  ;;  %v639_v39 = vcombine.low %v495_v21, %v638_v3  ;;  %v1175_v6 = vcombine.low %v932_v25, %v5058_v36 }
  0x1f   :  { %4504 = vmatprep.subr.msk.mxu1 %vm260_vm0, %v4956_v1  ;;  %v789_v38 = vrot.slane %v782_v37, %v5016_v22 }
  0x20   :  { %4308 = vmatmul.mubr.msk.f32.gmra.mrb[2].mxu1 %vm243_vm1, %v428_v42  ;;  %4353 = vmatmul.mubr.msk.f32.gmra.mrb[4].mxu0 %vm243_vm1, %v479_v12 }
  0x21   :  { %4310 = vmatprep.mubr.msk.f32.mxu1 %vm243_vm1, %v445_v55  ;;  %4355 = vmatprep.mubr.msk.f32.mxu0 %vm243_vm1, %v496_v20  ;;  %v790_v44 = vcombine.low %v5256_v29, %v789_v38 }
  0x24   :  { %4311 = vmatmul.mubr.msk.f32.gmra.mrb[4].mxu1 %vm243_vm1, %v462_v2  ;;  %4356 = vmatmul.mubr.msk.f32.gmra.mrb[6].mxu0 %vm243_vm1, %v933_v9 }
  0x25   :  { %4313 = vmatprep.mubr.msk.f32.mxu1 %vm243_vm1, %v479_v12  ;;  %4360 = vmatprep.mubr.msk.f32.mxu0 %vm243_vm1, %v5101_v51  ;;  %v627_v51 = vcombine.low %v427_v27, %v437_v35 }
  0x28   :  { %4314 = vmatmul.mubr.msk.f32.gmra.mrb[6].mxu1 %vm243_vm1, %v496_v20  ;;  %4361 = vmatmul.mubr.msk.f32.vlgmr.msra.gmra.mrb[0].mxu0 %vm243_vm1, %v5115_v57  ;;  %v628_v57 = vcombine.low %v444_v4, %v454_v47 }
  0x29   :  { %4373 = vmatpush3.msk.msra.mxu0 %vm260_vm0, %v4140_v54  ;;  %4318 = vmatprep.mubr.msk.f32.mxu1 %vm243_vm1, %v624_v26 }
  0x2a   :  { %4363 = vmatprep.mubr.msk.f32.mxu0 %vm243_vm1, %v5159_v11  ;;  %v1054_v11 = vcombine.low %v789_v38, %v5058_v36 }
  0x2c   :  { %4319 = vmatmul.mubr.msk.f32.vlgmr.msra.gmra.mrb[0].mxu1 %vm243_vm1, %v625_v30  ;;  %4364 = vmatmul.mubr.msk.f32.gmra.mrb[2].mxu0 %vm243_vm1, %v5179_v31  ;;  %v630_v31 = vcombine.low %v478_v0, %v488_v19 }
  0x2d   :  { %4321 = vmatprep.mubr.msk.f32.mxu1 %vm243_vm1, %v626_v43  ;;  %4366 = vmatprep.mubr.msk.f32.mxu0 %vm243_vm1, %v5210_v8  ;;  %v1551_v8 = vld [vmem:[%s6142_s3] sm:$0xff] }
  0x2e   :  { %4505 = vmatpush3.msk.msra.mxu1 %vm260_vm0, %v4956_v1  ;;  %v781_v1 = vcombine.low %v5214_v14, %v5244_v15  ;;  %v4466_v14 = vpack.c.bf16 %v1552_v13, %v1551_v8 }
  0x30   :  { %4322 = vmatmul.mubr.msk.f32.gmra.mrb[2].mxu1 %vm243_vm1, %v627_v51  ;;  %4367 = vmatmul.mubr.msk.f32.gmra.mrb[4].mxu0 %vm243_vm1, %v5235_v53 }
  0x31   :  { %4324 = vmatprep.mubr.msk.f32.mxu1 %vm243_vm1, %v628_v57  ;;  %4369 = vmatprep.mubr.msk.f32.mxu0 %vm243_vm1, %v5275_v32 }
  0x32   :  { %4467 = vmatprep.subr.bf16.mxu1 %v4466_v14 }
  0x34   :  { %4325 = vmatmul.mubr.msk.f32.gmra.mrb[4].mxu1 %vm243_vm1, %v629_v45  ;;  %4370 = vmatmul.mubr.msk.f32.gmra.mrb[6].mxu0 %vm243_vm1, %v1054_v11 }
  0x35   :  { %4327 = vmatprep.mubr.msk.f32.mxu1 %vm243_vm1, %v630_v31  ;;  %4374 = vmatprep.mubr.msk.f32.mxu0 %vm243_vm1, %v625_v30 }
  0x38   :  { %4328 = vmatmul.mubr.msk.f32.gmra.mrb[6].mxu1 %vm243_vm1, %v639_v39  ;;  %4375 = vmatmul.mubr.msk.f32.vlgmr.msra.gmra.mrb[0].mxu0 %vm243_vm1, %v626_v43 }
  0x39   :  { %4377 = vmatprep.mubr.msk.f32.mxu0 %vm243_vm1, %v627_v51  ;;  %4341 = vmatprep.mubr.msk.f32.mxu1 %vm243_vm1, %v781_v1 }
  0x3c   :  { %4378 = vmatmul.mubr.msk.f32.gmra.mrb[2].mxu0 %vm243_vm1, %v628_v57 }
  0x3d   :  { %4380 = vmatprep.mubr.msk.f32.mxu0 %vm243_vm1, %v629_v45 }
  0x40   :  { %4342 = vmatmul.mubr.msk.f32.vlgmr.msra.gmra.mrb[6].mxu1 %vm243_vm1, %v790_v44  ;;  %4381 = vmatmul.mubr.msk.f32.gmra.mrb[4].mxu0 %vm243_vm1, %v630_v31 }
  0x41   :  { %4383 = vmatprep.mubr.msk.f32.mxu0 %vm243_vm1, %v639_v39  ;;  %4469 = vmatpush3.bf16.msra.mxu1 %v4466_v14 }
  0x44   :  { %4384 = vmatmul.mubr.msk.f32.gmra.mrb[6].mxu0 %vm243_vm1, %v1175_v6 }
  0xff   :  { %v4320_v23 = vpop.f32.mrb[0].mxu1 }
 0x100   :  { %v725_v24 = vpop.f32.mrb[1].mxu1 }
 0x103   :  { %v4323_v46 = vpop.f32.mrb[2].mxu1 }
 0x104   :  { %v735_v50 = vpop.f32.mrb[3].mxu1 }
 0x107   :  { %v4326_v36 = vpop.f32.mrb[4].mxu1 }
 0x108   :  { %v745_v52 = vpop.f32.mrb[5].mxu1 }
 0x10b   :  { %v4376_v53 = vpop.f32.mrb[0].mxu0 }
 0x10c   :  { %v4506_v58 = vadd.f32 %v4376_v53, %v4320_v23  ;;  %v1247_v15 = vpop.f32.mrb[1].mxu0 }
 0x10d   :  { %v4507_v29 = vadd.f32 %v1247_v15, %v725_v24 }
 0x10e   :  { %v1300_v59 = vmul.f32 %v4506_v58, %v5390_v56 }
 0x10f   :  { %v1299_v16 = vmul.f32 %v4507_v29, %v5390_v56  ;;  %v4379_v61 = vpop.f32.mrb[2].mxu0 }
 0x110   :  { %v1313_v62 = vadd.f32 %v5395_v17, %v1300_v59  ;;  %v4508_v63 = vadd.f32 %v4379_v61, %v4323_v46  ;;  %v1257_v32 = vpop.f32.mrb[3].mxu0 }
 0x111   :  { %v1312_v27 = vadd.f32 %v5395_v17, %v1299_v16  ;;  %v4509_v28 = vadd.f32 %v1257_v32, %v735_v50 }
 0x112   :  { %v1321_v33 = vmax.f32 %v1313_v62, 0.0  ;;  %v1302_v35 = vmul.f32 %v4508_v63, %v5390_v56 }
 0x113   :  { %v1320_v4 = vmax.f32 %v1312_v27, 0.0  ;;  %v1301_v34 = vmul.f32 %v4509_v28, %v5390_v56  ;;  %v4343_v40 = vpop.f32.mrb[6].mxu1  ;;  %v4382_v41 = vpop.f32.mrb[4].mxu0 }
 0x114   :  { %v1353_v42 = vcombine.high %v1321_v33, %v1321_v33  ;;  %v5404_v47 = vrot.slane %v1321_v33, %v5016_v22  ;;  %v1315_v48 = vadd.f32 %v5395_v17, %v1302_v35  ;;  %v4510_v49 = vadd.f32 %v4382_v41, %v4326_v36  ;;  %v906_v54 = vpop.f32.mrb[7].mxu1  ;;  %v1267_v55 = vpop.f32.mrb[5].mxu0 }
 0x115   :  { %v1336_v60 = vcombine.high %v1320_v4, %v1320_v4  ;;  %v1343_v0 = vrot.slane %v1320_v4, %v5016_v22  ;;  %v1314_v2 = vadd.f32 %v5395_v17, %v1301_v34  ;;  %v4511_v5 = vadd.f32 %v1267_v55, %v745_v52 }
 0x116   :  { %v5410_v7 = vrot.slane %v1353_v42, %v5016_v22  ;;  %v5414_v10 = vcombine.high %v5404_v47, %v5404_v47  ;;  %v1323_v12 = vmax.f32 %v1315_v48, 0.0  ;;  %v1304_v3 = vmul.f32 %v4510_v49, %v5390_v56 }
 0x117   :  { %v5417_v18 = vrot.slane %v1336_v60, %v5016_v22  ;;  %v5419_v19 = vcombine.high %v1343_v0, %v1343_v0  ;;  %v1322_v21 = vmax.f32 %v1314_v2, 0.0  ;;  %v4385_v25 = vpop.f32.mrb[6].mxu0  ;;  %v1303_v26 = vmul.f32 %v4511_v5, %v5390_v56 }
 0x118   :  { %v5424_v20 = vcombine.high %v5410_v7, %v5410_v7  ;;  %v1387_v9 = vcombine.high %v1323_v12, %v1323_v12  ;;  %v1277_v30 = vpop.f32.mrb[7].mxu0  ;;  %v1506_v37 = vmax.f32 %v5414_v10, %v5410_v7  ;;  %v1521_v43 = vmax.f32 %v5404_v47, %v5414_v10 }
 0x119   :  { %v1352_v51 = vcombine.high %v5417_v18, %v5417_v18  ;;  %v1394_v38 = vrot.slane %v1323_v12, %v5016_v22  ;;  %v1504_v57 = vmax.f32 %v5419_v19, %v5417_v18  ;;  %v1370_v11 = vcombine.high %v1322_v21, %v1322_v21 }
 0x11a   :  { %v1401_v45 = vrot.slane %v1387_v9, %v5016_v22  ;;  %v1377_v31 = vrot.slane %v1322_v21, %v5016_v22  ;;  %v1522_v39 = vmax.f32 %v5410_v7, %v5424_v20  ;;  %v1519_v1 = vmax.f32 %v1343_v0, %v5419_v19 }
 0x11b   :  { %v1402_v44 = vcombine.high %v1394_v38, %v1394_v38  ;;  %v1317_v6 = vadd.f32 %v5395_v17, %v1304_v3  ;;  %v1384_v13 = vrot.slane %v1370_v11, %v5016_v22  ;;  %v1520_v24 = vmax.f32 %v5417_v18, %v1352_v51 }
 0x11c   :  { %v5442_v8 = vcombine.high %v1401_v45, %v1401_v45  ;;  %v1385_v14 = vcombine.high %v1377_v31, %v1377_v31  ;;  %v1507_v23 = vmax.f32 %v5424_v20, %v1377_v31  ;;  %v1316_v36 = vadd.f32 %v5395_v17, %v1303_v26 }
 0x11d   :  { %v1510_v46 = vmax.f32 %v1402_v44, %v1401_v45  ;;  %v1325_v50 = vmax.f32 %v1317_v6, 0.0  ;;  %v1525_v52 = vmax.f32 %v1394_v38, %v1402_v44  ;;  %v1386_v58 = vcombine.high %v1384_v13, %v1384_v13 }
 0x11e   :  { %v1526_v53 = vmax.f32 %v1401_v45, %v5442_v8  ;;  %v1523_v15 = vmax.f32 %v1377_v31, %v1385_v14  ;;  %v1324_v16 = vmax.f32 %v1316_v36, 0.0  ;;  %v4512_v61 = vadd.f32 %v4385_v25, %v4343_v40 }
 0x11f   :  { %v1421_v29 = vcombine.high %v1325_v50, %v1325_v50  ;;  %v5450_v59 = vrot.slane %v1325_v50, %v5016_v22  ;;  %v1508_v62 = vmax.f32 %v1385_v14, %v1384_v13  ;;  %v1509_v63 = vmax.f32 %v1386_v58, %v1394_v38 }
 0x120   :  { %v1524_v32 = vmax.f32 %v1384_v13, %v1386_v58  ;;  %v1539_v27 = vmax.f32 %v1507_v23, %v1523_v15  ;;  %v1404_v35 = vcombine.high %v1324_v16, %v1324_v16  ;;  %v1411_v4 = vrot.slane %v1324_v16, %v5016_v22 }
 0x121   :  { %v1435_v28 = vrot.slane %v1421_v29, %v5016_v22  ;;  %v1436_v33 = vcombine.high %v5450_v59, %v5450_v59  ;;  %v1541_v41 = vmax.f32 %v1509_v63, %v1525_v52  ;;  %v1306_v42 = vmul.f32 %v4512_v61, %v5390_v56 }
 0x122   :  { %v1540_v34 = vmax.f32 %v1508_v62, %v1524_v32  ;;  %v4513_v48 = vadd.f32 %v1277_v30, %v906_v54  ;;  %v1535_v49 = vmax.f32 %v1343_v0, %v1519_v1  ;;  %v1542_v55 = vmax.f32 %v1510_v46, %v1526_v53 }
 0x123   :  { %v1437_v40 = vcombine.high %v1435_v28, %v1435_v28  ;;  %v1418_v60 = vrot.slane %v1404_v35, %v5016_v22  ;;  %v1419_v5 = vcombine.high %v1411_v4, %v1411_v4  ;;  %v1511_v7 = vmax.f32 %v5442_v8, %v1411_v4 }
 0x124   :  { %v1593_v2 = vcombine.low %v1539_v27, %v1540_v34  ;;  %v1319_v10 = vadd.f32 %v5395_v17, %v1306_v42  ;;  %v1514_v12 = vmax.f32 %v1436_v33, %v1435_v28  ;;  %v1305_v19 = vmul.f32 %v4513_v48, %v5390_v56 }
 0x125   :  { %v1420_v18 = vcombine.high %v1418_v60, %v1418_v60  ;;  %v1505_v21 = vmax.f32 %v1352_v51, %v5404_v47  ;;  %v1530_v3 = vmax.f32 %v1435_v28, %v1437_v40  ;;  %v1527_v54 = vmax.f32 %v1411_v4, %v1419_v5 }
 0x126   :  { %v1327_v0 = vmax.f32 %v1319_v10, 0.0  ;;  %v1536_v25 = vmax.f32 %v1504_v57, %v1520_v24  ;;  %v1318_v9 = vadd.f32 %v5395_v17, %v1305_v19  ;;  %v1538_v30 = vmax.f32 %v1506_v37, %v1522_v39 }
 0x127   :  { %v1528_v20 = vmax.f32 %v1418_v60, %v1420_v18  ;;  %v1537_v26 = vmax.f32 %v1505_v21, %v1521_v43  ;;  %v1594_v31 = vcombine.low %v1541_v41, %v1542_v55  ;;  %v1601_v56 = vrot.slane %v1593_v2, %v5016_v22 }
 0x128   :  { %v1455_v38 = vcombine.high %v1327_v0, %v1327_v0  ;;  %v1462_v45 = vrot.slane %v1327_v0, %v5016_v22  ;;  %v1576_v11 = vcombine.low %v1535_v49, %v1536_v25  ;;  %v1326_v1 = vmax.f32 %v1318_v9, 0.0 }
 0x129   :  { %v1577_v44 = vcombine.low %v1537_v26, %v1538_v30  ;;  %v1513_v47 = vmax.f32 %v1420_v18, %v5450_v59  ;;  %v1608_v17 = vrot.slane %v1594_v31, %v5016_v22  ;;  %v1543_v8 = vmax.f32 %v1511_v7, %v1527_v54  ;;  %v4152_v7 = vld [vmem:[%s6144_s5] ss:$0 sm:$0xff]  ;;  %s4865_s5 = smov 64  }
 0x12a   :  { %v1469_v51 = vrot.slane %v1455_v38, %v5016_v22  ;;  %v1470_v6 = vcombine.high %v1462_v45, %v1462_v45  ;;  %v1584_v57 = vrot.slane %v1576_v11, %v5016_v22  ;;  %v1438_v43 = vcombine.high %v1326_v1, %v1326_v1 }
 0x12b   :  { %v1445_v37 = vrot.slane %v1326_v1, %v5016_v22  ;;  %v1591_v39 = vrot.slane %v1577_v44, %v5016_v22  ;;  %v1529_v13 = vmax.f32 %v5450_v59, %v1436_v33  ;;  %v1512_v14 = vmax.f32 %v1419_v5, %v1418_v60 }
 0x12c   :  { %v1471_v23 = vcombine.high %v1469_v51, %v1469_v51  ;;  %v1609_v24 = vcombine.low %v1601_v56, %v1608_v17  ;;  %v1452_v46 = vrot.slane %v1438_v43, %v5016_v22  ;;  %v1546_v29 = vmax.f32 %v1514_v12, %v1530_v3 }
 0x12d   :  { %v1453_v50 = vcombine.high %v1445_v37, %v1445_v37  ;;  %v1515_v36 = vmax.f32 %v1437_v40, %v1445_v37  ;;  %v1592_v52 = vcombine.low %v1584_v57, %v1591_v39  ;;  %v1544_v58 = vmax.f32 %v1512_v14, %v1528_v20 }
 0x12e   :  { %v1534_v53 = vmax.f32 %v1469_v51, %v1471_v23  ;;  %v1545_v15 = vmax.f32 %v1513_v47, %v1529_v13  ;;  %v1518_v16 = vmax.f32 %v1470_v6, %v1469_v51  ;;  %v1454_v61 = vcombine.high %v1452_v46, %v1452_v46 }
 0x12f   :  { %v1531_v62 = vmax.f32 %v1445_v37, %v1453_v50  ;;  %4390 = vmatprep.mubr.msk.f32.mxu1 %vm1644_vm2, %v1592_v52  ;;  %v1533_v63 = vmax.f32 %v1462_v45, %v1470_v6  ;;  %v1516_v32 = vmax.f32 %v1453_v50, %v1452_v46  ;;  %v1610_v59 = vcombine.low %v1543_v8, %v1544_v58  ;;  %v5530_v58 = vld [vmem:[%s6145_s4] sm:$0xff] }
 0x130   :  { %4391 = vmatmul.mubr.msk.f32.vlgmr.msra.gmra.mrb[8].mxu1 %vm1644_vm2, %v1609_v24  ;;  %v1611_v27 = vcombine.low %v1545_v15, %v1546_v29  ;;  %v1532_v28 = vmax.f32 %v1452_v46, %v1454_v61  ;;  %v1517_v33 = vmax.f32 %v1454_v61, %v1462_v45  ;;  %v1550_v4 = vmax.f32 %v1518_v16, %v1534_v53  ;;  %v5535_v15 = vld [vmem:[%s6145_s4 + $0x8] sm:$0xff]  ;;  %v5540_v29 = vld [vmem:[%s6145_s4 + $0x10] sm:$0xff]  ;;  %v5547_v61 = vld [vmem:[%s6145_s4 + $0x18] sm:$0xff]  ;;  %s5584_s4 = smov 0  }
 0x131   :  { %v1547_v35 = vmax.f32 %v1515_v36, %v1531_v62  ;;  %v1618_v34 = vrot.slane %v1610_v59, %v5016_v22 }
 0x132   :  { %v1625_v41 = vrot.slane %v1611_v27, %v5016_v22  ;;  %v1548_v42 = vmax.f32 %v1516_v32, %v1532_v28  ;;  %v1549_v48 = vmax.f32 %v1517_v33, %v1533_v63 }
 0x134   :  { %v1626_v49 = vcombine.low %v1618_v34, %v1625_v41  ;;  %v1627_v55 = vcombine.low %v1547_v35, %v1548_v42  ;;  %v1628_v40 = vcombine.low %v1549_v48, %v1550_v4 }
 0x136   :  { %4393 = vmatprep.mubr.msk.f32.mxu1 %vm1644_vm2, %v1626_v49  ;;  %v1635_v60 = vrot.slane %v1627_v55, %v5016_v22  ;;  %v1642_v2 = vrot.slane %v1628_v40, %v5016_v22 }
 0x138   :  { %v1643_v5 = vcombine.low %v1635_v60, %v1642_v2 }
 0x13a   :  { %4394 = vmatmul.mubr.msk.f32.gmra.mrb[10].mxu1 %vm1644_vm2, %v1643_v5 }
 0x203   :  { %v4392_v10 = vpop.f32.mrb[8].mxu1 }
 0x204   :  { %v1725_v12 = vadd.f32 %v4392_v10, %v4152_v7  ;;  %v1719_v18 = vpop.f32.mrb[9].mxu1 }
 0x205   :  { %v1720_v19 = vadd.f32 %v4152_v7, %v1719_v18  ;;  %v5578_v18 = vmov 0.0  }
 0x206   :  { %v1759_v21 = vcombine.high %v1725_v12, %v1725_v12  ;;  %v1766_v3 = vrot.slane %v1725_v12, %v5016_v22  ;;  %v5576_v12 = vmov 0.0  }
 0x207   :  { %v1742_v54 = vcombine.high %v1720_v19, %v1720_v19  ;;  %v1749_v0 = vrot.slane %v1720_v19, %v5016_v22  ;;  %v5580_v19 = vmov 0.0  }
 0x208   :  { %v1773_v25 = vrot.slane %v1759_v21, %v5016_v22  ;;  %1831 = vst.msk [vmem:[#allocation2 + $0x8] sm:$0x3] %vm1826_vm3, %v1766_v3  ;;  %v1877_v20 = vrot.slane %v1766_v3, %v5016_v22  ;;  %v1774_v9 = vcombine.high %v1766_v3, %v1766_v3  ;;  %v5582_v21 = vmov 0.0  }
 0x209   :  { %v1756_v26 = vrot.slane %v1742_v54, %v5016_v22  ;;  %1827 = vst.msk [vmem:[#allocation2] sm:$0x3] %vm1826_vm3, %v1749_v0  ;;  %v1757_v30 = vcombine.high %v1749_v0, %v1749_v0  ;;  %v1849_v31 = vrot.slane %v1749_v0, %v5016_v22 }
 0x20a   :  { %1833 = vst.msk [vmem:[#allocation2 + $0xc] sm:$0x3] %vm1826_vm3, %v1773_v25  ;;  %1963 = vrot.lane.b32.xlu0 %v1877_v20, %s4865_s5  ;;  %v1884_v38 = vrot.slane %v1774_v9, %v5016_v22  ;;  %1832 = vst.msk [vmem:[#allocation2 + $0xa] sm:$0x3] %vm1826_vm3, %v1774_v9  ;;  %v1775_v45 = vcombine.high %v1773_v25, %v1773_v25  ;;  %v1891_v6 = vrot.slane %v1773_v25, %v5016_v22 }
 0x20b   :  { %1829 = vst.msk [vmem:[#allocation2 + $0x4] sm:$0x3] %vm1826_vm3, %v1756_v26  ;;  %1828 = vst.msk [vmem:[#allocation2 + $0x2] sm:$0x3] %vm1826_vm3, %v1757_v30  ;;  %v1758_v11 = vcombine.high %v1756_v26, %v1756_v26  ;;  %v1863_v44 = vrot.slane %v1756_v26, %v5016_v22  ;;  %v1856_v23 = vrot.slane %v1757_v30, %v5016_v22 }
 0x20c   :  { %1965 = vrot.lane.b32.xlu1 %v1884_v38, %s4865_s5  ;;  %1834 = vst.msk [vmem:[#allocation2 + $0xe] sm:$0x3] %vm1826_vm3, %v1775_v45  ;;  %v1898_v39 = vrot.slane %v1775_v45, %v5016_v22 }
 0x20d   :  { %1830 = vst.msk [vmem:[#allocation2 + $0x6] sm:$0x3] %vm1826_vm3, %v1758_v11  ;;  %v4395_v1 = vpop.f32.mrb[10].mxu1  ;;  %v1870_v50 = vrot.slane %v1758_v11, %v5016_v22 }
 0x20e   :  { %1955 = vrot.lane.b32.xlu0 %v1849_v31, %s4865_s5  ;;  %v1735_v56 = vadd.f32 %v4395_v1, %v4152_v7  ;;  %v1729_v47 = vpop.f32.mrb[11].mxu1 }
 0x20f   :  { %v1730_v51 = vadd.f32 %v4152_v7, %v1729_v47 }
 0x210   :  { %1959 = vrot.lane.b32.xlu1 %v1863_v44, %s4865_s5  ;;  %v1793_v57 = vcombine.high %v1735_v56, %v1735_v56  ;;  %v1800_v17 = vrot.slane %v1735_v56, %v5016_v22 }
 0x211   :  { %v1776_v43 = vcombine.high %v1730_v51, %v1730_v51  ;;  %v1783_v37 = vrot.slane %v1730_v51, %v5016_v22 }
 0x212   :  { %1967 = vrot.lane.b32.xlu0 %v1891_v6, %s4865_s5  ;;  %v1807_v8 = vrot.slane %v1793_v57, %v5016_v22  ;;  %1839 = vst.msk [vmem:[#allocation2 + $0x18] sm:$0x3] %vm1826_vm3, %v1800_v17  ;;  %v1808_v13 = vcombine.high %v1800_v17, %v1800_v17  ;;  %v1933_v52 = vrot.slane %v1800_v17, %v5016_v22 }
 0x213   :  { %v1790_v14 = vrot.slane %v1776_v43, %v5016_v22  ;;  %1835 = vst.msk [vmem:[#allocation2 + $0x10] sm:$0x3] %vm1826_vm3, %v1783_v37  ;;  %v1791_v24 = vcombine.high %v1783_v37, %v1783_v37  ;;  %v1905_v16 = vrot.slane %v1783_v37, %v5016_v22 }
 0x214   :  { %1969 = vrot.lane.b32.xlu1 %v1898_v39, %s4865_s5  ;;  %1841 = vst.msk [vmem:[#allocation2 + $0x1c] sm:$0x3] %vm1826_vm3, %v1807_v8  ;;  %1840 = vst.msk [vmem:[#allocation2 + $0x1a] sm:$0x3] %vm1826_vm3, %v1808_v13  ;;  %v1809_v46 = vcombine.high %v1807_v8, %v1807_v8  ;;  %v1940_v53 = vrot.slane %v1808_v13, %v5016_v22  ;;  %v1947_v59 = vrot.slane %v1807_v8, %v5016_v22 }
 0x215   :  { %1837 = vst.msk [vmem:[#allocation2 + $0x14] sm:$0x3] %vm1826_vm3, %v1790_v14  ;;  %1836 = vst.msk [vmem:[#allocation2 + $0x12] sm:$0x3] %vm1826_vm3, %v1791_v24  ;;  %v1792_v36 = vcombine.high %v1790_v14, %v1790_v14  ;;  %v1912_v62 = vrot.slane %v1791_v24, %v5016_v22  ;;  %v1919_v63 = vrot.slane %v1790_v14, %v5016_v22 }
 0x216   :  { %1957 = vrot.lane.b32.xlu0 %v1856_v23, %s4865_s5  ;;  %1842 = vst.msk [vmem:[#allocation2 + $0x1e] sm:$0x3] %vm1826_vm3, %v1809_v46  ;;  %v1954_v27 = vrot.slane %v1809_v46, %v5016_v22 }
 0x217   :  { %1838 = vst.msk [vmem:[#allocation2 + $0x16] sm:$0x3] %vm1826_vm3, %v1792_v36  ;;  %v1926_v32 = vrot.slane %v1792_v36, %v5016_v22 }
 0x218   :  { %1961 = vrot.lane.b32.xlu1 %v1870_v50, %s4865_s5 }
 0x21a   :  { %1979 = vrot.lane.b32.xlu0 %v1933_v52, %s4865_s5 }
 0x21c   :  { %1981 = vrot.lane.b32.xlu1 %v1940_v53, %s4865_s5 }
 0x21e   :  { %1971 = vrot.lane.b32.xlu0 %v1905_v16, %s4865_s5 }
 0x220   :  { %1973 = vrot.lane.b32.xlu1 %v1912_v62, %s4865_s5 }
 0x222   :  { %1975 = vrot.lane.b32.xlu0 %v1919_v63, %s4865_s5 }
 0x224   :  { %1977 = vrot.lane.b32.xlu1 %v1926_v32, %s4865_s5 }
 0x226   :  { %1983 = vrot.lane.b32.xlu0 %v1947_v59, %s4865_s5 }
 0x228   :  { %1985 = vrot.lane.b32.xlu1 %v1954_v27, %s4865_s5 }
 0x27c   :  { %v1964_v28 = vpop.permute.xlu0 %1963 }
 0x27d   :  { %2007 = vst.msk [vmem:[#allocation3 + $0x8] sm:$0x3] %vm1826_vm3, %v1964_v28 }
 0x27e   :  { %v1966_v33 = vpop.permute.xlu1 %1965 }
 0x27f   :  { %2008 = vst.msk [vmem:[#allocation3 + $0xa] sm:$0x3] %vm1826_vm3, %v1966_v33 }
 0x280   :  { %v1956_v35 = vpop.permute.xlu0 %1955 }
 0x281   :  { %2003 = vst.msk [vmem:[#allocation3] sm:$0x3] %vm1826_vm3, %v1956_v35 }
 0x282   :  { %v1960_v4 = vpop.permute.xlu1 %1959 }
 0x283   :  { %2005 = vst.msk [vmem:[#allocation3 + $0x4] sm:$0x3] %vm1826_vm3, %v1960_v4 }
 0x284   :  { %v1968_v34 = vpop.permute.xlu0 %1967 }
 0x285   :  { %2009 = vst.msk [vmem:[#allocation3 + $0xc] sm:$0x3] %vm1826_vm3, %v1968_v34 }
 0x286   :  { %v1970_v41 = vpop.permute.xlu1 %1969 }
 0x287   :  { %2010 = vst.msk [vmem:[#allocation3 + $0xe] sm:$0x3] %vm1826_vm3, %v1970_v41 }
 0x288   :  { %v1958_v42 = vpop.permute.xlu0 %1957 }
 0x289   :  { %2004 = vst.msk [vmem:[#allocation3 + $0x2] sm:$0x3] %vm1826_vm3, %v1958_v42 }
 0x28a   :  { %v1962_v48 = vpop.permute.xlu1 %1961 }
 0x28b   :  { %2006 = vst.msk [vmem:[#allocation3 + $0x6] sm:$0x3] %vm1826_vm3, %v1962_v48 }
 0x28c   :  { %v1980_v49 = vpop.permute.xlu0 %1979 }
 0x28d   :  { %2015 = vst.msk [vmem:[#allocation3 + $0x18] sm:$0x3] %vm1826_vm3, %v1980_v49 }
 0x28e   :  { %v1982_v55 = vpop.permute.xlu1 %1981 }
 0x28f   :  { %2016 = vst.msk [vmem:[#allocation3 + $0x1a] sm:$0x3] %vm1826_vm3, %v1982_v55 }
 0x290   :  { %v1972_v40 = vpop.permute.xlu0 %1971 }
 0x291   :  { %2011 = vst.msk [vmem:[#allocation3 + $0x10] sm:$0x3] %vm1826_vm3, %v1972_v40 }
 0x292   :  { %v1974_v60 = vpop.permute.xlu1 %1973 }
 0x293   :  { %2012 = vst.msk [vmem:[#allocation3 + $0x12] sm:$0x3] %vm1826_vm3, %v1974_v60 }
 0x294   :  { %v1976_v2 = vpop.permute.xlu0 %1975 }
 0x295   :  { %2013 = vst.msk [vmem:[#allocation3 + $0x14] sm:$0x3] %vm1826_vm3, %v1976_v2 }
 0x296   :  { %v1978_v5 = vpop.permute.xlu1 %1977 }
 0x297   :  { %2014 = vst.msk [vmem:[#allocation3 + $0x16] sm:$0x3] %vm1826_vm3, %v1978_v5 }
 0x298   :  { %v1984_v7 = vpop.permute.xlu0 %1983 }
 0x299   :  { %2017 = vst.msk [vmem:[#allocation3 + $0x1c] sm:$0x3] %vm1826_vm3, %v1984_v7 }
 0x29a   :  { %v1986_v10 = vpop.permute.xlu1 %1985 }
 0x29b   :  { %2018 = vst.msk [vmem:[#allocation3 + $0x1e] sm:$0x3] %vm1826_vm3, %v1986_v10 }
 0x29c LB: > { %v4471_v3 = vpack.c.bf16 %v5535_v15, %v5530_v58  ;;  %v4866_v54 = vmov 0.0|0.0   ;;  %s4867_s23 = smov 80   ;;  %v4474_v0 = vpack.c.bf16 %v5547_v61, %v5540_v29  ;;  %vm4868_vm4 = vmmov 0   ;;  %s4159_s24 = sshll.u32 %s4821_s4, 1  ;;  %s4821_s4 = sphi %s5584_s4, %s2029_s4   ;;  %v4817_v21 = vphi %v5582_v21, %v2230_v21   ;;  %v4813_v19 = vphi %v5580_v19, %v2213_v19   ;;  %v4809_v18 = vphi %v5578_v18, %v2236_v18   ;;  %v4805_v12 = vphi %v5576_v12, %v2224_v12  }
 0x29d   : > { %4470 = vmatprep.subr.bf16.mxu0 %v4866_v54  ;;  %4473 = vmatprep.subr.bf16.mxu1 %v4866_v54  ;;  %v4869_v25 = vmov 0.0   ;;  %s2113_s25 = ssub.s32 15, %s4821_s4  ;;  %s2035_s0 = scalar_lea.vmem [#allocation2], %s4159_s24  ;;  %vm2242_vm5 = vcmask 123904  }
 0x29e   : > { %2038 = vrot.lane.b32.xlu0 %v4817_v21, %s4867_s23  ;;  %4472 = vmatpush3.bf16.msra.mxu0 %v4471_v3  ;;  %s5605_s26 = sshll.u32 %s2113_s25, 1  ;;  %v2036_v26 = vld [vmem:[%s2035_s0] sm:$0x3]  ;;  %s4870_s27 = smov 96  }
 0x29f   : > { %4400 = vmatprep.mubr.msk.f32.mxu0 %vm4868_vm4, %v4869_v25  ;;  %4407 = vmatprep.mubr.msk.f32.mxu1 %vm4868_vm4, %v4869_v25  ;;  %s2115_s1 = scalar_lea.vmem [#allocation3], %s5605_s26  ;;  %s4871_s28 = smov 16  }
 0x2a0   : > { %4475 = vmatpush3.bf16.msra.mxu1 %v4474_v0  ;;  %s4872_s29 = smov 32   ;;  %s2241_s30 = scalar_lea.vmem [#allocation4], %s4159_s24 }
 0x2a1   : > { %s2248_s13 = scalar_lea.vmem [#allocation5], %s5605_s26  ;;  %s2029_s4 = sadd.s32 1, %s4821_s4  }
 0x2a2   : > { %2118 = vrot.lane.b32.xlu0 %v4809_v18, %s4867_s23  ;;  %v2116_v11 = vld [vmem:[%s2115_s1] sm:$0x3]  ;;  %p2026_p0 = scmp.ge.s32.totalorder %s2029_s4, 16  }
 0x2a3   :  { %s4873_s14 = smov (%p2026_p0), 16   ;;  %v2362_v58 = vld [vmem:[%s6134_s6] sm:$0xff] (%p2026_p0)  ;;  %v2363_v15 = vld [vmem:[%s6134_s6 + $0x8] sm:$0xff] (%p2026_p0)  ;;  %v2364_v42 = vld [vmem:[%s6134_s6 + $0x10] sm:$0xff] (%p2026_p0)  ;;  %vm2457_vm6 = vcmask (%p2026_p0), 261120  }
 0x2a4   :  { %v4476_v61 = vpack.c.bf16 (%p2026_p0), %v2363_v15, %v2362_v58  ;;  %v2365_v48 = vld [vmem:[%s6134_s6 + $0x18] sm:$0xff] (%p2026_p0) }
 0x2a5   :  { %v4480_v49 = vpack.c.bf16 (%p2026_p0), %v2365_v48, %v2364_v42 }
 0x2a6   :  { %4477 = vmatprep.subr.bf16.mxu0 (%p2026_p0), %v4476_v61  ;;  %4554 = vmatprep.subr.bf16.mxu1 (%p2026_p0), %v4476_v61 }
 0x310   : > { %v2039_v20 = vpop.permute.xlu0 %2038 }
 0x311   : > { %4401 = vmatmul.mubr.msk.f32.vlgmr.msra.gmra.mrb[0].mxu0 %vm1644_vm2, %v2039_v20 }
 0x312   :  { %4479 = vmatpush3.bf16.msra.mxu0 (%p2026_p0), %v4476_v61 }
 0x313   :  { %4481 = vmatprep.subr.bf16.mxu0 (%p2026_p0), %v4480_v49 }
 0x314   : > { %v2119_v9 = vpop.permute.xlu0 %2118 }
 0x315   : > { %4408 = vmatmul.mubr.msk.f32.vlgmr.msra.gmra.mrb[0].mxu1 %vm1644_vm2, %v2119_v9 }
 0x316   :  { %4556 = vmatpush3.bf16.msra.mxu1 (%p2026_p0), %v4476_v61  ;;  %4483 = vmatpush3.bf16.msra.mxu0 (%p2026_p0), %v4480_v49 }
 0x317   :  { %4555 = vmatprep.subr.bf16.mxu1 (%p2026_p0), %v4480_v49 }
 0x31a   :  { %4557 = vmatpush3.bf16.msra.mxu1 (%p2026_p0), %v4480_v49 }
 0x3e4   : > { %v2108_v30 = vpop.f32.mrb[0].mxu0 }
 0x3e5   : > { %v2112_v38 = vadd.f32 %v2108_v30, %v2036_v26  ;;  %v4402_v45 = vpop.f32.mrb[1].mxu0 }
 0x3e7   : > { %4707 = vtanh.f32 %v2112_v38  ;;  %v2193_v51 = vmul.f32 0.5, %v2112_v38 }
 0x3e8   : > { %v2188_v31 = vpop.f32.mrb[0].mxu1 }
 0x3e9   : > { %v2192_v1 = vadd.f32 %v2188_v31, %v2116_v11  ;;  %v4409_v44 = vpop.f32.mrb[1].mxu1 }
 0x3eb   : > { %4709 = vtanh.f32 %v2192_v1  ;;  %v2198_v6 = vmul.f32 0.5, %v2192_v1 }
 0x3ec   : > { %4711 = vtanh.f32 %v2193_v51 }
 0x3ed   : > { %4713 = vtanh.f32 %v2198_v6 }
 0x3f1   : > { %v4708_v56 = vpop.eup %4707 }
 0x3f2   : > { %2205 = vrot.lane.b32.xlu1 %v4708_v56, %s4870_s27 }
 0x3f5   : > { %v4710_v47 = vpop.eup %4709 }
 0x3f6   : > { %2216 = vrot.lane.b32.xlu1 %v4710_v47, %s4870_s27  ;;  %v4712_v57 = vpop.eup %4711 }
 0x3f7   : > { %v2195_v17 = vadd.f32 1.0, %v4712_v57  ;;  %v4714_v43 = vpop.eup %4713 }
 0x3f8   : > { %v2200_v39 = vadd.f32 1.0, %v4714_v43 }
 0x3f9   : > { %v2196_v37 = vmul.f32 0.5, %v2195_v17 }
 0x3fa   : > { %v2201_v14 = vmul.f32 0.5, %v2200_v39 }
 0x3fb   : > { %v2203_v46 = vmul.f32 %v4813_v19, %v2196_v37 }
 0x3fc   : > { %v2214_v36 = vmul.f32 %v4805_v12, %v2201_v14 }
 0x464   : > { %v2206_v8 = vpop.permute.xlu1 %2205 }
 0x465   : > { %v2208_v13 = vmul.f32 %v2206_v8, %v2196_v37 }
 0x467   : > { %2210 = vrot.lane.b32.xlu0 %v2208_v13, %s4871_s28 }
 0x468   : > { %v2217_v23 = vpop.permute.xlu1 %2216 }
 0x469   : > { %v2219_v24 = vmul.f32 %v2217_v23, %v2201_v14 }
 0x46b   : > { %2221 = vrot.lane.b32.xlu1 %v2219_v24, %s4871_s28 }
 0x4d9   : > { %v2211_v50 = vpop.permute.xlu0 %2210 }
 0x4da   : > { %v2213_v19 = vadd.f32 %v2211_v50, %v2203_v46  }
 0x4dc   : > { %4715 = vtanh.f32 %v2213_v19 }
 0x4dd   : > { %v2222_v52 = vpop.permute.xlu1 %2221 }
 0x4de   : > { %v2224_v12 = vadd.f32 %v2222_v52, %v2214_v36  }
 0x4e0   : > { %4717 = vtanh.f32 %v2224_v12 }
 0x4e6   : > { %v4716_v53 = vpop.eup %4715 }
 0x4e7   : > { %2227 = vrot.lane.b32.xlu0 %v4716_v53, %s4872_s29 }
 0x4ea   : > { %v4718_v16 = vpop.eup %4717 }
 0x4eb   : > { %2233 = vrot.lane.b32.xlu1 %v4718_v16, %s4872_s29 }
 0x559   : > { %v2228_v62 = vpop.permute.xlu0 %2227 }
 0x55a   : > { %v2230_v21 = vmul.f32 %v2228_v62, %v2196_v37  }
 0x55c   : > { %2238 = vrot.lane.b32.xlu0 %v2230_v21, %s4867_s23 }
 0x55d   : > { %v2234_v63 = vpop.permute.xlu1 %2233 }
 0x55e   : > { %v2236_v18 = vmul.f32 %v2234_v63, %v2201_v14  }
 0x560   : > { %2245 = vrot.lane.b32.xlu1 %v2236_v18, %s4867_s23 }
 0x5cd   :  { %2028 = sbr.rel (!%p2026_p0) target bundleno = 668 (0x29c), region = 110 }
 0x5ce   : > { %v2239_v32 = vpop.permute.xlu0 %2238 }
 0x5cf   : > { %2243 = vst.msk [vmem:[%s2241_s30] sm:$0x3] %vm2242_vm5, %v2239_v32 }
 0x5d2   : > { %v2246_v59 = vpop.permute.xlu1 %2245 }
 0x5d3   : > { %2249 = vst.msk [vmem:[%s2248_s13] sm:$0x3] %vm2242_vm5, %v2246_v59 }
 0x5d6   :  { %v2252_v21 = vld [vmem:[#allocation4 + $0x4] sm:$0x3]  ;;  %v2250_v3 = vld [vmem:[#allocation4] sm:$0x3]  ;;  %v2253_v54 = vld [vmem:[#allocation4 + $0x6] sm:$0x3] }
 0x5d7   :  { %v2251_v0 = vld [vmem:[#allocation4 + $0x2] sm:$0x3]  ;;  %v2259_v31 = vld [vmem:[#allocation4 + $0x12] sm:$0x3]  ;;  %v2258_v1 = vld [vmem:[#allocation4 + $0x10] sm:$0x3] }
 0x5d8   :  { %v2261_v17 = vld [vmem:[#allocation4 + $0x16] sm:$0x3]  ;;  %v2260_v43 = vld [vmem:[#allocation4 + $0x14] sm:$0x3]  ;;  %v2255_v46 = vld [vmem:[#allocation4 + $0xa] sm:$0x3] }
 0x5d9   :  { %v2254_v50 = vld [vmem:[#allocation4 + $0x8] sm:$0x3]  ;;  %v2257_v32 = vld [vmem:[#allocation4 + $0xe] sm:$0x3]  ;;  %v2256_v59 = vld [vmem:[#allocation4 + $0xc] sm:$0x3] }
 0x5da   :  { %v2268_v27 = vld [vmem:[#allocation5 + $0x4] sm:$0x3]  ;;  %v2266_v28 = vld [vmem:[#allocation5] sm:$0x3]  ;;  %v2269_v33 = vld [vmem:[#allocation5 + $0x6] sm:$0x3] }
 0x5db   :  { %2302 = vrot.lane.b32.xlu1 %v2268_v27, %s4873_s14  ;;  %2298 = vrot.lane.b32.xlu0 %v2266_v28, %s4873_s14  ;;  %v2267_v35 = vld [vmem:[#allocation5 + $0x2] sm:$0x3]  ;;  %v2275_v4 = vld [vmem:[#allocation5 + $0x12] sm:$0x3]  ;;  %v2274_v34 = vld [vmem:[#allocation5 + $0x10] sm:$0x3] }
 0x5dc   :  { %v2277_v41 = vld [vmem:[#allocation5 + $0x16] sm:$0x3]  ;;  %v2276_v29 = vld [vmem:[#allocation5 + $0x14] sm:$0x3]  ;;  %v2271_v55 = vld [vmem:[#allocation5 + $0xa] sm:$0x3] }
 0x5dd   :  { %v2270_v40 = vld [vmem:[#allocation5 + $0x8] sm:$0x3]  ;;  %v2273_v60 = vld [vmem:[#allocation5 + $0xe] sm:$0x3]  ;;  %v2272_v2 = vld [vmem:[#allocation5 + $0xc] sm:$0x3] }
 0x5de   :  { %v2279_v5 = vld [vmem:[#allocation5 + $0x1a] sm:$0x3]  ;;  %v2278_v7 = vld [vmem:[#allocation5 + $0x18] sm:$0x3]  ;;  %v2281_v10 = vld [vmem:[#allocation5 + $0x1e] sm:$0x3] }
 0x5df   :  { %2304 = vrot.lane.b32.xlu1 %v2269_v33, %s4873_s14  ;;  %2300 = vrot.lane.b32.xlu0 %v2267_v35, %s4873_s14  ;;  %v2280_v12 = vld [vmem:[#allocation5 + $0x1c] sm:$0x3]  ;;  %v2263_v58 = vld [vmem:[#allocation4 + $0x1a] sm:$0x3]  ;;  %v2262_v15 = vld [vmem:[#allocation4 + $0x18] sm:$0x3] }
 0x5e3   :  { %2316 = vrot.lane.b32.xlu1 %v2275_v4, %s4873_s14  ;;  %2314 = vrot.lane.b32.xlu0 %v2274_v34, %s4873_s14 }
 0x5e7   :  { %2320 = vrot.lane.b32.xlu1 %v2277_v41, %s4873_s14  ;;  %2318 = vrot.lane.b32.xlu0 %v2276_v29, %s4873_s14 }
 0x5eb   :  { %2308 = vrot.lane.b32.xlu1 %v2271_v55, %s4873_s14  ;;  %2306 = vrot.lane.b32.xlu0 %v2270_v40, %s4873_s14 }
 0x5ef   :  { %2312 = vrot.lane.b32.xlu1 %v2273_v60, %s4873_s14  ;;  %2310 = vrot.lane.b32.xlu0 %v2272_v2, %s4873_s14  ;;  %v2265_v60 = vld [vmem:[#allocation4 + $0x1e] sm:$0x3]  ;;  %v2264_v2 = vld [vmem:[#allocation4 + $0x1c] sm:$0x3] }
 0x5f3   :  { %2324 = vrot.lane.b32.xlu1 %v2279_v5, %s4873_s14  ;;  %2322 = vrot.lane.b32.xlu0 %v2278_v7, %s4873_s14 }
 0x5f7   :  { %2328 = vrot.lane.b32.xlu1 %v2281_v10, %s4873_s14  ;;  %2326 = vrot.lane.b32.xlu0 %v2280_v12, %s4873_s14 }
 0x64d   :  { %v2303_v18 = vpop.permute.xlu1 %2302  ;;  %v2299_v19 = vpop.permute.xlu0 %2298 }
 0x64e   :  { %v2348_v9 = vsel %vm1644_vm2, %v2252_v21, %v2303_v18  ;;  %v2346_v26 = vsel %vm1644_vm2, %v2250_v3, %v2299_v19 }
 0x651   :  { %v2305_v25 = vpop.permute.xlu1 %2304  ;;  %v2301_v20 = vpop.permute.xlu0 %2300 }
 0x652   :  { %v2349_v30 = vsel %vm1644_vm2, %v2253_v54, %v2305_v25  ;;  %v2347_v38 = vsel %vm1644_vm2, %v2251_v0, %v2301_v20  ;;  %v4163_v0 = vld [vmem:[%s6136_s8] ss:$0 sm:$0xff] }
 0x653   :  { %v2390_v45 = vcombine.low %v2348_v9, %v2349_v30  ;;  %v2389_v11 = vcombine.low %v2346_v26, %v2347_v38 }
 0x655   :  { %v2404_v44 = vrot.slane %v2390_v45, %v5016_v22  ;;  %v2397_v56 = vrot.slane %v2389_v11, %v5016_v22  ;;  %v2317_v47 = vpop.permute.xlu1 %2316  ;;  %v2315_v51 = vpop.permute.xlu0 %2314 }
 0x656   :  { %v2355_v6 = vsel %vm1644_vm2, %v2259_v31, %v2317_v47  ;;  %v2354_v57 = vsel %vm1644_vm2, %v2258_v1, %v2315_v51 }
 0x657   :  { %v2405_v37 = vcombine.low %v2397_v56, %v2404_v44  ;;  %v2423_v39 = vcombine.low %v2354_v57, %v2355_v6 }
 0x659   :  { %v2321_v8 = vpop.permute.xlu1 %2320  ;;  %v2319_v13 = vpop.permute.xlu0 %2318  ;;  %4418 = vmatprep.mubr.msk.f32.mxu0 %vm2457_vm6, %v2405_v37  ;;  %v2431_v36 = vrot.slane %v2423_v39, %v5016_v22 }
 0x65a   :  { %v2357_v14 = vsel %vm1644_vm2, %v2261_v17, %v2321_v8  ;;  %v2356_v23 = vsel %vm1644_vm2, %v2260_v43, %v2319_v13 }
 0x65b   :  { %v2424_v24 = vcombine.low %v2356_v23, %v2357_v14 }
 0x65d   :  { %v2438_v52 = vrot.slane %v2424_v24, %v5016_v22  ;;  %v2309_v53 = vpop.permute.xlu1 %2308  ;;  %v2307_v16 = vpop.permute.xlu0 %2306 }
 0x65e   :  { %v2351_v62 = vsel %vm1644_vm2, %v2255_v46, %v2309_v53  ;;  %v2350_v63 = vsel %vm1644_vm2, %v2254_v50, %v2307_v16 }
 0x65f   :  { %v2439_v27 = vcombine.low %v2431_v36, %v2438_v52  ;;  %v2406_v28 = vcombine.low %v2350_v63, %v2351_v62 }
 0x661   :  { %v2313_v33 = vpop.permute.xlu1 %2312  ;;  %v2311_v35 = vpop.permute.xlu0 %2310  ;;  %4421 = vmatprep.mubr.msk.f32.mxu1 %vm2457_vm6, %v2439_v27  ;;  %v2414_v29 = vrot.slane %v2406_v28, %v5016_v22 }
 0x662   :  { %v2353_v4 = vsel %vm1644_vm2, %v2257_v32, %v2313_v33  ;;  %v2352_v34 = vsel %vm1644_vm2, %v2256_v59, %v2311_v35  ;;  %v5734_v35 = vld [vmem:[%s6135_s7] sm:$0xff] }
 0x663   :  { %v2407_v41 = vcombine.low %v2352_v34, %v2353_v4  ;;  %v5739_v4 = vld [vmem:[%s6135_s7 + $0x8] sm:$0xff]  ;;  %v5744_v34 = vld [vmem:[%s6135_s7 + $0x10] sm:$0xff] }
 0x665   :  { %v2421_v61 = vrot.slane %v2407_v41, %v5016_v22  ;;  %v2325_v42 = vpop.permute.xlu1 %2324  ;;  %v2323_v48 = vpop.permute.xlu0 %2322 }
 0x666   :  { %v2359_v49 = vsel %vm1644_vm2, %v2263_v58, %v2325_v42  ;;  %v2358_v55 = vsel %vm1644_vm2, %v2262_v15, %v2323_v48  ;;  %v5751_v58 = vld [vmem:[%s6135_s7 + $0x18] sm:$0xff]  ;;  %s5788_s7 = smov 0  }
 0x667   :  { %v2422_v40 = vcombine.low %v2414_v29, %v2421_v61  ;;  %v2440_v5 = vcombine.low %v2358_v55, %v2359_v49 }
 0x669   :  { %v2329_v7 = vpop.permute.xlu1 %2328  ;;  %v2327_v10 = vpop.permute.xlu0 %2326  ;;  %4419 = vmatmul.mubr.msk.f32.vlgmr.msra.gmra.mrb[0].mxu0 %vm2457_vm6, %v2422_v40  ;;  %v2448_v21 = vrot.slane %v2440_v5, %v5016_v22 }
 0x66a   :  { %v2361_v12 = vsel %vm1644_vm2, %v2265_v60, %v2329_v7  ;;  %v2360_v18 = vsel %vm1644_vm2, %v2264_v2, %v2327_v10 }
 0x66b   :  { %v2441_v19 = vcombine.low %v2360_v18, %v2361_v12 }
 0x66d   :  { %v2455_v3 = vrot.slane %v2441_v19, %v5016_v22 }
 0x66f   :  { %v2456_v54 = vcombine.low %v2448_v21, %v2455_v3 }
 0x671   :  { %4422 = vmatmul.mubr.msk.f32.vlgmr.msra.gmra.mrb[0].mxu1 %vm2457_vm6, %v2456_v54 }
 0x73c   :  { %v4420_v25 = vpop.f32.mrb[0].mxu0 }
 0x73d   :  { %v2538_v20 = vadd.f32 %v4420_v25, %v4163_v0  ;;  %v2532_v9 = vpop.f32.mrb[1].mxu0 }
 0x73e   :  { %v2533_v26 = vadd.f32 %v4163_v0, %v2532_v9  ;;  %v5782_v9 = vmov 0.0  }
 0x73f   :  { %v2572_v30 = vcombine.high %v2538_v20, %v2538_v20  ;;  %v2579_v38 = vrot.slane %v2538_v20, %v5016_v22  ;;  %v5780_v20 = vmov 0.0  }
 0x740   :  { %v2555_v45 = vcombine.high %v2533_v26, %v2533_v26  ;;  %v2562_v11 = vrot.slane %v2533_v26, %v5016_v22  ;;  %v5784_v26 = vmov 0.0  }
 0x741   :  { %v2586_v31 = vrot.slane %v2572_v30, %v5016_v22  ;;  %2643 = vst.msk [vmem:[#allocation2 + $0x8] sm:$0x3] %vm1826_vm3, %v2579_v38  ;;  %v2689_v1 = vrot.slane %v2579_v38, %v5016_v22  ;;  %v2587_v44 = vcombine.high %v2579_v38, %v2579_v38  ;;  %v5786_v30 = vmov 0.0  }
 0x742   :  { %v2569_v56 = vrot.slane %v2555_v45, %v5016_v22  ;;  %2639 = vst.msk [vmem:[#allocation2] sm:$0x3] %vm1826_vm3, %v2562_v11  ;;  %v2570_v47 = vcombine.high %v2562_v11, %v2562_v11  ;;  %v2661_v63 = vrot.slane %v2562_v11, %v5016_v22 }
 0x743   :  { %2645 = vst.msk [vmem:[#allocation2 + $0xc] sm:$0x3] %vm1826_vm3, %v2586_v31  ;;  %2775 = vrot.lane.b32.xlu0 %v2689_v1, %s4865_s5  ;;  %v2696_v51 = vrot.slane %v2587_v44, %v5016_v22  ;;  %2644 = vst.msk [vmem:[#allocation2 + $0xa] sm:$0x3] %vm1826_vm3, %v2587_v44  ;;  %v2588_v6 = vcombine.high %v2586_v31, %v2586_v31  ;;  %v2703_v28 = vrot.slane %v2586_v31, %v5016_v22 }
 0x744   :  { %2641 = vst.msk [vmem:[#allocation2 + $0x4] sm:$0x3] %vm1826_vm3, %v2569_v56  ;;  %v4423_v57 = vpop.f32.mrb[0].mxu1  ;;  %2640 = vst.msk [vmem:[#allocation2 + $0x2] sm:$0x3] %vm1826_vm3, %v2570_v47  ;;  %v2571_v17 = vcombine.high %v2569_v56, %v2569_v56  ;;  %v2668_v32 = vrot.slane %v2570_v47, %v5016_v22  ;;  %v2675_v41 = vrot.slane %v2569_v56, %v5016_v22 }
 0x745   :  { %v2548_v43 = vadd.f32 %v4423_v57, %v4163_v0  ;;  %v2542_v37 = vpop.f32.mrb[1].mxu1  ;;  %2777 = vrot.lane.b32.xlu1 %v2696_v51, %s4865_s5  ;;  %2646 = vst.msk [vmem:[#allocation2 + $0xe] sm:$0x3] %vm1826_vm3, %v2588_v6  ;;  %v2710_v33 = vrot.slane %v2588_v6, %v5016_v22 }
 0x746   :  { %v2543_v39 = vadd.f32 %v4163_v0, %v2542_v37  ;;  %2642 = vst.msk [vmem:[#allocation2 + $0x6] sm:$0x3] %vm1826_vm3, %v2571_v17  ;;  %v2682_v15 = vrot.slane %v2571_v17, %v5016_v22 }
 0x747   :  { %v2606_v8 = vcombine.high %v2548_v43, %v2548_v43  ;;  %v2613_v13 = vrot.slane %v2548_v43, %v5016_v22 }
 0x748   :  { %v2589_v14 = vcombine.high %v2543_v39, %v2543_v39  ;;  %v2596_v23 = vrot.slane %v2543_v39, %v5016_v22 }
 0x749   :  { %v2620_v24 = vrot.slane %v2606_v8, %v5016_v22  ;;  %2651 = vst.msk [vmem:[#allocation2 + $0x18] sm:$0x3] %vm1826_vm3, %v2613_v13  ;;  %v2745_v46 = vrot.slane %v2613_v13, %v5016_v22  ;;  %v2621_v50 = vcombine.high %v2613_v13, %v2613_v13 }
 0x74a   :  { %v2603_v36 = vrot.slane %v2589_v14, %v5016_v22  ;;  %2647 = vst.msk [vmem:[#allocation2 + $0x10] sm:$0x3] %vm1826_vm3, %v2596_v23  ;;  %v2604_v52 = vcombine.high %v2596_v23, %v2596_v23  ;;  %v2717_v59 = vrot.slane %v2596_v23, %v5016_v22 }
 0x74b   :  { %2653 = vst.msk [vmem:[#allocation2 + $0x1c] sm:$0x3] %vm1826_vm3, %v2620_v24  ;;  %2791 = vrot.lane.b32.xlu0 %v2745_v46, %s4865_s5  ;;  %2652 = vst.msk [vmem:[#allocation2 + $0x1a] sm:$0x3] %vm1826_vm3, %v2621_v50  ;;  %v2752_v53 = vrot.slane %v2621_v50, %v5016_v22  ;;  %v2622_v16 = vcombine.high %v2620_v24, %v2620_v24  ;;  %v2759_v42 = vrot.slane %v2620_v24, %v5016_v22 }
 0x74c   :  { %2649 = vst.msk [vmem:[#allocation2 + $0x14] sm:$0x3] %vm1826_vm3, %v2603_v36  ;;  %2648 = vst.msk [vmem:[#allocation2 + $0x12] sm:$0x3] %vm1826_vm3, %v2604_v52  ;;  %v2605_v62 = vcombine.high %v2603_v36, %v2603_v36  ;;  %v2724_v27 = vrot.slane %v2604_v52, %v5016_v22  ;;  %v2731_v29 = vrot.slane %v2603_v36, %v5016_v22 }
 0x74d   :  { %2793 = vrot.lane.b32.xlu1 %v2752_v53, %s4865_s5  ;;  %2654 = vst.msk [vmem:[#allocation2 + $0x1e] sm:$0x3] %vm1826_vm3, %v2622_v16  ;;  %v2766_v48 = vrot.slane %v2622_v16, %v5016_v22 }
 0x74e   :  { %2650 = vst.msk [vmem:[#allocation2 + $0x16] sm:$0x3] %vm1826_vm3, %v2605_v62  ;;  %v2738_v61 = vrot.slane %v2605_v62, %v5016_v22 }
 0x74f   :  { %2767 = vrot.lane.b32.xlu0 %v2661_v63, %s4865_s5 }
 0x751   :  { %2769 = vrot.lane.b32.xlu1 %v2668_v32, %s4865_s5 }
 0x753   :  { %2783 = vrot.lane.b32.xlu0 %v2717_v59, %s4865_s5 }
 0x755   :  { %2785 = vrot.lane.b32.xlu1 %v2724_v27, %s4865_s5 }
 0x757   :  { %2779 = vrot.lane.b32.xlu0 %v2703_v28, %s4865_s5 }
 0x759   :  { %2781 = vrot.lane.b32.xlu1 %v2710_v33, %s4865_s5 }
 0x75b   :  { %2771 = vrot.lane.b32.xlu0 %v2675_v41, %s4865_s5 }
 0x75d   :  { %2773 = vrot.lane.b32.xlu1 %v2682_v15, %s4865_s5 }
 0x75f   :  { %2787 = vrot.lane.b32.xlu0 %v2731_v29, %s4865_s5 }
 0x761   :  { %2789 = vrot.lane.b32.xlu1 %v2738_v61, %s4865_s5 }
 0x763   :  { %2795 = vrot.lane.b32.xlu0 %v2759_v42, %s4865_s5 }
 0x765   :  { %2797 = vrot.lane.b32.xlu1 %v2766_v48, %s4865_s5 }
 0x7b5   :  { %v2776_v49 = vpop.permute.xlu0 %2775 }
 0x7b6   :  { %2819 = vst.msk [vmem:[#allocation3 + $0x8] sm:$0x3] %vm1826_vm3, %v2776_v49 }
 0x7b7   :  { %v2778_v55 = vpop.permute.xlu1 %2777 }
 0x7b8   :  { %2820 = vst.msk [vmem:[#allocation3 + $0xa] sm:$0x3] %vm1826_vm3, %v2778_v55 }
 0x7bd   :  { %v2792_v40 = vpop.permute.xlu0 %2791 }
 0x7be   :  { %2827 = vst.msk [vmem:[#allocation3 + $0x18] sm:$0x3] %vm1826_vm3, %v2792_v40 }
 0x7bf   :  { %v2794_v60 = vpop.permute.xlu1 %2793 }
 0x7c0   :  { %2828 = vst.msk [vmem:[#allocation3 + $0x1a] sm:$0x3] %vm1826_vm3, %v2794_v60 }
 0x7c1   :  { %v2768_v2 = vpop.permute.xlu0 %2767 }
 0x7c2   :  { %2815 = vst.msk [vmem:[#allocation3] sm:$0x3] %vm1826_vm3, %v2768_v2 }
 0x7c3   :  { %v2770_v5 = vpop.permute.xlu1 %2769 }
 0x7c4   :  { %2816 = vst.msk [vmem:[#allocation3 + $0x2] sm:$0x3] %vm1826_vm3, %v2770_v5 }
 0x7c5   :  { %v2784_v7 = vpop.permute.xlu0 %2783 }
 0x7c6   :  { %2823 = vst.msk [vmem:[#allocation3 + $0x10] sm:$0x3] %vm1826_vm3, %v2784_v7 }
 0x7c7   :  { %v2786_v10 = vpop.permute.xlu1 %2785 }
 0x7c8   :  { %2824 = vst.msk [vmem:[#allocation3 + $0x12] sm:$0x3] %vm1826_vm3, %v2786_v10 }
 0x7c9   :  { %v2780_v12 = vpop.permute.xlu0 %2779 }
 0x7ca   :  { %2821 = vst.msk [vmem:[#allocation3 + $0xc] sm:$0x3] %vm1826_vm3, %v2780_v12 }
 0x7cb   :  { %v2782_v18 = vpop.permute.xlu1 %2781 }
 0x7cc   :  { %2822 = vst.msk [vmem:[#allocation3 + $0xe] sm:$0x3] %vm1826_vm3, %v2782_v18 }
 0x7cd   :  { %v2772_v19 = vpop.permute.xlu0 %2771 }
 0x7ce   :  { %2817 = vst.msk [vmem:[#allocation3 + $0x4] sm:$0x3] %vm1826_vm3, %v2772_v19 }
 0x7cf   :  { %v2774_v21 = vpop.permute.xlu1 %2773 }
 0x7d0   :  { %2818 = vst.msk [vmem:[#allocation3 + $0x6] sm:$0x3] %vm1826_vm3, %v2774_v21 }
 0x7d1   :  { %v2788_v3 = vpop.permute.xlu0 %2787 }
 0x7d2   :  { %2825 = vst.msk [vmem:[#allocation3 + $0x14] sm:$0x3] %vm1826_vm3, %v2788_v3 }
 0x7d3   :  { %v2790_v54 = vpop.permute.xlu1 %2789 }
 0x7d4   :  { %2826 = vst.msk [vmem:[#allocation3 + $0x16] sm:$0x3] %vm1826_vm3, %v2790_v54 }
 0x7d5   :  { %v2796_v0 = vpop.permute.xlu0 %2795 }
 0x7d6   :  { %2829 = vst.msk [vmem:[#allocation3 + $0x1c] sm:$0x3] %vm1826_vm3, %v2796_v0 }
 0x7d7   :  { %v2798_v25 = vpop.permute.xlu1 %2797 }
 0x7d8   :  { %2830 = vst.msk [vmem:[#allocation3 + $0x1e] sm:$0x3] %vm1826_vm3, %v2798_v25 }
 0x7d9 LB: > { %v4485_v38 = vpack.c.bf16 %v5739_v4, %v5734_v35  ;;  %v4874_v45 = vmov 0.0|0.0   ;;  %s4875_s1 = smov 80   ;;  %v4488_v11 = vpack.c.bf16 %v5751_v58, %v5744_v34  ;;  %vm4876_vm7 = vmmov 0   ;;  %s4170_s27 = sshll.u32 %s4841_s7, 1  ;;  %s4841_s7 = sphi %s5788_s7, %s2841_s7   ;;  %v4837_v30 = vphi %v5786_v30, %v3042_v30   ;;  %v4833_v26 = vphi %v5784_v26, %v3025_v26   ;;  %v4829_v9 = vphi %v5782_v9, %v3048_v9   ;;  %v4825_v20 = vphi %v5780_v20, %v3036_v20  }
 0x7da   : > { %4484 = vmatprep.subr.bf16.mxu0 %v4874_v45  ;;  %4487 = vmatprep.subr.bf16.mxu1 %v4874_v45  ;;  %v4877_v31 = vmov 0.0   ;;  %s2925_s28 = ssub.s32 15, %s4841_s7  ;;  %s2847_s30 = scalar_lea.vmem [#allocation2], %s4170_s27 }
 0x7db   : > { %2850 = vrot.lane.b32.xlu0 %v4837_v30, %s4875_s1  ;;  %4486 = vmatpush3.bf16.msra.mxu0 %v4485_v38  ;;  %s5809_s29 = sshll.u32 %s2925_s28, 1  ;;  %v2848_v56 = vld [vmem:[%s2847_s30] sm:$0x3]  ;;  %s4878_s2 = smov 96  }
 0x7dc   : > { %4428 = vmatprep.mubr.msk.f32.mxu0 %vm4876_vm7, %v4877_v31  ;;  %4435 = vmatprep.mubr.msk.f32.mxu1 %vm4876_vm7, %v4877_v31  ;;  %s2927_s13 = scalar_lea.vmem [#allocation3], %s5809_s29  ;;  %s4879_s3 = smov 16  }
 0x7dd   : > { %4489 = vmatpush3.bf16.msra.mxu1 %v4488_v11  ;;  %s4880_s15 = smov 32   ;;  %s3053_s16 = scalar_lea.vmem [#allocation4], %s4170_s27 }
 0x7de   : > { %s3060_s17 = scalar_lea.vmem [#allocation5], %s5809_s29  ;;  %s2841_s7 = sadd.s32 1, %s4841_s7  }
 0x7df   : > { %2930 = vrot.lane.b32.xlu0 %v4829_v9, %s4875_s1  ;;  %v2928_v57 = vld [vmem:[%s2927_s13] sm:$0x3]  ;;  %p2838_p1 = scmp.ge.s32.totalorder %s2841_s7, 16  }
 0x7e0   :  { %v3174_v5 = vld [vmem:[%s6137_s9] sm:$0xff] (%p2838_p1)  ;;  %v3175_v4 = vld [vmem:[%s6137_s9 + $0x8] sm:$0xff] (%p2838_p1)  ;;  %v3176_v7 = vld [vmem:[%s6137_s9 + $0x10] sm:$0xff] (%p2838_p1) }
 0x7e1   :  { %v4490_v58 = vpack.c.bf16 (%p2838_p1), %v3175_v4, %v3174_v5  ;;  %v3177_v10 = vld [vmem:[%s6137_s9 + $0x18] sm:$0xff] (%p2838_p1) }
 0x7e2   :  { %v4494_v12 = vpack.c.bf16 (%p2838_p1), %v3177_v10, %v3176_v7 }
 0x7e3   :  { %4491 = vmatprep.subr.bf16.mxu0 (%p2838_p1), %v4490_v58  ;;  %4558 = vmatprep.subr.bf16.mxu1 (%p2838_p1), %v4490_v58 }
 0x84d   : > { %v2851_v1 = vpop.permute.xlu0 %2850 }
 0x84e   : > { %4429 = vmatmul.mubr.msk.f32.vlgmr.msra.gmra.mrb[0].mxu0 %vm1644_vm2, %v2851_v1 }
 0x84f   :  { %4493 = vmatpush3.bf16.msra.mxu0 (%p2838_p1), %v4490_v58 }
 0x850   :  { %4495 = vmatprep.subr.bf16.mxu0 (%p2838_p1), %v4494_v12 }
 0x851   : > { %v2931_v44 = vpop.permute.xlu0 %2930 }
 0x852   : > { %4436 = vmatmul.mubr.msk.f32.vlgmr.msra.gmra.mrb[0].mxu1 %vm1644_vm2, %v2931_v44 }
 0x853   :  { %4560 = vmatpush3.bf16.msra.mxu1 (%p2838_p1), %v4490_v58  ;;  %4497 = vmatpush3.bf16.msra.mxu0 (%p2838_p1), %v4494_v12 }
 0x854   :  { %4559 = vmatprep.subr.bf16.mxu1 (%p2838_p1), %v4494_v12 }
 0x857   :  { %4561 = vmatpush3.bf16.msra.mxu1 (%p2838_p1), %v4494_v12 }
 0x921   : > { %v2920_v47 = vpop.f32.mrb[0].mxu0 }
 0x922   : > { %v2924_v51 = vadd.f32 %v2920_v47, %v2848_v56  ;;  %v4430_v6 = vpop.f32.mrb[1].mxu0 }
 0x924   : > { %4719 = vtanh.f32 %v2924_v51  ;;  %v3005_v13 = vmul.f32 0.5, %v2924_v51 }
 0x925   : > { %v3000_v17 = vpop.f32.mrb[0].mxu1 }
 0x926   : > { %v3004_v43 = vadd.f32 %v3000_v17, %v2928_v57  ;;  %v4437_v37 = vpop.f32.mrb[1].mxu1 }
 0x928   : > { %4721 = vtanh.f32 %v3004_v43  ;;  %v3010_v14 = vmul.f32 0.5, %v3004_v43 }
 0x929   : > { %4723 = vtanh.f32 %v3005_v13 }
 0x92a   : > { %4725 = vtanh.f32 %v3010_v14 }
 0x92e   : > { %v4720_v39 = vpop.eup %4719 }
 0x92f   : > { %3017 = vrot.lane.b32.xlu1 %v4720_v39, %s4878_s2 }
 0x932   : > { %v4722_v8 = vpop.eup %4721 }
 0x933   : > { %3028 = vrot.lane.b32.xlu1 %v4722_v8, %s4878_s2  ;;  %v4724_v23 = vpop.eup %4723 }
 0x934   : > { %v3007_v24 = vadd.f32 1.0, %v4724_v23  ;;  %v4726_v46 = vpop.eup %4725 }
 0x935   : > { %v3012_v36 = vadd.f32 1.0, %v4726_v46 }
 0x936   : > { %v3008_v50 = vmul.f32 0.5, %v3007_v24 }
 0x937   : > { %v3013_v16 = vmul.f32 0.5, %v3012_v36 }
 0x938   : > { %v3015_v32 = vmul.f32 %v4833_v26, %v3008_v50 }
 0x939   : > { %v3026_v27 = vmul.f32 %v4825_v20, %v3013_v16 }
 0x9a1   : > { %v3018_v52 = vpop.permute.xlu1 %3017 }
 0x9a2   : > { %v3020_v53 = vmul.f32 %v3018_v52, %v3008_v50 }
 0x9a4   : > { %3022 = vrot.lane.b32.xlu0 %v3020_v53, %s4879_s3 }
 0x9a5   : > { %v3029_v62 = vpop.permute.xlu1 %3028 }
 0x9a6   : > { %v3031_v63 = vmul.f32 %v3029_v62, %v3013_v16 }
 0x9a8   : > { %3033 = vrot.lane.b32.xlu1 %v3031_v63, %s4879_s3 }
 0xa16   : > { %v3023_v59 = vpop.permute.xlu0 %3022 }
 0xa17   : > { %v3025_v26 = vadd.f32 %v3023_v59, %v3015_v32  }
 0xa19   : > { %4727 = vtanh.f32 %v3025_v26 }
 0xa1a   : > { %v3034_v28 = vpop.permute.xlu1 %3033 }
 0xa1b   : > { %v3036_v20 = vadd.f32 %v3034_v28, %v3026_v27  }
 0xa1d   : > { %4729 = vtanh.f32 %v3036_v20 }
 0xa23   : > { %v4728_v33 = vpop.eup %4727 }
 0xa24   : > { %3039 = vrot.lane.b32.xlu0 %v4728_v33, %s4880_s15 }
 0xa27   : > { %v4730_v41 = vpop.eup %4729 }
 0xa28   : > { %3045 = vrot.lane.b32.xlu1 %v4730_v41, %s4880_s15 }
 0xa96   : > { %v3040_v15 = vpop.permute.xlu0 %3039 }
 0xa97   : > { %v3042_v30 = vmul.f32 %v3040_v15, %v3008_v50  }
 0xa99   : > { %3050 = vrot.lane.b32.xlu0 %v3042_v30, %s4875_s1 }
 0xa9a   : > { %v3046_v29 = vpop.permute.xlu1 %3045 }
 0xa9b   : > { %v3048_v9 = vmul.f32 %v3046_v29, %v3013_v16  }
 0xa9d   : > { %3057 = vrot.lane.b32.xlu1 %v3048_v9, %s4875_s1 }
 0xb0a   :  { %2840 = sbr.rel (!%p2838_p1) target bundleno = 2009 (0x7d9), region = 121 }
 0xb0b   : > { %v3051_v61 = vpop.permute.xlu0 %3050 }
 0xb0c   : > { %3055 = vst.msk [vmem:[%s3053_s16] sm:$0x3] %vm2242_vm5, %v3051_v61 }
 0xb0f   : > { %v3058_v42 = vpop.permute.xlu1 %3057 }
 0xb10   : > { %3061 = vst.msk [vmem:[%s3060_s17] sm:$0x3] %vm2242_vm5, %v3058_v42 }
 0xb13   :  { %v3064_v30 = vld [vmem:[#allocation4 + $0x4] sm:$0x3]  ;;  %v3062_v38 = vld [vmem:[#allocation4] sm:$0x3]  ;;  %v3065_v45 = vld [vmem:[#allocation4 + $0x6] sm:$0x3] }
 0xb14   :  { %v3063_v11 = vld [vmem:[#allocation4 + $0x2] sm:$0x3]  ;;  %v3071_v17 = vld [vmem:[#allocation4 + $0x12] sm:$0x3]  ;;  %v3070_v43 = vld [vmem:[#allocation4 + $0x10] sm:$0x3] }
 0xb15   :  { %v3073_v24 = vld [vmem:[#allocation4 + $0x16] sm:$0x3]  ;;  %v3072_v46 = vld [vmem:[#allocation4 + $0x14] sm:$0x3]  ;;  %v3067_v32 = vld [vmem:[#allocation4 + $0xa] sm:$0x3] }
 0xb16   :  { %v3066_v59 = vld [vmem:[#allocation4 + $0x8] sm:$0x3]  ;;  %v3069_v61 = vld [vmem:[#allocation4 + $0xe] sm:$0x3]  ;;  %v3068_v42 = vld [vmem:[#allocation4 + $0xc] sm:$0x3] }
 0xb17   :  { %v3080_v48 = vld [vmem:[#allocation5 + $0x4] sm:$0x3]  ;;  %v3078_v49 = vld [vmem:[#allocation5] sm:$0x3]  ;;  %v3081_v55 = vld [vmem:[#allocation5 + $0x6] sm:$0x3] }
 0xb18   :  { %3114 = vrot.lane.b32.xlu1 %v3080_v48, %s4873_s14  ;;  %3110 = vrot.lane.b32.xlu0 %v3078_v49, %s4873_s14  ;;  %v3079_v40 = vld [vmem:[#allocation5 + $0x2] sm:$0x3]  ;;  %v3087_v60 = vld [vmem:[#allocation5 + $0x12] sm:$0x3]  ;;  %v3086_v2 = vld [vmem:[#allocation5 + $0x10] sm:$0x3] }
 0xb19   :  { %v3089_v35 = vld [vmem:[#allocation5 + $0x16] sm:$0x3]  ;;  %v3088_v34 = vld [vmem:[#allocation5 + $0x14] sm:$0x3]  ;;  %v3083_v18 = vld [vmem:[#allocation5 + $0xa] sm:$0x3] }
 0xb1a   :  { %v3082_v19 = vld [vmem:[#allocation5 + $0x8] sm:$0x3]  ;;  %v3085_v21 = vld [vmem:[#allocation5 + $0xe] sm:$0x3]  ;;  %v3084_v3 = vld [vmem:[#allocation5 + $0xc] sm:$0x3] }
 0xb1b   :  { %v3091_v54 = vld [vmem:[#allocation5 + $0x1a] sm:$0x3]  ;;  %v3090_v0 = vld [vmem:[#allocation5 + $0x18] sm:$0x3]  ;;  %v3093_v25 = vld [vmem:[#allocation5 + $0x1e] sm:$0x3] }
 0xb1c   :  { %3116 = vrot.lane.b32.xlu1 %v3081_v55, %s4873_s14  ;;  %3112 = vrot.lane.b32.xlu0 %v3079_v40, %s4873_s14  ;;  %v3092_v20 = vld [vmem:[#allocation5 + $0x1c] sm:$0x3]  ;;  %v3074_v4 = vld [vmem:[#allocation4 + $0x18] sm:$0x3] }
 0xb20   :  { %3128 = vrot.lane.b32.xlu1 %v3087_v60, %s4873_s14  ;;  %3126 = vrot.lane.b32.xlu0 %v3086_v2, %s4873_s14 }
 0xb24   :  { %3132 = vrot.lane.b32.xlu1 %v3089_v35, %s4873_s14  ;;  %3130 = vrot.lane.b32.xlu0 %v3088_v34, %s4873_s14  ;;  %v3075_v35 = vld [vmem:[#allocation4 + $0x1a] sm:$0x3] }
 0xb28   :  { %3120 = vrot.lane.b32.xlu1 %v3083_v18, %s4873_s14  ;;  %3118 = vrot.lane.b32.xlu0 %v3082_v19, %s4873_s14  ;;  %v3077_v19 = vld [vmem:[#allocation4 + $0x1e] sm:$0x3] }
 0xb2c   :  { %3124 = vrot.lane.b32.xlu1 %v3085_v21, %s4873_s14  ;;  %3122 = vrot.lane.b32.xlu0 %v3084_v3, %s4873_s14  ;;  %v3076_v21 = vld [vmem:[#allocation4 + $0x1c] sm:$0x3] }
 0xb30   :  { %3136 = vrot.lane.b32.xlu1 %v3091_v54, %s4873_s14  ;;  %3134 = vrot.lane.b32.xlu0 %v3090_v0, %s4873_s14 }
 0xb34   :  { %3140 = vrot.lane.b32.xlu1 %v3093_v25, %s4873_s14  ;;  %3138 = vrot.lane.b32.xlu0 %v3092_v20, %s4873_s14 }
 0xb8a   :  { %v3115_v9 = vpop.permute.xlu1 %3114  ;;  %v3111_v26 = vpop.permute.xlu0 %3110 }
 0xb8b   :  { %v3160_v44 = vsel %vm1644_vm2, %v3064_v30, %v3115_v9  ;;  %v3158_v56 = vsel %vm1644_vm2, %v3062_v38, %v3111_v26 }
 0xb8e   :  { %v3117_v31 = vpop.permute.xlu1 %3116  ;;  %v3113_v1 = vpop.permute.xlu0 %3112 }
 0xb8f   :  { %v3161_v47 = vsel %vm1644_vm2, %v3065_v45, %v3117_v31  ;;  %v3159_v51 = vsel %vm1644_vm2, %v3063_v11, %v3113_v1  ;;  %v4174_v11 = vld [vmem:[%s6139_s11] ss:$0 sm:$0xff] }
 0xb90   :  { %v3202_v6 = vcombine.low %v3160_v44, %v3161_v47  ;;  %v3201_v57 = vcombine.low %v3158_v56, %v3159_v51 }
 0xb92   :  { %v3129_v37 = vpop.permute.xlu1 %3128  ;;  %v3127_v39 = vpop.permute.xlu0 %3126  ;;  %v3209_v8 = vrot.slane %v3201_v57, %v5016_v22  ;;  %v3216_v13 = vrot.slane %v3202_v6, %v5016_v22 }
 0xb93   :  { %v3167_v14 = vsel %vm1644_vm2, %v3071_v17, %v3129_v37  ;;  %v3166_v23 = vsel %vm1644_vm2, %v3070_v43, %v3127_v39 }
 0xb94   :  { %v3217_v50 = vcombine.low %v3209_v8, %v3216_v13  ;;  %v3235_v36 = vcombine.low %v3166_v23, %v3167_v14 }
 0xb96   :  { %v3133_v52 = vpop.permute.xlu1 %3132  ;;  %v3131_v53 = vpop.permute.xlu0 %3130  ;;  %4446 = vmatprep.mubr.msk.f32.mxu0 %vm2457_vm6, %v3217_v50  ;;  %v3243_v33 = vrot.slane %v3235_v36, %v5016_v22 }
 0xb97   :  { %v3169_v16 = vsel %vm1644_vm2, %v3073_v24, %v3133_v52  ;;  %v3168_v62 = vsel %vm1644_vm2, %v3072_v46, %v3131_v53 }
 0xb98   :  { %v3236_v63 = vcombine.low %v3168_v62, %v3169_v16 }
 0xb9a   :  { %v3121_v27 = vpop.permute.xlu1 %3120  ;;  %v3119_v28 = vpop.permute.xlu0 %3118  ;;  %v3250_v41 = vrot.slane %v3236_v63, %v5016_v22 }
 0xb9b   :  { %v3163_v15 = vsel %vm1644_vm2, %v3067_v32, %v3121_v27  ;;  %v3162_v29 = vsel %vm1644_vm2, %v3066_v59, %v3119_v28 }
 0xb9c   :  { %v3251_v48 = vcombine.low %v3243_v33, %v3250_v41  ;;  %v3218_v49 = vcombine.low %v3162_v29, %v3163_v15 }
 0xb9e   :  { %v3125_v55 = vpop.permute.xlu1 %3124  ;;  %v3123_v40 = vpop.permute.xlu0 %3122  ;;  %4449 = vmatprep.mubr.msk.f32.mxu1 %vm2457_vm6, %v3251_v48  ;;  %v3226_v34 = vrot.slane %v3218_v49, %v5016_v22 }
 0xb9f   :  { %v3165_v60 = vsel %vm1644_vm2, %v3069_v61, %v3125_v55  ;;  %v3164_v2 = vsel %vm1644_vm2, %v3068_v42, %v3123_v40  ;;  %v5938_v40 = vld [vmem:[%s6138_s10] sm:$0xff] }
 0xba0   :  { %v3219_v5 = vcombine.low %v3164_v2, %v3165_v60  ;;  %v5943_v60 = vld [vmem:[%s6138_s10 + $0x8] sm:$0xff]  ;;  %v5948_v2 = vld [vmem:[%s6138_s10 + $0x10] sm:$0xff] }
 0xba2   :  { %v3233_v58 = vrot.slane %v3219_v5, %v5016_v22  ;;  %v3137_v7 = vpop.permute.xlu1 %3136  ;;  %v3135_v10 = vpop.permute.xlu0 %3134 }
 0xba3   :  { %v3171_v12 = vsel %vm1644_vm2, %v3075_v35, %v3137_v7  ;;  %v3170_v18 = vsel %vm1644_vm2, %v3074_v4, %v3135_v10  ;;  %v5955_v35 = vld [vmem:[%s6138_s10 + $0x18] sm:$0xff]  ;;  %s5992_s10 = smov 0  }
 0xba4   :  { %v3234_v3 = vcombine.low %v3226_v34, %v3233_v58  ;;  %v3252_v54 = vcombine.low %v3170_v18, %v3171_v12 }
 0xba6   :  { %v3141_v0 = vpop.permute.xlu1 %3140  ;;  %v3139_v25 = vpop.permute.xlu0 %3138  ;;  %4447 = vmatmul.mubr.msk.f32.vlgmr.msra.gmra.mrb[0].mxu0 %vm2457_vm6, %v3234_v3  ;;  %v3260_v30 = vrot.slane %v3252_v54, %v5016_v22 }
 0xba7   :  { %v3173_v20 = vsel %vm1644_vm2, %v3077_v19, %v3141_v0  ;;  %v3172_v9 = vsel %vm1644_vm2, %v3076_v21, %v3139_v25 }
 0xba8   :  { %v3253_v26 = vcombine.low %v3172_v9, %v3173_v20 }
 0xbaa   :  { %v3267_v38 = vrot.slane %v3253_v26, %v5016_v22 }
 0xbac   :  { %v3268_v45 = vcombine.low %v3260_v30, %v3267_v38 }
 0xbae   :  { %4450 = vmatmul.mubr.msk.f32.vlgmr.msra.gmra.mrb[0].mxu1 %vm2457_vm6, %v3268_v45 }
 0xc79   :  { %v4448_v31 = vpop.f32.mrb[0].mxu0 }
 0xc7a   :  { %v3349_v1 = vadd.f32 %v4448_v31, %v4174_v11  ;;  %v3343_v44 = vpop.f32.mrb[1].mxu0  ;;  %v5984_v31 = vmov 0.0  }
 0xc7b   :  { %v3344_v56 = vadd.f32 %v4174_v11, %v3343_v44  ;;  %v5988_v44 = vmov 0.0  }
 0xc7c   :  { %v3383_v47 = vcombine.high %v3349_v1, %v3349_v1  ;;  %v3390_v51 = vrot.slane %v3349_v1, %v5016_v22  ;;  %v5986_v1 = vmov 0.0  }
 0xc7d   :  { %v3366_v6 = vcombine.high %v3344_v56, %v3344_v56  ;;  %v3373_v57 = vrot.slane %v3344_v56, %v5016_v22  ;;  %v5990_v56 = vmov 0.0  }
 0xc7e   :  { %v3397_v17 = vrot.slane %v3383_v47, %v5016_v22  ;;  %3454 = vst.msk [vmem:[#allocation2 + $0x8] sm:$0x3] %vm1826_vm3, %v3390_v51  ;;  %v3500_v43 = vrot.slane %v3390_v51, %v5016_v22  ;;  %v3398_v37 = vcombine.high %v3390_v51, %v3390_v51 }
 0xc7f   :  { %v3380_v39 = vrot.slane %v3366_v6, %v5016_v22  ;;  %3450 = vst.msk [vmem:[#allocation2] sm:$0x3] %vm1826_vm3, %v3373_v57  ;;  %v3381_v8 = vcombine.high %v3373_v57, %v3373_v57  ;;  %v3472_v29 = vrot.slane %v3373_v57, %v5016_v22 }
 0xc80   :  { %3456 = vst.msk [vmem:[#allocation2 + $0xc] sm:$0x3] %vm1826_vm3, %v3397_v17  ;;  %3586 = vrot.lane.b32.xlu0 %v3500_v43, %s4865_s5  ;;  %v3507_v13 = vrot.slane %v3398_v37, %v5016_v22  ;;  %3455 = vst.msk [vmem:[#allocation2 + $0xa] sm:$0x3] %vm1826_vm3, %v3398_v37  ;;  %v3399_v14 = vcombine.high %v3397_v17, %v3397_v17  ;;  %v3514_v49 = vrot.slane %v3397_v17, %v5016_v22 }
 0xc81   :  { %3452 = vst.msk [vmem:[#allocation2 + $0x4] sm:$0x3] %vm1826_vm3, %v3380_v39  ;;  %v4451_v23 = vpop.f32.mrb[0].mxu1  ;;  %3451 = vst.msk [vmem:[#allocation2 + $0x2] sm:$0x3] %vm1826_vm3, %v3381_v8  ;;  %v3382_v24 = vcombine.high %v3380_v39, %v3380_v39  ;;  %v3479_v61 = vrot.slane %v3381_v8, %v5016_v22  ;;  %v3486_v5 = vrot.slane %v3380_v39, %v5016_v22 }
 0xc82   :  { %v3359_v46 = vadd.f32 %v4451_v23, %v4174_v11  ;;  %v3353_v50 = vpop.f32.mrb[1].mxu1  ;;  %3588 = vrot.lane.b32.xlu1 %v3507_v13, %s4865_s5  ;;  %3457 = vst.msk [vmem:[#allocation2 + $0xe] sm:$0x3] %vm1826_vm3, %v3399_v14  ;;  %v3521_v55 = vrot.slane %v3399_v14, %v5016_v22 }
 0xc83   :  { %v3354_v36 = vadd.f32 %v4174_v11, %v3353_v50  ;;  %3453 = vst.msk [vmem:[#allocation2 + $0x6] sm:$0x3] %vm1826_vm3, %v3382_v24  ;;  %v3493_v4 = vrot.slane %v3382_v24, %v5016_v22 }
 0xc84   :  { %v3417_v52 = vcombine.high %v3359_v46, %v3359_v46  ;;  %v3424_v53 = vrot.slane %v3359_v46, %v5016_v22 }
 0xc85   :  { %v3400_v16 = vcombine.high %v3354_v36, %v3354_v36  ;;  %v3407_v62 = vrot.slane %v3354_v36, %v5016_v22 }
 0xc86   :  { %v3431_v63 = vrot.slane %v3417_v52, %v5016_v22  ;;  %3462 = vst.msk [vmem:[#allocation2 + $0x18] sm:$0x3] %vm1826_vm3, %v3424_v53  ;;  %v3556_v32 = vrot.slane %v3424_v53, %v5016_v22  ;;  %v3432_v59 = vcombine.high %v3424_v53, %v3424_v53 }
 0xc87   :  { %v3414_v27 = vrot.slane %v3400_v16, %v5016_v22  ;;  %3458 = vst.msk [vmem:[#allocation2 + $0x10] sm:$0x3] %vm1826_vm3, %v3407_v62  ;;  %v3415_v28 = vcombine.high %v3407_v62, %v3407_v62  ;;  %v3528_v42 = vrot.slane %v3407_v62, %v5016_v22 }
 0xc88   :  { %3464 = vst.msk [vmem:[#allocation2 + $0x1c] sm:$0x3] %vm1826_vm3, %v3431_v63  ;;  %3602 = vrot.lane.b32.xlu0 %v3556_v32, %s4865_s5  ;;  %3463 = vst.msk [vmem:[#allocation2 + $0x1a] sm:$0x3] %vm1826_vm3, %v3432_v59  ;;  %v3563_v33 = vrot.slane %v3432_v59, %v5016_v22  ;;  %v3433_v41 = vcombine.high %v3431_v63, %v3431_v63  ;;  %v3570_v7 = vrot.slane %v3431_v63, %v5016_v22 }
 0xc89   :  { %3460 = vst.msk [vmem:[#allocation2 + $0x14] sm:$0x3] %vm1826_vm3, %v3414_v27  ;;  %3459 = vst.msk [vmem:[#allocation2 + $0x12] sm:$0x3] %vm1826_vm3, %v3415_v28  ;;  %v3416_v15 = vcombine.high %v3414_v27, %v3414_v27  ;;  %v3535_v48 = vrot.slane %v3415_v28, %v5016_v22  ;;  %v3542_v34 = vrot.slane %v3414_v27, %v5016_v22 }
 0xc8a   :  { %3604 = vrot.lane.b32.xlu1 %v3563_v33, %s4865_s5  ;;  %3465 = vst.msk [vmem:[#allocation2 + $0x1e] sm:$0x3] %vm1826_vm3, %v3433_v41  ;;  %v3577_v10 = vrot.slane %v3433_v41, %v5016_v22 }
 0xc8b   :  { %3461 = vst.msk [vmem:[#allocation2 + $0x16] sm:$0x3] %vm1826_vm3, %v3416_v15  ;;  %v3549_v58 = vrot.slane %v3416_v15, %v5016_v22 }
 0xc8c   :  { %3578 = vrot.lane.b32.xlu0 %v3472_v29, %s4865_s5 }
 0xc8e   :  { %3580 = vrot.lane.b32.xlu1 %v3479_v61, %s4865_s5 }
 0xc90   :  { %3594 = vrot.lane.b32.xlu0 %v3528_v42, %s4865_s5 }
 0xc92   :  { %3596 = vrot.lane.b32.xlu1 %v3535_v48, %s4865_s5 }
 0xc94   :  { %3590 = vrot.lane.b32.xlu0 %v3514_v49, %s4865_s5 }
 0xc96   :  { %3592 = vrot.lane.b32.xlu1 %v3521_v55, %s4865_s5 }
 0xc98   :  { %3582 = vrot.lane.b32.xlu0 %v3486_v5, %s4865_s5 }
 0xc9a   :  { %3584 = vrot.lane.b32.xlu1 %v3493_v4, %s4865_s5 }
 0xc9c   :  { %3598 = vrot.lane.b32.xlu0 %v3542_v34, %s4865_s5 }
 0xc9e   :  { %3600 = vrot.lane.b32.xlu1 %v3549_v58, %s4865_s5 }
 0xca0   :  { %3606 = vrot.lane.b32.xlu0 %v3570_v7, %s4865_s5 }
 0xca2   :  { %3608 = vrot.lane.b32.xlu1 %v3577_v10, %s4865_s5 }
 0xcf2   :  { %v3587_v12 = vpop.permute.xlu0 %3586 }
 0xcf3   :  { %3630 = vst.msk [vmem:[#allocation3 + $0x8] sm:$0x3] %vm1826_vm3, %v3587_v12 }
 0xcf4   :  { %v3589_v18 = vpop.permute.xlu1 %3588 }
 0xcf5   :  { %3631 = vst.msk [vmem:[#allocation3 + $0xa] sm:$0x3] %vm1826_vm3, %v3589_v18 }
 0xcfa   :  { %v3603_v19 = vpop.permute.xlu0 %3602 }
 0xcfb   :  { %3638 = vst.msk [vmem:[#allocation3 + $0x18] sm:$0x3] %vm1826_vm3, %v3603_v19 }
 0xcfc   :  { %v3605_v21 = vpop.permute.xlu1 %3604 }
 0xcfd   :  { %3639 = vst.msk [vmem:[#allocation3 + $0x1a] sm:$0x3] %vm1826_vm3, %v3605_v21 }
 0xcfe   :  { %v3579_v3 = vpop.permute.xlu0 %3578 }
 0xcff   :  { %3626 = vst.msk [vmem:[#allocation3] sm:$0x3] %vm1826_vm3, %v3579_v3 }
 0xd00   :  { %v3581_v54 = vpop.permute.xlu1 %3580 }
 0xd01   :  { %3627 = vst.msk [vmem:[#allocation3 + $0x2] sm:$0x3] %vm1826_vm3, %v3581_v54 }
 0xd02   :  { %v3595_v22 = vpop.permute.xlu0 %3594 }
 0xd03   :  { %3634 = vst.msk [vmem:[#allocation3 + $0x10] sm:$0x3] %vm1826_vm3, %v3595_v22 }
 0xd04   :  { %v3597_v0 = vpop.permute.xlu1 %3596 }
 0xd05   :  { %3635 = vst.msk [vmem:[#allocation3 + $0x12] sm:$0x3] %vm1826_vm3, %v3597_v0 }
 0xd06   :  { %v3591_v25 = vpop.permute.xlu0 %3590 }
 0xd07   :  { %3632 = vst.msk [vmem:[#allocation3 + $0xc] sm:$0x3] %vm1826_vm3, %v3591_v25 }
 0xd08   :  { %v3593_v20 = vpop.permute.xlu1 %3592 }
 0xd09   :  { %3633 = vst.msk [vmem:[#allocation3 + $0xe] sm:$0x3] %vm1826_vm3, %v3593_v20 }
 0xd0a   :  { %v3583_v9 = vpop.permute.xlu0 %3582 }
 0xd0b   :  { %3628 = vst.msk [vmem:[#allocation3 + $0x4] sm:$0x3] %vm1826_vm3, %v3583_v9 }
 0xd0c   :  { %v3585_v26 = vpop.permute.xlu1 %3584 }
 0xd0d   :  { %3629 = vst.msk [vmem:[#allocation3 + $0x6] sm:$0x3] %vm1826_vm3, %v3585_v26 }
 0xd0e   :  { %v3599_v30 = vpop.permute.xlu0 %3598 }
 0xd0f   :  { %3636 = vst.msk [vmem:[#allocation3 + $0x14] sm:$0x3] %vm1826_vm3, %v3599_v30 }
 0xd10   :  { %v3601_v38 = vpop.permute.xlu1 %3600 }
 0xd11   :  { %3637 = vst.msk [vmem:[#allocation3 + $0x16] sm:$0x3] %vm1826_vm3, %v3601_v38 }
 0xd12   :  { %v3607_v45 = vpop.permute.xlu0 %3606 }
 0xd13   :  { %3640 = vst.msk [vmem:[#allocation3 + $0x1c] sm:$0x3] %vm1826_vm3, %v3607_v45 }
 0xd14   :  { %v3609_v11 = vpop.permute.xlu1 %3608 }
 0xd15   :  { %3641 = vst.msk [vmem:[#allocation3 + $0x1e] sm:$0x3] %vm1826_vm3, %v3609_v11 }
 0xd16 LB: > { %v4499_v47 = vpack.c.bf16 %v5943_v60, %v5938_v40  ;;  %v4881_v51 = vmov 0.0|0.0   ;;  %s4882_s5 = smov 80   ;;  %v4502_v6 = vpack.c.bf16 %v5955_v35, %v5948_v2  ;;  %vm4883_vm8 = vmmov 0   ;;  %s4181_s28 = sshll.u32 %s4861_s10, 1  ;;  %s4861_s10 = sphi %s5992_s10, %s3652_s10   ;;  %v4857_v56 = vphi %v5990_v56, %v3853_v56   ;;  %v4853_v44 = vphi %v5988_v44, %v3836_v44   ;;  %v4849_v1 = vphi %v5986_v1, %v3859_v1   ;;  %v4845_v31 = vphi %v5984_v31, %v3847_v31  }
 0xd17   : > { %4498 = vmatprep.subr.bf16.mxu0 %v4881_v51  ;;  %4501 = vmatprep.subr.bf16.mxu1 %v4881_v51  ;;  %v4884_v57 = vmov 0.0   ;;  %s3736_s29 = ssub.s32 15, %s4861_s10  ;;  %s3658_s13 = scalar_lea.vmem [#allocation2], %s4181_s28 }
 0xd18   : > { %3661 = vrot.lane.b32.xlu0 %v4857_v56, %s4882_s5  ;;  %4500 = vmatpush3.bf16.msra.mxu0 %v4499_v47  ;;  %s6013_s30 = sshll.u32 %s3736_s29, 1  ;;  %v3659_v37 = vld [vmem:[%s3658_s13] sm:$0x3]  ;;  %s4885_s3 = smov 96  }
 0xd19   : > { %4456 = vmatprep.mubr.msk.f32.mxu0 %vm4883_vm8, %v4884_v57  ;;  %4463 = vmatprep.mubr.msk.f32.mxu1 %vm4883_vm8, %v4884_v57  ;;  %s3738_s2 = scalar_lea.vmem [#allocation3], %s6013_s30  ;;  %s4886_s15 = smov 16  }
 0xd1a   : > { %4503 = vmatpush3.bf16.msra.mxu1 %v4502_v6  ;;  %s4887_s16 = smov 32   ;;  %s3864_s17 = scalar_lea.vmem [#allocation4], %s4181_s28 }
 0xd1b   : > { %s3871_s18 = scalar_lea.vmem [#allocation5], %s6013_s30  ;;  %s3652_s10 = sadd.s32 1, %s4861_s10  }
 0xd1c   : > { %3741 = vrot.lane.b32.xlu0 %v4849_v1, %s4882_s5  ;;  %v3739_v14 = vld [vmem:[%s3738_s2] sm:$0x3]  ;;  %p3649_p2 = scmp.ge.s32.totalorder %s3652_s10, 16  }
 0xd1d   :  { %vm3985_vm9 = vcmask (%p3649_p2), 254976  }
 0xd8a   : > { %v3662_v17 = vpop.permute.xlu0 %3661 }
 0xd8b   : > { %4457 = vmatmul.mubr.msk.f32.vlgmr.msra.gmra.mrb[0].mxu0 %vm1644_vm2, %v3662_v17 }
 0xd8e   : > { %v3742_v43 = vpop.permute.xlu0 %3741 }
 0xd8f   : > { %4464 = vmatmul.mubr.msk.f32.vlgmr.msra.gmra.mrb[0].mxu1 %vm1644_vm2, %v3742_v43 }
 0xe5e   : > { %v3731_v39 = vpop.f32.mrb[0].mxu0 }
 0xe5f   : > { %v3735_v8 = vadd.f32 %v3731_v39, %v3659_v37  ;;  %v4458_v13 = vpop.f32.mrb[1].mxu0 }
 0xe61   : > { %4731 = vtanh.f32 %v3735_v8  ;;  %v3816_v52 = vmul.f32 0.5, %v3735_v8 }
 0xe62   : > { %v3811_v23 = vpop.f32.mrb[0].mxu1 }
 0xe63   : > { %v3815_v24 = vadd.f32 %v3811_v23, %v3739_v14  ;;  %v4465_v46 = vpop.f32.mrb[1].mxu1 }
 0xe65   : > { %4733 = vtanh.f32 %v3815_v24  ;;  %v3821_v53 = vmul.f32 0.5, %v3815_v24 }
 0xe66   : > { %4735 = vtanh.f32 %v3816_v52 }
 0xe67   : > { %4737 = vtanh.f32 %v3821_v53 }
 0xe6b   : > { %v4732_v50 = vpop.eup %4731 }
 0xe6c   : > { %3828 = vrot.lane.b32.xlu1 %v4732_v50, %s4885_s3 }
 0xe6f   : > { %v4734_v36 = vpop.eup %4733 }
 0xe70   : > { %3839 = vrot.lane.b32.xlu1 %v4734_v36, %s4885_s3  ;;  %v4736_v16 = vpop.eup %4735 }
 0xe71   : > { %v3818_v62 = vadd.f32 1.0, %v4736_v16  ;;  %v4738_v63 = vpop.eup %4737 }
 0xe72   : > { %v3823_v59 = vadd.f32 1.0, %v4738_v63 }
 0xe73   : > { %v3819_v32 = vmul.f32 0.5, %v3818_v62 }
 0xe74   : > { %v3824_v33 = vmul.f32 0.5, %v3823_v59 }
 0xe75   : > { %v3826_v29 = vmul.f32 %v4853_v44, %v3819_v32 }
 0xe76   : > { %v3837_v42 = vmul.f32 %v4845_v31, %v3824_v33 }
 0xede   : > { %v3829_v27 = vpop.permute.xlu1 %3828 }
 0xedf   : > { %v3831_v28 = vmul.f32 %v3829_v27, %v3819_v32 }
 0xee1   : > { %3833 = vrot.lane.b32.xlu0 %v3831_v28, %s4886_s15 }
 0xee2   : > { %v3840_v41 = vpop.permute.xlu1 %3839 }
 0xee3   : > { %v3842_v15 = vmul.f32 %v3840_v41, %v3824_v33 }
 0xee5   : > { %3844 = vrot.lane.b32.xlu1 %v3842_v15, %s4886_s15 }
 0xf53   : > { %v3834_v61 = vpop.permute.xlu0 %3833 }
 0xf54   : > { %v3836_v44 = vadd.f32 %v3834_v61, %v3826_v29  }
 0xf56   : > { %4739 = vtanh.f32 %v3836_v44 }
 0xf57   : > { %v3845_v48 = vpop.permute.xlu1 %3844 }
 0xf58   : > { %v3847_v31 = vadd.f32 %v3845_v48, %v3837_v42  }
 0xf5a   : > { %4741 = vtanh.f32 %v3847_v31 }
 0xf60   : > { %v4740_v49 = vpop.eup %4739 }
 0xf61   : > { %3850 = vrot.lane.b32.xlu0 %v4740_v49, %s4887_s16 }
 0xf64   : > { %v4742_v55 = vpop.eup %4741 }
 0xf65   : > { %3856 = vrot.lane.b32.xlu1 %v4742_v55, %s4887_s16 }
 0xfd3   : > { %v3851_v5 = vpop.permute.xlu0 %3850 }
 0xfd4   : > { %v3853_v56 = vmul.f32 %v3851_v5, %v3819_v32  }
 0xfd6   : > { %3861 = vrot.lane.b32.xlu0 %v3853_v56, %s4882_s5 }
 0xfd7   : > { %v3857_v4 = vpop.permute.xlu1 %3856 }
 0xfd8   : > { %v3859_v1 = vmul.f32 %v3857_v4, %v3824_v33  }
 0xfda   : > { %3868 = vrot.lane.b32.xlu1 %v3859_v1, %s4882_s5 }
0x1047   :  { %3651 = sbr.rel (!%p3649_p2) target bundleno = 3350 (0xd16), region = 132 }
0x1048   : > { %v3862_v34 = vpop.permute.xlu0 %3861 }
0x1049   : > { %3866 = vst.msk [vmem:[%s3864_s17] sm:$0x3] %vm2242_vm5, %v3862_v34 }
0x104c   : > { %v3869_v58 = vpop.permute.xlu1 %3868 }
0x104d   : > { %3872 = vst.msk [vmem:[%s3871_s18] sm:$0x3] %vm2242_vm5, %v3869_v58 }
0x1050   :  { %v3875_v9 = vld [vmem:[#allocation4 + $0x4] sm:$0x3]  ;;  %v3873_v26 = vld [vmem:[#allocation4] sm:$0x3]  ;;  %v3876_v31 = vld [vmem:[#allocation4 + $0x6] sm:$0x3] }
0x1051   :  { %v3874_v1 = vld [vmem:[#allocation4 + $0x2] sm:$0x3]  ;;  %v3878_v6 = vld [vmem:[#allocation4 + $0xa] sm:$0x3]  ;;  %v3877_v57 = vld [vmem:[#allocation4 + $0x8] sm:$0x3] }
0x1052   :  { %v3880_v8 = vld [vmem:[#allocation4 + $0xe] sm:$0x3]  ;;  %v3879_v13 = vld [vmem:[#allocation4 + $0xc] sm:$0x3]  ;;  %v3882_v50 = vld [vmem:[#allocation4 + $0x12] sm:$0x3] }
0x1053   :  { %v3881_v36 = vld [vmem:[#allocation4 + $0x10] sm:$0x3]  ;;  %v3884_v63 = vld [vmem:[#allocation4 + $0x16] sm:$0x3]  ;;  %v3883_v32 = vld [vmem:[#allocation4 + $0x14] sm:$0x3] }
0x1054   :  { %v3891_v7 = vld [vmem:[#allocation5 + $0x4] sm:$0x3]  ;;  %v3889_v10 = vld [vmem:[#allocation5] sm:$0x3]  ;;  %v3892_v12 = vld [vmem:[#allocation5 + $0x6] sm:$0x3] }
0x1055   :  { %3925 = vrot.lane.b32.xlu1 %v3891_v7, %s4873_s14  ;;  %3921 = vrot.lane.b32.xlu0 %v3889_v10, %s4873_s14  ;;  %v3890_v18 = vld [vmem:[#allocation5 + $0x2] sm:$0x3]  ;;  %v3894_v19 = vld [vmem:[#allocation5 + $0xa] sm:$0x3]  ;;  %v3893_v21 = vld [vmem:[#allocation5 + $0x8] sm:$0x3] }
0x1056   :  { %v3896_v3 = vld [vmem:[#allocation5 + $0xe] sm:$0x3]  ;;  %v3895_v54 = vld [vmem:[#allocation5 + $0xc] sm:$0x3]  ;;  %v3898_v40 = vld [vmem:[#allocation5 + $0x12] sm:$0x3] }
0x1057   :  { %v3897_v60 = vld [vmem:[#allocation5 + $0x10] sm:$0x3]  ;;  %v3900_v2 = vld [vmem:[#allocation5 + $0x16] sm:$0x3]  ;;  %v3899_v35 = vld [vmem:[#allocation5 + $0x14] sm:$0x3] }
0x1058   :  { %v3902_v22 = vld [vmem:[#allocation5 + $0x1a] sm:$0x3]  ;;  %v3901_v0 = vld [vmem:[#allocation5 + $0x18] sm:$0x3]  ;;  %v3904_v25 = vld [vmem:[#allocation5 + $0x1e] sm:$0x3] }
0x1059   :  { %3927 = vrot.lane.b32.xlu1 %v3892_v12, %s4873_s14  ;;  %3923 = vrot.lane.b32.xlu0 %v3890_v18, %s4873_s14  ;;  %v3903_v20 = vld [vmem:[#allocation5 + $0x1c] sm:$0x3]  ;;  %v3886_v41 = vld [vmem:[#allocation4 + $0x1a] sm:$0x3]  ;;  %v3885_v15 = vld [vmem:[#allocation4 + $0x18] sm:$0x3] }
0x105a   :  { %v3888_v49 = vld [vmem:[#allocation4 + $0x1e] sm:$0x3]  ;;  %v3887_v55 = vld [vmem:[#allocation4 + $0x1c] sm:$0x3] }
0x105d   :  { %3931 = vrot.lane.b32.xlu1 %v3894_v19, %s4873_s14  ;;  %3929 = vrot.lane.b32.xlu0 %v3893_v21, %s4873_s14 }
0x1061   :  { %3935 = vrot.lane.b32.xlu1 %v3896_v3, %s4873_s14  ;;  %3933 = vrot.lane.b32.xlu0 %v3895_v54, %s4873_s14 }
0x1065   :  { %3939 = vrot.lane.b32.xlu1 %v3898_v40, %s4873_s14  ;;  %3937 = vrot.lane.b32.xlu0 %v3897_v60, %s4873_s14 }
0x1069   :  { %3943 = vrot.lane.b32.xlu1 %v3900_v2, %s4873_s14  ;;  %3941 = vrot.lane.b32.xlu0 %v3899_v35, %s4873_s14 }
0x106d   :  { %3947 = vrot.lane.b32.xlu1 %v3902_v22, %s4873_s14  ;;  %3945 = vrot.lane.b32.xlu0 %v3901_v0, %s4873_s14 }
0x1071   :  { %3951 = vrot.lane.b32.xlu1 %v3904_v25, %s4873_s14  ;;  %3949 = vrot.lane.b32.xlu0 %v3903_v20, %s4873_s14 }
0x10c7   :  { %v3926_v30 = vpop.permute.xlu1 %3925  ;;  %v3922_v38 = vpop.permute.xlu0 %3921 }
0x10c8   :  { %v3971_v45 = vsel %vm1644_vm2, %v3875_v9, %v3926_v30  ;;  %v3969_v11 = vsel %vm1644_vm2, %v3873_v26, %v3922_v38 }
0x10c9   :  { %3988 = vst.msk [vmem:[%s6140_s12 + $0x4] sm:$0x3] %vm3985_vm9, %v3971_v45  ;;  %3986 = vst.msk [vmem:[%s6140_s12] sm:$0x3] %vm3985_vm9, %v3969_v11 }
0x10cb   :  { %v3928_v44 = vpop.permute.xlu1 %3927  ;;  %v3924_v56 = vpop.permute.xlu0 %3923 }
0x10cc   :  { %v3972_v47 = vsel %vm1644_vm2, %v3876_v31, %v3928_v44  ;;  %v3970_v51 = vsel %vm1644_vm2, %v3874_v1, %v3924_v56 }
0x10cd   :  { %3989 = vst.msk [vmem:[%s6140_s12 + $0x6] sm:$0x3] %vm3985_vm9, %v3972_v47  ;;  %3987 = vst.msk [vmem:[%s6140_s12 + $0x2] sm:$0x3] %vm3985_vm9, %v3970_v51 }
0x10cf   :  { %v3932_v17 = vpop.permute.xlu1 %3931  ;;  %v3930_v43 = vpop.permute.xlu0 %3929 }
0x10d0   :  { %v3974_v37 = vsel %vm1644_vm2, %v3878_v6, %v3932_v17  ;;  %v3973_v39 = vsel %vm1644_vm2, %v3877_v57, %v3930_v43 }
0x10d1   :  { %3991 = vst.msk [vmem:[%s6140_s12 + $0xa] sm:$0x3] %vm3985_vm9, %v3974_v37  ;;  %3990 = vst.msk [vmem:[%s6140_s12 + $0x8] sm:$0x3] %vm3985_vm9, %v3973_v39 }
0x10d3   :  { %v3936_v14 = vpop.permute.xlu1 %3935  ;;  %v3934_v23 = vpop.permute.xlu0 %3933 }
0x10d4   :  { %v3976_v24 = vsel %vm1644_vm2, %v3880_v8, %v3936_v14  ;;  %v3975_v46 = vsel %vm1644_vm2, %v3879_v13, %v3934_v23 }
0x10d5   :  { %3993 = vst.msk [vmem:[%s6140_s12 + $0xe] sm:$0x3] %vm3985_vm9, %v3976_v24  ;;  %3992 = vst.msk [vmem:[%s6140_s12 + $0xc] sm:$0x3] %vm3985_vm9, %v3975_v46 }
0x10d7   :  { %v3940_v52 = vpop.permute.xlu1 %3939  ;;  %v3938_v53 = vpop.permute.xlu0 %3937 }
0x10d8   :  { %v3978_v16 = vsel %vm1644_vm2, %v3882_v50, %v3940_v52  ;;  %v3977_v62 = vsel %vm1644_vm2, %v3881_v36, %v3938_v53 }
0x10d9   :  { %3995 = vst.msk [vmem:[%s6140_s12 + $0x12] sm:$0x3] %vm3985_vm9, %v3978_v16  ;;  %3994 = vst.msk [vmem:[%s6140_s12 + $0x10] sm:$0x3] %vm3985_vm9, %v3977_v62 }
0x10db   :  { %v3944_v59 = vpop.permute.xlu1 %3943  ;;  %v3942_v27 = vpop.permute.xlu0 %3941 }
0x10dc   :  { %v3980_v28 = vsel %vm1644_vm2, %v3884_v63, %v3944_v59  ;;  %v3979_v33 = vsel %vm1644_vm2, %v3883_v32, %v3942_v27 }
0x10dd   :  { %3997 = vst.msk [vmem:[%s6140_s12 + $0x16] sm:$0x3] %vm3985_vm9, %v3980_v28  ;;  %3996 = vst.msk [vmem:[%s6140_s12 + $0x14] sm:$0x3] %vm3985_vm9, %v3979_v33 }
0x10df   :  { %v3948_v29 = vpop.permute.xlu1 %3947  ;;  %v3946_v61 = vpop.permute.xlu0 %3945 }
0x10e0   :  { %v3982_v42 = vsel %vm1644_vm2, %v3886_v41, %v3948_v29  ;;  %v3981_v48 = vsel %vm1644_vm2, %v3885_v15, %v3946_v61 }
0x10e1   :  { %3999 = vst.msk [vmem:[%s6140_s12 + $0x1a] sm:$0x3] %vm3985_vm9, %v3982_v42  ;;  %3998 = vst.msk [vmem:[%s6140_s12 + $0x18] sm:$0x3] %vm3985_vm9, %v3981_v48 }
0x10e3   :  { %v3952_v5 = vpop.permute.xlu1 %3951  ;;  %v3950_v4 = vpop.permute.xlu0 %3949 }
0x10e4   :  { %v3984_v34 = vsel %vm1644_vm2, %v3888_v49, %v3952_v5  ;;  %v3983_v58 = vsel %vm1644_vm2, %v3887_v55, %v3950_v4 }
0x10e5   :  { %4001 = vst.msk [vmem:[%s6140_s12 + $0x1e] sm:$0x3] %vm3985_vm9, %v3984_v34  ;;  %4000 = vst.msk [vmem:[%s6140_s12 + $0x1c] sm:$0x3] %vm3985_vm9, %v3983_v58 }

// kernel: dense_lstm_forward.3
= control target key start
LH: loop header
LB: loop body
LE: loop exit
PB: predicated region body
PF: predicated region fallthrough
CT: control target
= control target key end

     0   :  { %s8237_s3 = smov 2   ;;  %s8238_s10 = smov 1   ;;  %v8239_v0 = vmov 1983009808   ;;  %v307_v2 = vlaneseq  ;;  %vm370_vm0 = vcmask 261120   ;;  %vm631_vm1 = vcmask 130048   ;;  %s9577_s0 = inlined_call_operand.smem [shape: u32[51], index: -1, kind: input, shape index: {}] }
   0x1   :  { %s7113_s6 = sld [smem:[%s9577_s0 + %s8237_s3]]   ;;  %v305_v1 = vunpack.c.l.s4 %v8239_v0  ;;  %s8240_s14 = smov 4   ;;  %vm1394_vm2 = vcmask 326656   ;;  %vm2417_vm3 = vcmask 392192   ;;  %vm2694_vm4 = vcmask 195584  }
   0x2   :  { %s8303_s9 = sld [smem:[%s9577_s0]]   ;;  %v308_v7 = vshrl.u32 %v307_v2, 7  ;;  %s8241_s18 = smov 3   ;;  %vm8264_vm5 = vmmov 0   ;;  %vm4196_vm6 = vcmask 1043456   ;;  %vm4193_vm7 = vcmask 162816  }
   0x3   :  { %s7112_s13 = sld [smem:[%s9577_s0 + %s8238_s10]]   ;;  %v306_v6 = vunpack.c.0.s8 %v305_v1  ;;  %s8243_s22 = smov 6   ;;  %vm8268_vm8 = vmmov 1   ;;  %vm4678_vm10 = vcmask 228352   ;;  %vm5163_vm11 = vcmask 293888  }
   0x4   :  { %s8425_s17 = sld [smem:[%s9577_s0 + %s8240_s14]]   ;;  %s8244_s26 = smov 32   ;;  %vm9181_vm9 = vmpackc.low %vm4196_vm6, %vm8268_vm8  ;;  %vm5649_vm12 = vcmask 359424   ;;  %vm6136_vm13 = vcmask 424960   ;;  %vm6271_vm14 = vcmask 1041408  }
   0x5   :  { %v8338_v23 = vsub.s32 %v306_v6, %v308_v7  ;;  %s7114_s21 = sld [smem:[%s9577_s0 + %s8241_s18]]   ;;  %s8245_s27 = smov 5   ;;  %vm8109_vm15 = vmpackc.low %vm6271_vm14, %vm8268_vm8 }
   0x6   :  { %s8489_s25 = sld [smem:[%s9577_s0 + %s8243_s22]]   ;;  %s8246_s1 = smov 8  }
   0x7   :  { %v282_v3 = vld [vmem:[%s7113_s6] sm:$0xff]  ;;  %v283_v4 = vld [vmem:[%s7113_s6 + $0x8] sm:$0xff]  ;;  %v284_v5 = vld [vmem:[%s7113_s6 + $0x10] sm:$0xff]  ;;  %s7116_s30 = sld [smem:[%s9577_s0 + %s8245_s27]]   ;;  %s8247_s5 = smov 7  }
   0x8   :  { %v7937_v8 = vpack.c.bf16 %v283_v4, %v282_v3  ;;  %v285_v9 = vld [vmem:[%s7113_s6 + $0x18] sm:$0xff]  ;;  %v8309_v10 = vld [vmem:[%s8303_s9] sm:$0x3]  ;;  %v8312_v11 = vld [vmem:[%s8303_s9 + $0x2] sm:$0x3]  ;;  %s8667_s4 = sld [smem:[%s9577_s0 + %s8246_s1]]   ;;  %s8250_s14 = smov 9  }
   0x9   :  { %v7941_v12 = vpack.c.bf16 %v285_v9, %v284_v5  ;;  %v8315_v13 = vld [vmem:[%s8303_s9 + $0x4] sm:$0x3]  ;;  %v8318_v14 = vld [vmem:[%s8303_s9 + $0x6] sm:$0x3]  ;;  %v8320_v15 = vld [vmem:[%s7112_s13] ss:$0 sm:$0xff]  ;;  %s7118_s8 = sld [smem:[%s9577_s0 + %s8247_s5]]  }
   0xa   :  { %7938 = vmatprep.subr.bf16.mxu0 %v7937_v8  ;;  %v229_v16 = vmul.f32 %v8320_v15, %v8309_v10  ;;  %v230_v17 = vmul.f32 %v8320_v15, %v8312_v11  ;;  %v231_v18 = vmul.f32 %v8320_v15, %v8315_v13  ;;  %v232_v19 = vmul.f32 %v8320_v15, %v8318_v14  ;;  %v8330_v20 = vld [vmem:[%s7112_s13 + $0x1] ss:$0 sm:$0xff]  ;;  %v8333_v21 = vld [vmem:[%s8303_s9 + $0x8] sm:$0x3]  ;;  %v8336_v22 = vld [vmem:[%s8303_s9 + $0xa] sm:$0x3] }
   0xb   :  { %7940 = vmatpush3.bf16.msra.mxu0 %v7937_v8  ;;  %v8341_v24 = vld [vmem:[%s8303_s9 + $0xc] sm:$0x3]  ;;  %v8344_v25 = vld [vmem:[%s8303_s9 + $0xe] sm:$0x3]  ;;  %v233_v26 = vmul.f32 %v8320_v15, %v8333_v21  ;;  %v234_v27 = vmul.f32 %v8320_v15, %v8336_v22  ;;  %v8361_v36 = vld [vmem:[%s8303_s9 + $0x10] sm:$0x3] }
   0xc   :  { %7942 = vmatprep.subr.bf16.mxu0 %v7941_v12  ;;  %v250_v28 = vadd.f32 %v8330_v20, %v229_v16  ;;  %v251_v29 = vadd.f32 %v8330_v20, %v230_v17  ;;  %v252_v30 = vadd.f32 %v8330_v20, %v231_v18  ;;  %v253_v31 = vadd.f32 %v8330_v20, %v232_v19  ;;  %v8364_v37 = vld [vmem:[%s8303_s9 + $0x12] sm:$0x3]  ;;  %v8367_v42 = vld [vmem:[%s8303_s9 + $0x14] sm:$0x3]  ;;  %v8372_v47 = vld [vmem:[%s8303_s9 + $0x16] sm:$0x3] }
   0xd   :  { %v235_v32 = vmul.f32 %v8320_v15, %v8341_v24  ;;  %v236_v33 = vmul.f32 %v8320_v15, %v8344_v25  ;;  %v254_v34 = vadd.f32 %v8330_v20, %v233_v26  ;;  %v255_v35 = vadd.f32 %v8330_v20, %v234_v27  ;;  %v8381_v56 = vld [vmem:[%s8303_s9 + $0x18] sm:$0x3]  ;;  %v8389_v61 = vld [vmem:[%s8303_s9 + $0x1a] sm:$0x3]  ;;  %v8395_v2 = vld [vmem:[%s8303_s9 + $0x1c] sm:$0x3] }
   0xe   :  { %v266_v38 = vmax.f32 %v250_v28, 0.0  ;;  %v267_v39 = vmax.f32 %v251_v29, 0.0  ;;  %v268_v40 = vmax.f32 %v252_v30, 0.0  ;;  %v269_v41 = vmax.f32 %v253_v31, 0.0  ;;  %v8398_v3 = vld [vmem:[%s8303_s9 + $0x1e] sm:$0x3] }
   0xf   :  { %7944 = vmatpush3.bf16.msra.mxu0 %v7941_v12  ;;  %v256_v43 = vadd.f32 %v8330_v20, %v235_v32  ;;  %v257_v44 = vadd.f32 %v8330_v20, %v236_v33  ;;  %v270_v45 = vmax.f32 %v254_v34, 0.0  ;;  %v271_v46 = vmax.f32 %v255_v35, 0.0  ;;  %s8248_s9 = smov 10   ;;  %s8249_s13 = smov 40  }
  0x10   :  { %v302_v48 = vcombine.low %v266_v38, %v267_v39  ;;  %v303_v49 = vcombine.low %v268_v40, %v269_v41  ;;  %v237_v50 = vmul.f32 %v8320_v15, %v8361_v36  ;;  %v238_v51 = vmul.f32 %v8320_v15, %v8364_v37  ;;  %s8730_s12 = sld [smem:[%s9577_s0 + %s8248_s9]]   ;;  %s8251_s18 = smov 12  }
  0x11   :  { %v272_v52 = vmax.f32 %v256_v43, 0.0  ;;  %v273_v53 = vmax.f32 %v257_v44, 0.0  ;;  %v319_v54 = vcombine.low %v270_v45, %v271_v46  ;;  %v239_v55 = vmul.f32 %v8320_v15, %v8367_v42  ;;  %v7170_v46 = vld [vmem:[%s8425_s17 + $0x10] sm:$0xff]  ;;  %s8252_s22 = smov 11   ;;  %s8253_s27 = smov 14  }
  0x12   :  { %v310_v57 = vrot.slane %v302_v48, %v8338_v23  ;;  %v317_v58 = vrot.slane %v303_v49, %v8338_v23  ;;  %v240_v59 = vmul.f32 %v8320_v15, %v8372_v47  ;;  %v258_v60 = vadd.f32 %v8330_v20, %v237_v50  ;;  %v7171_v48 = vld [vmem:[%s8425_s17 + $0x18] sm:$0xff]  ;;  %v558_v50 = vld [vmem:[%s8425_s17] sm:$0xff]  ;;  %s8254_s1 = smov 13   ;;  %s8255_s5 = smov 24  }
  0x13   :  { %v320_v62 = vcombine.low %v272_v52, %v273_v53  ;;  %v327_v63 = vrot.slane %v319_v54, %v8338_v23  ;;  %v259_v0 = vadd.f32 %v8330_v20, %v238_v51  ;;  %v260_v1 = vadd.f32 %v8330_v20, %v239_v55  ;;  %v559_v51 = vld [vmem:[%s8425_s17 + $0x8] sm:$0xff]  ;;  %v7168_v53 = vld [vmem:[%s7114_s21] ss:$0 sm:$0xff]  ;;  %v7169_v55 = vld [vmem:[%s7114_s21 + $0x1] ss:$0 sm:$0xff]  ;;  %s7123_s21 = sld [smem:[%s9577_s0 + %s8251_s18]]   ;;  %s8256_s6 = smov 16  }
  0x14   :  { %v318_v4 = vcombine.low %v310_v57, %v317_v58  ;;  %v261_v5 = vadd.f32 %v8330_v20, %v240_v59  ;;  %v274_v6 = vmax.f32 %v258_v60, 0.0  ;;  %v241_v7 = vmul.f32 %v8320_v15, %v8381_v56  ;;  %s7127_s9 = sld [smem:[%s9577_s0 + %s8256_s6]]   ;;  %s8257_s10 = smov 15  }
  0x15   :  { %v334_v8 = vrot.slane %v320_v62, %v8338_v23  ;;  %v275_v9 = vmax.f32 %v259_v0, 0.0  ;;  %v276_v12 = vmax.f32 %v260_v1, 0.0  ;;  %v242_v16 = vmul.f32 %v8320_v15, %v8389_v61  ;;  %s8258_s15 = smov 18   ;;  %s8259_s19 = smov 17  }
  0x16   :  { %7547 = vmatprep.mubr.msk.f32.mxu0 %vm370_vm0, %v318_v4  ;;  %v277_v17 = vmax.f32 %v261_v5, 0.0  ;;  %v243_v18 = vmul.f32 %v8320_v15, %v8395_v2  ;;  %v244_v19 = vmul.f32 %v8320_v15, %v8398_v3  ;;  %v262_v26 = vadd.f32 %v8330_v20, %v241_v7  ;;  %s9013_s18 = sld [smem:[%s9577_s0 + %s8258_s15]]   ;;  %s8260_s23 = smov 20  }
  0x17   :  { %v335_v27 = vcombine.low %v327_v63, %v334_v8  ;;  %v336_v28 = vcombine.low %v274_v6, %v275_v9  ;;  %v263_v29 = vadd.f32 %v8330_v20, %v242_v16  ;;  %v7945_v49 = vpack.c.bf16 %v7171_v48, %v7170_v46  ;;  %s8261_s28 = smov 19   ;;  %s8262_s2 = smov 22  }
  0x18   :  { %v337_v30 = vcombine.low %v276_v12, %v277_v17  ;;  %v264_v31 = vadd.f32 %v8330_v20, %v243_v18  ;;  %v265_v32 = vadd.f32 %v8330_v20, %v244_v19  ;;  %v278_v33 = vmax.f32 %v262_v26, 0.0  ;;  %v7180_v19 = vld [vmem:[%s8425_s17 + $0x20] sm:$0xff]  ;;  %v7181_v26 = vld [vmem:[%s8425_s17 + $0x28] sm:$0xff]  ;;  %s7120_s17 = sld [smem:[%s9577_s0 + %s8250_s14]]   ;;  %s8265_s7 = smov 21  }
  0x19   :  { %7548 = vmatmul.mubr.msk.f32.vlgmr.msra.gmra.mrb[0].mxu0 %vm370_vm0, %v335_v27  ;;  %v344_v34 = vrot.slane %v336_v28, %v8338_v23  ;;  %v279_v35 = vmax.f32 %v263_v29, 0.0  ;;  %7946 = vmatprep.subr.bf16.mxu1 %v7945_v49  ;;  %v8431_v52 = vpack.c.bf16 %v559_v51, %v558_v50  ;;  %s7126_s14 = sld [smem:[%s9577_s0 + %s8257_s10]]   ;;  %s8266_s15 = smov 23  }
  0x1a   :  { %v351_v38 = vrot.slane %v337_v30, %v8338_v23  ;;  %v280_v15 = vmax.f32 %v264_v31, 0.0  ;;  %v281_v39 = vmax.f32 %v265_v32, 0.0  ;;  %7948 = vmatpush3.bf16.msra.mxu1 %v7945_v49  ;;  %s7133_s6 = sld [smem:[%s9577_s0 + %s8262_s2]]   ;;  %s8287_s16 = smov 45  }
  0x1b   :  { %v353_v40 = vcombine.low %v278_v33, %v279_v35  ;;  %7950 = vmatprep.subr.bf16.mxu1 %v8431_v52  ;;  %s7132_s10 = sld [smem:[%s9577_s0 + %s8265_s7]]   ;;  %s8288_s20 = smov 47  }
  0x1c   :  { %v352_v41 = vcombine.low %v344_v34, %v351_v38  ;;  %v354_v43 = vcombine.low %v280_v15, %v281_v39  ;;  %v7953_v15 = vpack.c.bf16 %v7181_v26, %v7180_v19  ;;  %v8242_v19 = vmov 0.0   ;;  %s7158_s24 = sld [smem:[%s9577_s0 + %s8288_s20]]  }
  0x1d   :  { %v361_v44 = vrot.slane %v353_v40, %v8338_v23 }
  0x1e   :  { %7550 = vmatprep.mubr.msk.f32.mxu0 %vm370_vm0, %v352_v41  ;;  %v368_v45 = vrot.slane %v354_v43, %v8338_v23 }
  0x20   :  { %v369_v20 = vcombine.low %v361_v44, %v368_v45 }
  0x22   :  { %7551 = vmatmul.mubr.msk.f32.gmra.mrb[2].mxu0 %vm370_vm0, %v369_v20 }
  0xec   :  { %v7549_v54 = vpop.f32.mrb[0].mxu0 }
  0xed   :  { %v470_v57 = vmul.f32 %v7549_v54, %v7168_v53  ;;  %v445_v58 = vpop.f32.mrb[1].mxu0 }
  0xee   :  { %v469_v59 = vmul.f32 %v7168_v53, %v445_v58 }
  0xef   :  { %v479_v60 = vadd.f32 %v7169_v55, %v470_v57 }
  0xf0   :  { %v478_v62 = vadd.f32 %v7169_v55, %v469_v59 }
  0xf1   :  { %v483_v63 = vmax.f32 %v479_v60, 0.0 }
  0xf2   :  { %v482_v0 = vmax.f32 %v478_v62, 0.0 }
  0xf3   :  { %v507_v1 = vcombine.high %v483_v63, %v483_v63  ;;  %v514_v4 = vrot.slane %v483_v63, %v8338_v23 }
  0xf4   :  { %v490_v5 = vcombine.high %v482_v0, %v482_v0  ;;  %v497_v6 = vrot.slane %v482_v0, %v8338_v23 }
  0xf5   :  { %v521_v7 = vrot.slane %v507_v1, %v8338_v23  ;;  %v522_v8 = vcombine.high %v514_v4, %v514_v4  ;;  %v7552_v9 = vpop.f32.mrb[2].mxu0 }
  0xf6   :  { %v504_v12 = vrot.slane %v490_v5, %v8338_v23  ;;  %v472_v16 = vmul.f32 %v7552_v9, %v7168_v53  ;;  %v455_v17 = vpop.f32.mrb[3].mxu0  ;;  %v505_v18 = vcombine.high %v497_v6, %v497_v6  ;;  %v726_v26 = vcombine.low %v8242_v19, %v497_v6 }
  0xf7   :  { %v580_v27 = vcombine.low %v514_v4, %v522_v8  ;;  %v744_v28 = vcombine.low %v522_v8, %v521_v7  ;;  %v471_v29 = vmul.f32 %v7168_v53, %v455_v17  ;;  %v523_v30 = vcombine.high %v521_v7, %v521_v7 }
  0xf8   :  { %v481_v31 = vadd.f32 %v7169_v55, %v472_v16  ;;  %v506_v32 = vcombine.high %v504_v12, %v504_v12  ;;  %v563_v33 = vcombine.low %v497_v6, %v505_v18  ;;  %v727_v35 = vcombine.low %v505_v18, %v504_v12 }
  0xf9   :  { %v480_v34 = vadd.f32 %v7169_v55, %v471_v29  ;;  %v581_v38 = vcombine.low %v521_v7, %v523_v30  ;;  %v8444_v39 = vrot.slane %v744_v28, %v8338_v23  ;;  %v588_v20 = vrot.slane %v580_v27, %v8338_v23 }
  0xfa   :  { %v485_v40 = vmax.f32 %v481_v31, 0.0  ;;  %v564_v41 = vcombine.low %v504_v12, %v506_v32  ;;  %v743_v43 = vcombine.low %v506_v32, %v514_v4  ;;  %v571_v45 = vrot.slane %v563_v33, %v8338_v23 }
  0xfb   :  { %v484_v44 = vmax.f32 %v480_v34, 0.0  ;;  %v595_v46 = vrot.slane %v581_v38, %v8338_v23  ;;  %v741_v57 = vrot.slane %v727_v35, %v8338_v23 }
  0xfc   :  { %v541_v48 = vcombine.high %v485_v40, %v485_v40  ;;  %v548_v49 = vrot.slane %v485_v40, %v8338_v23  ;;  %v578_v50 = vrot.slane %v564_v41, %v8338_v23  ;;  %v751_v51 = vrot.slane %v743_v43, %v8338_v23 }
  0xfd   :  { %v524_v53 = vcombine.high %v484_v44, %v484_v44  ;;  %v531_v54 = vrot.slane %v484_v44, %v8338_v23  ;;  %v596_v55 = vcombine.low %v588_v20, %v595_v46  ;;  %v734_v40 = vrot.slane %v726_v26, %v8338_v23  ;;  %v1308_v26 = vld [vmem:[%s8489_s25 + $0x18] sm:$0xff] }
  0xfe   :  { %v555_v58 = vrot.slane %v541_v48, %v8338_v23  ;;  %v556_v59 = vcombine.high %v548_v49, %v548_v49  ;;  %v579_v60 = vcombine.low %v571_v45, %v578_v50  ;;  %v759_v62 = vcombine.low %v751_v51, %v8444_v39 }
  0xff   :  { %v538_v63 = vrot.slane %v524_v53, %v8338_v23  ;;  %v539_v0 = vcombine.high %v531_v54, %v531_v54  ;;  %v760_v1 = vcombine.low %v523_v30, %v531_v54  ;;  %v890_v4 = vcombine.low %v741_v57, %v751_v51 }
 0x100   :  { %v557_v5 = vcombine.high %v555_v58, %v555_v58  ;;  %7557 = vmatprep.mubr.msk.f32.mxu1 %vm631_vm1, %v579_v60  ;;  %v614_v16 = vcombine.low %v548_v49, %v556_v59  ;;  %v778_v18 = vcombine.low %v556_v59, %v555_v58  ;;  %v742_v44 = vcombine.low %v734_v40, %v741_v57 }
 0x101   :  { %v540_v7 = vcombine.high %v538_v63, %v538_v63  ;;  %v597_v8 = vcombine.low %v531_v54, %v539_v0  ;;  %7558 = vmatmul.mubr.msk.f32.vlgmr.msra.gmra.mrb[0].mxu1 %vm631_vm1, %v596_v55  ;;  %v761_v9 = vcombine.low %v539_v0, %v538_v63  ;;  %v768_v12 = vrot.slane %v760_v1, %v8338_v23 }
 0x102   :  { %7952 = vmatpush3.bf16.msra.mxu1 %v8431_v52  ;;  %v615_v17 = vcombine.low %v555_v58, %v557_v5  ;;  %v622_v52 = vrot.slane %v614_v16, %v8338_v23  ;;  %v792_v6 = vrot.slane %v778_v18, %v8338_v23  ;;  %v893_v45 = vcombine.low %v557_v5, %v8242_v19  ;;  %v1306_v5 = vld [vmem:[%s8489_s25 + $0x8] sm:$0xff]  ;;  %v1307_v18 = vld [vmem:[%s8489_s25 + $0x10] sm:$0xff] }
 0x103   :  { %v598_v27 = vcombine.low %v538_v63, %v540_v7  ;;  %7954 = vmatprep.subr.bf16.mxu1 %v7953_v15  ;;  %v775_v28 = vrot.slane %v761_v9, %v8338_v23  ;;  %v891_v29 = vcombine.low %v8444_v39, %v768_v12  ;;  %v777_v31 = vcombine.low %v540_v7, %v548_v49 }
 0x104   :  { %v629_v30 = vrot.slane %v615_v17, %v8338_v23  ;;  %v605_v32 = vrot.slane %v597_v8, %v8338_v23  ;;  %v900_v20 = vrot.slane %v893_v45, %v8338_v23 }
 0x105   :  { %v612_v33 = vrot.slane %v598_v27, %v8338_v23  ;;  %v776_v34 = vcombine.low %v768_v12, %v775_v28  ;;  %v785_v35 = vrot.slane %v777_v31, %v8338_v23 }
 0x106   :  { %v630_v41 = vcombine.low %v622_v52, %v629_v30  ;;  %v901_v46 = vcombine.low %v792_v6, %v900_v20  ;;  %v1309_v52 = vld [vmem:[%s8489_s25 + $0x20] sm:$0xff] }
 0x107   :  { %v613_v38 = vcombine.low %v605_v32, %v612_v33  ;;  %v793_v43 = vcombine.low %v785_v35, %v792_v6  ;;  %v892_v39 = vcombine.low %v775_v28, %v785_v35  ;;  %v7961_v28 = vpack.c.bf16 %v1308_v26, %v1307_v18 }
 0x109   :  { %7560 = vmatprep.mubr.msk.f32.mxu1 %vm631_vm1, %v613_v38 }
 0x10a   :  { %7561 = vmatmul.mubr.msk.f32.gmra.mrb[2].mxu1 %vm631_vm1, %v630_v41 }
 0x10b   :  { %7567 = vmatprep.mubr.msk.f32.mxu1 %vm631_vm1, %v742_v44 }
 0x10e   :  { %7568 = vmatmul.mubr.msk.f32.vlgmr.msra.gmra.mrb[0].mxu1 %vm631_vm1, %v759_v62 }
 0x10f   :  { %7956 = vmatpush3.bf16.msra.mxu1 %v7953_v15  ;;  %7570 = vmatprep.mubr.msk.f32.mxu1 %vm631_vm1, %v776_v34 }
 0x112   :  { %7571 = vmatmul.mubr.msk.f32.gmra.mrb[2].mxu1 %vm631_vm1, %v793_v43 }
 0x113   :  { %7577 = vmatprep.mubr.msk.f32.mxu1 %vm631_vm1, %v890_v4  ;;  %v1305_v4 = vld [vmem:[%s8489_s25] sm:$0xff]  ;;  %s7122_s25 = sld [smem:[%s9577_s0 + %s8252_s22]]  }
 0x114   :  { %v7957_v9 = vpack.c.bf16 %v1306_v5, %v1305_v4  ;;  %s7128_s22 = sld [smem:[%s9577_s0 + %s8259_s19]]  }
 0x115   :  { %s7156_s19 = sld [smem:[%s9577_s0 + %s8287_s16]]  }
 0x116   :  { %7578 = vmatmul.mubr.msk.f32.vlgmr.msra.gmra.mrb[0].mxu1 %vm631_vm1, %v891_v29  ;;  %7958 = vmatprep.subr.bf16.mxu0 %v7957_v9 }
 0x117   :  { %7580 = vmatprep.mubr.msk.f32.mxu1 %vm631_vm1, %v892_v39  ;;  %7960 = vmatpush3.bf16.msra.mxu0 %v7957_v9 }
 0x118   :  { %7962 = vmatprep.subr.bf16.mxu0 %v7961_v28 }
 0x11a   :  { %7581 = vmatmul.mubr.msk.f32.gmra.mrb[2].mxu1 %vm631_vm1, %v901_v46 }
 0x11b   :  { %7964 = vmatpush3.bf16.msra.mxu0 %v7961_v28 }
 0x11c   :  { %7591 = vmatprep.subr.mxu0 %v1309_v52 }
 0x11f   :  { %7592 = vmatpush3.msra.mxu0 %v1309_v52 }
 0x1e9   :  { %v7579_v48 = vpop.f32.mrb[0].mxu1 }
 0x1ea   :  { %v1020_v49 = vcombine.high %v7579_v48, %v7579_v48  ;;  %v1027_v15 = vrot.slane %v7579_v48, %v8338_v23  ;;  %v976_v50 = vpop.f32.mrb[1].mxu1 }
 0x1eb   :  { %v1003_v51 = vcombine.high %v976_v50, %v976_v50  ;;  %v1010_v53 = vrot.slane %v976_v50, %v8338_v23 }
 0x1ec   :  { %v1105_v54 = vrot.slane %v1027_v15, %v8338_v23  ;;  %v1035_v55 = vcombine.high %v1027_v15, %v1027_v15  ;;  %v1034_v58 = vrot.slane %v1020_v49, %v8338_v23 }
 0x1ed   :  { %v7582_v57 = vpop.f32.mrb[2].mxu1  ;;  %v1017_v59 = vrot.slane %v1003_v51, %v8338_v23  ;;  %v1077_v63 = vrot.slane %v1010_v53, %v8338_v23  ;;  %v1018_v7 = vcombine.high %v1010_v53, %v1010_v53 }
 0x1ee   :  { %1191 = vrot.lane.b32.xlu0 %v1105_v54, %s8244_s26  ;;  %v986_v60 = vpop.f32.mrb[3].mxu1  ;;  %v1112_v62 = vrot.slane %v1035_v55, %v8338_v23  ;;  %v1036_v0 = vcombine.high %v1034_v58, %v1034_v58  ;;  %v1119_v8 = vrot.slane %v1034_v58, %v8338_v23  ;;  %v1061_v16 = vrot.slane %v7582_v57, %v8338_v23  ;;  %v8544_v55 = vld [vmem:[%s7116_s30] ss:$0 sm:$0xff] }
 0x1ef   :  { %v1091_v1 = vrot.slane %v1017_v59, %v8338_v23  ;;  %v1019_v12 = vcombine.high %v1017_v59, %v1017_v59  ;;  %v1084_v27 = vrot.slane %v1018_v7, %v8338_v23  ;;  %v1037_v29 = vcombine.high %v986_v60, %v986_v60 }
 0x1f0   :  { %1193 = vrot.lane.b32.xlu1 %v1112_v62, %s8244_s26  ;;  %v1126_v17 = vrot.slane %v1036_v0, %v8338_v23  ;;  %v1069_v30 = vcombine.high %v1061_v16, %v1061_v16  ;;  %v1044_v31 = vrot.slane %v986_v60, %v8338_v23  ;;  %v1161_v33 = vrot.slane %v1061_v16, %v8338_v23 }
 0x1f1   :  { %v1098_v32 = vrot.slane %v1019_v12, %v8338_v23  ;;  %v1054_v34 = vcombine.high %v7582_v57, %v7582_v57  ;;  %v1051_v35 = vrot.slane %v1037_v29, %v8338_v23 }
 0x1f2   :  { %1183 = vrot.lane.b32.xlu0 %v1077_v63, %s8244_s26  ;;  %v1052_v6 = vcombine.high %v1044_v31, %v1044_v31  ;;  %v1168_v38 = vrot.slane %v1069_v30, %v8338_v23  ;;  %v1133_v40 = vrot.slane %v1044_v31, %v8338_v23 }
 0x1f3   :  { %v1068_v41 = vrot.slane %v1054_v34, %v8338_v23  ;;  %v1053_v43 = vcombine.high %v1051_v35, %v1051_v35  ;;  %v1147_v44 = vrot.slane %v1051_v35, %v8338_v23 }
 0x1f4   :  { %1187 = vrot.lane.b32.xlu1 %v1091_v1, %s8244_s26  ;;  %v1140_v39 = vrot.slane %v1052_v6, %v8338_v23 }
 0x1f5   :  { %v1070_v45 = vcombine.high %v1068_v41, %v1068_v41  ;;  %v1154_v20 = vrot.slane %v1053_v43, %v8338_v23  ;;  %v1175_v46 = vrot.slane %v1068_v41, %v8338_v23 }
 0x1f6   :  { %1195 = vrot.lane.b32.xlu0 %v1119_v8, %s8244_s26 }
 0x1f7   :  { %v1182_v48 = vrot.slane %v1070_v45, %v8338_v23 }
 0x1f8   :  { %1197 = vrot.lane.b32.xlu1 %v1126_v17, %s8244_s26 }
 0x1fa   :  { %1185 = vrot.lane.b32.xlu0 %v1084_v27, %s8244_s26 }
 0x1fc   :  { %1189 = vrot.lane.b32.xlu1 %v1098_v32, %s8244_s26 }
 0x1fe   :  { %1207 = vrot.lane.b32.xlu0 %v1161_v33, %s8244_s26 }
 0x200   :  { %1209 = vrot.lane.b32.xlu1 %v1168_v38, %s8244_s26 }
 0x202   :  { %1199 = vrot.lane.b32.xlu0 %v1133_v40, %s8244_s26 }
 0x204   :  { %1201 = vrot.lane.b32.xlu1 %v1140_v39, %s8244_s26 }
 0x206   :  { %1203 = vrot.lane.b32.xlu0 %v1147_v44, %s8244_s26 }
 0x208   :  { %1205 = vrot.lane.b32.xlu1 %v1154_v20, %s8244_s26 }
 0x20a   :  { %1211 = vrot.lane.b32.xlu0 %v1175_v46, %s8244_s26 }
 0x20c   :  { %1213 = vrot.lane.b32.xlu1 %v1182_v48, %s8244_s26 }
 0x260   :  { %v1192_v49 = vpop.permute.xlu0 %1191 }
 0x261   :  { %v8548_v57 = vsel %vm370_vm0, %v8333_v21, %v1192_v49 }
 0x262   :  { %v1194_v15 = vpop.permute.xlu1 %1193  ;;  %v1256_v63 = vmul.f32 %v8544_v55, %v8548_v57 }
 0x263   :  { %v8538_v51 = vsel %vm370_vm0, %v8336_v22, %v1194_v15 }
 0x264   :  { %v1184_v50 = vpop.permute.xlu0 %1183  ;;  %v1257_v59 = vmul.f32 %v8544_v55, %v8538_v51 }
 0x265   :  { %v8542_v54 = vsel %vm370_vm0, %v8309_v10, %v1184_v50 }
 0x266   :  { %v1188_v53 = vpop.permute.xlu1 %1187  ;;  %v1252_v10 = vmul.f32 %v8544_v55, %v8542_v54 }
 0x267   :  { %v8554_v60 = vsel %vm370_vm0, %v8315_v13, %v1188_v53  ;;  %v8570_v13 = vld [vmem:[%s7116_s30 + $0x1] ss:$0 sm:$0xff]  ;;  %s8906_s30 = sld [smem:[%s9577_s0 + %s8253_s27]]  }
 0x268   :  { %v1196_v58 = vpop.permute.xlu0 %1195  ;;  %v1278_v5 = vadd.f32 %v8570_v13, %v1257_v59  ;;  %v1277_v17 = vadd.f32 %v8570_v13, %v1256_v63  ;;  %s9052_s27 = sld [smem:[%s9577_s0 + %s8260_s23]]  }
 0x269   :  { %v8558_v22 = vsel %vm370_vm0, %v8341_v24, %v1196_v58  ;;  %v1254_v24 = vmul.f32 %v8544_v55, %v8554_v60 }
 0x26a   :  { %v1258_v62 = vmul.f32 %v8544_v55, %v8558_v22  ;;  %v1198_v21 = vpop.permute.xlu1 %1197  ;;  %v1294_v30 = vmax.f32 %v1278_v5, 0.0  ;;  %v1293_v35 = vmax.f32 %v1277_v17, 0.0 }
 0x26b   :  { %v8568_v0 = vsel %vm370_vm0, %v8344_v25, %v1198_v21  ;;  %v1273_v25 = vadd.f32 %v8570_v13, %v1252_v10  ;;  %v1275_v26 = vadd.f32 %v8570_v13, %v1254_v24 }
 0x26c   :  { %v1259_v1 = vmul.f32 %v8544_v55, %v8568_v0  ;;  %v1186_v4 = vpop.permute.xlu0 %1185  ;;  %v1279_v7 = vadd.f32 %v8570_v13, %v1258_v62  ;;  %v1343_v39 = vcombine.low %v1293_v35, %v1294_v30 }
 0x26d   :  { %v8580_v8 = vsel %vm370_vm0, %v8312_v11, %v1186_v4  ;;  %v1289_v32 = vmax.f32 %v1273_v25, 0.0 }
 0x26e   :  { %v1280_v9 = vadd.f32 %v8570_v13, %v1259_v1  ;;  %v1253_v12 = vmul.f32 %v8544_v55, %v8580_v8  ;;  %v1190_v16 = vpop.permute.xlu1 %1189  ;;  %v1295_v31 = vmax.f32 %v1279_v7, 0.0  ;;  %v1351_v58 = vrot.slane %v1343_v39, %v8338_v23 }
 0x26f   :  { %v8589_v18 = vsel %vm370_vm0, %v8318_v14, %v1190_v16  ;;  %v1291_v14 = vmax.f32 %v1275_v26, 0.0 }
 0x270   :  { %v1296_v27 = vmax.f32 %v1280_v9, 0.0  ;;  %v1274_v11 = vadd.f32 %v8570_v13, %v1253_v12  ;;  %v1255_v28 = vmul.f32 %v8544_v55, %v8589_v18  ;;  %v1208_v29 = vpop.permute.xlu0 %1207 }
 0x271   :  { %v8606_v20 = vsel %vm370_vm0, %v8381_v56, %v1208_v29 }
 0x272   :  { %v1290_v33 = vmax.f32 %v1274_v11, 0.0  ;;  %v1276_v34 = vadd.f32 %v8570_v13, %v1255_v28  ;;  %v1210_v52 = vpop.permute.xlu1 %1209  ;;  %v1344_v6 = vcombine.low %v1295_v31, %v1296_v27  ;;  %v1264_v59 = vmul.f32 %v8544_v55, %v8606_v20 }
 0x273   :  { %v8598_v41 = vsel %vm370_vm0, %v8389_v61, %v1210_v52 }
 0x274   :  { %v1326_v38 = vcombine.low %v1289_v32, %v1290_v33  ;;  %v1292_v40 = vmax.f32 %v1276_v34, 0.0  ;;  %v1200_v43 = vpop.permute.xlu0 %1199  ;;  %v1358_v48 = vrot.slane %v1344_v6, %v8338_v23  ;;  %v1265_v49 = vmul.f32 %v8544_v55, %v8598_v41 }
 0x275   :  { %v8602_v44 = vsel %vm370_vm0, %v8361_v36, %v1200_v43  ;;  %v1285_v12 = vadd.f32 %v8570_v13, %v1264_v59 }
 0x276   :  { %v1327_v45 = vcombine.low %v1291_v14, %v1292_v40  ;;  %v1202_v46 = vpop.permute.xlu1 %1201  ;;  %v1260_v61 = vmul.f32 %v8544_v55, %v8602_v44  ;;  %v1334_v36 = vrot.slane %v1326_v38, %v8338_v23  ;;  %v1359_v1 = vcombine.low %v1351_v58, %v1358_v48 }
 0x277   :  { %v8615_v15 = vsel %vm370_vm0, %v8364_v37, %v1202_v46  ;;  %v1286_v4 = vadd.f32 %v8570_v13, %v1265_v49  ;;  %v1301_v33 = vmax.f32 %v1285_v12, 0.0  ;;  %v7195_v46 = vld [vmem:[%s8667_s4 + $0x18] sm:$0xff]  ;;  %v1582_v49 = vld [vmem:[%s8667_s4] sm:$0xff] }
 0x278   :  { %v1341_v50 = vrot.slane %v1327_v45, %v8338_v23  ;;  %v1261_v56 = vmul.f32 %v8544_v55, %v8615_v15  ;;  %v1204_v53 = vpop.permute.xlu0 %1203  ;;  %v1281_v10 = vadd.f32 %v8570_v13, %v1260_v61  ;;  %v1583_v61 = vld [vmem:[%s8667_s4 + $0x8] sm:$0xff] }
 0x279   :  { %v8627_v37 = vsel %vm370_vm0, %v8367_v42, %v1204_v53  ;;  %v1302_v11 = vmax.f32 %v1286_v4, 0.0  ;;  %v7193_v53 = vld [vmem:[%s7118_s8 + $0x1] ss:$0 sm:$0xff] }
 0x27a   :  { %v1282_v62 = vadd.f32 %v8570_v13, %v1261_v56  ;;  %v1262_v21 = vmul.f32 %v8544_v55, %v8627_v37  ;;  %v1206_v63 = vpop.permute.xlu1 %1205  ;;  %v1342_v24 = vcombine.low %v1334_v36, %v1341_v50  ;;  %v1297_v16 = vmax.f32 %v1281_v10, 0.0  ;;  %v7192_v50 = vld [vmem:[%s7118_s8] ss:$0 sm:$0xff] }
 0x27b   :  { %v8635_v5 = vsel %vm370_vm0, %v8372_v47, %v1206_v63  ;;  %v1377_v35 = vcombine.low %v1301_v33, %v1302_v11  ;;  %v7969_v36 = vpack.c.bf16 %v1583_v61, %v1582_v49 }
 0x27c   :  { %v1298_v7 = vmax.f32 %v1282_v62, 0.0  ;;  %v1283_v25 = vadd.f32 %v8570_v13, %v1262_v21  ;;  %v1263_v42 = vmul.f32 %v8544_v55, %v8635_v5  ;;  %7593 = vmatprep.mubr.msk.f32.mxu0 %vm1394_vm2, %v1342_v24  ;;  %v1212_v9 = vpop.permute.xlu0 %1211 }
 0x27d   :  { %v8644_v17 = vsel %vm370_vm0, %v8395_v2, %v1212_v9  ;;  %7594 = vmatmul.mubr.msk.f32.vlgmr.msra.gmra.mrb[4].mxu0 %vm1394_vm2, %v1359_v1  ;;  %v1385_v39 = vrot.slane %v1377_v35, %v8338_v23 }
 0x27e   :  { %v1284_v47 = vadd.f32 %v8570_v13, %v1263_v42  ;;  %v1266_v26 = vmul.f32 %v8544_v55, %v8644_v17  ;;  %v1214_v27 = vpop.permute.xlu1 %1213  ;;  %v1360_v28 = vcombine.low %v1297_v16, %v1298_v7  ;;  %v1299_v30 = vmax.f32 %v1283_v25, 0.0 }
 0x27f   :  { %v8652_v29 = vsel %vm370_vm0, %v8398_v3, %v1214_v27 }
 0x280   :  { %v1300_v31 = vmax.f32 %v1284_v47, 0.0  ;;  %v1287_v32 = vadd.f32 %v8570_v13, %v1266_v26  ;;  %v1267_v2 = vmul.f32 %v8544_v55, %v8652_v29  ;;  %v1368_v6 = vrot.slane %v1360_v28, %v8338_v23 }
 0x282   :  { %v1361_v34 = vcombine.low %v1299_v30, %v1300_v31  ;;  %v1288_v52 = vadd.f32 %v8570_v13, %v1267_v2  ;;  %v1303_v38 = vmax.f32 %v1287_v32, 0.0  ;;  %v7194_v13 = vld [vmem:[%s8667_s4 + $0x10] sm:$0xff] }
 0x283   :  { %v7965_v48 = vpack.c.bf16 %v7195_v46, %v7194_v13 }
 0x284   :  { %v1375_v14 = vrot.slane %v1361_v34, %v8338_v23  ;;  %v1304_v40 = vmax.f32 %v1288_v52, 0.0 }
 0x285   :  { %7966 = vmatprep.subr.bf16.mxu0 %v7965_v48 }
 0x286   :  { %v1378_v3 = vcombine.low %v1303_v38, %v1304_v40  ;;  %v1376_v43 = vcombine.low %v1368_v6, %v1375_v14  ;;  %7968 = vmatpush3.bf16.msra.mxu0 %v7965_v48 }
 0x287   :  { %7970 = vmatprep.subr.bf16.mxu0 %v7969_v36 }
 0x288   :  { %v1392_v45 = vrot.slane %v1378_v3, %v8338_v23  ;;  %7596 = vmatprep.mubr.msk.f32.mxu0 %vm1394_vm2, %v1376_v43  ;;  %v7204_v43 = vld [vmem:[%s8667_s4 + $0x20] sm:$0xff] }
 0x28a   :  { %v1393_v55 = vcombine.low %v1385_v39, %v1392_v45  ;;  %v7205_v39 = vld [vmem:[%s8667_s4 + $0x28] sm:$0xff]  ;;  %s7124_s4 = sld [smem:[%s9577_s0 + %s8254_s1]]  }
 0x28b   :  { %s7130_s1 = sld [smem:[%s9577_s0 + %s8261_s28]]  }
 0x28c   :  { %7597 = vmatmul.mubr.msk.f32.gmra.mrb[6].mxu0 %vm1394_vm2, %v1393_v55 }
 0x350   :  { %v7595_v56 = vpop.f32.mrb[4].mxu0 }
 0x351   :  { %v1494_v58 = vmul.f32 %v7595_v56, %v7192_v50  ;;  %v1469_v59 = vpop.f32.mrb[5].mxu0 }
 0x352   :  { %v1493_v10 = vmul.f32 %v7192_v50, %v1469_v59 }
 0x353   :  { %v1503_v62 = vadd.f32 %v7193_v53, %v1494_v58  ;;  %v7973_v58 = vpack.c.bf16 %v7205_v39, %v7204_v43 }
 0x354   :  { %v1502_v21 = vadd.f32 %v7193_v53, %v1493_v10 }
 0x355   :  { %v1507_v63 = vmax.f32 %v1503_v62, 0.0 }
 0x356   :  { %v1506_v24 = vmax.f32 %v1502_v21, 0.0 }
 0x357   :  { %v1531_v1 = vcombine.high %v1507_v63, %v1507_v63  ;;  %v1538_v4 = vrot.slane %v1507_v63, %v8338_v23 }
 0x358   :  { %v1514_v7 = vcombine.high %v1506_v24, %v1506_v24  ;;  %v1521_v25 = vrot.slane %v1506_v24, %v8338_v23 }
 0x359   :  { %v1545_v42 = vrot.slane %v1531_v1, %v8338_v23  ;;  %v1546_v9 = vcombine.high %v1538_v4, %v1538_v4 }
 0x35a   :  { %v1528_v12 = vrot.slane %v1514_v7, %v8338_v23  ;;  %v1529_v16 = vcombine.high %v1521_v25, %v1521_v25 }
 0x35b   :  { %v1547_v47 = vcombine.high %v1545_v42, %v1545_v42  ;;  %v1766_v26 = vcombine.low %v1546_v9, %v1545_v42  ;;  %v1604_v30 = vcombine.low %v1538_v4, %v1546_v9 }
 0x35c   :  { %v1530_v27 = vcombine.high %v1528_v12, %v1528_v12  ;;  %v1587_v11 = vcombine.low %v1521_v25, %v1529_v16  ;;  %v1749_v28 = vcombine.low %v1529_v16, %v1528_v12 }
 0x35d   :  { %v1605_v31 = vcombine.low %v1545_v42, %v1547_v47  ;;  %v8682_v34 = vrot.slane %v1766_v26, %v8338_v23  ;;  %v1612_v45 = vrot.slane %v1604_v30, %v8338_v23 }
 0x35e   :  { %v1765_v32 = vcombine.low %v1530_v27, %v1538_v4  ;;  %v1588_v2 = vcombine.low %v1528_v12, %v1530_v27  ;;  %v1595_v35 = vrot.slane %v1587_v11, %v8338_v23  ;;  %v1763_v3 = vrot.slane %v1749_v28, %v8338_v23 }
 0x35f   :  { %v1619_v33 = vrot.slane %v1605_v31, %v8338_v23  ;;  %v7598_v52 = vpop.f32.mrb[6].mxu0  ;;  %v1748_v28 = vcombine.low %v8242_v19, %v1521_v25 }
 0x360   :  { %v8686_v6 = vrot.slane %v1765_v32, %v8338_v23  ;;  %v1496_v14 = vmul.f32 %v7598_v52, %v7192_v50  ;;  %v1479_v38 = vpop.f32.mrb[7].mxu0  ;;  %v1602_v40 = vrot.slane %v1588_v2, %v8338_v23 }
 0x361   :  { %v1495_v55 = vmul.f32 %v7192_v50, %v1479_v38  ;;  %v1620_v61 = vcombine.low %v1612_v45, %v1619_v33 }
 0x362   :  { %v1505_v13 = vadd.f32 %v7193_v53, %v1496_v14  ;;  %v1603_v46 = vcombine.low %v1595_v35, %v1602_v40  ;;  %v1781_v48 = vcombine.low %v8686_v6, %v8682_v34  ;;  %v1912_v49 = vcombine.low %v1763_v3, %v8686_v6 }
 0x363   :  { %v1504_v56 = vadd.f32 %v7193_v53, %v1495_v55  ;;  %v1756_v40 = vrot.slane %v1748_v28, %v8338_v23 }
 0x364   :  { %v1509_v59 = vmax.f32 %v1505_v13, 0.0  ;;  %7603 = vmatprep.mubr.msk.f32.mxu0 %vm631_vm1, %v1603_v46 }
 0x365   :  { %v1508_v10 = vmax.f32 %v1504_v56, 0.0  ;;  %7604 = vmatmul.mubr.msk.f32.vlgmr.msra.gmra.mrb[8].mxu0 %vm631_vm1, %v1620_v61  ;;  %v1764_v45 = vcombine.low %v1756_v40, %v1763_v3 }
 0x366   :  { %v1565_v62 = vcombine.high %v1509_v59, %v1509_v59  ;;  %v1572_v21 = vrot.slane %v1509_v59, %v8338_v23  ;;  %7972 = vmatpush3.bf16.msra.mxu0 %v7969_v36 }
 0x367   :  { %v1548_v50 = vcombine.high %v1508_v10, %v1508_v10  ;;  %v1555_v63 = vrot.slane %v1508_v10, %v8338_v23  ;;  %7974 = vmatprep.subr.bf16.mxu0 %v7973_v58 }
 0x368   :  { %v1579_v24 = vrot.slane %v1565_v62, %v8338_v23  ;;  %v1580_v1 = vcombine.high %v1572_v21, %v1572_v21 }
 0x369   :  { %v1562_v53 = vrot.slane %v1548_v50, %v8338_v23  ;;  %v1563_v4 = vcombine.high %v1555_v63, %v1555_v63  ;;  %v1782_v7 = vcombine.low %v1547_v47, %v1555_v63 }
 0x36a   :  { %v1581_v42 = vcombine.high %v1579_v24, %v1579_v24  ;;  %v1638_v27 = vcombine.low %v1572_v21, %v1580_v1  ;;  %v1800_v36 = vcombine.low %v1580_v1, %v1579_v24 }
 0x36b   :  { %v1564_v9 = vcombine.high %v1562_v53, %v1562_v53  ;;  %v1621_v12 = vcombine.low %v1555_v63, %v1563_v4  ;;  %v1783_v16 = vcombine.low %v1563_v4, %v1562_v53  ;;  %v1790_v26 = vrot.slane %v1782_v7, %v8338_v23  ;;  %v2328_v4 = vld [vmem:[%s8730_s12 + $0x8] sm:$0xff] }
 0x36c   :  { %v1639_v11 = vcombine.low %v1579_v24, %v1581_v42  ;;  %v1646_v6 = vrot.slane %v1638_v27, %v8338_v23  ;;  %v1814_v38 = vrot.slane %v1800_v36, %v8338_v23  ;;  %v1915_v55 = vcombine.low %v1581_v42, %v8242_v19  ;;  %v2329_v27 = vld [vmem:[%s8730_s12 + $0x10] sm:$0xff] }
 0x36d   :  { %v1622_v30 = vcombine.low %v1562_v53, %v1564_v9  ;;  %v1797_v31 = vrot.slane %v1783_v16, %v8338_v23  ;;  %v1913_v32 = vcombine.low %v8682_v34, %v1790_v26  ;;  %v1799_v33 = vcombine.low %v1564_v9, %v1572_v21  ;;  %v2327_v53 = vld [vmem:[%s8730_s12] sm:$0xff] }
 0x36e   :  { %v1653_v2 = vrot.slane %v1639_v11, %v8338_v23  ;;  %v1629_v47 = vrot.slane %v1621_v12, %v8338_v23  ;;  %v1922_v13 = vrot.slane %v1915_v55, %v8338_v23  ;;  %v7977_v16 = vpack.c.bf16 %v2328_v4, %v2327_v53  ;;  %v2330_v11 = vld [vmem:[%s8730_s12 + $0x18] sm:$0xff] }
 0x36f   :  { %v1636_v52 = vrot.slane %v1622_v30, %v8338_v23  ;;  %v1798_v35 = vcombine.low %v1790_v26, %v1797_v31  ;;  %v1807_v14 = vrot.slane %v1799_v33, %v8338_v23  ;;  %v7981_v30 = vpack.c.bf16 %v2330_v11, %v2329_v27  ;;  %v2332_v33 = vld [vmem:[%s8730_s12 + $0x28] sm:$0xff] }
 0x370   :  { %v1654_v43 = vcombine.low %v1646_v6, %v1653_v2  ;;  %v1923_v3 = vcombine.low %v1814_v38, %v1922_v13  ;;  %7978 = vmatprep.subr.bf16.mxu1 %v7977_v16  ;;  %v2331_v2 = vld [vmem:[%s8730_s12 + $0x20] sm:$0xff] }
 0x371   :  { %v1637_v25 = vcombine.low %v1629_v47, %v1636_v52  ;;  %v1815_v39 = vcombine.low %v1807_v14, %v1814_v38  ;;  %v1914_v34 = vcombine.low %v1797_v31, %v1807_v14  ;;  %7980 = vmatpush3.bf16.msra.mxu1 %v7977_v16  ;;  %v7985_v6 = vpack.c.bf16 %v2332_v33, %v2331_v2 }
 0x372   :  { %7982 = vmatprep.subr.bf16.mxu1 %v7981_v30 }
 0x373   :  { %7606 = vmatprep.mubr.msk.f32.mxu0 %vm631_vm1, %v1637_v25 }
 0x374   :  { %7607 = vmatmul.mubr.msk.f32.gmra.mrb[10].mxu0 %vm631_vm1, %v1654_v43 }
 0x375   :  { %7613 = vmatprep.mubr.msk.f32.mxu0 %vm631_vm1, %v1764_v45  ;;  %7984 = vmatpush3.bf16.msra.mxu1 %v7981_v30 }
 0x376   :  { %7986 = vmatprep.subr.bf16.mxu1 %v7985_v6 }
 0x378   :  { %7614 = vmatmul.mubr.msk.f32.vlgmr.msra.gmra.mrb[8].mxu0 %vm631_vm1, %v1781_v48 }
 0x379   :  { %7976 = vmatpush3.bf16.msra.mxu0 %v7973_v58  ;;  %7616 = vmatprep.mubr.msk.f32.mxu0 %vm631_vm1, %v1798_v35 }
 0x37a   :  { %7988 = vmatpush3.bf16.msra.mxu1 %v7985_v6 }
 0x37c   :  { %7617 = vmatmul.mubr.msk.f32.gmra.mrb[10].mxu0 %vm631_vm1, %v1815_v39 }
 0x37d   :  { %7623 = vmatprep.mubr.msk.f32.mxu0 %vm631_vm1, %v1912_v49 }
 0x380   :  { %7624 = vmatmul.mubr.msk.f32.vlgmr.msra.gmra.mrb[8].mxu0 %vm631_vm1, %v1913_v32 }
 0x381   :  { %7626 = vmatprep.mubr.msk.f32.mxu0 %vm631_vm1, %v1914_v34 }
 0x384   :  { %7627 = vmatmul.mubr.msk.f32.gmra.mrb[10].mxu0 %vm631_vm1, %v1923_v3 }
 0x453   :  { %v7625_v46 = vpop.f32.mrb[8].mxu0 }
 0x454   :  { %v2042_v48 = vcombine.high %v7625_v46, %v7625_v46  ;;  %v2049_v61 = vrot.slane %v7625_v46, %v8338_v23  ;;  %v1998_v56 = vpop.f32.mrb[9].mxu0 }
 0x455   :  { %v2032_v58 = vrot.slane %v1998_v56, %v8338_v23  ;;  %v2025_v21 = vcombine.high %v1998_v56, %v1998_v56 }
 0x456   :  { %v2057_v49 = vcombine.high %v2049_v61, %v2049_v61  ;;  %v2127_v59 = vrot.slane %v2049_v61, %v8338_v23  ;;  %v2056_v62 = vrot.slane %v2042_v48, %v8338_v23 }
 0x457   :  { %v7628_v10 = vpop.f32.mrb[10].mxu0  ;;  %v2040_v50 = vcombine.high %v2032_v58, %v2032_v58  ;;  %v2099_v1 = vrot.slane %v2032_v58, %v8338_v23  ;;  %v2039_v42 = vrot.slane %v2025_v21, %v8338_v23 }
 0x458   :  { %2213 = vrot.lane.b32.xlu0 %v2127_v59, %s8249_s13  ;;  %v2008_v63 = vpop.f32.mrb[11].mxu0  ;;  %v2134_v24 = vrot.slane %v2057_v49, %v8338_v23  ;;  %v2058_v7 = vcombine.high %v2056_v62, %v2056_v62  ;;  %v2141_v12 = vrot.slane %v2056_v62, %v8338_v23  ;;  %v2083_v26 = vrot.slane %v7628_v10, %v8338_v23  ;;  %v8781_v62 = vld [vmem:[%s7120_s17] ss:$0 sm:$0xff] }
 0x459   :  { %v2106_v9 = vrot.slane %v2040_v50, %v8338_v23  ;;  %v2041_v36 = vcombine.high %v2039_v42, %v2039_v42  ;;  %v2113_v31 = vrot.slane %v2039_v42, %v8338_v23  ;;  %v2059_v32 = vcombine.high %v2008_v63, %v2008_v63 }
 0x45a   :  { %2215 = vrot.lane.b32.xlu1 %v2134_v24, %s8249_s13  ;;  %v2148_v28 = vrot.slane %v2058_v7, %v8338_v23  ;;  %v2091_v47 = vcombine.high %v2083_v26, %v2083_v26  ;;  %v2066_v52 = vrot.slane %v2008_v63, %v8338_v23  ;;  %v2183_v14 = vrot.slane %v2083_v26, %v8338_v23 }
 0x45b   :  { %v2120_v35 = vrot.slane %v2041_v36, %v8338_v23  ;;  %v2076_v38 = vcombine.high %v7628_v10, %v7628_v10  ;;  %v2073_v25 = vrot.slane %v2059_v32, %v8338_v23 }
 0x45c   :  { %2205 = vrot.lane.b32.xlu0 %v2099_v1, %s8249_s13  ;;  %v2074_v40 = vcombine.high %v2066_v52, %v2066_v52  ;;  %v2190_v43 = vrot.slane %v2091_v47, %v8338_v23  ;;  %v2155_v39 = vrot.slane %v2066_v52, %v8338_v23 }
 0x45d   :  { %v2090_v34 = vrot.slane %v2076_v38, %v8338_v23  ;;  %v2075_v45 = vcombine.high %v2073_v25, %v2073_v25  ;;  %v2169_v13 = vrot.slane %v2073_v25, %v8338_v23 }
 0x45e   :  { %2207 = vrot.lane.b32.xlu1 %v2106_v9, %s8249_s13  ;;  %v2162_v55 = vrot.slane %v2074_v40, %v8338_v23 }
 0x45f   :  { %v2092_v3 = vcombine.high %v2090_v34, %v2090_v34  ;;  %v2176_v46 = vrot.slane %v2075_v45, %v8338_v23  ;;  %v2197_v48 = vrot.slane %v2090_v34, %v8338_v23 }
 0x460   :  { %2217 = vrot.lane.b32.xlu0 %v2141_v12, %s8249_s13 }
 0x461   :  { %v2204_v61 = vrot.slane %v2092_v3, %v8338_v23 }
 0x462   :  { %2219 = vrot.lane.b32.xlu1 %v2148_v28, %s8249_s13 }
 0x464   :  { %2209 = vrot.lane.b32.xlu0 %v2113_v31, %s8249_s13 }
 0x466   :  { %2211 = vrot.lane.b32.xlu1 %v2120_v35, %s8249_s13 }
 0x468   :  { %2229 = vrot.lane.b32.xlu0 %v2183_v14, %s8249_s13 }
 0x46a   :  { %2231 = vrot.lane.b32.xlu1 %v2190_v43, %s8249_s13 }
 0x46c   :  { %2221 = vrot.lane.b32.xlu0 %v2155_v39, %s8249_s13 }
 0x46e   :  { %2223 = vrot.lane.b32.xlu1 %v2162_v55, %s8249_s13 }
 0x470   :  { %2225 = vrot.lane.b32.xlu0 %v2169_v13, %s8249_s13 }
 0x472   :  { %2227 = vrot.lane.b32.xlu1 %v2176_v46, %s8249_s13 }
 0x474   :  { %2233 = vrot.lane.b32.xlu0 %v2197_v48, %s8249_s13 }
 0x476   :  { %2235 = vrot.lane.b32.xlu1 %v2204_v61, %s8249_s13 }
 0x4ca   :  { %v2214_v56 = vpop.permute.xlu0 %2213 }
 0x4cb   :  { %v2257_v63 = vsel %vm1394_vm2, %v8548_v57, %v2214_v56 }
 0x4cc   :  { %v2216_v58 = vpop.permute.xlu1 %2215 }
 0x4cd   :  { %v2258_v59 = vsel %vm1394_vm2, %v8538_v51, %v2216_v58 }
 0x4ce   :  { %v2206_v49 = vpop.permute.xlu0 %2205  ;;  %v2279_v53 = vmul.f32 %v8781_v62, %v2258_v59 }
 0x4cf   :  { %v2253_v21 = vsel %vm1394_vm2, %v8542_v54, %v2206_v49  ;;  %v8795_v54 = vld [vmem:[%s7120_s17 + $0x1] ss:$0 sm:$0xff]  ;;  %s9302_s17 = sld [smem:[%s9577_s0 + %s8244_s26]]  }
 0x4d0   :  { %v2208_v10 = vpop.permute.xlu1 %2207  ;;  %v2274_v4 = vmul.f32 %v8781_v62, %v2253_v21  ;;  %v2300_v26 = vadd.f32 %v8795_v54, %v2279_v53 }
 0x4d1   :  { %v2254_v50 = vsel %vm1394_vm2, %v8580_v8, %v2208_v10  ;;  %v2278_v8 = vmul.f32 %v8781_v62, %v2257_v63 }
 0x4d2   :  { %v2275_v24 = vmul.f32 %v8781_v62, %v2254_v50  ;;  %v2218_v1 = vpop.permute.xlu0 %2217  ;;  %v2295_v11 = vadd.f32 %v8795_v54, %v2274_v4 }
 0x4d3   :  { %v2259_v51 = vsel %vm1394_vm2, %v8558_v22, %v2218_v1 }
 0x4d4   :  { %v2280_v7 = vmul.f32 %v8781_v62, %v2259_v51  ;;  %v2220_v42 = vpop.permute.xlu1 %2219  ;;  %v2296_v9 = vadd.f32 %v8795_v54, %v2275_v24  ;;  %v2311_v6 = vmax.f32 %v2295_v11, 0.0 }
 0x4d5   :  { %v2260_v57 = vsel %vm1394_vm2, %v8568_v0, %v2220_v42  ;;  %v2299_v0 = vadd.f32 %v8795_v54, %v2278_v8 }
 0x4d6   :  { %v2281_v12 = vmul.f32 %v8781_v62, %v2260_v57  ;;  %v2210_v16 = vpop.permute.xlu0 %2209  ;;  %v2301_v22 = vadd.f32 %v8795_v54, %v2280_v7  ;;  %v2312_v32 = vmax.f32 %v2296_v9, 0.0 }
 0x4d7   :  { %v2255_v27 = vsel %vm1394_vm2, %v8554_v60, %v2210_v16  ;;  %v2316_v60 = vmax.f32 %v2300_v26, 0.0  ;;  %v2315_v25 = vmax.f32 %v2299_v0, 0.0 }
 0x4d8   :  { %v2302_v36 = vadd.f32 %v8795_v54, %v2281_v12  ;;  %v2276_v28 = vmul.f32 %v8781_v62, %v2255_v27  ;;  %v2212_v30 = vpop.permute.xlu1 %2211  ;;  %v2317_v35 = vmax.f32 %v2301_v22, 0.0  ;;  %v2349_v43 = vcombine.low %v2311_v6, %v2312_v32 }
 0x4d9   :  { %v2256_v31 = vsel %vm1394_vm2, %v8589_v18, %v2212_v30  ;;  %v2366_v55 = vcombine.low %v2315_v25, %v2316_v60  ;;  %v2650_v25 = vld [vmem:[%s7123_s21 + $0x8] sm:$0xff] }
 0x4da   :  { %v2318_v2 = vmax.f32 %v2302_v36, 0.0  ;;  %v2297_v33 = vadd.f32 %v8795_v54, %v2276_v28  ;;  %v2277_v47 = vmul.f32 %v8781_v62, %v2256_v31  ;;  %v2230_v52 = vpop.permute.xlu0 %2229 }
 0x4db   :  { %v2265_v46 = vsel %vm1394_vm2, %v8606_v20, %v2230_v52  ;;  %v2374_v20 = vrot.slane %v2366_v55, %v8338_v23 }
 0x4dc   :  { %v2298_v14 = vadd.f32 %v8795_v54, %v2277_v47  ;;  %v2232_v38 = vpop.permute.xlu1 %2231  ;;  %v2367_v40 = vcombine.low %v2317_v35, %v2318_v2  ;;  %v2313_v39 = vmax.f32 %v2297_v33, 0.0  ;;  %v2286_v21 = vmul.f32 %v8781_v62, %v2265_v46 }
 0x4dd   :  { %v2266_v18 = vsel %vm1394_vm2, %v8598_v41, %v2232_v38  ;;  %v2357_v41 = vrot.slane %v2349_v43, %v8338_v23  ;;  %v2651_v43 = vld [vmem:[%s7123_s21 + $0x10] sm:$0xff] }
 0x4de   :  { %v2314_v34 = vmax.f32 %v2298_v14, 0.0  ;;  %v2222_v45 = vpop.permute.xlu0 %2221  ;;  %v2381_v61 = vrot.slane %v2367_v40, %v8338_v23  ;;  %v2287_v56 = vmul.f32 %v8781_v62, %v2266_v18  ;;  %v2307_v9 = vadd.f32 %v8795_v54, %v2286_v21 }
 0x4df   :  { %v2261_v13 = vsel %vm1394_vm2, %v8602_v44, %v2222_v45 }
 0x4e0   :  { %v2350_v3 = vcombine.low %v2313_v39, %v2314_v34  ;;  %v2224_v48 = vpop.permute.xlu1 %2223  ;;  %v2282_v58 = vmul.f32 %v8781_v62, %v2261_v13  ;;  %v2382_v51 = vcombine.low %v2374_v20, %v2381_v61  ;;  %v2308_v4 = vadd.f32 %v8795_v54, %v2287_v56  ;;  %v7217_v20 = vld [vmem:[%s7122_s25 + $0x1] ss:$0 sm:$0xff] }
 0x4e1   :  { %v2262_v49 = vsel %vm1394_vm2, %v8615_v15, %v2224_v48  ;;  %v2323_v32 = vmax.f32 %v2307_v9, 0.0 }
 0x4e2   :  { %v2364_v59 = vrot.slane %v2350_v3, %v8338_v23  ;;  %v2283_v44 = vmul.f32 %v8781_v62, %v2262_v49  ;;  %v2226_v10 = vpop.permute.xlu0 %2225  ;;  %v2303_v50 = vadd.f32 %v8795_v54, %v2282_v58  ;;  %v2324_v27 = vmax.f32 %v2308_v4, 0.0  ;;  %v7216_v49 = vld [vmem:[%s7122_s25] ss:$0 sm:$0xff] }
 0x4e3   :  { %v2263_v63 = vsel %vm1394_vm2, %v8627_v37, %v2226_v10 }
 0x4e4   :  { %v2304_v24 = vadd.f32 %v8795_v54, %v2283_v44  ;;  %v2284_v15 = vmul.f32 %v8781_v62, %v2263_v63  ;;  %v2228_v1 = vpop.permute.xlu1 %2227  ;;  %v2365_v53 = vcombine.low %v2357_v41, %v2364_v59  ;;  %v2319_v12 = vmax.f32 %v2303_v50, 0.0 }
 0x4e5   :  { %v2264_v7 = vsel %vm1394_vm2, %v8635_v5, %v2228_v1  ;;  %v2400_v33 = vcombine.low %v2323_v32, %v2324_v27 }
 0x4e6   :  { %v2320_v42 = vmax.f32 %v2304_v24, 0.0  ;;  %v2305_v8 = vadd.f32 %v8795_v54, %v2284_v15  ;;  %v2285_v57 = vmul.f32 %v8781_v62, %v2264_v7  ;;  %7641 = vmatprep.mubr.msk.f32.mxu1 %vm2417_vm3, %v2365_v53  ;;  %v2234_v37 = vpop.permute.xlu0 %2233 }
 0x4e7   :  { %v2267_v16 = vsel %vm1394_vm2, %v8644_v17, %v2234_v37  ;;  %7642 = vmatmul.mubr.msk.f32.vlgmr.msra.gmra.mrb[4].mxu1 %vm2417_vm3, %v2382_v51 }
 0x4e8   :  { %v2306_v26 = vadd.f32 %v8795_v54, %v2285_v57  ;;  %v2288_v5 = vmul.f32 %v8781_v62, %v2267_v16  ;;  %v2236_v22 = vpop.permute.xlu1 %2235  ;;  %v2383_v11 = vcombine.low %v2319_v12, %v2320_v42  ;;  %v2321_v28 = vmax.f32 %v2305_v8, 0.0 }
 0x4e9   :  { %v2268_v36 = vsel %vm1394_vm2, %v8652_v29, %v2236_v22  ;;  %v2408_v29 = vrot.slane %v2400_v33, %v8338_v23 }
 0x4ea   :  { %v2322_v30 = vmax.f32 %v2306_v26, 0.0  ;;  %v2309_v0 = vadd.f32 %v8795_v54, %v2288_v5  ;;  %v2289_v31 = vmul.f32 %v8781_v62, %v2268_v36  ;;  %v2391_v47 = vrot.slane %v2383_v11, %v8338_v23 }
 0x4ec   :  { %v2384_v17 = vcombine.low %v2321_v28, %v2322_v30  ;;  %v2310_v2 = vadd.f32 %v8795_v54, %v2289_v31  ;;  %v2325_v60 = vmax.f32 %v2309_v0, 0.0  ;;  %v2649_v54 = vld [vmem:[%s7123_s21] sm:$0xff] }
 0x4ed   :  { %v7989_v40 = vpack.c.bf16 %v2650_v25, %v2649_v54 }
 0x4ee   :  { %v2398_v52 = vrot.slane %v2384_v17, %v8338_v23  ;;  %v2326_v35 = vmax.f32 %v2310_v2, 0.0 }
 0x4ef   :  { %7990 = vmatprep.subr.bf16.mxu1 %v7989_v40 }
 0x4f0   :  { %v2401_v6 = vcombine.low %v2325_v60, %v2326_v35  ;;  %v2399_v14 = vcombine.low %v2391_v47, %v2398_v52  ;;  %7992 = vmatpush3.bf16.msra.mxu1 %v7989_v40 }
 0x4f1   :  { %7651 = vmatprep.subr.mxu1 %v2651_v43 }
 0x4f2   :  { %v2415_v38 = vrot.slane %v2401_v6, %v8338_v23  ;;  %7644 = vmatprep.mubr.msk.f32.mxu1 %vm2417_vm3, %v2399_v14 }
 0x4f4   :  { %v2416_v62 = vcombine.low %v2408_v29, %v2415_v38  ;;  %7652 = vmatpush3.msra.mxu1 %v2651_v43 }
 0x4f6   :  { %7645 = vmatmul.mubr.msk.f32.gmra.mrb[6].mxu1 %vm2417_vm3, %v2416_v62  ;;  %vm7106_vm3 = vcmask 1024  }
 0x5ba   :  { %v7643_v39 = vpop.f32.mrb[4].mxu1 }
 0x5bb   :  { %v2532_v34 = vcombine.high %v7643_v39, %v7643_v39  ;;  %v2539_v18 = vrot.slane %v7643_v39, %v8338_v23  ;;  %v2492_v45 = vpop.f32.mrb[5].mxu1 }
 0x5bc   :  { %v2515_v55 = vcombine.high %v2492_v45, %v2492_v45  ;;  %v2522_v13 = vrot.slane %v2492_v45, %v8338_v23 }
 0x5bd   :  { %v2546_v3 = vrot.slane %v2532_v34, %v8338_v23  ;;  %v2547_v46 = vcombine.high %v2539_v18, %v2539_v18 }
 0x5be   :  { %v2529_v48 = vrot.slane %v2515_v55, %v8338_v23  ;;  %v2530_v61 = vcombine.high %v2522_v13, %v2522_v13 }
 0x5bf   :  { %v2548_v56 = vcombine.high %v2546_v3, %v2546_v3  ;;  %v2601_v58 = vadd.f32 %v2547_v46, %v2539_v18 }
 0x5c0   :  { %v2531_v41 = vcombine.high %v2529_v48, %v2529_v48  ;;  %v2599_v59 = vadd.f32 %v2530_v61, %v2522_v13 }
 0x5c1   :  { %v2602_v44 = vadd.f32 %v2548_v56, %v2546_v3  ;;  %v8869_v10 = vmul.f32 0.5, %v2601_v58 }
 0x5c2   :  { %v2600_v21 = vadd.f32 %v2531_v41, %v2529_v48  ;;  %v8871_v50 = vmul.f32 0.5, %v2599_v59 }
 0x5c3   :  { %v8873_v63 = vmul.f32 0.5, %v2602_v44  ;;  %v2622_v24 = vmul.f32 %v7216_v49, %v8869_v10  ;;  %v7223_v44 = vld [vmem:[%s8906_s30 + $0x18] sm:$0xff] }
 0x5c4   :  { %v8876_v15 = vmul.f32 0.5, %v2600_v21  ;;  %v2620_v1 = vmul.f32 %v7216_v49, %v8871_v50  ;;  %v2826_v21 = vld [vmem:[%s8906_s30] sm:$0xff] }
 0x5c5   :  { %v2623_v53 = vmul.f32 %v7216_v49, %v8873_v63  ;;  %v2635_v51 = vadd.f32 %v7217_v20, %v2622_v24  ;;  %v2827_v24 = vld [vmem:[%s8906_s30 + $0x8] sm:$0xff] }
 0x5c6   :  { %v2621_v4 = vmul.f32 %v7216_v49, %v8876_v15  ;;  %v2633_v7 = vadd.f32 %v7217_v20, %v2620_v1  ;;  %v7997_v1 = vpack.c.bf16 %v2827_v24, %v2826_v21 }
 0x5c7   :  { %v2636_v42 = vadd.f32 %v7217_v20, %v2623_v53  ;;  %v2643_v57 = vmax.f32 %v2635_v51, 0.0  ;;  %v7220_v53 = vld [vmem:[%s7124_s4] ss:$0 sm:$0xff] }
 0x5c8   :  { %v2634_v8 = vadd.f32 %v7217_v20, %v2621_v4  ;;  %v2641_v12 = vmax.f32 %v2633_v7, 0.0  ;;  %v7221_v4 = vld [vmem:[%s7124_s4 + $0x1] ss:$0 sm:$0xff] }
 0x5c9   :  { %v2644_v37 = vmax.f32 %v2636_v42, 0.0  ;;  %v7646_v9 = vpop.f32.mrb[6].mxu1 }
 0x5ca   :  { %v2642_v16 = vmax.f32 %v2634_v8, 0.0  ;;  %v2566_v26 = vcombine.high %v7646_v9, %v7646_v9  ;;  %v2573_v5 = vrot.slane %v7646_v9, %v8338_v23  ;;  %v2502_v22 = vpop.f32.mrb[7].mxu1 }
 0x5cb   :  { %v2661_v27 = vcombine.low %v2643_v57, %v2644_v37  ;;  %v2549_v11 = vcombine.high %v2502_v22, %v2502_v22  ;;  %v2556_v36 = vrot.slane %v2502_v22, %v8338_v23 }
 0x5cc   :  { %v2660_v28 = vcombine.low %v2641_v12, %v2642_v16  ;;  %v2580_v30 = vrot.slane %v2566_v26, %v8338_v23  ;;  %v2581_v0 = vcombine.high %v2573_v5, %v2573_v5 }
 0x5cd   :  { %v2563_v31 = vrot.slane %v2549_v11, %v8338_v23  ;;  %v2564_v32 = vcombine.high %v2556_v36, %v2556_v36  ;;  %v2675_v17 = vrot.slane %v2661_v27, %v8338_v23 }
 0x5ce   :  { %v2582_v2 = vcombine.high %v2580_v30, %v2580_v30  ;;  %v2605_v33 = vadd.f32 %v2581_v0, %v2573_v5  ;;  %v2668_v47 = vrot.slane %v2660_v28, %v8338_v23 }
 0x5cf   :  { %v2565_v52 = vcombine.high %v2563_v31, %v2563_v31  ;;  %v2603_v60 = vadd.f32 %v2564_v32, %v2556_v36 }
 0x5d0   :  { %v2606_v35 = vadd.f32 %v2582_v2, %v2580_v30  ;;  %v8887_v6 = vmul.f32 0.5, %v2605_v33  ;;  %v2676_v14 = vcombine.low %v2668_v47, %v2675_v17 }
 0x5d1   :  { %v2604_v29 = vadd.f32 %v2565_v52, %v2563_v31  ;;  %v8889_v38 = vmul.f32 0.5, %v2603_v60 }
 0x5d2   :  { %v8891_v62 = vmul.f32 0.5, %v2606_v35  ;;  %v2626_v54 = vmul.f32 %v7216_v49, %v8887_v6  ;;  %7653 = vmatprep.mubr.msk.f32.mxu1 %vm2694_vm4, %v2676_v14 }
 0x5d3   :  { %v8895_v25 = vmul.f32 0.5, %v2604_v29  ;;  %v2624_v40 = vmul.f32 %v7216_v49, %v8889_v38 }
 0x5d4   :  { %v2627_v43 = vmul.f32 %v7216_v49, %v8891_v62  ;;  %v2639_v39 = vadd.f32 %v7217_v20, %v2626_v54 }
 0x5d5   :  { %v2625_v34 = vmul.f32 %v7216_v49, %v8895_v25  ;;  %v2637_v18 = vadd.f32 %v7217_v20, %v2624_v40  ;;  %v7222_v49 = vld [vmem:[%s8906_s30 + $0x10] sm:$0xff] }
 0x5d6   :  { %v2640_v45 = vadd.f32 %v7217_v20, %v2627_v43  ;;  %v2647_v13 = vmax.f32 %v2639_v39, 0.0  ;;  %v7228_v43 = vld [vmem:[%s8906_s30 + $0x20] sm:$0xff]  ;;  %v7229_v39 = vld [vmem:[%s8906_s30 + $0x28] sm:$0xff] }
 0x5d7   :  { %v2638_v55 = vadd.f32 %v7217_v20, %v2625_v34  ;;  %v2645_v46 = vmax.f32 %v2637_v18, 0.0  ;;  %v7993_v20 = vpack.c.bf16 %v7223_v44, %v7222_v49 }
 0x5d8   :  { %v2648_v3 = vmax.f32 %v2640_v45, 0.0 }
 0x5d9   :  { %v2646_v48 = vmax.f32 %v2638_v55, 0.0  ;;  %7994 = vmatprep.subr.bf16.mxu1 %v7993_v20 }
 0x5da   :  { %v2678_v61 = vcombine.low %v2647_v13, %v2648_v3 }
 0x5db   :  { %v2677_v56 = vcombine.low %v2645_v46, %v2646_v48  ;;  %v8001_v48 = vpack.c.bf16 %v7229_v39, %v7228_v43 }
 0x5dc   :  { %v2692_v58 = vrot.slane %v2678_v61, %v8338_v23 }
 0x5dd   :  { %v2685_v41 = vrot.slane %v2677_v56, %v8338_v23 }
 0x5df   :  { %v2693_v59 = vcombine.low %v2685_v41, %v2692_v58 }
 0x5e1   :  { %7654 = vmatmul.mubr.msk.f32.vlgmr.msra.gmra.mrb[8].mxu1 %vm2694_vm4, %v2693_v59 }
 0x5e2   :  { %7996 = vmatpush3.bf16.msra.mxu1 %v7993_v20 }
 0x5e3   :  { %7998 = vmatprep.subr.bf16.mxu1 %v7997_v1 }
 0x6b4   :  { %v7655_v51 = vpop.f32.mrb[8].mxu1 }
 0x6b5   :  { %v2780_v7 = vmul.f32 %v7655_v51, %v7220_v53  ;;  %v2765_v42 = vpop.f32.mrb[9].mxu1 }
 0x6b6   :  { %v2779_v8 = vmul.f32 %v7220_v53, %v2765_v42 }
 0x6b7   :  { %v2787_v57 = vadd.f32 %v7221_v4, %v2780_v7 }
 0x6b8   :  { %v2786_v37 = vadd.f32 %v7221_v4, %v2779_v8 }
 0x6b9   :  { %v2789_v9 = vmax.f32 %v2787_v57, 0.0 }
 0x6ba   :  { %v2788_v12 = vmax.f32 %v2786_v37, 0.0 }
 0x6bb   :  { %v2809_v16 = vcombine.high %v2789_v9, %v2789_v9  ;;  %v2816_v26 = vrot.slane %v2789_v9, %v8338_v23 }
 0x6bc   :  { %v2792_v5 = vcombine.high %v2788_v12, %v2788_v12  ;;  %v2799_v22 = vrot.slane %v2788_v12, %v8338_v23  ;;  %v3309_v12 = vld [vmem:[%s7127_s9] sm:$0xff] }
 0x6bd   :  { %v2823_v27 = vrot.slane %v2809_v16, %v8338_v23  ;;  %v2824_v11 = vcombine.high %v2816_v26, %v2816_v26  ;;  %v3310_v16 = vld [vmem:[%s7127_s9 + $0x8] sm:$0xff] }
 0x6be   :  { %v2806_v36 = vrot.slane %v2792_v5, %v8338_v23  ;;  %v2807_v28 = vcombine.high %v2799_v22, %v2799_v22  ;;  %v2944_v47 = vcombine.low %v8242_v19, %v2799_v22 }
 0x6bf   :  { %v2825_v30 = vcombine.high %v2823_v27, %v2823_v27  ;;  %v2962_v0 = vcombine.low %v2824_v11, %v2823_v27  ;;  %v2848_v2 = vcombine.low %v2816_v26, %v2824_v11  ;;  %v3311_v11 = vld [vmem:[%s7127_s9 + $0x10] sm:$0xff] }
 0x6c0   :  { %v2808_v31 = vcombine.high %v2806_v36, %v2806_v36  ;;  %v2831_v32 = vcombine.low %v2799_v22, %v2807_v28  ;;  %v2945_v17 = vcombine.low %v2807_v28, %v2806_v36  ;;  %v2952_v55 = vrot.slane %v2944_v47, %v8338_v23 }
 0x6c1   :  { %v2849_v33 = vcombine.low %v2823_v27, %v2825_v30  ;;  %v2976_v14 = vrot.slane %v2962_v0, %v8338_v23  ;;  %v2856_v18 = vrot.slane %v2848_v2, %v8338_v23  ;;  %v3061_v56 = vcombine.low %v2825_v30, %v8242_v19  ;;  %v7232_v2 = vld [vmem:[%s7126_s14] ss:$0 sm:$0xff] }
 0x6c2   :  { %v2961_v52 = vcombine.low %v2808_v31, %v2816_v26  ;;  %v2832_v60 = vcombine.low %v2806_v36, %v2808_v31  ;;  %v2839_v29 = vrot.slane %v2831_v32, %v8338_v23  ;;  %v2959_v40 = vrot.slane %v2945_v17, %v8338_v23  ;;  %v3312_v36 = vld [vmem:[%s7127_s9 + $0x18] sm:$0xff] }
 0x6c3   :  { %v2863_v35 = vrot.slane %v2849_v33, %v8338_v23  ;;  %v3068_v58 = vrot.slane %v3061_v56, %v8338_v23  ;;  %v8005_v26 = vpack.c.bf16 %v3310_v16, %v3309_v12  ;;  %v8009_v28 = vpack.c.bf16 %v3312_v36, %v3311_v11  ;;  %v7238_v12 = vld [vmem:[%s9013_s18 + $0x10] sm:$0xff]  ;;  %v7239_v16 = vld [vmem:[%s9013_s18 + $0x18] sm:$0xff]  ;;  %v7236_v11 = vld [vmem:[%s7128_s22] ss:$0 sm:$0xff] }
 0x6c4   :  { %v2846_v54 = vrot.slane %v2832_v60, %v8338_v23  ;;  %v2969_v34 = vrot.slane %v2961_v52, %v8338_v23  ;;  %v2960_v61 = vcombine.low %v2952_v55, %v2959_v40 }
 0x6c5   :  { %v2864_v46 = vcombine.low %v2856_v18, %v2863_v35  ;;  %v3069_v41 = vcombine.low %v2976_v14, %v3068_v58  ;;  %8006 = vmatprep.subr.bf16.mxu0 %v8005_v26 }
 0x6c6   :  { %v2847_v45 = vcombine.low %v2839_v29, %v2846_v54  ;;  %v2977_v13 = vcombine.low %v2969_v34, %v2976_v14  ;;  %v3060_v3 = vcombine.low %v2959_v40, %v2969_v34  ;;  %8008 = vmatpush3.bf16.msra.mxu0 %v8005_v26  ;;  %v8013_v26 = vpack.c.bf16 %v7239_v16, %v7238_v12 }
 0x6c7   :  { %8010 = vmatprep.subr.bf16.mxu0 %v8009_v28 }
 0x6c8   :  { %7660 = vmatprep.mubr.msk.f32.mxu1 %vm631_vm1, %v2847_v45 }
 0x6c9   :  { %7661 = vmatmul.mubr.msk.f32.vlgmr.msra.gmra.mrb[10].mxu1 %vm631_vm1, %v2864_v46 }
 0x6ca   :  { %8000 = vmatpush3.bf16.msra.mxu1 %v7997_v1  ;;  %7667 = vmatprep.mubr.msk.f32.mxu1 %vm631_vm1, %v2960_v61 }
 0x6cb   :  { %8002 = vmatprep.subr.bf16.mxu1 %v8001_v48  ;;  %8012 = vmatpush3.bf16.msra.mxu0 %v8009_v28  ;;  %v7237_v28 = vld [vmem:[%s7128_s22 + $0x1] ss:$0 sm:$0xff]  ;;  %s8269_s22 = smov 25  }
 0x6cc   :  { %8014 = vmatprep.subr.bf16.mxu0 %v8013_v26 }
 0x6d1   :  { %7668 = vmatmul.mubr.msk.f32.vlgmr.msra.gmra.mrb[10].mxu1 %vm631_vm1, %v2977_v13 }
 0x6d2   :  { %8004 = vmatpush3.bf16.msra.mxu1 %v8001_v48  ;;  %7674 = vmatprep.mubr.msk.f32.mxu1 %vm631_vm1, %v3060_v3 }
 0x6d9   :  { %7675 = vmatmul.mubr.msk.f32.vlgmr.msra.gmra.mrb[10].mxu1 %vm631_vm1, %v3069_v41 }
 0x7ac   :  { %v7676_v59 = vpop.f32.mrb[10].mxu1 }
 0x7ad   :  { %v3177_v49 = vrot.slane %v7676_v59, %v8338_v23  ;;  %v3140_v44 = vpop.f32.mrb[11].mxu1  ;;  %v3170_v53 = vcombine.high %v7676_v59, %v7676_v59 }
 0x7ae   :  { %v3153_v20 = vcombine.high %v3140_v44, %v3140_v44  ;;  %v3160_v21 = vrot.slane %v3140_v44, %v8338_v23 }
 0x7af   :  { %v3185_v24 = vcombine.high %v3177_v49, %v3177_v49  ;;  %v3221_v1 = vrot.slane %v3177_v49, %v8338_v23  ;;  %v3184_v8 = vrot.slane %v3170_v53, %v8338_v23 }
 0x7b0   :  { %v3167_v51 = vrot.slane %v3153_v20, %v8338_v23  ;;  %v3168_v4 = vcombine.high %v3160_v21, %v3160_v21  ;;  %v3193_v42 = vrot.slane %v3160_v21, %v8338_v23 }
 0x7b1   :  { %3251 = vrot.lane.b32.xlu0 %v3221_v1, %s8255_s5  ;;  %v3228_v7 = vrot.slane %v3185_v24, %v8338_v23  ;;  %v3186_v5 = vcombine.high %v3184_v8, %v3184_v8  ;;  %v3235_v27 = vrot.slane %v3184_v8, %v8338_v23 }
 0x7b2   :  { %v3169_v57 = vcombine.high %v3167_v51, %v3167_v51  ;;  %v3200_v37 = vrot.slane %v3168_v4, %v8338_v23  ;;  %v3207_v9 = vrot.slane %v3167_v51, %v8338_v23 }
 0x7b3   :  { %3253 = vrot.lane.b32.xlu1 %v3228_v7, %s8255_s5  ;;  %v3242_v30 = vrot.slane %v3186_v5, %v8338_v23  ;;  %v3486_v5 = vld [vmem:[%s9013_s18] sm:$0xff] }
 0x7b4   :  { %v3214_v22 = vrot.slane %v3169_v57, %v8338_v23 }
 0x7b5   :  { %3243 = vrot.lane.b32.xlu0 %v3193_v42, %s8255_s5 }
 0x7b7   :  { %3245 = vrot.lane.b32.xlu1 %v3200_v37, %s8255_s5 }
 0x7b9   :  { %3247 = vrot.lane.b32.xlu0 %v3207_v9, %s8255_s5 }
 0x7bb   :  { %3249 = vrot.lane.b32.xlu1 %v3214_v22, %s8255_s5  ;;  %v3487_v22 = vld [vmem:[%s9013_s18 + $0x8] sm:$0xff] }
 0x7bd   :  { %3255 = vrot.lane.b32.xlu0 %v3235_v27, %s8255_s5  ;;  %v8017_v27 = vpack.c.bf16 %v3487_v22, %v3486_v5 }
 0x7bf   :  { %3257 = vrot.lane.b32.xlu1 %v3242_v30, %s8255_s5 }
 0x823   :  { %v3252_v0 = vpop.permute.xlu0 %3251 }
 0x824   :  { %v8974_v47 = vsel %vm2694_vm4, %v8889_v38, %v3252_v0 }
 0x825   :  { %v3254_v31 = vpop.permute.xlu1 %3253 }
 0x826   :  { %v8966_v32 = vsel %vm2694_vm4, %v8895_v25, %v3254_v31  ;;  %v7233_v25 = vld [vmem:[%s7126_s14 + $0x1] ss:$0 sm:$0xff]  ;;  %s7135_s14 = sld [smem:[%s9577_s0 + %s8255_s5]]   ;;  %s8267_s5 = smov 26  }
 0x827   :  { %v3244_v17 = vpop.permute.xlu0 %3243  ;;  %v3285_v35 = vmul.f32 %v7232_v2, %v8966_v32  ;;  %s7137_s21 = sld [smem:[%s9577_s0 + %s8267_s5]]  }
 0x828   :  { %v8970_v33 = vsel %vm2694_vm4, %v8871_v50, %v3244_v17  ;;  %v3284_v50 = vmul.f32 %v7232_v2, %v8974_v47 }
 0x829   :  { %v3280_v52 = vmul.f32 %v7232_v2, %v8970_v33  ;;  %v3246_v60 = vpop.permute.xlu1 %3245  ;;  %v3298_v18 = vadd.f32 %v7233_v25, %v3285_v35 }
 0x82a   :  { %v8980_v14 = vsel %vm2694_vm4, %v8876_v15, %v3246_v60  ;;  %v3297_v46 = vadd.f32 %v7233_v25, %v3284_v50 }
 0x82b   :  { %v3281_v29 = vmul.f32 %v7232_v2, %v8980_v14  ;;  %v3248_v54 = vpop.permute.xlu0 %3247  ;;  %v3293_v40 = vadd.f32 %v7233_v25, %v3280_v52  ;;  %v3306_v41 = vmax.f32 %v3298_v18, 0.0 }
 0x82c   :  { %v8986_v38 = vsel %vm2694_vm4, %v8869_v10, %v3248_v54  ;;  %v3305_v24 = vmax.f32 %v3297_v46, 0.0 }
 0x82d   :  { %v3294_v43 = vadd.f32 %v7233_v25, %v3281_v29  ;;  %v3282_v39 = vmul.f32 %v7232_v2, %v8986_v38  ;;  %v3250_v34 = vpop.permute.xlu1 %3249  ;;  %v3301_v48 = vmax.f32 %v3293_v40, 0.0 }
 0x82e   :  { %v8991_v15 = vsel %vm2694_vm4, %v8873_v63, %v3250_v34 }
 0x82f   :  { %v3302_v45 = vmax.f32 %v3294_v43, 0.0  ;;  %v3295_v55 = vadd.f32 %v7233_v25, %v3282_v39  ;;  %v3283_v13 = vmul.f32 %v7232_v2, %v8991_v15  ;;  %v3256_v3 = vpop.permute.xlu0 %3255 }
 0x830   :  { %v8996_v10 = vsel %vm2694_vm4, %v8887_v6, %v3256_v3  ;;  %v3338_v6 = vcombine.low %v3305_v24, %v3306_v41 }
 0x831   :  { %v3296_v61 = vadd.f32 %v7233_v25, %v3283_v13  ;;  %v3286_v56 = vmul.f32 %v7232_v2, %v8996_v10  ;;  %v3258_v58 = vpop.permute.xlu1 %3257  ;;  %v3321_v59 = vcombine.low %v3301_v48, %v3302_v45  ;;  %v3303_v49 = vmax.f32 %v3295_v55, 0.0 }
 0x832   :  { %v9001_v63 = vsel %vm2694_vm4, %v8891_v62, %v3258_v58  ;;  %v3346_v62 = vrot.slane %v3338_v6, %v8338_v23 }
 0x833   :  { %v3304_v44 = vmax.f32 %v3296_v61, 0.0  ;;  %v3299_v20 = vadd.f32 %v7233_v25, %v3286_v56  ;;  %v3287_v21 = vmul.f32 %v7232_v2, %v9001_v63  ;;  %v3329_v51 = vrot.slane %v3321_v59, %v8338_v23 }
 0x835   :  { %v3322_v1 = vcombine.low %v3303_v49, %v3304_v44  ;;  %v3300_v53 = vadd.f32 %v7233_v25, %v3287_v21  ;;  %v3307_v7 = vmax.f32 %v3299_v20, 0.0  ;;  %v7244_v20 = vld [vmem:[%s9013_s18 + $0x20] sm:$0xff]  ;;  %v7245_v21 = vld [vmem:[%s9013_s18 + $0x28] sm:$0xff]  ;;  %s7134_s18 = sld [smem:[%s9577_s0 + %s8266_s15]]   ;;  %s8281_s15 = smov 37  }
 0x837   :  { %v3336_v4 = vrot.slane %v3322_v1, %v8338_v23  ;;  %v3308_v42 = vmax.f32 %v3300_v53, 0.0 }
 0x839   :  { %v3339_v8 = vcombine.low %v3307_v7, %v3308_v42  ;;  %v3337_v57 = vcombine.low %v3329_v51, %v3336_v4  ;;  %v8021_v42 = vpack.c.bf16 %v7245_v21, %v7244_v20 }
 0x83b   :  { %v3353_v37 = vrot.slane %v3339_v8, %v8338_v23  ;;  %7685 = vmatprep.mubr.msk.f32.mxu0 %vm370_vm0, %v3337_v57 }
 0x83d   :  { %v3354_v9 = vcombine.low %v3346_v62, %v3353_v37 }
 0x83f   :  { %7686 = vmatmul.mubr.msk.f32.vlgmr.msra.gmra.mrb[12].mxu0 %vm370_vm0, %v3354_v9 }
 0x840   :  { %8016 = vmatpush3.bf16.msra.mxu0 %v8013_v26 }
 0x841   :  { %8018 = vmatprep.subr.bf16.mxu0 %v8017_v27 }
 0x912   :  { %v7687_v36 = vpop.f32.mrb[12].mxu0 }
 0x913   :  { %v3440_v30 = vmul.f32 %v7687_v36, %v7236_v11  ;;  %v3425_v0 = vpop.f32.mrb[13].mxu0 }
 0x914   :  { %v3439_v31 = vmul.f32 %v7236_v11, %v3425_v0 }
 0x915   :  { %v3447_v17 = vadd.f32 %v7237_v28, %v3440_v30 }
 0x916   :  { %v3446_v2 = vadd.f32 %v7237_v28, %v3439_v31 }
 0x917   :  { %v3449_v52 = vmax.f32 %v3447_v17, 0.0 }
 0x918   :  { %v3448_v60 = vmax.f32 %v3446_v2, 0.0 }
 0x919   :  { %v3469_v35 = vcombine.high %v3449_v52, %v3449_v52  ;;  %v3476_v25 = vrot.slane %v3449_v52, %v8338_v23  ;;  %v3969_v52 = vld [vmem:[%s9052_s27] sm:$0xff] }
 0x91a   :  { %v3452_v29 = vcombine.high %v3448_v60, %v3448_v60  ;;  %v3459_v54 = vrot.slane %v3448_v60, %v8338_v23  ;;  %v3970_v60 = vld [vmem:[%s9052_s27 + $0x8] sm:$0xff] }
 0x91b   :  { %v3483_v50 = vrot.slane %v3469_v35, %v8338_v23  ;;  %v3484_v40 = vcombine.high %v3476_v25, %v3476_v25  ;;  %v8025_v35 = vpack.c.bf16 %v3970_v60, %v3969_v52 }
 0x91c   :  { %v3466_v43 = vrot.slane %v3452_v29, %v8338_v23  ;;  %v3467_v39 = vcombine.high %v3459_v54, %v3459_v54  ;;  %v3604_v48 = vcombine.low %v8242_v19, %v3459_v54 }
 0x91d   :  { %v3485_v34 = vcombine.high %v3483_v50, %v3483_v50  ;;  %v3622_v18 = vcombine.low %v3484_v40, %v3483_v50  ;;  %v3508_v3 = vcombine.low %v3476_v25, %v3484_v40  ;;  %8026 = vmatprep.subr.bf16.mxu1 %v8025_v35  ;;  %v3972_v40 = vld [vmem:[%s9052_s27 + $0x18] sm:$0xff] }
 0x91e   :  { %v3468_v45 = vcombine.high %v3466_v43, %v3466_v43  ;;  %v3491_v55 = vcombine.low %v3459_v54, %v3467_v39  ;;  %v3605_v13 = vcombine.low %v3467_v39, %v3466_v43  ;;  %v3612_v6 = vrot.slane %v3604_v48, %v8338_v23  ;;  %8028 = vmatpush3.bf16.msra.mxu1 %v8025_v35  ;;  %v4169_v35 = vld [vmem:[%s7133_s6] sm:$0xff] }
 0x91f   :  { %v3509_v46 = vcombine.low %v3483_v50, %v3485_v34  ;;  %v3636_v41 = vrot.slane %v3622_v18, %v8338_v23  ;;  %v3516_v1 = vrot.slane %v3508_v3, %v8338_v23  ;;  %v3721_v57 = vcombine.low %v3485_v34, %v8242_v19  ;;  %v3971_v50 = vld [vmem:[%s9052_s27 + $0x10] sm:$0xff]  ;;  %v3973_v18 = vld [vmem:[%s9052_s27 + $0x20] sm:$0xff]  ;;  %s7136_s27 = sld [smem:[%s9577_s0 + %s8269_s22]]   ;;  %s8282_s22 = smov 39  }
 0x920   :  { %v3621_v61 = vcombine.low %v3468_v45, %v3476_v25  ;;  %v3492_v56 = vcombine.low %v3466_v43, %v3468_v45  ;;  %v3499_v59 = vrot.slane %v3491_v55, %v8338_v23  ;;  %v3619_v44 = vrot.slane %v3605_v13, %v8338_v23 }
 0x921   :  { %v3523_v58 = vrot.slane %v3509_v46, %v8338_v23  ;;  %v3728_v62 = vrot.slane %v3721_v57, %v8338_v23  ;;  %v8029_v43 = vpack.c.bf16 %v3972_v40, %v3971_v50  ;;  %v7248_v46 = vld [vmem:[%s7130_s1] ss:$0 sm:$0xff]  ;;  %v4171_v50 = vld [vmem:[%s7133_s6 + $0x10] sm:$0xf] }
 0x922   :  { %v3506_v49 = vrot.slane %v3492_v56, %v8338_v23  ;;  %v3629_v24 = vrot.slane %v3621_v61, %v8338_v23  ;;  %v3620_v8 = vcombine.low %v3612_v6, %v3619_v44 }
 0x923   :  { %v3524_v7 = vcombine.low %v3516_v1, %v3523_v58  ;;  %v3729_v37 = vcombine.low %v3636_v41, %v3728_v62  ;;  %8030 = vmatprep.subr.bf16.mxu1 %v8029_v43 }
 0x924   :  { %v3507_v53 = vcombine.low %v3499_v59, %v3506_v49  ;;  %v3637_v51 = vcombine.low %v3629_v24, %v3636_v41  ;;  %v3720_v4 = vcombine.low %v3619_v44, %v3629_v24  ;;  %8032 = vmatpush3.bf16.msra.mxu1 %v8029_v43  ;;  %v7249_v49 = vld [vmem:[%s7130_s1 + $0x1] ss:$0 sm:$0xff]  ;;  %s8271_s1 = smov 27  }
 0x925   :  { %7717 = vmatprep.subr.mxu1 %v3973_v18  ;;  %s7138_s4 = sld [smem:[%s9577_s0 + %s8271_s1]]   ;;  %s8291_s1 = smov 50  }
 0x926   :  { %7692 = vmatprep.mubr.msk.f32.mxu0 %vm631_vm1, %v3507_v53 }
 0x927   :  { %7693 = vmatmul.mubr.msk.f32.vlgmr.msra.gmra.mrb[14].mxu0 %vm631_vm1, %v3524_v7 }
 0x928   :  { %8020 = vmatpush3.bf16.msra.mxu0 %v8017_v27  ;;  %7699 = vmatprep.mubr.msk.f32.mxu0 %vm631_vm1, %v3620_v8 }
 0x929   :  { %8022 = vmatprep.subr.bf16.mxu0 %v8021_v42  ;;  %7718 = vmatpush3.msra.mxu1 %v3973_v18 }
 0x92f   :  { %7700 = vmatmul.mubr.msk.f32.vlgmr.msra.gmra.mrb[14].mxu0 %vm631_vm1, %v3637_v51 }
 0x930   :  { %8024 = vmatpush3.bf16.msra.mxu0 %v8021_v42  ;;  %7706 = vmatprep.mubr.msk.f32.mxu0 %vm631_vm1, %v3720_v4 }
 0x937   :  { %7707 = vmatmul.mubr.msk.f32.vlgmr.msra.gmra.mrb[14].mxu0 %vm631_vm1, %v3729_v37 }
 0x938   :  { %7728 = vmatprep.mubr.msk.f32.mxu0 %vm8264_vm5, %v8242_v19 }
 0xa0a   :  { %v7708_v9 = vpop.f32.mrb[14].mxu0 }
 0xa0b   :  { %v3837_v12 = vrot.slane %v7708_v9, %v8338_v23  ;;  %v3800_v16 = vpop.f32.mrb[15].mxu0  ;;  %v3830_v11 = vcombine.high %v7708_v9, %v7708_v9 }
 0xa0c   :  { %v3813_v26 = vcombine.high %v3800_v16, %v3800_v16  ;;  %v3820_v5 = vrot.slane %v3800_v16, %v8338_v23 }
 0xa0d   :  { %v3845_v22 = vcombine.high %v3837_v12, %v3837_v12  ;;  %v3881_v27 = vrot.slane %v3837_v12, %v8338_v23  ;;  %v3844_v31 = vrot.slane %v3830_v11, %v8338_v23 }
 0xa0e   :  { %v3827_v36 = vrot.slane %v3813_v26, %v8338_v23  ;;  %v3828_v28 = vcombine.high %v3820_v5, %v3820_v5  ;;  %v3853_v0 = vrot.slane %v3820_v5, %v8338_v23 }
 0xa0f   :  { %3911 = vrot.lane.b32.xlu0 %v3881_v27, %s8244_s26  ;;  %v3888_v30 = vrot.slane %v3845_v22, %v8338_v23  ;;  %v3846_v29 = vcombine.high %v3844_v31, %v3844_v31  ;;  %v3895_v39 = vrot.slane %v3844_v31, %v8338_v23 }
 0xa10   :  { %v3829_v17 = vcombine.high %v3827_v36, %v3827_v36  ;;  %v3860_v2 = vrot.slane %v3828_v28, %v8338_v23  ;;  %v3867_v25 = vrot.slane %v3827_v36, %v8338_v23 }
 0xa11   :  { %3913 = vrot.lane.b32.xlu1 %v3888_v30, %s8244_s26  ;;  %v3902_v34 = vrot.slane %v3846_v29, %v8338_v23 }
 0xa12   :  { %v3874_v54 = vrot.slane %v3829_v17, %v8338_v23 }
 0xa13   :  { %3903 = vrot.lane.b32.xlu0 %v3853_v0, %s8244_s26 }
 0xa15   :  { %3905 = vrot.lane.b32.xlu1 %v3860_v2, %s8244_s26 }
 0xa17   :  { %3907 = vrot.lane.b32.xlu0 %v3867_v25, %s8244_s26  ;;  %v4170_v25 = vld [vmem:[%s7133_s6 + $0x8] sm:$0xff]  ;;  %s8272_s6 = smov 30  }
 0xa18   :  { %v8034_v29 = vpack.c.bf16 %v4170_v25, %v4169_v35  ;;  %s7141_s9 = sld [smem:[%s9577_s0 + %s8272_s6]]  }
 0xa19   :  { %3909 = vrot.lane.b32.xlu1 %v3874_v54, %s8244_s26  ;;  %v8263_v54 = vmov 0.0|0.0  }
 0xa1a   :  { %8033 = vmatprep.subr.bf16.mxu0 %v8263_v54  ;;  %8039 = vmatprep.subr.bf16.mxu1 %v8263_v54 }
 0xa1b   :  { %3915 = vrot.lane.b32.xlu0 %v3895_v39, %s8244_s26  ;;  %8035 = vmatpush3.bf16.msra.mxu0 %v8034_v29 }
 0xa1c   :  { %7726 = vmatprep.subr.mxu0 %v8242_v19 }
 0xa1d   :  { %3917 = vrot.lane.b32.xlu1 %v3902_v34, %s8244_s26  ;;  %s8275_s26 = smov 34  }
 0xa1e   :  { %s7145_s25 = sld [smem:[%s9577_s0 + %s8275_s26]]  }
 0xa1f   :  { %7727 = vmatpush3.msk.msra.mxu0 %vm4196_vm6, %v4171_v50  ;;  %v7262_v50 = vld [vmem:[%s7135_s14 + $0x20] sm:$0xff] }
 0xa20   :  { %8036 = vmatprep.subr.bf16.mxu0 %v8263_v54 }
 0xa81   :  { %v3912_v45 = vpop.permute.xlu0 %3911 }
 0xa82   :  { %v3931_v61 = vsel %vm370_vm0, %v8974_v47, %v3912_v45 }
 0xa83   :  { %v3914_v55 = vpop.permute.xlu1 %3913  ;;  %v3944_v21 = vmul.f32 %v7248_v46, %v3931_v61 }
 0xa84   :  { %v3932_v13 = vsel %vm370_vm0, %v8966_v32, %v3914_v55 }
 0xa85   :  { %v3904_v3 = vpop.permute.xlu0 %3903  ;;  %v3945_v41 = vmul.f32 %v7248_v46, %v3932_v13 }
 0xa86   :  { %v3927_v48 = vsel %vm370_vm0, %v8970_v33, %v3904_v3 }
 0xa87   :  { %v3940_v56 = vmul.f32 %v7248_v46, %v3927_v48  ;;  %v3906_v58 = vpop.permute.xlu1 %3905  ;;  %v3958_v6 = vadd.f32 %v7249_v49, %v3945_v41 }
 0xa88   :  { %v3928_v59 = vsel %vm370_vm0, %v8980_v14, %v3906_v58  ;;  %v3957_v14 = vadd.f32 %v7249_v49, %v3944_v21 }
 0xa89   :  { %v3941_v44 = vmul.f32 %v7248_v46, %v3928_v59  ;;  %v3908_v20 = vpop.permute.xlu0 %3907  ;;  %v3953_v24 = vadd.f32 %v7249_v49, %v3940_v56  ;;  %v7252_v56 = vld [vmem:[%s7132_s10] ss:$0 sm:$0xff] }
 0xa8a   :  { %v3929_v32 = vsel %vm370_vm0, %v8986_v38, %v3908_v20  ;;  %v3966_v38 = vmax.f32 %v3958_v6, 0.0  ;;  %v3965_v27 = vmax.f32 %v3957_v14, 0.0 }
 0xa8b   :  { %v3954_v1 = vadd.f32 %v7249_v49, %v3941_v44  ;;  %v3942_v53 = vmul.f32 %v7248_v46, %v3929_v32  ;;  %v3910_v33 = vpop.permute.xlu1 %3909  ;;  %v3961_v8 = vmax.f32 %v3953_v24, 0.0  ;;  %v7253_v44 = vld [vmem:[%s7132_s10 + $0x1] ss:$0 sm:$0xff]  ;;  %s8273_s10 = smov 29  }
 0xa8c   :  { %v3930_v47 = vsel %vm370_vm0, %v8991_v15, %v3910_v33  ;;  %v3999_v28 = vcombine.low %v3965_v27, %v3966_v38 }
 0xa8d   :  { %v3962_v51 = vmax.f32 %v3954_v1, 0.0  ;;  %v3955_v4 = vadd.f32 %v7249_v49, %v3942_v53  ;;  %v3943_v7 = vmul.f32 %v7248_v46, %v3930_v47  ;;  %v3916_v42 = vpop.permute.xlu0 %3915 }
 0xa8e   :  { %v3933_v57 = vsel %vm370_vm0, %v8996_v10, %v3916_v42  ;;  %v4007_v52 = vrot.slane %v3999_v28, %v8338_v23  ;;  %v7257_v28 = vld [vmem:[%s7134_s18 + $0x1] ss:$0 sm:$0xff] }
 0xa8f   :  { %v3956_v62 = vadd.f32 %v7249_v49, %v3943_v7  ;;  %v3946_v37 = vmul.f32 %v7248_v46, %v3933_v57  ;;  %v3918_v9 = vpop.permute.xlu1 %3917  ;;  %v3982_v12 = vcombine.low %v3961_v8, %v3962_v51  ;;  %v3963_v26 = vmax.f32 %v3955_v4, 0.0 }
 0xa90   :  { %v3934_v16 = vsel %vm370_vm0, %v9001_v63, %v3918_v9  ;;  %vm6268_vm0 = vcmask 211968  }
 0xa91   :  { %v3964_v5 = vmax.f32 %v3956_v62, 0.0  ;;  %v3959_v15 = vadd.f32 %v7249_v49, %v3946_v37  ;;  %v3947_v22 = vmul.f32 %v7248_v46, %v3934_v16  ;;  %v3990_v30 = vrot.slane %v3982_v12, %v8338_v23  ;;  %v4301_v16 = vld [vmem:[%s7135_s14] sm:$0xff] }
 0xa93   :  { %v3983_v11 = vcombine.low %v3963_v26, %v3964_v5  ;;  %v3960_v36 = vadd.f32 %v7249_v49, %v3947_v22  ;;  %v3967_v0 = vmax.f32 %v3959_v15, 0.0  ;;  %v4302_v26 = vld [vmem:[%s7135_s14 + $0x8] sm:$0xff]  ;;  %v7258_v15 = vld [vmem:[%s7135_s14 + $0x10] sm:$0xff]  ;;  %v7259_v22 = vld [vmem:[%s7135_s14 + $0x18] sm:$0xff] }
 0xa94   :  { %v8040_v5 = vpack.c.bf16 %v4302_v26, %v4301_v16  ;;  %v8037_v27 = vpack.c.bf16 %v7259_v22, %v7258_v15  ;;  %v7266_v15 = vld [vmem:[%s7136_s27 + $0x1] ss:$0 sm:$0xff] }
 0xa95   :  { %v3997_v10 = vrot.slane %v3983_v11, %v8338_v23  ;;  %v3968_v31 = vmax.f32 %v3960_v36, 0.0  ;;  %v7256_v11 = vld [vmem:[%s7134_s18] ss:$0 sm:$0xff]  ;;  %s8274_s18 = smov 31  }
 0xa97   :  { %v4000_v17 = vcombine.low %v3967_v0, %v3968_v31  ;;  %v3998_v2 = vcombine.low %v3990_v30, %v3997_v10 }
 0xa99   :  { %v4014_v63 = vrot.slane %v4000_v17, %v8338_v23  ;;  %7719 = vmatprep.mubr.msk.f32.mxu1 %vm1394_vm2, %v3998_v2 }
 0xa9b   :  { %v4015_v60 = vcombine.low %v4007_v52, %v4014_v63 }
 0xa9d   :  { %7720 = vmatmul.mubr.msk.f32.vlgmr.msra.gmra.mrb[12].mxu1 %vm1394_vm2, %v4015_v60  ;;  %vm6678_vm2 = vcmask 277504  }
 0xa9e   :  { %7742 = vmatprep.mubr.msk.f32.mxu1 %vm8264_vm5, %v8242_v19  ;;  %8041 = vmatpush3.bf16.msra.mxu1 %v8040_v5 }
 0xa9f   :  { %8042 = vmatprep.subr.bf16.mxu1 %v8263_v54 }
 0xb70   :  { %v7721_v40 = vpop.f32.mrb[12].mxu1 }
 0xb71   :  { %v4114_v43 = vcombine.high %v7721_v40, %v7721_v40  ;;  %v4121_v39 = vrot.slane %v7721_v40, %v8338_v23  ;;  %v4086_v34 = vpop.f32.mrb[13].mxu1  ;;  %v7263_v40 = vld [vmem:[%s7135_s14 + $0x28] sm:$0xff]  ;;  %s7140_s14 = sld [smem:[%s9577_s0 + %s8273_s10]]  }
 0xb72   :  { %v4097_v18 = vcombine.high %v4086_v34, %v4086_v34  ;;  %v4104_v45 = vrot.slane %v4086_v34, %v8338_v23 }
 0xb73   :  { %v4128_v55 = vrot.slane %v4114_v43, %v8338_v23  ;;  %v4129_v13 = vcombine.high %v4121_v39, %v4121_v39 }
 0xb74   :  { %v4111_v3 = vrot.slane %v4097_v18, %v8338_v23  ;;  %v4112_v46 = vcombine.high %v4104_v45, %v4104_v45  ;;  %v8043_v18 = vpack.c.bf16 %v7263_v40, %v7262_v50 }
 0xb75   :  { %v4130_v48 = vcombine.high %v4128_v55, %v4128_v55  ;;  %v4141_v61 = vadd.f32 %v4129_v13, %v4121_v39 }
 0xb76   :  { %v4113_v58 = vcombine.high %v4111_v3, %v4111_v3  ;;  %v4139_v41 = vadd.f32 %v4112_v46, %v4104_v45 }
 0xb77   :  { %v4142_v59 = vadd.f32 %v4130_v48, %v4128_v55  ;;  %v9120_v49 = vmul.f32 0.5, %v4141_v61 }
 0xb78   :  { %v4140_v20 = vadd.f32 %v4113_v58, %v4111_v3  ;;  %v9122_v21 = vmul.f32 0.5, %v4139_v41 }
 0xb79   :  { %v9124_v24 = vmul.f32 0.5, %v4142_v59  ;;  %v4154_v32 = vmul.f32 %v7252_v56, %v9120_v49 }
 0xb7a   :  { %v9127_v1 = vmul.f32 0.5, %v4140_v20  ;;  %v4152_v53 = vmul.f32 %v7252_v56, %v9122_v21 }
 0xb7b   :  { %v4155_v33 = vmul.f32 %v7252_v56, %v9124_v24  ;;  %v4163_v6 = vadd.f32 %v7253_v44, %v4154_v32 }
 0xb7c   :  { %v4153_v47 = vmul.f32 %v7252_v56, %v9127_v1  ;;  %v4161_v51 = vadd.f32 %v7253_v44, %v4152_v53 }
 0xb7d   :  { %v4164_v4 = vadd.f32 %v7253_v44, %v4155_v33  ;;  %v4167_v42 = vmax.f32 %v4163_v6, 0.0 }
 0xb7e   :  { %v4162_v7 = vadd.f32 %v7253_v44, %v4153_v47  ;;  %v4165_v8 = vmax.f32 %v4161_v51, 0.0  ;;  %v4653_v47 = vld [vmem:[%s7137_s21] sm:$0xff]  ;;  %v4654_v51 = vld [vmem:[%s7137_s21 + $0x8] sm:$0xff] }
 0xb7f   :  { %v4168_v14 = vmax.f32 %v4164_v4, 0.0 }
 0xb80   :  { %v4166_v57 = vmax.f32 %v4162_v7, 0.0 }
 0xb81   :  { %v4177_v62 = vcombine.low %v4167_v42, %v4168_v14  ;;  %v8046_v42 = vpack.c.bf16 %v4654_v51, %v4653_v47 }
 0xb82   :  { %v4176_v37 = vcombine.low %v4165_v8, %v4166_v57  ;;  %v4655_v8 = vld [vmem:[%s7137_s21 + $0x10] sm:$0xff]  ;;  %v4656_v57 = vld [vmem:[%s7137_s21 + $0x18] sm:$0xf]  ;;  %s7142_s21 = sld [smem:[%s9577_s0 + %s8274_s18]]  }
 0xb83   :  { %v4191_v9 = vrot.slane %v4177_v62, %v8338_v23  ;;  %s7148_s18 = sld [smem:[%s9577_s0 + %s8281_s15]]  }
 0xb84   :  { %v4184_v38 = vrot.slane %v4176_v37, %v8338_v23  ;;  %v8049_v37 = vpack.c.bf16 %v4656_v57, %v4655_v8 }
 0xb86   :  { %v4192_v12 = vcombine.low %v4184_v38, %v4191_v9  ;;  %v7265_v38 = vld [vmem:[%s7136_s27] ss:$0 sm:$0xff]  ;;  %s8276_s27 = smov 36  }
 0xb87   :  { %s9385_s3 = sld [smem:[%s9577_s0 + %s8276_s27]]  }
 0xb88   :  { %7729 = vmatmul.mubr.msk.f32.vlgmr.msra.gmra.mrb[16].mxu0 %vm4193_vm7, %v4192_v12 }
 0xb89   :  { %7735 = vmatprep.mubr.msk.f32.mxu0 %vm8264_vm5, %v8242_v19  ;;  %8038 = vmatpush3.bf16.msra.mxu0 %v8037_v27 }
 0xb8a   :  { %8045 = vmatprep.subr.bf16.mxu0 %v8263_v54 }
 0xc5b   :  { %v4266_v36 = vpop.f32.mrb[16].mxu0 }
 0xc5c   :  { %v4275_v30 = vmul.f32 %v7256_v11, %v4266_v36  ;;  %v7730_v10 = vpop.f32.mrb[17].mxu0 }
 0xc5e   :  { %v4281_v0 = vadd.f32 %v7257_v28, %v4275_v30 }
 0xc60   :  { %v4282_v31 = vmax.f32 %v4281_v0, 0.0 }
 0xc62   :  { %v4284_v17 = vcombine.high %v4282_v31, %v4282_v31  ;;  %v4291_v2 = vrot.slane %v4282_v31, %v8338_v23 }
 0xc64   :  { %v4298_v52 = vrot.slane %v4284_v17, %v8338_v23  ;;  %v4299_v63 = vcombine.high %v4291_v2, %v4291_v2  ;;  %v4395_v60 = vcombine.low %v8242_v19, %v4291_v2 }
 0xc66   :  { %v4300_v35 = vcombine.high %v4298_v52, %v4298_v52  ;;  %v4306_v25 = vcombine.low %v4291_v2, %v4299_v63  ;;  %v4396_v29 = vcombine.low %v4299_v63, %v4298_v52  ;;  %v4403_v39 = vrot.slane %v4395_v60, %v8338_v23 }
 0xc68   :  { %v4307_v43 = vcombine.low %v4298_v52, %v4300_v35  ;;  %v4410_v34 = vrot.slane %v4396_v29, %v8338_v23  ;;  %v4314_v45 = vrot.slane %v4306_v25, %v8338_v23  ;;  %v4487_v13 = vcombine.low %v4300_v35, %v8242_v19 }
 0xc6a   :  { %v4321_v55 = vrot.slane %v4307_v43, %v8338_v23  ;;  %v4411_v3 = vcombine.low %v4403_v39, %v4410_v34  ;;  %v4494_v48 = vrot.slane %v4487_v13, %v8338_v23  ;;  %v7269_v39 = vld [vmem:[%s7138_s4] ss:$0 sm:$0xff] }
 0xc6c   :  { %7743 = vmatmul.mubr.msk.f32.vlgmr.msra.gmra.mrb[14].mxu1 %vm631_vm1, %v4411_v3  ;;  %v4322_v46 = vcombine.low %v4314_v45, %v4321_v55  ;;  %v4495_v61 = vcombine.low %v4410_v34, %v4494_v48 }
 0xc6d   :  { %8044 = vmatpush3.bf16.msra.mxu1 %v8043_v18  ;;  %7749 = vmatprep.mubr.msk.f32.mxu1 %vm8264_vm5, %v8242_v19  ;;  %v7270_v18 = vld [vmem:[%s7138_s4 + $0x1] ss:$0 sm:$0xff]  ;;  %s8278_s4 = smov 35  }
 0xc6e   :  { %7736 = vmatmul.mubr.msk.f32.vlgmr.msra.gmra.mrb[18].mxu0 %vm631_vm1, %v4322_v46  ;;  %8052 = vmatprep.subr.bf16.mxu1 %v8263_v54  ;;  %s7146_s8 = sld [smem:[%s9577_s0 + %s8278_s4]]  }
 0xc6f   :  { %7760 = vmatprep.mubr.msk.f32.mxu0 %vm8264_vm5, %v8242_v19  ;;  %8047 = vmatpush3.bf16.msra.mxu0 %v8046_v42  ;;  %s7161_s4 = sld [smem:[%s9577_s0 + %s8291_s1]]  }
 0xc70   :  { %8048 = vmatprep.subr.bf16.mxu0 %v8263_v54 }
 0xc73   :  { %8051 = vmatpush3.bf16.msk.msra.mxu0 %vm9181_vm9, %v8049_v37 }
 0xc74   :  { %7750 = vmatmul.mubr.msk.f32.vlgmr.msra.gmra.mrb[14].mxu1 %vm631_vm1, %v4495_v61  ;;  %8061 = vmatprep.subr.bf16.mxu0 %v8263_v54 }
 0xc75   :  { %7767 = vmatprep.mubr.msk.f32.mxu1 %vm8264_vm5, %v8242_v19 }
 0xd41   :  { %v4391_v56 = vpop.f32.mrb[18].mxu0 }
 0xd42   :  { %v7737_v58 = vpop.f32.mrb[19].mxu0 }
 0xd47   :  { %v4564_v41 = vpop.f32.mrb[14].mxu1 }
 0xd48   :  { %v8135_v59 = vadd.f32 %v4564_v41, %v4391_v56  ;;  %v7751_v44 = vpop.f32.mrb[15].mxu1 }
 0xd4a   :  { %v4570_v20 = vcombine.high %v8135_v59, %v8135_v59  ;;  %v4577_v32 = vrot.slane %v8135_v59, %v8338_v23 }
 0xd4c   :  { %v4584_v53 = vrot.slane %v4570_v20, %v8338_v23  ;;  %v4585_v33 = vcombine.high %v4577_v32, %v4577_v32  ;;  %v4593_v6 = vrot.slane %v4577_v32, %v8338_v23 }
 0xd4e   :  { %4615 = vrot.lane.b32.xlu0 %v4593_v6, %s8260_s23  ;;  %v4600_v4 = vrot.slane %v4585_v33, %v8338_v23  ;;  %v4586_v7 = vcombine.high %v4584_v53, %v4584_v53  ;;  %v4607_v14 = vrot.slane %v4584_v53, %v8338_v23 }
 0xd50   :  { %4617 = vrot.lane.b32.xlu1 %v4600_v4, %s8260_s23  ;;  %v4614_v62 = vrot.slane %v4586_v7, %v8338_v23 }
 0xd52   :  { %4619 = vrot.lane.b32.xlu0 %v4607_v14, %s8260_s23 }
 0xd54   :  { %4621 = vrot.lane.b32.xlu1 %v4614_v62, %s8260_s23  ;;  %s8270_s23 = smov 28  }
 0xd55   :  { %s9221_s30 = sld [smem:[%s9577_s0 + %s8270_s23]]  }
 0xd5b   :  { %v7272_v40 = vld [vmem:[%s9221_s30 + $0x18] sm:$0xff]  ;;  %v4785_v44 = vld [vmem:[%s9221_s30] sm:$0xff]  ;;  %v4786_v20 = vld [vmem:[%s9221_s30 + $0x8] sm:$0xff] }
 0xd5c   :  { %v8056_v33 = vpack.c.bf16 %v4786_v20, %v4785_v44  ;;  %v7275_v7 = vld [vmem:[%s9221_s30 + $0x20] sm:$0xff]  ;;  %v7276_v42 = vld [vmem:[%s9221_s30 + $0x28] sm:$0xff] }
 0xd5d   :  { %v8059_v8 = vpack.c.bf16 %v7276_v42, %v7275_v7 }
 0xdc0   :  { %v4616_v12 = vpop.permute.xlu0 %4615 }
 0xdc1   :  { %v9194_v16 = vsel %vm4193_vm7, %v9122_v21, %v4616_v12 }
 0xdc2   :  { %v4636_v26 = vmul.f32 %v7265_v38, %v9194_v16  ;;  %v4618_v5 = vpop.permute.xlu1 %4617 }
 0xdc3   :  { %v9199_v22 = vsel %vm4193_vm7, %v9127_v1, %v4618_v5 }
 0xdc4   :  { %v4637_v27 = vmul.f32 %v7265_v38, %v9199_v22  ;;  %v4620_v11 = vpop.permute.xlu0 %4619  ;;  %v4645_v28 = vadd.f32 %v7266_v15, %v4636_v26 }
 0xdc5   :  { %v9204_v36 = vsel %vm4193_vm7, %v9120_v49, %v4620_v11  ;;  %v5138_v11 = vld [vmem:[%s7141_s9 + $0x8] sm:$0xff] }
 0xdc6   :  { %v4646_v30 = vadd.f32 %v7266_v15, %v4637_v27  ;;  %v4638_v21 = vmul.f32 %v7265_v38, %v9204_v36  ;;  %v4622_v10 = vpop.permute.xlu1 %4621  ;;  %v4649_v2 = vmax.f32 %v4645_v28, 0.0  ;;  %v5137_v27 = vld [vmem:[%s7141_s9] sm:$0xff] }
 0xdc7   :  { %v9209_v0 = vsel %vm4193_vm7, %v9124_v24, %v4622_v10  ;;  %v7271_v24 = vld [vmem:[%s9221_s30 + $0x10] sm:$0xff]  ;;  %v8062_v10 = vpack.c.bf16 %v5138_v11, %v5137_v27 }
 0xdc8   :  { %v4650_v31 = vmax.f32 %v4646_v30, 0.0  ;;  %v4647_v17 = vadd.f32 %v7266_v15, %v4638_v21  ;;  %v4639_v1 = vmul.f32 %v7265_v38, %v9209_v0  ;;  %v8053_v43 = vpack.c.bf16 %v7272_v40, %v7271_v24  ;;  %v7279_v40 = vld [vmem:[%s7140_s14 + $0x1] ss:$0 sm:$0xff] }
 0xdca   :  { %v4648_v52 = vadd.f32 %v7266_v15, %v4639_v1  ;;  %v4661_v63 = vcombine.low %v4649_v2, %v4650_v31  ;;  %v4651_v60 = vmax.f32 %v4647_v17, 0.0  ;;  %8054 = vmatpush3.bf16.msra.mxu1 %v8053_v43  ;;  %v5139_v1 = vld [vmem:[%s7141_s9 + $0x10] sm:$0xff]  ;;  %v5140_v2 = vld [vmem:[%s7141_s9 + $0x18] sm:$0xff] }
 0xdcb   :  { %8055 = vmatprep.subr.bf16.mxu1 %v8263_v54 }
 0xdcc   :  { %v4652_v35 = vmax.f32 %v4648_v52, 0.0  ;;  %v4669_v25 = vrot.slane %v4661_v63, %v8338_v23  ;;  %v8065_v63 = vpack.c.bf16 %v5140_v2, %v5139_v1  ;;  %v7289_v1 = vld [vmem:[%s9302_s17 + $0x28] sm:$0xff] }
 0xdce   :  { %v4662_v49 = vcombine.low %v4651_v60, %v4652_v35  ;;  %v5141_v35 = vld [vmem:[%s7141_s9 + $0x20] sm:$0xf]  ;;  %s8279_s9 = smov 38  }
 0xdcf   :  { %s9420_s12 = sld [smem:[%s9577_s0 + %s8279_s9]]  }
 0xdd0   :  { %v4676_v29 = vrot.slane %v4662_v49, %v8338_v23  ;;  %v7278_v49 = vld [vmem:[%s7140_s14] ss:$0 sm:$0xff]  ;;  %s8280_s14 = smov 44  }
 0xdd1   :  { %s7155_s7 = sld [smem:[%s9577_s0 + %s8280_s14]]  }
 0xdd2   :  { %v4677_v50 = vcombine.low %v4669_v25, %v4676_v29 }
 0xdd4   :  { %7761 = vmatmul.mubr.msk.f32.vlgmr.msra.gmra.mrb[20].mxu0 %vm4678_vm10, %v4677_v50 }
 0xdd5   :  { %7794 = vmatprep.mubr.msk.f32.mxu0 %vm8264_vm5, %v8242_v19  ;;  %8063 = vmatpush3.bf16.msra.mxu0 %v8062_v10 }
 0xdd6   :  { %8064 = vmatprep.subr.bf16.mxu0 %v8263_v54 }
 0xdd9   :  { %8066 = vmatpush3.bf16.msra.mxu0 %v8065_v63 }
 0xdda   :  { %7792 = vmatprep.subr.mxu0 %v8242_v19 }
 0xddd   :  { %7793 = vmatpush3.msk.msra.mxu0 %vm4196_vm6, %v5141_v35 }
 0xdde   :  { %8067 = vmatprep.subr.bf16.mxu0 %v8263_v54 }
 0xea7   :  { %v4750_v34 = vpop.f32.mrb[20].mxu0 }
 0xea8   :  { %v4759_v45 = vmul.f32 %v7269_v39, %v4750_v34  ;;  %v7762_v55 = vpop.f32.mrb[21].mxu0 }
 0xeaa   :  { %v4765_v13 = vadd.f32 %v7270_v18, %v4759_v45 }
 0xeac   :  { %v4766_v3 = vmax.f32 %v4765_v13, 0.0 }
 0xeae   :  { %v4768_v46 = vcombine.high %v4766_v3, %v4766_v3  ;;  %v4775_v48 = vrot.slane %v4766_v3, %v8338_v23 }
 0xeb0   :  { %v4782_v61 = vrot.slane %v4768_v46, %v8338_v23  ;;  %v4783_v56 = vcombine.high %v4775_v48, %v4775_v48  ;;  %v4879_v51 = vcombine.low %v8242_v19, %v4775_v48 }
 0xeb2   :  { %v4784_v58 = vcombine.high %v4782_v61, %v4782_v61  ;;  %v4790_v41 = vcombine.low %v4775_v48, %v4783_v56  ;;  %v4880_v6 = vcombine.low %v4783_v56, %v4782_v61  ;;  %v4887_v14 = vrot.slane %v4879_v51, %v8338_v23  ;;  %v7283_v51 = vld [vmem:[%s7142_s21 + $0x1] ss:$0 sm:$0xff] }
 0xeb4   :  { %v4791_v59 = vcombine.low %v4782_v61, %v4784_v58  ;;  %v4798_v32 = vrot.slane %v4790_v41, %v8338_v23  ;;  %v4894_v4 = vrot.slane %v4880_v6, %v8338_v23  ;;  %v4971_v57 = vcombine.low %v4784_v58, %v8242_v19  ;;  %v7282_v6 = vld [vmem:[%s7142_s21] ss:$0 sm:$0xff]  ;;  %s7151_s21 = sld [smem:[%s9577_s0 + %s8249_s13]]  }
 0xeb5   :  { %s7150_s13 = sld [smem:[%s9577_s0 + %s8282_s22]]  }
 0xeb6   :  { %v4805_v53 = vrot.slane %v4791_v59, %v8338_v23  ;;  %v4895_v62 = vcombine.low %v4887_v14, %v4894_v4  ;;  %v4978_v37 = vrot.slane %v4971_v57, %v8338_v23 }
 0xeb8   :  { %v4806_v47 = vcombine.low %v4798_v32, %v4805_v53  ;;  %v4979_v38 = vcombine.low %v4894_v4, %v4978_v37  ;;  %v7285_v53 = vld [vmem:[%s9302_s17 + $0x18] sm:$0xff] }
 0xeba   :  { %7768 = vmatmul.mubr.msk.f32.vlgmr.msra.gmra.mrb[16].mxu1 %vm631_vm1, %v4806_v47 }
 0xebb   :  { %8057 = vmatpush3.bf16.msra.mxu1 %v8056_v33  ;;  %7774 = vmatprep.mubr.msk.f32.mxu1 %vm8264_vm5, %v8242_v19 }
 0xebc   :  { %8058 = vmatprep.subr.bf16.mxu1 %v8263_v54 }
 0xec2   :  { %7775 = vmatmul.mubr.msk.f32.vlgmr.msra.gmra.mrb[16].mxu1 %vm631_vm1, %v4895_v62 }
 0xec3   :  { %8060 = vmatpush3.bf16.msra.mxu1 %v8059_v8  ;;  %7781 = vmatprep.mubr.msk.f32.mxu1 %vm8264_vm5, %v8242_v19 }
 0xec4   :  { %8076 = vmatprep.subr.bf16.mxu1 %v8263_v54 }
 0xeca   :  { %7782 = vmatmul.mubr.msk.f32.vlgmr.msra.gmra.mrb[16].mxu1 %vm631_vm1, %v4979_v38 }
 0xecb   :  { %7830 = vmatprep.mubr.msk.f32.mxu1 %vm8264_vm5, %v8242_v19 }
 0xf9d   :  { %v5048_v12 = vpop.f32.mrb[16].mxu1 }
 0xf9e   :  { %v5054_v26 = vcombine.high %v5048_v12, %v5048_v12  ;;  %v5061_v5 = vrot.slane %v5048_v12, %v8338_v23  ;;  %v7783_v15 = vpop.f32.mrb[17].mxu1 }
 0xf9f   :  { %v5271_v15 = vld [vmem:[%s9302_s17 + $0x8] sm:$0xff] }
 0xfa0   :  { %v5068_v28 = vrot.slane %v5054_v26, %v8338_v23  ;;  %v5069_v30 = vcombine.high %v5061_v5, %v5061_v5  ;;  %v5077_v21 = vrot.slane %v5061_v5, %v8338_v23  ;;  %v5270_v5 = vld [vmem:[%s9302_s17] sm:$0xff] }
 0xfa2   :  { %v5070_v31 = vcombine.high %v5068_v28, %v5068_v28  ;;  %5099 = vrot.lane.b32.xlu0 %v5077_v21, %s8270_s23  ;;  %v5084_v17 = vrot.slane %v5069_v30, %v8338_v23  ;;  %v5091_v52 = vrot.slane %v5068_v28, %v8338_v23  ;;  %v8071_v28 = vpack.c.bf16 %v5271_v15, %v5270_v5 }
 0xfa4   :  { %5101 = vrot.lane.b32.xlu1 %v5084_v17, %s8270_s23  ;;  %v5098_v60 = vrot.slane %v5070_v31, %v8338_v23  ;;  %v7288_v17 = vld [vmem:[%s9302_s17 + $0x20] sm:$0xff] }
 0xfa6   :  { %5103 = vrot.lane.b32.xlu0 %v5091_v52, %s8270_s23  ;;  %v8074_v52 = vpack.c.bf16 %v7289_v1, %v7288_v17 }
 0xfa8   :  { %5105 = vrot.lane.b32.xlu1 %v5098_v60, %s8270_s23  ;;  %s8277_s23 = smov 33  }
 0xfa9   :  { %s7144_s30 = sld [smem:[%s9577_s0 + %s8277_s23]]  }
0x1014   :  { %v5100_v25 = vpop.permute.xlu0 %5099 }
0x1015   :  { %v9275_v29 = vsel %vm4678_vm10, %v9194_v16, %v5100_v25 }
0x1016   :  { %v5120_v50 = vmul.f32 %v7278_v49, %v9275_v29  ;;  %v5102_v24 = vpop.permute.xlu1 %5101 }
0x1017   :  { %v9280_v43 = vsel %vm4678_vm10, %v9199_v22, %v5102_v24  ;;  %v5623_v24 = vld [vmem:[%s7145_s25 + $0x8] sm:$0xff] }
0x1018   :  { %v5121_v39 = vmul.f32 %v7278_v49, %v9280_v43  ;;  %v5104_v34 = vpop.permute.xlu0 %5103  ;;  %v5129_v45 = vadd.f32 %v7279_v40, %v5120_v50  ;;  %v5622_v50 = vld [vmem:[%s7145_s25] sm:$0xff] }
0x1019   :  { %v9285_v18 = vsel %vm4678_vm10, %v9204_v36, %v5104_v34 }
0x101a   :  { %v5130_v55 = vadd.f32 %v7279_v40, %v5121_v39  ;;  %v5122_v16 = vmul.f32 %v7278_v49, %v9285_v18  ;;  %v5106_v13 = vpop.permute.xlu1 %5105  ;;  %v5133_v61 = vmax.f32 %v5129_v45, 0.0  ;;  %v8077_v45 = vpack.c.bf16 %v5623_v24, %v5622_v50 }
0x101b   :  { %v9290_v3 = vsel %vm4678_vm10, %v9209_v0, %v5106_v13  ;;  %v7284_v0 = vld [vmem:[%s9302_s17 + $0x10] sm:$0xff] }
0x101c   :  { %v5134_v46 = vmax.f32 %v5130_v55, 0.0  ;;  %v5131_v48 = vadd.f32 %v7279_v40, %v5122_v16  ;;  %v5123_v22 = vmul.f32 %v7278_v49, %v9290_v3  ;;  %v8068_v33 = vpack.c.bf16 %v7285_v53, %v7284_v0  ;;  %8078 = vmatpush3.bf16.msra.mxu1 %v8077_v45 }
0x101d   :  { %8079 = vmatprep.subr.bf16.mxu1 %v8263_v54 }
0x101e   :  { %v5132_v56 = vadd.f32 %v7279_v40, %v5123_v22  ;;  %v5146_v58 = vcombine.low %v5133_v61, %v5134_v46  ;;  %v5135_v41 = vmax.f32 %v5131_v48, 0.0  ;;  %v5624_v46 = vld [vmem:[%s7145_s25 + $0x10] sm:$0xff]  ;;  %v5625_v48 = vld [vmem:[%s7145_s25 + $0x18] sm:$0xff] }
0x1020   :  { %v5136_v59 = vmax.f32 %v5132_v56, 0.0  ;;  %v5154_v44 = vrot.slane %v5146_v58, %v8338_v23  ;;  %v8080_v56 = vpack.c.bf16 %v5625_v48, %v5624_v46 }
0x1022   :  { %v5147_v36 = vcombine.low %v5135_v41, %v5136_v59  ;;  %8081 = vmatpush3.bf16.msra.mxu1 %v8080_v56  ;;  %v5626_v41 = vld [vmem:[%s7145_s25 + $0x20] sm:$0xff]  ;;  %v5627_v59 = vld [vmem:[%s7145_s25 + $0x28] sm:$0xf]  ;;  %s8289_s25 = smov 48  }
0x1023   :  { %8082 = vmatprep.subr.bf16.mxu1 %v8263_v54  ;;  %s7159_s23 = sld [smem:[%s9577_s0 + %s8289_s25]]  }
0x1024   :  { %v5161_v20 = vrot.slane %v5147_v36, %v8338_v23 }
0x1026   :  { %v5162_v32 = vcombine.low %v5154_v44, %v5161_v20  ;;  %v8083_v44 = vpack.c.bf16 %v5627_v59, %v5626_v41  ;;  %v7291_v20 = vld [vmem:[%s7144_s30] ss:$0 sm:$0xff] }
0x1028   :  { %7795 = vmatmul.mubr.msk.f32.vlgmr.msra.gmra.mrb[22].mxu0 %vm5163_vm11, %v5162_v32  ;;  %8085 = vmatpush3.bf16.msk.msra.mxu1 %vm9181_vm9, %v8083_v44 }
0x1029   :  { %7801 = vmatprep.mubr.msk.f32.mxu0 %vm8264_vm5, %v8242_v19  ;;  %8069 = vmatpush3.bf16.msra.mxu0 %v8068_v33 }
0x102a   :  { %8070 = vmatprep.subr.bf16.mxu0 %v8263_v54  ;;  %8095 = vmatprep.subr.bf16.mxu1 %v8263_v54 }
0x10fb   :  { %v5235_v47 = vpop.f32.mrb[22].mxu0 }
0x10fc   :  { %v5244_v4 = vmul.f32 %v7282_v6, %v5235_v47  ;;  %v7796_v7 = vpop.f32.mrb[23].mxu0  ;;  %v7292_v6 = vld [vmem:[%s7144_s30 + $0x1] ss:$0 sm:$0xff]  ;;  %s8284_s30 = smov 41  }
0x10fe   :  { %v5250_v42 = vadd.f32 %v7283_v51, %v5244_v4 }
0x1100   :  { %v5251_v14 = vmax.f32 %v5250_v42, 0.0 }
0x1102   :  { %v5253_v8 = vcombine.high %v5251_v14, %v5251_v14  ;;  %v5260_v57 = vrot.slane %v5251_v14, %v8338_v23 }
0x1104   :  { %v5267_v62 = vrot.slane %v5253_v8, %v8338_v23  ;;  %v5268_v37 = vcombine.high %v5260_v57, %v5260_v57  ;;  %v5364_v10 = vcombine.low %v8242_v19, %v5260_v57 }
0x1106   :  { %v5269_v38 = vcombine.high %v5267_v62, %v5267_v62  ;;  %v5275_v12 = vcombine.low %v5260_v57, %v5268_v37  ;;  %v5365_v30 = vcombine.low %v5268_v37, %v5267_v62  ;;  %v5372_v2 = vrot.slane %v5364_v10, %v8338_v23 }
0x1108   :  { %v5276_v26 = vcombine.low %v5267_v62, %v5269_v38  ;;  %v5283_v27 = vrot.slane %v5275_v12, %v8338_v23  ;;  %v5379_v31 = vrot.slane %v5365_v30, %v8338_v23  ;;  %v5456_v63 = vcombine.low %v5269_v38, %v8242_v19 }
0x110a   :  { %v5290_v11 = vrot.slane %v5276_v26, %v8338_v23  ;;  %v5380_v60 = vcombine.low %v5372_v2, %v5379_v31  ;;  %v5463_v35 = vrot.slane %v5456_v63, %v8338_v23 }
0x110c   :  { %v5291_v21 = vcombine.low %v5283_v27, %v5290_v11  ;;  %v5464_v49 = vcombine.low %v5379_v31, %v5463_v35  ;;  %v7296_v31 = vld [vmem:[%s7146_s8 + $0x1] ss:$0 sm:$0xff] }
0x110e   :  { %7802 = vmatmul.mubr.msk.f32.vlgmr.msra.gmra.mrb[24].mxu0 %vm631_vm1, %v5291_v21  ;;  %v7295_v21 = vld [vmem:[%s7146_s8] ss:$0 sm:$0xff]  ;;  %s8285_s8 = smov 43  }
0x110f   :  { %8072 = vmatpush3.bf16.msra.mxu0 %v8071_v28  ;;  %7808 = vmatprep.mubr.msk.f32.mxu0 %vm8264_vm5, %v8242_v19  ;;  %v7298_v28 = vld [vmem:[%s9385_s3 + $0x18] sm:$0xff]  ;;  %s7154_s11 = sld [smem:[%s9577_s0 + %s8285_s8]]  }
0x1110   :  { %8073 = vmatprep.subr.bf16.mxu0 %v8263_v54 }
0x1116   :  { %7809 = vmatmul.mubr.msk.f32.vlgmr.msra.gmra.mrb[24].mxu0 %vm631_vm1, %v5380_v60 }
0x1117   :  { %8075 = vmatpush3.bf16.msra.mxu0 %v8074_v52  ;;  %7815 = vmatprep.mubr.msk.f32.mxu0 %vm8264_vm5, %v8242_v19 }
0x1118   :  { %8086 = vmatprep.subr.bf16.mxu0 %v8263_v54 }
0x111e   :  { %7816 = vmatmul.mubr.msk.f32.vlgmr.msra.gmra.mrb[24].mxu0 %vm631_vm1, %v5464_v49 }
0x111f   :  { %7837 = vmatprep.mubr.msk.f32.mxu0 %vm8264_vm5, %v8242_v19 }
0x11f1   :  { %v5533_v25 = vpop.f32.mrb[24].mxu0 }
0x11f2   :  { %v5539_v40 = vcombine.high %v5533_v25, %v5533_v25  ;;  %v5546_v39 = vrot.slane %v5533_v25, %v8338_v23  ;;  %v7817_v34 = vpop.f32.mrb[25].mxu0 }
0x11f4   :  { %v5553_v55 = vrot.slane %v5539_v40, %v8338_v23  ;;  %v5554_v16 = vcombine.high %v5546_v39, %v5546_v39  ;;  %v5562_v13 = vrot.slane %v5546_v39, %v8338_v23  ;;  %v5756_v40 = vld [vmem:[%s9385_s3] sm:$0xff]  ;;  %v5757_v39 = vld [vmem:[%s9385_s3 + $0x8] sm:$0xff] }
0x11f6   :  { %v5555_v22 = vcombine.high %v5553_v55, %v5553_v55  ;;  %5584 = vrot.lane.b32.xlu0 %v5562_v13, %s8276_s27  ;;  %v5569_v61 = vrot.slane %v5554_v16, %v8338_v23  ;;  %v5576_v58 = vrot.slane %v5553_v55, %v8338_v23  ;;  %v8090_v55 = vpack.c.bf16 %v5757_v39, %v5756_v40 }
0x11f8   :  { %5586 = vrot.lane.b32.xlu1 %v5569_v61, %s8276_s27  ;;  %v5583_v36 = vrot.slane %v5555_v22, %v8338_v23  ;;  %v7301_v22 = vld [vmem:[%s9385_s3 + $0x20] sm:$0xff]  ;;  %v7302_v61 = vld [vmem:[%s9385_s3 + $0x28] sm:$0xff] }
0x11fa   :  { %5588 = vrot.lane.b32.xlu0 %v5576_v58, %s8276_s27  ;;  %v8093_v58 = vpack.c.bf16 %v7302_v61, %v7301_v22 }
0x11fc   :  { %5590 = vrot.lane.b32.xlu1 %v5583_v36, %s8276_s27  ;;  %s8283_s27 = smov 42  }
0x11fd   :  { %s7153_s29 = sld [smem:[%s9577_s0 + %s8283_s27]]  }
0x1268   :  { %v5585_v32 = vpop.permute.xlu0 %5584 }
0x1269   :  { %v9358_v0 = vsel %vm5163_vm11, %v9275_v29, %v5585_v32  ;;  %v6109_v32 = vld [vmem:[%s9420_s12 + $0x8] sm:$0xff] }
0x126a   :  { %v5605_v53 = vmul.f32 %v7291_v20, %v9358_v0  ;;  %v5587_v33 = vpop.permute.xlu1 %5586 }
0x126b   :  { %v9363_v9 = vsel %vm5163_vm11, %v9280_v43, %v5587_v33 }
0x126c   :  { %v5606_v47 = vmul.f32 %v7291_v20, %v9363_v9  ;;  %v5589_v51 = vpop.permute.xlu0 %5588  ;;  %v5614_v7 = vadd.f32 %v7292_v6, %v5605_v53 }
0x126d   :  { %v9368_v4 = vsel %vm5163_vm11, %v9285_v18, %v5589_v51 }
0x126e   :  { %v5615_v42 = vadd.f32 %v7292_v6, %v5606_v47  ;;  %v5607_v29 = vmul.f32 %v7291_v20, %v9368_v4  ;;  %v5591_v14 = vpop.permute.xlu1 %5590  ;;  %v5618_v37 = vmax.f32 %v5614_v7, 0.0  ;;  %v6110_v7 = vld [vmem:[%s9420_s12 + $0x10] sm:$0xff] }
0x126f   :  { %v9373_v8 = vsel %vm5163_vm11, %v9290_v3, %v5591_v14  ;;  %v7297_v3 = vld [vmem:[%s9385_s3 + $0x10] sm:$0xff]  ;;  %s7152_s3 = sld [smem:[%s9577_s0 + %s8284_s30]]  }
0x1270   :  { %v5619_v57 = vmax.f32 %v5615_v42, 0.0  ;;  %v5616_v62 = vadd.f32 %v7292_v6, %v5607_v29  ;;  %v5608_v43 = vmul.f32 %v7291_v20, %v9373_v8  ;;  %v8087_v30 = vpack.c.bf16 %v7298_v28, %v7297_v3  ;;  %v6108_v20 = vld [vmem:[%s9420_s12] sm:$0xff]  ;;  %v6111_v42 = vld [vmem:[%s9420_s12 + $0x18] sm:$0xff] }
0x1271   :  { %v8096_v53 = vpack.c.bf16 %v6109_v32, %v6108_v20  ;;  %v7308_v32 = vld [vmem:[%s7150_s13] ss:$0 sm:$0xff] }
0x1272   :  { %v5617_v38 = vadd.f32 %v7292_v6, %v5608_v43  ;;  %v5632_v12 = vcombine.low %v5618_v37, %v5619_v57  ;;  %v5620_v26 = vmax.f32 %v5616_v62, 0.0  ;;  %8088 = vmatpush3.bf16.msra.mxu0 %v8087_v30  ;;  %v8099_v62 = vpack.c.bf16 %v6111_v42, %v6110_v7 }
0x1273   :  { %8089 = vmatprep.subr.bf16.mxu0 %v8263_v54 }
0x1274   :  { %v5621_v5 = vmax.f32 %v5617_v38, 0.0  ;;  %v5640_v15 = vrot.slane %v5632_v12, %v8338_v23  ;;  %v6112_v38 = vld [vmem:[%s9420_s12 + $0x20] sm:$0xff]  ;;  %v6113_v12 = vld [vmem:[%s9420_s12 + $0x28] sm:$0xff] }
0x1276   :  { %v5633_v18 = vcombine.low %v5620_v26, %v5621_v5  ;;  %v8102_v5 = vpack.c.bf16 %v6113_v12, %v6112_v38  ;;  %v7315_v38 = vld [vmem:[%s7153_s29 + $0x18] sm:$0xff] }
0x1278   :  { %v5647_v27 = vrot.slane %v5633_v18, %v8338_v23 }
0x127a   :  { %v5648_v11 = vcombine.low %v5640_v15, %v5647_v27  ;;  %v6114_v15 = vld [vmem:[%s9420_s12 + $0x30] sm:$0xf]  ;;  %v7304_v27 = vld [vmem:[%s7148_s18] ss:$0 sm:$0xff] }
0x127c   :  { %7831 = vmatmul.mubr.msk.f32.vlgmr.msra.gmra.mrb[18].mxu1 %vm5649_vm12, %v5648_v11 }
0x127d   :  { %7868 = vmatprep.mubr.msk.f32.mxu1 %vm8264_vm5, %v8242_v19  ;;  %8097 = vmatpush3.bf16.msra.mxu1 %v8096_v53 }
0x127e   :  { %8098 = vmatprep.subr.bf16.mxu1 %v8263_v54 }
0x1281   :  { %8100 = vmatpush3.bf16.msra.mxu1 %v8099_v62 }
0x1282   :  { %8101 = vmatprep.subr.bf16.mxu1 %v8263_v54 }
0x1285   :  { %8103 = vmatpush3.bf16.msra.mxu1 %v8102_v5 }
0x1286   :  { %7866 = vmatprep.subr.mxu1 %v8242_v19 }
0x1289   :  { %7867 = vmatpush3.msk.msra.mxu1 %vm4196_vm6, %v6114_v15 }
0x128a   :  { %8111 = vmatprep.subr.bf16.mxu1 %v8263_v54 }
0x134f   :  { %v5721_v10 = vpop.f32.mrb[18].mxu1 }
0x1350   :  { %v5730_v17 = vmul.f32 %v7295_v21, %v5721_v10  ;;  %v7832_v1 = vpop.f32.mrb[19].mxu1  ;;  %v7305_v21 = vld [vmem:[%s7148_s18 + $0x1] ss:$0 sm:$0xff] }
0x1352   :  { %v5736_v2 = vadd.f32 %v7296_v31, %v5730_v17 }
0x1354   :  { %v5737_v52 = vmax.f32 %v5736_v2, 0.0 }
0x1356   :  { %v5739_v63 = vcombine.high %v5737_v52, %v5737_v52  ;;  %v5746_v60 = vrot.slane %v5737_v52, %v8338_v23 }
0x1358   :  { %v5753_v35 = vrot.slane %v5739_v63, %v8338_v23  ;;  %v5754_v49 = vcombine.high %v5746_v60, %v5746_v60  ;;  %v5850_v46 = vcombine.low %v8242_v19, %v5746_v60 }
0x135a   :  { %v5755_v25 = vcombine.high %v5753_v35, %v5753_v35  ;;  %v5761_v50 = vcombine.low %v5746_v60, %v5754_v49  ;;  %v5851_v16 = vcombine.low %v5754_v49, %v5753_v35  ;;  %v5858_v56 = vrot.slane %v5850_v46, %v8338_v23  ;;  %v6256_v46 = vld [vmem:[%s7151_s21 + $0x10] sm:$0xff] }
0x135c   :  { %v5762_v24 = vcombine.low %v5753_v35, %v5755_v25  ;;  %v5769_v34 = vrot.slane %v5761_v50, %v8338_v23  ;;  %v5865_v48 = vrot.slane %v5851_v16, %v8338_v23  ;;  %v5942_v41 = vcombine.low %v5755_v25, %v8242_v19  ;;  %v6255_v16 = vld [vmem:[%s7151_s21 + $0x8] sm:$0xff] }
0x135e   :  { %v5776_v45 = vrot.slane %v5762_v24, %v8338_v23  ;;  %v5866_v59 = vcombine.low %v5858_v56, %v5865_v48  ;;  %v5949_v36 = vrot.slane %v5942_v41, %v8338_v23 }
0x1360   :  { %v5777_v13 = vcombine.low %v5769_v34, %v5776_v45  ;;  %v5950_v44 = vcombine.low %v5865_v48, %v5949_v36  ;;  %v6257_v48 = vld [vmem:[%s7151_s21 + $0x18] sm:$0x3] }
0x1361   :  { %v8108_v22 = vpack.c.bf16 %v6257_v48, %v6256_v46  ;;  %v7321_v46 = vld [vmem:[%s7154_s11] ss:$0 sm:$0xff] }
0x1362   :  { %7838 = vmatmul.mubr.msk.f32.vlgmr.msra.gmra.mrb[26].mxu0 %vm631_vm1, %v5777_v13 }
0x1363   :  { %8091 = vmatpush3.bf16.msra.mxu0 %v8090_v55  ;;  %7844 = vmatprep.mubr.msk.f32.mxu0 %vm8264_vm5, %v8242_v19 }
0x1364   :  { %8092 = vmatprep.subr.bf16.mxu0 %v8263_v54 }
0x136a   :  { %7845 = vmatmul.mubr.msk.f32.vlgmr.msra.gmra.mrb[26].mxu0 %vm631_vm1, %v5866_v59 }
0x136b   :  { %8094 = vmatpush3.bf16.msra.mxu0 %v8093_v58  ;;  %7851 = vmatprep.mubr.msk.f32.mxu0 %vm8264_vm5, %v8242_v19 }
0x136c   :  { %8104 = vmatprep.subr.bf16.mxu0 %v8263_v54 }
0x1372   :  { %7852 = vmatmul.mubr.msk.f32.vlgmr.msra.gmra.mrb[26].mxu0 %vm631_vm1, %v5950_v44 }
0x1373   :  { %7879 = vmatprep.mubr.msk.f32.mxu0 %vm8264_vm5, %v8242_v19 }
0x1445   :  { %v6019_v33 = vpop.f32.mrb[26].mxu0 }
0x1446   :  { %v6025_v6 = vcombine.high %v6019_v33, %v6019_v33  ;;  %v6032_v47 = vrot.slane %v6019_v33, %v8338_v23  ;;  %v7853_v51 = vpop.f32.mrb[27].mxu0 }
0x1448   :  { %v6039_v29 = vrot.slane %v6025_v6, %v8338_v23  ;;  %v6040_v14 = vcombine.high %v6032_v47, %v6032_v47  ;;  %v6048_v57 = vrot.slane %v6032_v47, %v8338_v23  ;;  %v7309_v6 = vld [vmem:[%s7150_s13 + $0x1] ss:$0 sm:$0xff] }
0x144a   :  { %v6041_v43 = vcombine.high %v6039_v29, %v6039_v29  ;;  %6070 = vrot.lane.b32.xlu0 %v6048_v57, %s8280_s14  ;;  %v6055_v37 = vrot.slane %v6040_v14, %v8338_v23  ;;  %v6062_v26 = vrot.slane %v6039_v29, %v8338_v23 }
0x144c   :  { %6072 = vrot.lane.b32.xlu1 %v6055_v37, %s8280_s14  ;;  %v6069_v18 = vrot.slane %v6041_v43, %v8338_v23  ;;  %v7314_v37 = vld [vmem:[%s7153_s29 + $0x10] sm:$0xff] }
0x144d   :  { %v8112_v12 = vpack.c.bf16 %v7315_v38, %v7314_v37 }
0x144e   :  { %6074 = vrot.lane.b32.xlu0 %v6062_v26, %s8280_s14  ;;  %v7312_v26 = vld [vmem:[%s7152_s3] ss:$0 sm:$0xff] }
0x1450   :  { %6076 = vrot.lane.b32.xlu1 %v6069_v18, %s8280_s14  ;;  %v7313_v18 = vld [vmem:[%s7152_s3 + $0x1] ss:$0 sm:$0xff] }
0x14bc   :  { %v6071_v11 = vpop.permute.xlu0 %6070 }
0x14bd   :  { %v6082_v3 = vsel %vm5649_vm12, %v9358_v0, %v6071_v11 }
0x14be   :  { %v6091_v28 = vmul.f32 %v7304_v27, %v6082_v3  ;;  %v6073_v30 = vpop.permute.xlu1 %6072 }
0x14bf   :  { %v6083_v10 = vsel %vm5649_vm12, %v9363_v9, %v6073_v30 }
0x14c0   :  { %v6092_v31 = vmul.f32 %v7304_v27, %v6083_v10  ;;  %v6075_v17 = vpop.permute.xlu0 %6074  ;;  %v6100_v2 = vadd.f32 %v7305_v21, %v6091_v28  ;;  %v6368_v10 = vld [vmem:[%s7153_s29 + $0x8] sm:$0xff] }
0x14c1   :  { %v6084_v1 = vsel %vm5649_vm12, %v9368_v4, %v6075_v17 }
0x14c2   :  { %v6101_v52 = vadd.f32 %v7305_v21, %v6092_v31  ;;  %v6093_v63 = vmul.f32 %v7304_v27, %v6084_v1  ;;  %v6077_v60 = vpop.permute.xlu1 %6076  ;;  %v6104_v50 = vmax.f32 %v6100_v2, 0.0 }
0x14c3   :  { %v6085_v35 = vsel %vm5649_vm12, %v9373_v8, %v6077_v60  ;;  %v6254_v8 = vld [vmem:[%s7151_s21] sm:$0xff] }
0x14c4   :  { %v6105_v49 = vmax.f32 %v6101_v52, 0.0  ;;  %v6102_v0 = vadd.f32 %v7305_v21, %v6093_v63  ;;  %v6094_v25 = vmul.f32 %v7304_v27, %v6085_v35  ;;  %v8105_v13 = vpack.c.bf16 %v6255_v16, %v6254_v8  ;;  %v7318_v52 = vld [vmem:[%s7153_s29 + $0x20] sm:$0xff]  ;;  %v7319_v63 = vld [vmem:[%s7153_s29 + $0x28] sm:$0xff] }
0x14c5   :  { %v8118_v60 = vpack.c.bf16 %v7319_v63, %v7318_v52  ;;  %v6667_v16 = vld [vmem:[%s7155_s7 + $0x20] sm:$0x3] }
0x14c6   :  { %v6103_v24 = vadd.f32 %v7305_v21, %v6094_v25  ;;  %v6119_v40 = vcombine.low %v6104_v50, %v6105_v49  ;;  %v6106_v39 = vmax.f32 %v6102_v0, 0.0  ;;  %8106 = vmatpush3.bf16.msra.mxu0 %v8105_v13  ;;  %v6367_v21 = vld [vmem:[%s7153_s29] sm:$0xff]  ;;  %v6664_v50 = vld [vmem:[%s7155_s7 + $0x8] sm:$0xff] }
0x14c7   :  { %8107 = vmatprep.subr.bf16.mxu0 %v8263_v54  ;;  %v8115_v17 = vpack.c.bf16 %v6368_v10, %v6367_v21  ;;  %v6663_v25 = vld [vmem:[%s7155_s7] sm:$0xff] }
0x14c8   :  { %v6107_v9 = vmax.f32 %v6103_v24, 0.0  ;;  %v6127_v45 = vrot.slane %v6119_v40, %v8338_v23  ;;  %v8121_v24 = vpack.c.bf16 %v6664_v50, %v6663_v25 }
0x14ca   :  { %v6120_v34 = vcombine.low %v6106_v39, %v6107_v9  ;;  %8110 = vmatpush3.bf16.msk.msra.mxu0 %vm8109_vm15, %v8108_v22  ;;  %v6665_v39 = vld [vmem:[%s7155_s7 + $0x10] sm:$0xff]  ;;  %v6666_v9 = vld [vmem:[%s7155_s7 + $0x18] sm:$0xff]  ;;  %v7322_v22 = vld [vmem:[%s7154_s11 + $0x1] ss:$0 sm:$0xff] }
0x14cb   :  { %8120 = vmatprep.subr.bf16.mxu0 %v8263_v54 }
0x14cc   :  { %v6134_v4 = vrot.slane %v6120_v34, %v8338_v23 }
0x14ce   :  { %v6135_v55 = vcombine.low %v6127_v45, %v6134_v4  ;;  %v8124_v4 = vpack.c.bf16 %v6666_v9, %v6665_v39  ;;  %v7337_v9 = vld [vmem:[%s7159_s23 + $0x1] ss:$0 sm:$0xff] }
0x14d0   :  { %7869 = vmatmul.mubr.msk.f32.vlgmr.msra.gmra.mrb[20].mxu1 %vm6136_vm13, %v6135_v55 }
0x14d1   :  { %7886 = vmatprep.mubr.msk.f32.mxu1 %vm8264_vm5, %v8242_v19  ;;  %8113 = vmatpush3.bf16.msra.mxu1 %v8112_v12 }
0x14d2   :  { %8114 = vmatprep.subr.bf16.mxu1 %v8263_v54 }
0x15a3   :  { %v6208_v61 = vpop.f32.mrb[20].mxu1 }
0x15a4   :  { %v6213_v56 = vcombine.high %v6208_v61, %v6208_v61  ;;  %v6220_v58 = vrot.slane %v6208_v61, %v8338_v23  ;;  %v7870_v41 = vpop.f32.mrb[21].mxu1 }
0x15a6   :  { %v6227_v59 = vrot.slane %v6213_v56, %v8338_v23  ;;  %v6228_v36 = vcombine.high %v6220_v58, %v6220_v58 }
0x15a8   :  { %v6229_v44 = vcombine.high %v6227_v59, %v6227_v59  ;;  %v6234_v20 = vadd.f32 %v6228_v36, %v6220_v58 }
0x15aa   :  { %v6235_v53 = vadd.f32 %v6229_v44, %v6227_v59  ;;  %v9472_v33 = vmul.f32 0.5, %v6234_v20 }
0x15ac   :  { %v9474_v47 = vmul.f32 0.5, %v6235_v53  ;;  %v6243_v51 = vmul.f32 %v7308_v32, %v9472_v33 }
0x15ae   :  { %v6244_v7 = vmul.f32 %v7308_v32, %v9474_v47  ;;  %v6250_v42 = vadd.f32 %v7309_v6, %v6243_v51 }
0x15b0   :  { %v6251_v29 = vadd.f32 %v7309_v6, %v6244_v7  ;;  %v6252_v14 = vmax.f32 %v6250_v42, 0.0  ;;  %v7325_v7 = vld [vmem:[%s7156_s19] ss:$0 sm:$0xff] }
0x15b2   :  { %v6253_v57 = vmax.f32 %v6251_v29, 0.0  ;;  %v7326_v29 = vld [vmem:[%s7156_s19 + $0x1] ss:$0 sm:$0xff] }
0x15b4   :  { %v6260_v62 = vcombine.low %v6252_v14, %v6253_v57 }
0x15b6   :  { %v6267_v43 = vrot.slane %v6260_v62, %v8338_v23 }
0x15b8   :  { %7880 = vmatmul.mubr.msk.f32.vlgmr.msra.gmra.mrb[28].mxu0 %vm6268_vm0, %v6267_v43 }
0x15b9   :  { %7913 = vmatprep.mubr.msk.f32.mxu0 %vm8264_vm5, %v8242_v19  ;;  %8122 = vmatpush3.bf16.msra.mxu0 %v8121_v24  ;;  %v7336_v24 = vld [vmem:[%s7159_s23] ss:$0 sm:$0xff] }
0x15ba   :  { %8123 = vmatprep.subr.bf16.mxu0 %v8263_v54 }
0x15bd   :  { %8125 = vmatpush3.bf16.msra.mxu0 %v8124_v4 }
0x15be   :  { %7911 = vmatprep.subr.mxu0 %v8242_v19 }
0x15c1   :  { %7912 = vmatpush3.msk.msra.mxu0 %vm6271_vm14, %v6667_v16 }
0x168b   :  { %v6341_v5 = vpop.f32.mrb[28].mxu0 }
0x168c   :  { %v6350_v15 = vmul.f32 %v7312_v26, %v6341_v5  ;;  %v7881_v27 = vpop.f32.mrb[29].mxu0 }
0x168e   :  { %v6356_v11 = vadd.f32 %v7313_v18, %v6350_v15 }
0x1690   :  { %v6357_v3 = vmax.f32 %v6356_v11, 0.0 }
0x1692   :  { %v6365_v28 = vrot.slane %v6357_v3, %v8338_v23 }
0x1694   :  { %v6366_v30 = vcombine.high %v6365_v28, %v6365_v28  ;;  %v6452_v2 = vcombine.low %v8242_v19, %v6365_v28 }
0x1696   :  { %v6372_v31 = vcombine.low %v6365_v28, %v6366_v30  ;;  %v6459_v35 = vrot.slane %v6452_v2, %v8338_v23  ;;  %v6535_v49 = vcombine.low %v6366_v30, %v8242_v19 }
0x1698   :  { %v6379_v1 = vrot.slane %v6372_v31, %v8338_v23  ;;  %v6542_v0 = vrot.slane %v6535_v49, %v8338_v23 }
0x169a   :  { %7887 = vmatmul.mubr.msk.f32.vlgmr.msra.gmra.mrb[22].mxu1 %vm631_vm1, %v6379_v1 }
0x169b   :  { %8116 = vmatpush3.bf16.msra.mxu1 %v8115_v17  ;;  %7893 = vmatprep.mubr.msk.f32.mxu1 %vm8264_vm5, %v8242_v19 }
0x169c   :  { %8117 = vmatprep.subr.bf16.mxu1 %v8263_v54 }
0x16a2   :  { %7894 = vmatmul.mubr.msk.f32.vlgmr.msra.gmra.mrb[22].mxu1 %vm631_vm1, %v6459_v35 }
0x16a3   :  { %8119 = vmatpush3.bf16.msra.mxu1 %v8118_v60  ;;  %7900 = vmatprep.mubr.msk.f32.mxu1 %vm8264_vm5, %v8242_v19  ;;  %v7335_v60 = vld [vmem:[%s7158_s24 + $0x1] ss:$0 sm:$0xff] }
0x16a4   :  { %8126 = vmatprep.subr.bf16.mxu1 %v8263_v54 }
0x16aa   :  { %7901 = vmatmul.mubr.msk.f32.vlgmr.msra.gmra.mrb[22].mxu1 %vm631_vm1, %v6542_v0 }
0x16ab   :  { %7920 = vmatprep.mubr.msk.f32.mxu1 %vm8264_vm5, %v8242_v19 }
0x177d   :  { %v6611_v40 = vpop.f32.mrb[22].mxu1 }
0x177e   :  { %v6623_v34 = vrot.slane %v6611_v40, %v8338_v23  ;;  %v7902_v45 = vpop.f32.mrb[23].mxu1 }
0x1780   :  { %v6624_v55 = vcombine.high %v6623_v34, %v6623_v34  ;;  %v6631_v8 = vrot.slane %v6623_v34, %v8338_v23 }
0x1782   :  { %6639 = vrot.lane.b32.xlu0 %v6631_v8, %s8267_s5  ;;  %v6638_v13 = vrot.slane %v6624_v55, %v8338_v23 }
0x1784   :  { %6641 = vrot.lane.b32.xlu1 %v6638_v13, %s8267_s5  ;;  %s8286_s5 = smov 46  }
0x1785   :  { %s7157_s15 = sld [smem:[%s9577_s0 + %s8286_s5]]  }
0x178b   :  { %v6776_v12 = vld [vmem:[%s7157_s15] sm:$0xff]  ;;  %v6777_v26 = vld [vmem:[%s7157_s15 + $0x8] sm:$0xff] }
0x178c   :  { %v8130_v18 = vpack.c.bf16 %v6777_v26, %v6776_v12  ;;  %v7331_v11 = vld [vmem:[%s7157_s15 + $0x20] sm:$0xff]  ;;  %v7332_v3 = vld [vmem:[%s7157_s15 + $0x28] sm:$0xff] }
0x178d   :  { %v8133_v28 = vpack.c.bf16 %v7332_v3, %v7331_v11 }
0x17f4   :  { %v6640_v48 = vpop.permute.xlu0 %6639 }
0x17f5   :  { %v9523_v61 = vsel %vm6268_vm0, %v9472_v33, %v6640_v48  ;;  %v7327_v33 = vld [vmem:[%s7157_s15 + $0x10] sm:$0xff] }
0x17f6   :  { %v6652_v56 = vmul.f32 %v7321_v46, %v9523_v61  ;;  %v6642_v58 = vpop.permute.xlu1 %6641 }
0x17f7   :  { %v9528_v41 = vsel %vm6268_vm0, %v9474_v47, %v6642_v58  ;;  %v7328_v47 = vld [vmem:[%s7157_s15 + $0x18] sm:$0xff] }
0x17f8   :  { %v6659_v59 = vadd.f32 %v7322_v22, %v6652_v56  ;;  %v6653_v36 = vmul.f32 %v7321_v46, %v9528_v41  ;;  %v8127_v51 = vpack.c.bf16 %v7328_v47, %v7327_v33 }
0x17fa   :  { %v6660_v44 = vadd.f32 %v7322_v22, %v6653_v36  ;;  %v6661_v20 = vmax.f32 %v6659_v59, 0.0  ;;  %8128 = vmatpush3.bf16.msra.mxu1 %v8127_v51 }
0x17fb   :  { %8129 = vmatprep.subr.bf16.mxu1 %v8263_v54 }
0x17fc   :  { %v6662_v32 = vmax.f32 %v6660_v44, 0.0 }
0x17fe   :  { %v6670_v53 = vcombine.low %v6661_v20, %v6662_v32 }
0x1800   :  { %v6677_v6 = vrot.slane %v6670_v53, %v8338_v23 }
0x1802   :  { %7914 = vmatmul.mubr.msk.f32.vlgmr.msra.gmra.mrb[30].mxu0 %vm6678_vm2, %v6677_v6 }
0x18d5   :  { %v6750_v42 = vpop.f32.mrb[30].mxu0 }
0x18d6   :  { %v6759_v14 = vmul.f32 %v7325_v7, %v6750_v42  ;;  %v7915_v57 = vpop.f32.mrb[31].mxu0 }
0x18d8   :  { %v6765_v62 = vadd.f32 %v7326_v29, %v6759_v14 }
0x18da   :  { %v6766_v43 = vmax.f32 %v6765_v62, 0.0 }
0x18dc   :  { %v6774_v37 = vrot.slane %v6766_v43, %v8338_v23 }
0x18de   :  { %v6775_v38 = vcombine.high %v6774_v37, %v6774_v37  ;;  %v6861_v27 = vcombine.low %v8242_v19, %v6774_v37 }
0x18e0   :  { %v6781_v5 = vcombine.low %v6774_v37, %v6775_v38  ;;  %v6868_v30 = vrot.slane %v6861_v27, %v8338_v23  ;;  %v6944_v21 = vcombine.low %v6775_v38, %v8242_v19 }
0x18e2   :  { %v6788_v15 = vrot.slane %v6781_v5, %v8338_v23  ;;  %v6951_v10 = vrot.slane %v6944_v21, %v8338_v23 }
0x18e4   :  { %7921 = vmatmul.mubr.msk.f32.vlgmr.msra.gmra.mrb[24].mxu1 %vm631_vm1, %v6788_v15 }
0x18e5   :  { %8131 = vmatpush3.bf16.msra.mxu1 %v8130_v18  ;;  %7927 = vmatprep.mubr.msk.f32.mxu1 %vm8264_vm5, %v8242_v19 }
0x18e6   :  { %8132 = vmatprep.subr.bf16.mxu1 %v8263_v54 }
0x18ec   :  { %7928 = vmatmul.mubr.msk.f32.vlgmr.msra.gmra.mrb[24].mxu1 %vm631_vm1, %v6868_v30 }
0x18ed   :  { %8134 = vmatpush3.bf16.msra.mxu1 %v8133_v28  ;;  %7934 = vmatprep.mubr.msk.f32.mxu1 %vm8264_vm5, %v8242_v19  ;;  %v7334_v19 = vld [vmem:[%s7158_s24] ss:$0 sm:$0xff] }
0x18f4   :  { %7935 = vmatmul.mubr.msk.f32.vlgmr.msra.gmra.mrb[24].mxu1 %vm631_vm1, %v6951_v10  ;;  %vm7088_vm1 = vcmask 336896  }
0x19c7   :  { %v7020_v31 = vpop.f32.mrb[24].mxu1 }
0x19c8   :  { %v7032_v54 = vrot.slane %v7020_v31, %v8338_v23  ;;  %v7936_v17 = vpop.f32.mrb[25].mxu1 }
0x19ca   :  { %v7033_v1 = vcombine.high %v7032_v54, %v7032_v54  ;;  %v7040_v2 = vrot.slane %v7032_v54, %v8338_v23 }
0x19cc   :  { %7048 = vrot.lane.b32.xlu0 %v7040_v2, %s8275_s26  ;;  %v7047_v52 = vrot.slane %v7033_v1, %v8338_v23 }
0x19ce   :  { %7050 = vrot.lane.b32.xlu1 %v7047_v52, %s8275_s26  ;;  %s8290_s26 = smov 49  }
0x19cf   :  { %s7160_s30 = sld [smem:[%s9577_s0 + %s8290_s26]]  }
0x19d5   :  { %v106_v16 = vstv %s7160_s30 }
0x19d6   :  { %107 = vst [vmem:[#allocation2] sm:$0x1] %v106_v16 }
0x19dd   :  { %v7338_v22 = vld [vmem:[#allocation2] ss:$0 sm:$0xff] }
0x1a3e   :  { %v7049_v63 = vpop.permute.xlu0 %7048 }
0x1a3f   :  { %v7054_v35 = vsel %vm6678_vm2, %v9523_v61, %v7049_v63 }
0x1a40   :  { %v7061_v49 = vmul.f32 %v7334_v19, %v7054_v35  ;;  %v7051_v23 = vpop.permute.xlu1 %7050 }
0x1a41   :  { %v7055_v0 = vsel %vm6678_vm2, %v9528_v41, %v7051_v23 }
0x1a42   :  { %v7068_v25 = vadd.f32 %v7335_v60, %v7061_v49  ;;  %v7062_v50 = vmul.f32 %v7334_v19, %v7055_v0 }
0x1a44   :  { %v7069_v40 = vadd.f32 %v7335_v60, %v7062_v50  ;;  %v7070_v39 = vmax.f32 %v7068_v25, 0.0 }
0x1a46   :  { %v7086_v34 = vmul.f32 %v7336_v24, %v7070_v39  ;;  %v7071_v45 = vmax.f32 %v7069_v40, 0.0 }
0x1a48   :  { %v7089_v4 = vsel %vm7088_vm1, %v7086_v34, 0.0  ;;  %v7087_v55 = vmul.f32 %v7337_v9, %v7071_v45 }
0x1a49   :  { %7090 = vadd.xlane.f32.xlu0 %v7089_v4 }
0x1a4a   :  { %v7092_v8 = vsel %vm7088_vm1, %v7087_v55, 0.0 }
0x1a4b   :  { %7093 = vadd.xlane.f32.xlu1 %v7092_v8 }
0x1ad6   :  { %v7091_v13 = vpop.xlane.xlu0 %7090 }
0x1ad7   :  { %v7095_v48 = vsel %vm6271_vm14, %v7091_v13, 0.0 }
0x1ad8   :  { %v7094_v46 = vpop.xlane.xlu1 %7093 }
0x1ad9   :  { %v7096_v61 = vsel %vm6271_vm14, %v7094_v46, 0.0 }
0x1ada   :  { %v7097_v56 = vadd.f32 %v7096_v61, %v7095_v48 }
0x1adc   :  { %v7105_v58 = vadd.f32 %v7338_v22, %v7097_v56 }
0x1ade   :  { %7107 = vst.msk [vmem:[%s7161_s4] sm:$0x3] %vm7106_vm3, %v7105_v58 }

</bundles_post_ra>
